<compile_context>
chip_gen: v7x
topology: tpu7x:2x2x1
jax: 0.10.0
libtpu: 0.0.40
codegen_flags: <defaults>
</compile_context>

<pallas_src>
import functools

import numpy as np

import jax
import jax.numpy as jnp
from jax import lax
from jax.experimental import pallas as pl
from jax.experimental.pallas import tpu as pltpu

EPS = 1e-5
LANE = 128
# MXU input dtype (accumulation is always f32).  Set to jnp.float32 for max
# accuracy (error < 1e-3); bf16 keeps the error at the ~1e-2 level but halves
# DMA bytes and runs the MXU at full bf16 rate on v6e/v7x.
COMPUTE_DTYPE = jnp.bfloat16
TOKEN_TILE = 256  # row tile (tokens) for the token-wise kernels

_COMPILER_PARAMS = pltpu.CompilerParams(
    dimension_semantics=("parallel",),
    vmem_limit_bytes=32 * 1024 * 1024,
)


def _rup(x, m):
    return (x + m - 1) // m * m


# ----------------------------------------------------------------------------
# In-kernel helpers
# ----------------------------------------------------------------------------
def _bn_scale_shift(bn_ref, inv_count):
    """bn_ref rows: 0=sum, 1=sum_sq, 2=gamma, 3=beta  ->  (scale, shift)."""
    mean = bn_ref[0:1, :] * inv_count
    ex2 = bn_ref[1:2, :] * inv_count
    var = ex2 - mean * mean
    scale = bn_ref[2:3, :] * lax.rsqrt(var + EPS)
    shift = bn_ref[3:4, :] - mean * scale
    return scale, shift


def _conv3x3_compute(x, w_ref, mask_ref, y_ref, st_ref, *, H, W):
    """3x3 conv (zero padding, stride 1) as 9 shifted matmuls on the flattened
    padded token grid.  x: (BPE, cin_p) in COMPUTE_DTYPE."""
    Wp = W + 2
    BP = (H + 2) * Wp
    guard = W + 3
    cin_p = x.shape[1]
    cout_p = y_ref.shape[-1]

    acc = jnp.zeros((BP, cout_p), jnp.float32)
    for t in range(9):
        dh, dw = divmod(t, 3)
        start = dh * Wp + dw  # constant row shift for this tap
        acc = acc + jnp.dot(
            x[start:start + BP, :],
            w_ref[t * cin_p:(t + 1) * cin_p, :],
            preferred_element_type=jnp.float32,
        )

    # zero the pad ring so the result can be reused directly as the (padded)
    # input of the next conv, and so the BN stats only count interior tokens.
    y = acc * mask_ref[guard:guard + BP, :]
    y_ref[0] = y

    # per-image partial BN statistics (row 0 = sum, row 1 = sum of squares)
    st_ref[...] = jnp.zeros_like(st_ref)
    st_ref[0:1, :] = jnp.sum(y, axis=0, keepdims=True)
    st_ref[1:2, :] = jnp.sum(y * y, axis=0, keepdims=True)


# ----------------------------------------------------------------------------
# Kernels
# ----------------------------------------------------------------------------
def _conv3x3_kernel(x_ref, w_ref, mask_ref, y_ref, st_ref, *, H, W):
    """conv1: raw 3x3 conv + partial BN stats."""
    _conv3x3_compute(x_ref[0], w_ref, mask_ref, y_ref, st_ref, H=H, W=W)


def _bn_relu_conv3x3_kernel(x_ref, w_ref, mask_ref, bn_ref, y_ref, st_ref,
                            *, H, W, inv_count):
    """conv2: apply bn1+ReLU to the raw conv1 output, re-zero the pad ring,
    then 3x3 conv + partial BN stats."""
    scale, shift = _bn_scale_shift(bn_ref, inv_count)
    a = jnp.maximum(x_ref[0] * scale + shift, 0.0) * mask_ref[...]
    _conv3x3_compute(a.astype(COMPUTE_DTYPE), w_ref, mask_ref, y_ref, st_ref,
                     H=H, W=W)


def _proj_stats_kernel(x_ref, ws_ref, st_ref):
    """Partial BN stats of the 1x1 projection shortcut (s is not stored)."""
    s = jnp.dot(x_ref[...], ws_ref[...], preferred_element_type=jnp.float32)
    st_ref[...] = jnp.zeros_like(st_ref)
    st_ref[0:1, :] = jnp.sum(s, axis=0, keepdims=True)
    st_ref[1:2, :] = jnp.sum(s * s, axis=0, keepdims=True)


def _final_identity_kernel(y2_ref, bn2_ref, xid_ref, out_ref, *, inv_count):
    """out = relu(bn2(y2) + x)  (identity shortcut)."""
    scale, shift = _bn_scale_shift(bn2_ref, inv_count)
    out_ref[...] = jnp.maximum(y2_ref[...] * scale + shift + xid_ref[...], 0.0)


def _final_project_kernel(y2_ref, bn2_ref, x_ref, ws_ref, bns_ref, out_ref,
                          *, inv_count):
    """out = relu(bn2(y2) + bn_s(x @ Ws))  (projection shortcut, recomputed)."""
    s2, h2 = _bn_scale_shift(bn2_ref, inv_count)
    ss, hs = _bn_scale_shift(bns_ref, inv_count)
    s = jnp.dot(x_ref[...], ws_ref[...], preferred_element_type=jnp.float32)
    out_ref[...] = jnp.maximum(y2_ref[...] * s2 + h2 + (s * ss + hs), 0.0)


# ----------------------------------------------------------------------------
# Host-side glue (layout plumbing + tiny stat reductions only)
# ----------------------------------------------------------------------------
def _pad_channels(x, cp):
    c = x.shape[-1]
    if c == cp:
        return x
    return jnp.pad(x, [(0, 0)] * (x.ndim - 1) + [(0, cp - c)])


def _pad_rows(x, rp):
    r = x.shape[0]
    if r == rp:
        return x
    return jnp.pad(x, ((0, rp - r), (0, 0)))


def _pad2(w, rows, cols):
    out = jnp.zeros((rows, cols), jnp.float32)
    return out.at[:w.shape[0], :w.shape[1]].set(w)


def _pack_conv_weight(w_hwio, cin_p, cout_p):
    ci, co = w_hwio.shape[2], w_hwio.shape[3]
    wp = jnp.zeros((3, 3, cin_p, cout_p), jnp.float32)
    wp = wp.at[:, :, :ci, :co].set(w_hwio)
    return wp.reshape(9 * cin_p, cout_p).astype(COMPUTE_DTYPE)


def _interior_mask(H, W, cout_p):
    """(BPE, cout_p) f32 mask: 1 on interior tokens, 0 on pad ring & guard."""
    Wp = W + 2
    BP = (H + 2) * Wp
    guard = W + 3
    m = np.zeros((H + 2, Wp), np.float32)
    m[1:H + 1, 1:W + 1] = 1.0
    me = np.zeros((BP + 2 * guard,), np.float32)
    me[guard:guard + BP] = m.reshape(BP)
    return jnp.asarray(np.tile(me[:, None], (1, cout_p)))


def _pack_bn(st_partial, gamma, beta, cout, cout_p):
    """Sum per-image partials and pack [sum, sum_sq, gamma, beta, 0...] (8, Cp)."""
    s = jnp.sum(st_partial.reshape(-1, 8, cout_p), axis=0)
    g = jnp.concatenate([gamma.astype(jnp.float32),
                         jnp.zeros((cout_p - cout,), jnp.float32)])[None, :]
    b = jnp.concatenate([beta.astype(jnp.float32),
                         jnp.zeros((cout_p - cout,), jnp.float32)])[None, :]
    return jnp.concatenate(
        [s[0:2], g, b, jnp.zeros((4, cout_p), jnp.float32)], axis=0)


def _conv3x3_call(x_guard, w_packed, mask, bn_pack, *, H, W, inv_count):
    """One pallas_call: grid over images, conv (+optional fused bn+relu on the
    input), returns (raw conv on padded grid, per-image partial stats)."""
    N, BPE, cin_p = x_guard.shape
    cout_p = w_packed.shape[1]
    BP = (H + 2) * (W + 2)

    in_specs = [
        pl.BlockSpec((1, BPE, cin_p), lambda n: (n, 0, 0)),
        pl.BlockSpec((9 * cin_p, cout_p), lambda n: (0, 0)),   # resident
        pl.BlockSpec((BPE, cout_p), lambda n: (0, 0)),         # resident
    ]
    args = [x_guard, w_packed, mask]
    if bn_pack is None:
        kernel = functools.partial(_conv3x3_kernel, H=H, W=W)
    else:
        in_specs.append(pl.BlockSpec((8, cin_p), lambda n: (0, 0)))
        args.append(bn_pack)
        kernel = functools.partial(_bn_relu_conv3x3_kernel, H=H, W=W,
                                   inv_count=inv_count)

    y, st = pl.pallas_call(
        kernel,
        grid=(N,),
        in_specs=in_specs,
        out_specs=[pl.BlockSpec((1, BP, cout_p), lambda n: (n, 0, 0)),
                   pl.BlockSpec((8, cout_p), lambda n: (n, 0))],
        out_shape=[jax.ShapeDtypeStruct((N, BP, cout_p), jnp.float32),
                   jax.ShapeDtypeStruct((N * 8, cout_p), jnp.float32)],
        compiler_params=_COMPILER_PARAMS,
    )(*args)
    return y, st


def _residual_block_impl(x_nchw, params):
    N, Cin, H, W = x_nchw.shape
    Cout = params["w1"].shape[-1]
    project = Cin != Cout
    cin_p = _rup(Cin, LANE)
    cout_p = _rup(Cout, LANE)
    R = N * H * W
    inv_count = 1.0 / float(R)
    BP = (H + 2) * (W + 2)
    guard = W + 3

    # NCHW -> NHWC, lane-dense channel padding.
    x_nhwc = jnp.transpose(x_nchw, (0, 2, 3, 1)).astype(jnp.float32)
    x_cp = _pad_channels(x_nhwc, cin_p)                        # (N,H,W,cin_p)

    # Flattened, spatially padded + guarded token grid for the conv kernels.
    xp = jnp.pad(x_cp, ((0, 0), (1, 1), (1, 1), (0, 0)))
    xg = jnp.pad(xp.reshape(N, BP, cin_p),
                 ((0, 0), (guard, guard), (0, 0))).astype(COMPUTE_DTYPE)

    mask = _interior_mask(H, W, cout_p)
    w1 = _pack_conv_weight(params["w1"], cin_p, cout_p)
    w2 = _pack_conv_weight(params["w2"], cout_p, cout_p)

    # ---- conv1 (+ partial bn1 stats) ---------------------------------------
    y1, st1 = _conv3x3_call(xg, w1, mask, None, H=H, W=W, inv_count=inv_count)
    bn1 = _pack_bn(st1, params["g1"], params["b1"], Cout, cout_p)

    # ---- bn1 + relu fused into conv2 (+ partial bn2 stats) -----------------
    y1g = jnp.pad(y1, ((0, 0), (guard, guard), (0, 0)))        # add guard rows
    y2, st2 = _conv3x3_call(y1g, w2, mask, bn1, H=H, W=W, inv_count=inv_count)
    bn2 = _pack_bn(st2, params["g2"], params["b2"], Cout, cout_p)

    # ---- bn2 + shortcut + add + relu (row-tiled over tokens) ---------------
    y2_int = y2.reshape(N, H + 2, W + 2, cout_p)[:, 1:H + 1, 1:W + 1, :]
    y2_rows = y2_int.reshape(R, cout_p)
    TR = TOKEN_TILE
    R_pad = _rup(R, TR)
    G = R_pad // TR
    y2_rows = _pad_rows(y2_rows, R_pad)
    x_int = x_cp.reshape(R, cin_p)

    if project:
        ws = _pad2(params["ws"], cin_p, cout_p).astype(COMPUTE_DTYPE)
        x_rows = _pad_rows(x_int, R_pad).astype(COMPUTE_DTYPE)
        st_s = pl.pallas_call(
            _proj_stats_kernel,
            grid=(G,),
            in_specs=[pl.BlockSpec((TR, cin_p), lambda g: (g, 0)),
                      pl.BlockSpec((cin_p, cout_p), lambda g: (0, 0))],
            out_specs=pl.BlockSpec((8, cout_p), lambda g: (g, 0)),
            out_shape=jax.ShapeDtypeStruct((G * 8, cout_p), jnp.float32),
            compiler_params=_COMPILER_PARAMS,
        )(x_rows, ws)
        bns = _pack_bn(st_s, params["gs"], params["bs"], Cout, cout_p)
        out_rows = pl.pallas_call(
            functools.partial(_final_project_kernel, inv_count=inv_count),
            grid=(G,),
            in_specs=[pl.BlockSpec((TR, cout_p), lambda g: (g, 0)),
                      pl.BlockSpec((8, cout_p), lambda g: (0, 0)),
                      pl.BlockSpec((TR, cin_p), lambda g: (g, 0)),
                      pl.BlockSpec((cin_p, cout_p), lambda g: (0, 0)),
                      pl.BlockSpec((8, cout_p), lambda g: (0, 0))],
            out_specs=pl.BlockSpec((TR, cout_p), lambda g: (g, 0)),
            out_shape=jax.ShapeDtypeStruct((R_pad, cout_p), jnp.float32),
            compiler_params=_COMPILER_PARAMS,
        )(y2_rows, bn2, x_rows, ws, bns)
    else:
        x_rows = _pad_rows(x_int, R_pad)                        # f32 identity
        out_rows = pl.pallas_call(
            functools.partial(_final_identity_kernel, inv_count=inv_count),
            grid=(G,),
            in_specs=[pl.BlockSpec((TR, cout_p), lambda g: (g, 0)),
                      pl.BlockSpec((8, cout_p), lambda g: (0, 0)),
                      pl.BlockSpec((TR, cout_p), lambda g: (g, 0))],
            out_specs=pl.BlockSpec((TR, cout_p), lambda g: (g, 0)),
            out_shape=jax.ShapeDtypeStruct((R_pad, cout_p), jnp.float32),
            compiler_params=_COMPILER_PARAMS,
        )(y2_rows, bn2, x_rows)

    out = out_rows[:R].reshape(N, H, W, cout_p)[..., :Cout]
    return jnp.transpose(out, (0, 3, 1, 2))


residual_block = jax.jit(_residual_block_impl)


# ----------------------------------------------------------------------------
# Parameters (deterministic synthetic; weights in HWIO layout).
# ----------------------------------------------------------------------------
def make_params(key, c_in, c_out):
    k = jax.random.split(key, 9)
    p = {
        "w1": 0.1 * jax.random.normal(k[0], (3, 3, c_in, c_out), jnp.float32),
        "g1": 1.0 + 0.1 * jax.random.normal(k[1], (c_out,), jnp.float32),
        "b1": 0.1 * jax.random.normal(k[2], (c_out,), jnp.float32),
        "w2": 0.1 * jax.random.normal(k[3], (3, 3, c_out, c_out), jnp.float32),
        "g2": 1.0 + 0.1 * jax.random.normal(k[4], (c_out,), jnp.float32),
        "b2": 0.1 * jax.random.normal(k[5], (c_out,), jnp.float32),
    }
    if c_in != c_out:
        p["ws"] = 0.1 * jax.random.normal(k[6], (c_in, c_out), jnp.float32)
        p["gs"] = 1.0 + 0.1 * jax.random.normal(k[7], (c_out,), jnp.float32)
        p["bs"] = 0.1 * jax.random.normal(k[8], (c_out,), jnp.float32)
    return p


# ----------------------------------------------------------------------------
# Pure-JAX reference (f32, HIGHEST precision) for verification.
# ----------------------------------------------------------------------------
def _ref_forward(x_nchw, params):
    Cout = params["w1"].shape[-1]
    project = x_nchw.shape[1] != Cout
    x = jnp.transpose(x_nchw, (0, 2, 3, 1)).astype(jnp.float32)

    def conv(x, w):
        return lax.conv_general_dilated(
            x, w, (1, 1), "SAME",
            dimension_numbers=("NHWC", "HWIO", "NHWC"),
            precision=lax.Precision.HIGHEST)

    def bn(y, g, b):
        m = jnp.mean(y, axis=(0, 1, 2))
        v = jnp.mean((y - m) ** 2, axis=(0, 1, 2))
        return (y - m) * lax.rsqrt(v + EPS) * g + b

    if project:
        ident = bn(jnp.einsum("nhwc,cd->nhwd", x, params["ws"],
                              precision=lax.Precision.HIGHEST),
                   params["gs"], params["bs"])
    else:
        ident = x
    out = jax.nn.relu(bn(conv(x, params["w1"]), params["g1"], params["b1"]))
    out = bn(conv(out, params["w2"]), params["g2"], params["b2"])
    return jnp.transpose(jax.nn.relu(out + ident), (0, 3, 1, 2))


# NOTE: nn.BatchNorm2d's running-stat buffer updates are training bookkeeping
# that do not affect the forward output; they are not modeled here.
if __name__ == "__main__":
    # bf16 MXU inputs (f32 accumulation) -> use a bf16-appropriate tolerance.
    TOL = 5e-2 if COMPUTE_DTYPE == jnp.bfloat16 else 1e-3

    key = jax.random.PRNGKey(0)
    kx, kp1, kp2 = jax.random.split(key, 3)

    # Case 1: in_channels != out_channels (projection shortcut).
    N, Cin, Cout, H, W = 2, 4, 8, 16, 16
    x = jax.random.normal(kx, (N, Cin, H, W), jnp.float32)
    params = make_params(kp1, Cin, Cout)
    out = jax.block_until_ready(residual_block(x, params))
    ref = _ref_forward(x, params)
    assert out.shape == (N, Cout, H, W)
    err1 = float(jnp.max(jnp.abs(out - ref)))
    assert err1 < TOL, err1

    # Case 2: in_channels == out_channels (identity shortcut).
    x2 = jax.random.normal(kx, (N, Cout, H, W), jnp.float32)
    params2 = make_params(kp2, Cout, Cout)
    out2 = jax.block_until_ready(residual_block(x2, params2))
    ref2 = _ref_forward(x2, params2)
    err2 = float(jnp.max(jnp.abs(out2 - ref2)))
    assert err2 < TOL, err2

    print("KERNEL_OK")
</pallas_src>

<mosaic_0001>
module attributes {stable_mosaic.version = 11 : i64} {
  func.func @_proj_stats_kernel(%arg0: i32, %arg1: memref<256x128xbf16, #tpu.memory_space<vmem>>, %arg2: memref<128x128xbf16, #tpu.memory_space<vmem>>, %arg3: memref<8x128xf32, #tpu.memory_space<vmem>>) attributes {dimension_semantics = [#tpu.dimension_semantics<parallel>], iteration_bounds = array<i64: 2>, scalar_prefetch = 0 : i64, scratch_operands = 0 : i64, tpu.core_type = #tpu.core_type<tc>, window_params = [{transform_indices = @transform_0, window_bounds = array<i64: 256, 128>}, {pipeline_mode = #tpu.pipeline_mode<synchronous>, transform_indices = @transform_1, window_bounds = array<i64: 128, 128>}, {transform_indices = @transform_2, window_bounds = array<i64: 8, 128>}]} {
    %c0 = arith.constant 0 : index
    %c0_0 = arith.constant 0 : index
    %0 = vector.load %arg1[%c0, %c0_0] : memref<256x128xbf16, #tpu.memory_space<vmem>>, vector<256x128xbf16>
    %c0_1 = arith.constant 0 : index
    %c0_2 = arith.constant 0 : index
    %1 = vector.load %arg2[%c0_1, %c0_2] : memref<128x128xbf16, #tpu.memory_space<vmem>>, vector<128x128xbf16>
    %cst = arith.constant dense<0.000000e+00> : vector<256x128xf32>
    %2 = tpu.matmul %0, %1, %cst {dimension_numbers = #tpu.dot_dimension_numbers<[1], [0], [0], [1], [0, 0, 1, 1], [], []>} : vector<256x128xbf16>, vector<128x128xbf16>, vector<256x128xf32> -> vector<256x128xf32>
    %cst_3 = arith.constant 0.000000e+00 : f32
    %3 = vector.broadcast %cst_3 : f32 to vector<8x128xf32>
    %c0_4 = arith.constant 0 : index
    %c0_5 = arith.constant 0 : index
    %4 = vector.load %arg3[%c0_4, %c0_5] : memref<8x128xf32, #tpu.memory_space<vmem>>, vector<8x128xf32>
    tpu.vector_store %arg3[%c0_4, %c0_5], %3 {strides = array<i32>} : memref<8x128xf32, #tpu.memory_space<vmem>>, vector<8x128xf32>,
    %cst_6 = arith.constant dense<0.000000e+00> : vector<128xf32>
    %5 = vector.multi_reduction <add>, %2, %cst_6 [0] : vector<256x128xf32> to vector<128xf32>
    %6 = vector.shape_cast %5 : vector<128xf32> to vector<1x128xf32>
    %c0_7 = arith.constant 0 : index
    %c0_8 = arith.constant 0 : index
    %7 = vector.load %arg3[%c0_7, %c0_8] : memref<8x128xf32, #tpu.memory_space<vmem>>, vector<1x128xf32>
    tpu.vector_store %arg3[%c0_7, %c0_8], %6 {strides = array<i32>} : memref<8x128xf32, #tpu.memory_space<vmem>>, vector<1x128xf32>,
    %8 = arith.mulf %2, %2 : vector<256x128xf32>
    %cst_9 = arith.constant dense<0.000000e+00> : vector<128xf32>
    %9 = vector.multi_reduction <add>, %8, %cst_9 [0] : vector<256x128xf32> to vector<128xf32>
    %10 = vector.shape_cast %9 : vector<128xf32> to vector<1x128xf32>
    %c1 = arith.constant 1 : index
    %c0_10 = arith.constant 0 : index
    %11 = vector.load %arg3[%c1, %c0_10] : memref<8x128xf32, #tpu.memory_space<vmem>>, vector<1x128xf32>
    tpu.vector_store %arg3[%c1, %c0_10], %10 {strides = array<i32>} : memref<8x128xf32, #tpu.memory_space<vmem>>, vector<1x128xf32>,
    return
  }
  func.func @transform_0(%arg0: i32) -> (i32, i32) {
    %c0_i32 = arith.constant 0 : i32
    %c0_i32_0 = arith.constant 0 : i32
    return %arg0, %c0_i32 : i32, i32
  }
  func.func @transform_1(%arg0: i32) -> (i32, i32) {
    %c0_i32 = arith.constant 0 : i32
    %c0_i32_0 = arith.constant 0 : i32
    %c0_i32_1 = arith.constant 0 : i32
    return %c0_i32, %c0_i32_0 : i32, i32
  }
  func.func @transform_2(%arg0: i32) -> (i32, i32) {
    %c0_i32 = arith.constant 0 : i32
    %c0_i32_0 = arith.constant 0 : i32
    return %arg0, %c0_i32 : i32, i32
  }
}

module attributes {stable_mosaic.version = 11 : i64} {
  func.func @_conv3x3_kernel(%arg0: i32, %arg1: memref<1x362x128xbf16, #tpu.memory_space<vmem>>, %arg2: memref<1152x128xbf16, #tpu.memory_space<vmem>>, %arg3: memref<362x128xf32, #tpu.memory_space<vmem>>, %arg4: memref<1x324x128xf32, #tpu.memory_space<vmem>>, %arg5: memref<8x128xf32, #tpu.memory_space<vmem>>) attributes {dimension_semantics = [#tpu.dimension_semantics<parallel>], iteration_bounds = array<i64: 2>, scalar_prefetch = 0 : i64, scratch_operands = 0 : i64, tpu.core_type = #tpu.core_type<tc>, window_params = [{transform_indices = @transform_0, window_bounds = array<i64: 1, 362, 128>}, {pipeline_mode = #tpu.pipeline_mode<synchronous>, transform_indices = @transform_1, window_bounds = array<i64: 1152, 128>}, {pipeline_mode = #tpu.pipeline_mode<synchronous>, transform_indices = @transform_2, window_bounds = array<i64: 362, 128>}, {transform_indices = @transform_3, window_bounds = array<i64: 1, 324, 128>}, {transform_indices = @transform_4, window_bounds = array<i64: 8, 128>}]} {
    %c0 = arith.constant 0 : index
    %c0_0 = arith.constant 0 : index
    %c0_1 = arith.constant 0 : index
    %0 = vector.load %arg1[%c0, %c0_0, %c0_1] : memref<1x362x128xbf16, #tpu.memory_space<vmem>>, vector<1x362x128xbf16>
    %1 = vector.shape_cast %0 : vector<1x362x128xbf16> to vector<362x128xbf16>
    %cst = arith.constant 0.000000e+00 : f32
    %2 = vector.broadcast %cst : f32 to vector<324x128xf32>
    %3 = vector.extract_strided_slice %1 {offsets = [0, 0], sizes = [324, 128], strides = [1, 1]} : vector<362x128xbf16> to vector<324x128xbf16>
    %c0_2 = arith.constant 0 : index
    %c0_3 = arith.constant 0 : index
    %4 = vector.load %arg2[%c0_2, %c0_3] : memref<1152x128xbf16, #tpu.memory_space<vmem>>, vector<128x128xbf16>
    %cst_4 = arith.constant dense<0.000000e+00> : vector<324x128xf32>
    %5 = tpu.matmul %3, %4, %cst_4 {dimension_numbers = #tpu.dot_dimension_numbers<[1], [0], [0], [1], [0, 0, 1, 1], [], []>} : vector<324x128xbf16>, vector<128x128xbf16>, vector<324x128xf32> -> vector<324x128xf32>
    %6 = arith.addf %2, %5 : vector<324x128xf32>
    %7 = vector.extract_strided_slice %1 {offsets = [1, 0], sizes = [324, 128], strides = [1, 1]} : vector<362x128xbf16> to vector<324x128xbf16>
    %c128 = arith.constant 128 : index
    %c0_5 = arith.constant 0 : index
    %8 = vector.load %arg2[%c128, %c0_5] : memref<1152x128xbf16, #tpu.memory_space<vmem>>, vector<128x128xbf16>
    %cst_6 = arith.constant dense<0.000000e+00> : vector<324x128xf32>
    %9 = tpu.matmul %7, %8, %cst_6 {dimension_numbers = #tpu.dot_dimension_numbers<[1], [0], [0], [1], [0, 0, 1, 1], [], []>} : vector<324x128xbf16>, vector<128x128xbf16>, vector<324x128xf32> -> vector<324x128xf32>
    %10 = arith.addf %6, %9 : vector<324x128xf32>
    %11 = vector.extract_strided_slice %1 {offsets = [2, 0], sizes = [324, 128], strides = [1, 1]} : vector<362x128xbf16> to vector<324x128xbf16>
    %c256 = arith.constant 256 : index
    %c0_7 = arith.constant 0 : index
    %12 = vector.load %arg2[%c256, %c0_7] : memref<1152x128xbf16, #tpu.memory_space<vmem>>, vector<128x128xbf16>
    %cst_8 = arith.constant dense<0.000000e+00> : vector<324x128xf32>
    %13 = tpu.matmul %11, %12, %cst_8 {dimension_numbers = #tpu.dot_dimension_numbers<[1], [0], [0], [1], [0, 0, 1, 1], [], []>} : vector<324x128xbf16>, vector<128x128xbf16>, vector<324x128xf32> -> vector<324x128xf32>
    %14 = arith.addf %10, %13 : vector<324x128xf32>
    %15 = vector.extract_strided_slice %1 {offsets = [18, 0], sizes = [324, 128], strides = [1, 1]} : vector<362x128xbf16> to vector<324x128xbf16>
    %c384 = arith.constant 384 : index
    %c0_9 = arith.constant 0 : index
    %16 = vector.load %arg2[%c384, %c0_9] : memref<1152x128xbf16, #tpu.memory_space<vmem>>, vector<128x128xbf16>
    %cst_10 = arith.constant dense<0.000000e+00> : vector<324x128xf32>
    %17 = tpu.matmul %15, %16, %cst_10 {dimension_numbers = #tpu.dot_dimension_numbers<[1], [0], [0], [1], [0, 0, 1, 1], [], []>} : vector<324x128xbf16>, vector<128x128xbf16>, vector<324x128xf32> -> vector<324x128xf32>
    %18 = arith.addf %14, %17 : vector<324x128xf32>
    %19 = vector.extract_strided_slice %1 {offsets = [19, 0], sizes = [324, 128], strides = [1, 1]} : vector<362x128xbf16> to vector<324x128xbf16>
    %c512 = arith.constant 512 : index
    %c0_11 = arith.constant 0 : index
    %20 = vector.load %arg2[%c512, %c0_11] : memref<1152x128xbf16, #tpu.memory_space<vmem>>, vector<128x128xbf16>
    %cst_12 = arith.constant dense<0.000000e+00> : vector<324x128xf32>
    %21 = tpu.matmul %19, %20, %cst_12 {dimension_numbers = #tpu.dot_dimension_numbers<[1], [0], [0], [1], [0, 0, 1, 1], [], []>} : vector<324x128xbf16>, vector<128x128xbf16>, vector<324x128xf32> -> vector<324x128xf32>
    %22 = arith.addf %18, %21 : vector<324x128xf32>
    %23 = vector.extract_strided_slice %1 {offsets = [20, 0], sizes = [324, 128], strides = [1, 1]} : vector<362x128xbf16> to vector<324x128xbf16>
    %c640 = arith.constant 640 : index
    %c0_13 = arith.constant 0 : index
    %24 = vector.load %arg2[%c640, %c0_13] : memref<1152x128xbf16, #tpu.memory_space<vmem>>, vector<128x128xbf16>
    %cst_14 = arith.constant dense<0.000000e+00> : vector<324x128xf32>
    %25 = tpu.matmul %23, %24, %cst_14 {dimension_numbers = #tpu.dot_dimension_numbers<[1], [0], [0], [1], [0, 0, 1, 1], [], []>} : vector<324x128xbf16>, vector<128x128xbf16>, vector<324x128xf32> -> vector<324x128xf32>
    %26 = arith.addf %22, %25 : vector<324x128xf32>
    %27 = vector.extract_strided_slice %1 {offsets = [36, 0], sizes = [324, 128], strides = [1, 1]} : vector<362x128xbf16> to vector<324x128xbf16>
    %c768 = arith.constant 768 : index
    %c0_15 = arith.constant 0 : index
    %28 = vector.load %arg2[%c768, %c0_15] : memref<1152x128xbf16, #tpu.memory_space<vmem>>, vector<128x128xbf16>
    %cst_16 = arith.constant dense<0.000000e+00> : vector<324x128xf32>
    %29 = tpu.matmul %27, %28, %cst_16 {dimension_numbers = #tpu.dot_dimension_numbers<[1], [0], [0], [1], [0, 0, 1, 1], [], []>} : vector<324x128xbf16>, vector<128x128xbf16>, vector<324x128xf32> -> vector<324x128xf32>
    %30 = arith.addf %26, %29 : vector<324x128xf32>
    %31 = vector.extract_strided_slice %1 {offsets = [37, 0], sizes = [324, 128], strides = [1, 1]} : vector<362x128xbf16> to vector<324x128xbf16>
    %c896 = arith.constant 896 : index
    %c0_17 = arith.constant 0 : index
    %32 = vector.load %arg2[%c896, %c0_17] : memref<1152x128xbf16, #tpu.memory_space<vmem>>, vector<128x128xbf16>
    %cst_18 = arith.constant dense<0.000000e+00> : vector<324x128xf32>
    %33 = tpu.matmul %31, %32, %cst_18 {dimension_numbers = #tpu.dot_dimension_numbers<[1], [0], [0], [1], [0, 0, 1, 1], [], []>} : vector<324x128xbf16>, vector<128x128xbf16>, vector<324x128xf32> -> vector<324x128xf32>
    %34 = arith.addf %30, %33 : vector<324x128xf32>
    %35 = vector.extract_strided_slice %1 {offsets = [38, 0], sizes = [324, 128], strides = [1, 1]} : vector<362x128xbf16> to vector<324x128xbf16>
    %c1024 = arith.constant 1024 : index
    %c0_19 = arith.constant 0 : index
    %36 = vector.load %arg2[%c1024, %c0_19] : memref<1152x128xbf16, #tpu.memory_space<vmem>>, vector<128x128xbf16>
    %cst_20 = arith.constant dense<0.000000e+00> : vector<324x128xf32>
    %37 = tpu.matmul %35, %36, %cst_20 {dimension_numbers = #tpu.dot_dimension_numbers<[1], [0], [0], [1], [0, 0, 1, 1], [], []>} : vector<324x128xbf16>, vector<128x128xbf16>, vector<324x128xf32> -> vector<324x128xf32>
    %38 = arith.addf %34, %37 : vector<324x128xf32>
    %c19 = arith.constant 19 : index
    %c0_21 = arith.constant 0 : index
    %39 = vector.load %arg3[%c19, %c0_21] : memref<362x128xf32, #tpu.memory_space<vmem>>, vector<324x128xf32>
    %40 = arith.mulf %38, %39 : vector<324x128xf32>
    %c0_22 = arith.constant 0 : index
    %c0_23 = arith.constant 0 : index
    %c0_24 = arith.constant 0 : index
    %41 = vector.load %arg4[%c0_22, %c0_23, %c0_24] : memref<1x324x128xf32, #tpu.memory_space<vmem>>, vector<1x324x128xf32>
    %42 = vector.shape_cast %41 : vector<1x324x128xf32> to vector<324x128xf32>
    %43 = vector.shape_cast %40 : vector<324x128xf32> to vector<1x324x128xf32>
    tpu.vector_store %arg4[%c0_22, %c0_23, %c0_24], %43 {strides = array<i32>} : memref<1x324x128xf32, #tpu.memory_space<vmem>>, vector<1x324x128xf32>,
    %cst_25 = arith.constant 0.000000e+00 : f32
    %44 = vector.broadcast %cst_25 : f32 to vector<8x128xf32>
    %c0_26 = arith.constant 0 : index
    %c0_27 = arith.constant 0 : index
    %45 = vector.load %arg5[%c0_26, %c0_27] : memref<8x128xf32, #tpu.memory_space<vmem>>, vector<8x128xf32>
    tpu.vector_store %arg5[%c0_26, %c0_27], %44 {strides = array<i32>} : memref<8x128xf32, #tpu.memory_space<vmem>>, vector<8x128xf32>,
    %cst_28 = arith.constant dense<0.000000e+00> : vector<128xf32>
    %46 = vector.multi_reduction <add>, %40, %cst_28 [0] : vector<324x128xf32> to vector<128xf32>
    %47 = vector.shape_cast %46 : vector<128xf32> to vector<1x128xf32>
    %c0_29 = arith.constant 0 : index
    %c0_30 = arith.constant 0 : index
    %48 = vector.load %arg5[%c0_29, %c0_30] : memref<8x128xf32, #tpu.memory_space<vmem>>, vector<1x128xf32>
    tpu.vector_store %arg5[%c0_29, %c0_30], %47 {strides = array<i32>} : memref<8x128xf32, #tpu.memory_space<vmem>>, vector<1x128xf32>,
    %49 = arith.mulf %40, %40 : vector<324x128xf32>
    %cst_31 = arith.constant dense<0.000000e+00> : vector<128xf32>
    %50 = vector.multi_reduction <add>, %49, %cst_31 [0] : vector<324x128xf32> to vector<128xf32>
    %51 = vector.shape_cast %50 : vector<128xf32> to vector<1x128xf32>
    %c1 = arith.constant 1 : index
    %c0_32 = arith.constant 0 : index
    %52 = vector.load %arg5[%c1, %c0_32] : memref<8x128xf32, #tpu.memory_space<vmem>>, vector<1x128xf32>
    tpu.vector_store %arg5[%c1, %c0_32], %51 {strides = array<i32>} : memref<8x128xf32, #tpu.memory_space<vmem>>, vector<1x128xf32>,
    return
  }
  func.func @transform_0(%arg0: i32) -> (i32, i32, i32) {
    %c0_i32 = arith.constant 0 : i32
    %c0_i32_0 = arith.constant 0 : i32
    %c0_i32_1 = arith.constant 0 : i32
    return %arg0, %c0_i32, %c0_i32_0 : i32, i32, i32
  }
  func.func @transform_1(%arg0: i32) -> (i32, i32) {
    %c0_i32 = arith.constant 0 : i32
    %c0_i32_0 = arith.constant 0 : i32
    %c0_i32_1 = arith.constant 0 : i32
    return %c0_i32, %c0_i32_0 : i32, i32
  }
  func.func @transform_2(%arg0: i32) -> (i32, i32) {
    %c0_i32 = arith.constant 0 : i32
    %c0_i32_0 = arith.constant 0 : i32
    %c0_i32_1 = arith.constant 0 : i32
    return %c0_i32, %c0_i32_0 : i32, i32
  }
  func.func @transform_3(%arg0: i32) -> (i32, i32, i32) {
    %c0_i32 = arith.constant 0 : i32
    %c0_i32_0 = arith.constant 0 : i32
    %c0_i32_1 = arith.constant 0 : i32
    return %arg0, %c0_i32, %c0_i32_0 : i32, i32, i32
  }
  func.func @transform_4(%arg0: i32) -> (i32, i32) {
    %c0_i32 = arith.constant 0 : i32
    %c0_i32_0 = arith.constant 0 : i32
    return %arg0, %c0_i32 : i32, i32
  }
}

module attributes {stable_mosaic.version = 11 : i64} {
  func.func @_bn_relu_conv3x3_kernel(%arg0: i32, %arg1: memref<1x362x128xf32, #tpu.memory_space<vmem>>, %arg2: memref<1152x128xbf16, #tpu.memory_space<vmem>>, %arg3: memref<362x128xf32, #tpu.memory_space<vmem>>, %arg4: memref<8x128xf32, #tpu.memory_space<vmem>>, %arg5: memref<1x324x128xf32, #tpu.memory_space<vmem>>, %arg6: memref<8x128xf32, #tpu.memory_space<vmem>>) attributes {dimension_semantics = [#tpu.dimension_semantics<parallel>], iteration_bounds = array<i64: 2>, scalar_prefetch = 0 : i64, scratch_operands = 0 : i64, tpu.core_type = #tpu.core_type<tc>, window_params = [{transform_indices = @transform_0, window_bounds = array<i64: 1, 362, 128>}, {pipeline_mode = #tpu.pipeline_mode<synchronous>, transform_indices = @transform_1, window_bounds = array<i64: 1152, 128>}, {pipeline_mode = #tpu.pipeline_mode<synchronous>, transform_indices = @transform_2, window_bounds = array<i64: 362, 128>}, {pipeline_mode = #tpu.pipeline_mode<synchronous>, transform_indices = @transform_3, window_bounds = array<i64: 8, 128>}, {transform_indices = @transform_4, window_bounds = array<i64: 1, 324, 128>}, {transform_indices = @transform_5, window_bounds = array<i64: 8, 128>}]} {
    %c0 = arith.constant 0 : index
    %c0_0 = arith.constant 0 : index
    %0 = vector.load %arg4[%c0, %c0_0] : memref<8x128xf32, #tpu.memory_space<vmem>>, vector<1x128xf32>
    %cst = arith.constant 0.001953125 : f32
    %1 = vector.broadcast %cst : f32 to vector<1x128xf32>
    %2 = arith.mulf %0, %1 : vector<1x128xf32>
    %c1 = arith.constant 1 : index
    %c0_1 = arith.constant 0 : index
    %3 = vector.load %arg4[%c1, %c0_1] : memref<8x128xf32, #tpu.memory_space<vmem>>, vector<1x128xf32>
    %cst_2 = arith.constant 0.001953125 : f32
    %4 = vector.broadcast %cst_2 : f32 to vector<1x128xf32>
    %5 = arith.mulf %3, %4 : vector<1x128xf32>
    %6 = arith.mulf %2, %2 : vector<1x128xf32>
    %7 = arith.subf %5, %6 : vector<1x128xf32>
    %c2 = arith.constant 2 : index
    %c0_3 = arith.constant 0 : index
    %8 = vector.load %arg4[%c2, %c0_3] : memref<8x128xf32, #tpu.memory_space<vmem>>, vector<1x128xf32>
    %cst_4 = arith.constant 9.99999974E-6 : f32
    %9 = vector.broadcast %cst_4 : f32 to vector<1x128xf32>
    %10 = arith.addf %7, %9 : vector<1x128xf32>
    %11 = math.rsqrt %10 : vector<1x128xf32>
    %12 = arith.mulf %8, %11 : vector<1x128xf32>
    %c3 = arith.constant 3 : index
    %c0_5 = arith.constant 0 : index
    %13 = vector.load %arg4[%c3, %c0_5] : memref<8x128xf32, #tpu.memory_space<vmem>>, vector<1x128xf32>
    %14 = arith.mulf %2, %12 : vector<1x128xf32>
    %15 = arith.subf %13, %14 : vector<1x128xf32>
    %c0_6 = arith.constant 0 : index
    %c0_7 = arith.constant 0 : index
    %c0_8 = arith.constant 0 : index
    %16 = vector.load %arg1[%c0_6, %c0_7, %c0_8] : memref<1x362x128xf32, #tpu.memory_space<vmem>>, vector<1x362x128xf32>
    %17 = vector.shape_cast %16 : vector<1x362x128xf32> to vector<362x128xf32>
    %18 = vector.broadcast %12 : vector<1x128xf32> to vector<362x128xf32>
    %19 = arith.mulf %17, %18 : vector<362x128xf32>
    %20 = vector.broadcast %15 : vector<1x128xf32> to vector<362x128xf32>
    %21 = arith.addf %19, %20 : vector<362x128xf32>
    %cst_9 = arith.constant 0.000000e+00 : f32
    %22 = vector.broadcast %cst_9 : f32 to vector<362x128xf32>
    %23 = arith.maximumf %21, %22 : vector<362x128xf32>
    %c0_10 = arith.constant 0 : index
    %c0_11 = arith.constant 0 : index
    %24 = vector.load %arg3[%c0_10, %c0_11] : memref<362x128xf32, #tpu.memory_space<vmem>>, vector<362x128xf32>
    %25 = arith.mulf %23, %24 : vector<362x128xf32>
    %26 = arith.truncf %25 : vector<362x128xf32> to vector<362x128xbf16>
    %cst_12 = arith.constant 0.000000e+00 : f32
    %27 = vector.broadcast %cst_12 : f32 to vector<324x128xf32>
    %28 = vector.extract_strided_slice %26 {offsets = [0, 0], sizes = [324, 128], strides = [1, 1]} : vector<362x128xbf16> to vector<324x128xbf16>
    %c0_13 = arith.constant 0 : index
    %c0_14 = arith.constant 0 : index
    %29 = vector.load %arg2[%c0_13, %c0_14] : memref<1152x128xbf16, #tpu.memory_space<vmem>>, vector<128x128xbf16>
    %cst_15 = arith.constant dense<0.000000e+00> : vector<324x128xf32>
    %30 = tpu.matmul %28, %29, %cst_15 {dimension_numbers = #tpu.dot_dimension_numbers<[1], [0], [0], [1], [0, 0, 1, 1], [], []>} : vector<324x128xbf16>, vector<128x128xbf16>, vector<324x128xf32> -> vector<324x128xf32>
    %31 = arith.addf %27, %30 : vector<324x128xf32>
    %32 = vector.extract_strided_slice %26 {offsets = [1, 0], sizes = [324, 128], strides = [1, 1]} : vector<362x128xbf16> to vector<324x128xbf16>
    %c128 = arith.constant 128 : index
    %c0_16 = arith.constant 0 : index
    %33 = vector.load %arg2[%c128, %c0_16] : memref<1152x128xbf16, #tpu.memory_space<vmem>>, vector<128x128xbf16>
    %cst_17 = arith.constant dense<0.000000e+00> : vector<324x128xf32>
    %34 = tpu.matmul %32, %33, %cst_17 {dimension_numbers = #tpu.dot_dimension_numbers<[1], [0], [0], [1], [0, 0, 1, 1], [], []>} : vector<324x128xbf16>, vector<128x128xbf16>, vector<324x128xf32> -> vector<324x128xf32>
    %35 = arith.addf %31, %34 : vector<324x128xf32>
    %36 = vector.extract_strided_slice %26 {offsets = [2, 0], sizes = [324, 128], strides = [1, 1]} : vector<362x128xbf16> to vector<324x128xbf16>
    %c256 = arith.constant 256 : index
    %c0_18 = arith.constant 0 : index
    %37 = vector.load %arg2[%c256, %c0_18] : memref<1152x128xbf16, #tpu.memory_space<vmem>>, vector<128x128xbf16>
    %cst_19 = arith.constant dense<0.000000e+00> : vector<324x128xf32>
    %38 = tpu.matmul %36, %37, %cst_19 {dimension_numbers = #tpu.dot_dimension_numbers<[1], [0], [0], [1], [0, 0, 1, 1], [], []>} : vector<324x128xbf16>, vector<128x128xbf16>, vector<324x128xf32> -> vector<324x128xf32>
    %39 = arith.addf %35, %38 : vector<324x128xf32>
    %40 = vector.extract_strided_slice %26 {offsets = [18, 0], sizes = [324, 128], strides = [1, 1]} : vector<362x128xbf16> to vector<324x128xbf16>
    %c384 = arith.constant 384 : index
    %c0_20 = arith.constant 0 : index
    %41 = vector.load %arg2[%c384, %c0_20] : memref<1152x128xbf16, #tpu.memory_space<vmem>>, vector<128x128xbf16>
    %cst_21 = arith.constant dense<0.000000e+00> : vector<324x128xf32>
    %42 = tpu.matmul %40, %41, %cst_21 {dimension_numbers = #tpu.dot_dimension_numbers<[1], [0], [0], [1], [0, 0, 1, 1], [], []>} : vector<324x128xbf16>, vector<128x128xbf16>, vector<324x128xf32> -> vector<324x128xf32>
    %43 = arith.addf %39, %42 : vector<324x128xf32>
    %44 = vector.extract_strided_slice %26 {offsets = [19, 0], sizes = [324, 128], strides = [1, 1]} : vector<362x128xbf16> to vector<324x128xbf16>
    %c512 = arith.constant 512 : index
    %c0_22 = arith.constant 0 : index
    %45 = vector.load %arg2[%c512, %c0_22] : memref<1152x128xbf16, #tpu.memory_space<vmem>>, vector<128x128xbf16>
    %cst_23 = arith.constant dense<0.000000e+00> : vector<324x128xf32>
    %46 = tpu.matmul %44, %45, %cst_23 {dimension_numbers = #tpu.dot_dimension_numbers<[1], [0], [0], [1], [0, 0, 1, 1], [], []>} : vector<324x128xbf16>, vector<128x128xbf16>, vector<324x128xf32> -> vector<324x128xf32>
    %47 = arith.addf %43, %46 : vector<324x128xf32>
    %48 = vector.extract_strided_slice %26 {offsets = [20, 0], sizes = [324, 128], strides = [1, 1]} : vector<362x128xbf16> to vector<324x128xbf16>
    %c640 = arith.constant 640 : index
    %c0_24 = arith.constant 0 : index
    %49 = vector.load %arg2[%c640, %c0_24] : memref<1152x128xbf16, #tpu.memory_space<vmem>>, vector<128x128xbf16>
    %cst_25 = arith.constant dense<0.000000e+00> : vector<324x128xf32>
    %50 = tpu.matmul %48, %49, %cst_25 {dimension_numbers = #tpu.dot_dimension_numbers<[1], [0], [0], [1], [0, 0, 1, 1], [], []>} : vector<324x128xbf16>, vector<128x128xbf16>, vector<324x128xf32> -> vector<324x128xf32>
    %51 = arith.addf %47, %50 : vector<324x128xf32>
    %52 = vector.extract_strided_slice %26 {offsets = [36, 0], sizes = [324, 128], strides = [1, 1]} : vector<362x128xbf16> to vector<324x128xbf16>
    %c768 = arith.constant 768 : index
    %c0_26 = arith.constant 0 : index
    %53 = vector.load %arg2[%c768, %c0_26] : memref<1152x128xbf16, #tpu.memory_space<vmem>>, vector<128x128xbf16>
    %cst_27 = arith.constant dense<0.000000e+00> : vector<324x128xf32>
    %54 = tpu.matmul %52, %53, %cst_27 {dimension_numbers = #tpu.dot_dimension_numbers<[1], [0], [0], [1], [0, 0, 1, 1], [], []>} : vector<324x128xbf16>, vector<128x128xbf16>, vector<324x128xf32> -> vector<324x128xf32>
    %55 = arith.addf %51, %54 : vector<324x128xf32>
    %56 = vector.extract_strided_slice %26 {offsets = [37, 0], sizes = [324, 128], strides = [1, 1]} : vector<362x128xbf16> to vector<324x128xbf16>
    %c896 = arith.constant 896 : index
    %c0_28 = arith.constant 0 : index
    %57 = vector.load %arg2[%c896, %c0_28] : memref<1152x128xbf16, #tpu.memory_space<vmem>>, vector<128x128xbf16>
    %cst_29 = arith.constant dense<0.000000e+00> : vector<324x128xf32>
    %58 = tpu.matmul %56, %57, %cst_29 {dimension_numbers = #tpu.dot_dimension_numbers<[1], [0], [0], [1], [0, 0, 1, 1], [], []>} : vector<324x128xbf16>, vector<128x128xbf16>, vector<324x128xf32> -> vector<324x128xf32>
    %59 = arith.addf %55, %58 : vector<324x128xf32>
    %60 = vector.extract_strided_slice %26 {offsets = [38, 0], sizes = [324, 128], strides = [1, 1]} : vector<362x128xbf16> to vector<324x128xbf16>
    %c1024 = arith.constant 1024 : index
    %c0_30 = arith.constant 0 : index
    %61 = vector.load %arg2[%c1024, %c0_30] : memref<1152x128xbf16, #tpu.memory_space<vmem>>, vector<128x128xbf16>
    %cst_31 = arith.constant dense<0.000000e+00> : vector<324x128xf32>
    %62 = tpu.matmul %60, %61, %cst_31 {dimension_numbers = #tpu.dot_dimension_numbers<[1], [0], [0], [1], [0, 0, 1, 1], [], []>} : vector<324x128xbf16>, vector<128x128xbf16>, vector<324x128xf32> -> vector<324x128xf32>
    %63 = arith.addf %59, %62 : vector<324x128xf32>
    %c19 = arith.constant 19 : index
    %c0_32 = arith.constant 0 : index
    %64 = vector.load %arg3[%c19, %c0_32] : memref<362x128xf32, #tpu.memory_space<vmem>>, vector<324x128xf32>
    %65 = arith.mulf %63, %64 : vector<324x128xf32>
    %c0_33 = arith.constant 0 : index
    %c0_34 = arith.constant 0 : index
    %c0_35 = arith.constant 0 : index
    %66 = vector.load %arg5[%c0_33, %c0_34, %c0_35] : memref<1x324x128xf32, #tpu.memory_space<vmem>>, vector<1x324x128xf32>
    %67 = vector.shape_cast %66 : vector<1x324x128xf32> to vector<324x128xf32>
    %68 = vector.shape_cast %65 : vector<324x128xf32> to vector<1x324x128xf32>
    tpu.vector_store %arg5[%c0_33, %c0_34, %c0_35], %68 {strides = array<i32>} : memref<1x324x128xf32, #tpu.memory_space<vmem>>, vector<1x324x128xf32>,
    %cst_36 = arith.constant 0.000000e+00 : f32
    %69 = vector.broadcast %cst_36 : f32 to vector<8x128xf32>
    %c0_37 = arith.constant 0 : index
    %c0_38 = arith.constant 0 : index
    %70 = vector.load %arg6[%c0_37, %c0_38] : memref<8x128xf32, #tpu.memory_space<vmem>>, vector<8x128xf32>
    tpu.vector_store %arg6[%c0_37, %c0_38], %69 {strides = array<i32>} : memref<8x128xf32, #tpu.memory_space<vmem>>, vector<8x128xf32>,
    %cst_39 = arith.constant dense<0.000000e+00> : vector<128xf32>
    %71 = vector.multi_reduction <add>, %65, %cst_39 [0] : vector<324x128xf32> to vector<128xf32>
    %72 = vector.shape_cast %71 : vector<128xf32> to vector<1x128xf32>
    %c0_40 = arith.constant 0 : index
    %c0_41 = arith.constant 0 : index
    %73 = vector.load %arg6[%c0_40, %c0_41] : memref<8x128xf32, #tpu.memory_space<vmem>>, vector<1x128xf32>
    tpu.vector_store %arg6[%c0_40, %c0_41], %72 {strides = array<i32>} : memref<8x128xf32, #tpu.memory_space<vmem>>, vector<1x128xf32>,
    %74 = arith.mulf %65, %65 : vector<324x128xf32>
    %cst_42 = arith.constant dense<0.000000e+00> : vector<128xf32>
    %75 = vector.multi_reduction <add>, %74, %cst_42 [0] : vector<324x128xf32> to vector<128xf32>
    %76 = vector.shape_cast %75 : vector<128xf32> to vector<1x128xf32>
    %c1_43 = arith.constant 1 : index
    %c0_44 = arith.constant 0 : index
    %77 = vector.load %arg6[%c1_43, %c0_44] : memref<8x128xf32, #tpu.memory_space<vmem>>, vector<1x128xf32>
    tpu.vector_store %arg6[%c1_43, %c0_44], %76 {strides = array<i32>} : memref<8x128xf32, #tpu.memory_space<vmem>>, vector<1x128xf32>,
    return
  }
  func.func @transform_0(%arg0: i32) -> (i32, i32, i32) {
    %c0_i32 = arith.constant 0 : i32
    %c0_i32_0 = arith.constant 0 : i32
    %c0_i32_1 = arith.constant 0 : i32
    return %arg0, %c0_i32, %c0_i32_0 : i32, i32, i32
  }
  func.func @transform_1(%arg0: i32) -> (i32, i32) {
    %c0_i32 = arith.constant 0 : i32
    %c0_i32_0 = arith.constant 0 : i32
    %c0_i32_1 = arith.constant 0 : i32
    return %c0_i32, %c0_i32_0 : i32, i32
  }
  func.func @transform_2(%arg0: i32) -> (i32, i32) {
    %c0_i32 = arith.constant 0 : i32
    %c0_i32_0 = arith.constant 0 : i32
    %c0_i32_1 = arith.constant 0 : i32
    return %c0_i32, %c0_i32_0 : i32, i32
  }
  func.func @transform_3(%arg0: i32) -> (i32, i32) {
    %c0_i32 = arith.constant 0 : i32
    %c0_i32_0 = arith.constant 0 : i32
    %c0_i32_1 = arith.constant 0 : i32
    return %c0_i32, %c0_i32_0 : i32, i32
  }
  func.func @transform_4(%arg0: i32) -> (i32, i32, i32) {
    %c0_i32 = arith.constant 0 : i32
    %c0_i32_0 = arith.constant 0 : i32
    %c0_i32_1 = arith.constant 0 : i32
    return %arg0, %c0_i32, %c0_i32_0 : i32, i32, i32
  }
  func.func @transform_5(%arg0: i32) -> (i32, i32) {
    %c0_i32 = arith.constant 0 : i32
    %c0_i32_0 = arith.constant 0 : i32
    return %arg0, %c0_i32 : i32, i32
  }
}

module attributes {stable_mosaic.version = 11 : i64} {
  func.func @_final_project_kernel(%arg0: i32, %arg1: memref<256x128xf32, #tpu.memory_space<vmem>>, %arg2: memref<8x128xf32, #tpu.memory_space<vmem>>, %arg3: memref<256x128xbf16, #tpu.memory_space<vmem>>, %arg4: memref<128x128xbf16, #tpu.memory_space<vmem>>, %arg5: memref<8x128xf32, #tpu.memory_space<vmem>>, %arg6: memref<256x128xf32, #tpu.memory_space<vmem>>) attributes {dimension_semantics = [#tpu.dimension_semantics<parallel>], iteration_bounds = array<i64: 2>, scalar_prefetch = 0 : i64, scratch_operands = 0 : i64, tpu.core_type = #tpu.core_type<tc>, window_params = [{transform_indices = @transform_0, window_bounds = array<i64: 256, 128>}, {pipeline_mode = #tpu.pipeline_mode<synchronous>, transform_indices = @transform_1, window_bounds = array<i64: 8, 128>}, {transform_indices = @transform_2, window_bounds = array<i64: 256, 128>}, {pipeline_mode = #tpu.pipeline_mode<synchronous>, transform_indices = @transform_3, window_bounds = array<i64: 128, 128>}, {pipeline_mode = #tpu.pipeline_mode<synchronous>, transform_indices = @transform_4, window_bounds = array<i64: 8, 128>}, {transform_indices = @transform_5, window_bounds = array<i64: 256, 128>}]} {
    %c0 = arith.constant 0 : index
    %c0_0 = arith.constant 0 : index
    %0 = vector.load %arg2[%c0, %c0_0] : memref<8x128xf32, #tpu.memory_space<vmem>>, vector<1x128xf32>
    %cst = arith.constant 0.001953125 : f32
    %1 = vector.broadcast %cst : f32 to vector<1x128xf32>
    %2 = arith.mulf %0, %1 : vector<1x128xf32>
    %c1 = arith.constant 1 : index
    %c0_1 = arith.constant 0 : index
    %3 = vector.load %arg2[%c1, %c0_1] : memref<8x128xf32, #tpu.memory_space<vmem>>, vector<1x128xf32>
    %cst_2 = arith.constant 0.001953125 : f32
    %4 = vector.broadcast %cst_2 : f32 to vector<1x128xf32>
    %5 = arith.mulf %3, %4 : vector<1x128xf32>
    %6 = arith.mulf %2, %2 : vector<1x128xf32>
    %7 = arith.subf %5, %6 : vector<1x128xf32>
    %c2 = arith.constant 2 : index
    %c0_3 = arith.constant 0 : index
    %8 = vector.load %arg2[%c2, %c0_3] : memref<8x128xf32, #tpu.memory_space<vmem>>, vector<1x128xf32>
    %cst_4 = arith.constant 9.99999974E-6 : f32
    %9 = vector.broadcast %cst_4 : f32 to vector<1x128xf32>
    %10 = arith.addf %7, %9 : vector<1x128xf32>
    %11 = math.rsqrt %10 : vector<1x128xf32>
    %12 = arith.mulf %8, %11 : vector<1x128xf32>
    %c3 = arith.constant 3 : index
    %c0_5 = arith.constant 0 : index
    %13 = vector.load %arg2[%c3, %c0_5] : memref<8x128xf32, #tpu.memory_space<vmem>>, vector<1x128xf32>
    %14 = arith.mulf %2, %12 : vector<1x128xf32>
    %15 = arith.subf %13, %14 : vector<1x128xf32>
    %c0_6 = arith.constant 0 : index
    %c0_7 = arith.constant 0 : index
    %16 = vector.load %arg5[%c0_6, %c0_7] : memref<8x128xf32, #tpu.memory_space<vmem>>, vector<1x128xf32>
    %cst_8 = arith.constant 0.001953125 : f32
    %17 = vector.broadcast %cst_8 : f32 to vector<1x128xf32>
    %18 = arith.mulf %16, %17 : vector<1x128xf32>
    %c1_9 = arith.constant 1 : index
    %c0_10 = arith.constant 0 : index
    %19 = vector.load %arg5[%c1_9, %c0_10] : memref<8x128xf32, #tpu.memory_space<vmem>>, vector<1x128xf32>
    %cst_11 = arith.constant 0.001953125 : f32
    %20 = vector.broadcast %cst_11 : f32 to vector<1x128xf32>
    %21 = arith.mulf %19, %20 : vector<1x128xf32>
    %22 = arith.mulf %18, %18 : vector<1x128xf32>
    %23 = arith.subf %21, %22 : vector<1x128xf32>
    %c2_12 = arith.constant 2 : index
    %c0_13 = arith.constant 0 : index
    %24 = vector.load %arg5[%c2_12, %c0_13] : memref<8x128xf32, #tpu.memory_space<vmem>>, vector<1x128xf32>
    %cst_14 = arith.constant 9.99999974E-6 : f32
    %25 = vector.broadcast %cst_14 : f32 to vector<1x128xf32>
    %26 = arith.addf %23, %25 : vector<1x128xf32>
    %27 = math.rsqrt %26 : vector<1x128xf32>
    %28 = arith.mulf %24, %27 : vector<1x128xf32>
    %c3_15 = arith.constant 3 : index
    %c0_16 = arith.constant 0 : index
    %29 = vector.load %arg5[%c3_15, %c0_16] : memref<8x128xf32, #tpu.memory_space<vmem>>, vector<1x128xf32>
    %30 = arith.mulf %18, %28 : vector<1x128xf32>
    %31 = arith.subf %29, %30 : vector<1x128xf32>
    %c0_17 = arith.constant 0 : index
    %c0_18 = arith.constant 0 : index
    %32 = vector.load %arg3[%c0_17, %c0_18] : memref<256x128xbf16, #tpu.memory_space<vmem>>, vector<256x128xbf16>
    %c0_19 = arith.constant 0 : index
    %c0_20 = arith.constant 0 : index
    %33 = vector.load %arg4[%c0_19, %c0_20] : memref<128x128xbf16, #tpu.memory_space<vmem>>, vector<128x128xbf16>
    %cst_21 = arith.constant dense<0.000000e+00> : vector<256x128xf32>
    %34 = tpu.matmul %32, %33, %cst_21 {dimension_numbers = #tpu.dot_dimension_numbers<[1], [0], [0], [1], [0, 0, 1, 1], [], []>} : vector<256x128xbf16>, vector<128x128xbf16>, vector<256x128xf32> -> vector<256x128xf32>
    %c0_22 = arith.constant 0 : index
    %c0_23 = arith.constant 0 : index
    %35 = vector.load %arg1[%c0_22, %c0_23] : memref<256x128xf32, #tpu.memory_space<vmem>>, vector<256x128xf32>
    %36 = vector.broadcast %12 : vector<1x128xf32> to vector<256x128xf32>
    %37 = arith.mulf %35, %36 : vector<256x128xf32>
    %38 = vector.broadcast %15 : vector<1x128xf32> to vector<256x128xf32>
    %39 = arith.addf %37, %38 : vector<256x128xf32>
    %40 = vector.broadcast %28 : vector<1x128xf32> to vector<256x128xf32>
    %41 = arith.mulf %34, %40 : vector<256x128xf32>
    %42 = vector.broadcast %31 : vector<1x128xf32> to vector<256x128xf32>
    %43 = arith.addf %41, %42 : vector<256x128xf32>
    %44 = arith.addf %39, %43 : vector<256x128xf32>
    %cst_24 = arith.constant 0.000000e+00 : f32
    %45 = vector.broadcast %cst_24 : f32 to vector<256x128xf32>
    %46 = arith.maximumf %44, %45 : vector<256x128xf32>
    %c0_25 = arith.constant 0 : index
    %c0_26 = arith.constant 0 : index
    %47 = vector.load %arg6[%c0_25, %c0_26] : memref<256x128xf32, #tpu.memory_space<vmem>>, vector<256x128xf32>
    tpu.vector_store %arg6[%c0_25, %c0_26], %46 {strides = array<i32>} : memref<256x128xf32, #tpu.memory_space<vmem>>, vector<256x128xf32>,
    return
  }
  func.func @transform_0(%arg0: i32) -> (i32, i32) {
    %c0_i32 = arith.constant 0 : i32
    %c0_i32_0 = arith.constant 0 : i32
    return %arg0, %c0_i32 : i32, i32
  }
  func.func @transform_1(%arg0: i32) -> (i32, i32) {
    %c0_i32 = arith.constant 0 : i32
    %c0_i32_0 = arith.constant 0 : i32
    %c0_i32_1 = arith.constant 0 : i32
    return %c0_i32, %c0_i32_0 : i32, i32
  }
  func.func @transform_2(%arg0: i32) -> (i32, i32) {
    %c0_i32 = arith.constant 0 : i32
    %c0_i32_0 = arith.constant 0 : i32
    return %arg0, %c0_i32 : i32, i32
  }
  func.func @transform_3(%arg0: i32) -> (i32, i32) {
    %c0_i32 = arith.constant 0 : i32
    %c0_i32_0 = arith.constant 0 : i32
    %c0_i32_1 = arith.constant 0 : i32
    return %c0_i32, %c0_i32_0 : i32, i32
  }
  func.func @transform_4(%arg0: i32) -> (i32, i32) {
    %c0_i32 = arith.constant 0 : i32
    %c0_i32_0 = arith.constant 0 : i32
    %c0_i32_1 = arith.constant 0 : i32
    return %c0_i32, %c0_i32_0 : i32, i32
  }
  func.func @transform_5(%arg0: i32) -> (i32, i32) {
    %c0_i32 = arith.constant 0 : i32
    %c0_i32_0 = arith.constant 0 : i32
    return %arg0, %c0_i32 : i32, i32
  }
}

</mosaic_0001>

<bundles_post_ra>
// kernel: _residual_block_impl.6
= control target key start
LH: loop header
LB: loop body
LE: loop exit
PB: predicated region body
PF: predicated region fallthrough
CT: control target
= control target key end

     0   :  { %s839_s9 = smov 0   ;;  %s958_s0 = inlined_call_operand.vmem [shape: bf16[512,128], index: 0, kind: input, shape index: {}]   ;;  %s959_s1 = inlined_call_operand.vmem [shape: bf16[128,128], index: 1, kind: input, shape index: {}]   ;;  %s960_s2 = inlined_call_operand.vmem [shape: f32[16,128], index: 2, kind: output, shape index: {}]  }
   0x1 LB: > { %s845_s10 = sadd.s32 4294967295, %s821_s9   ;;  %p664_p0 = scmp.ge.s32.totalorder %s821_s9, 1  ;;  %s821_s9 = sphi %s839_s9, %s12_s9  }
   0x2   : > { %p113_p1 = scmp.lt.s32.totalorder %s821_s9, 3 }
   0x4   : > { %p114_p2 = pnand %p664_p0, %p113_p1 }
   0x5   : > { %v791_v0 = vld [vmem:[%s959_s1] sm:$0xff] (!%p114_p2)   ;;  %s665_s13 = sshll.u32 (!%p114_p2), %s845_s10, 5  ;;  %v792_v1 = vld [vmem:[%s959_s1 + $0x8] sm:$0xff] (!%p114_p2)   ;;  %v793_v2 = vld [vmem:[%s959_s1 + $0x10] sm:$0xff] (!%p114_p2)   ;;  %p140_p4 = scmp.lt.s32.totalorder (!%p114_p2), %s845_s10, 1  ;;  %v823_v24 = vmov (!%p114_p2), 0.0  }
   0x6   : > { %117 = sbr.rel (%p114_p2) target bundleno = 330 (0x14a), region = 28  ;;  %p135_p3 = scmp.lt.s32.totalorder (!%p114_p2), %s665_s13, 63  ;;  %718 = vmatprep.subr.bf16.mxu0 (!%p114_p2), %v791_v0  ;;  %766 = vmatprep.subr.bf16.mxu1 (!%p114_p2), %v791_v0  ;;  %v794_v3 = vld [vmem:[%s959_s1 + $0x18] sm:$0xff] (!%p114_p2)   ;;  %v795_v5 = vld [vmem:[%s959_s1 + $0x20] sm:$0xff] (!%p114_p2)   ;;  %v796_v6 = vld [vmem:[%s959_s1 + $0x28] sm:$0xff] (!%p114_p2)  }
   0x7   : > { %719 = vmatpush3.bf16.msra.mxu0 (!%p114_p2), %v791_v0  ;;  %774 = vmatpush3.bf16.msra.mxu1 (!%p114_p2), %v791_v0  ;;  %v797_v8 = vld [vmem:[%s959_s1 + $0x30] sm:$0xff] (!%p114_p2)   ;;  %v798_v9 = vld [vmem:[%s959_s1 + $0x38] sm:$0xff] (!%p114_p2)  }
   0x8   : > { %720 = vmatprep.subr.bf16.mxu0 (!%p114_p2), %v792_v1  ;;  %767 = vmatprep.subr.bf16.mxu1 (!%p114_p2), %v792_v1 }
   0xb   : > { %721 = vmatpush3.bf16.msra.mxu0 (!%p114_p2), %v792_v1  ;;  %775 = vmatpush3.bf16.msra.mxu1 (!%p114_p2), %v792_v1 }
   0xc   : > { %722 = vmatprep.subr.bf16.mxu0 (!%p114_p2), %v793_v2  ;;  %768 = vmatprep.subr.bf16.mxu1 (!%p114_p2), %v793_v2 }
   0xd   : > { %s962_s13 = smov (!%p135_p3, %s665_s13), 63  ;;  %s964_s10 = smov (!%p140_p4, %s845_s10), 1 }
   0xe   : > { %s666_s18 = sshll.u32 %s962_s13, 2  ;;  %s667_s4 = sshll.u32 %s964_s10, 3 }
   0xf   : > { %s862_s21 = scalar_lea.vmem %s958_s0, %s666_s18  ;;  %723 = vmatpush3.bf16.msra.mxu0 %v793_v2  ;;  %776 = vmatpush3.bf16.msra.mxu1 %v793_v2  ;;  %s900_s7 = scalar_lea.vmem %s960_s2, %s667_s4 }
  0x10   : > { %v799_v4 = vld [vmem:[%s862_s21] sm:$0xff]   ;;  %724 = vmatprep.subr.bf16.mxu0 %v794_v3  ;;  %769 = vmatprep.subr.bf16.mxu1 %v794_v3  ;;  %v800_v10 = vld [vmem:[%s862_s21 + $0x8] sm:$0xff]   ;;  %v801_v12 = vld [vmem:[%s862_s21 + $0x10] sm:$0xff]   ;;  %498 = vst [vmem:[%s900_s7] sm:$0xff] %v823_v24 }
  0x11   : > { %734 = vmatprep.mubr.bf16.mxu0 %v799_v4  ;;  %v807_v7 = vld [vmem:[%s862_s21 + $0x40] sm:$0xff]   ;;  %v808_v11 = vld [vmem:[%s862_s21 + $0x48] sm:$0xff]   ;;  %v809_v13 = vld [vmem:[%s862_s21 + $0x50] sm:$0xff]  }
  0x12   : > { %750 = vmatprep.mubr.bf16.mxu1 %v807_v7  ;;  %v802_v14 = vld [vmem:[%s862_s21 + $0x18] sm:$0xff]   ;;  %v803_v16 = vld [vmem:[%s862_s21 + $0x20] sm:$0xff]   ;;  %v804_v18 = vld [vmem:[%s862_s21 + $0x28] sm:$0xff]  }
  0x13   : > { %725 = vmatpush3.bf16.msra.mxu0 %v794_v3  ;;  %777 = vmatpush3.bf16.msra.mxu1 %v794_v3  ;;  %v810_v15 = vld [vmem:[%s862_s21 + $0x58] sm:$0xff]   ;;  %v811_v17 = vld [vmem:[%s862_s21 + $0x60] sm:$0xff]   ;;  %v812_v19 = vld [vmem:[%s862_s21 + $0x68] sm:$0xff]  }
  0x14   : > { %726 = vmatprep.subr.bf16.mxu0 %v795_v5  ;;  %770 = vmatprep.subr.bf16.mxu1 %v795_v5  ;;  %v805_v20 = vld [vmem:[%s862_s21 + $0x30] sm:$0xff]   ;;  %v806_v22 = vld [vmem:[%s862_s21 + $0x38] sm:$0xff]  }
  0x15   : > { %v813_v21 = vld [vmem:[%s862_s21 + $0x70] sm:$0xff]   ;;  %v814_v23 = vld [vmem:[%s862_s21 + $0x78] sm:$0xff]  }
  0x17   : > { %727 = vmatpush3.bf16.msra.mxu0 %v795_v5  ;;  %778 = vmatpush3.bf16.msra.mxu1 %v795_v5 }
  0x18   : > { %728 = vmatprep.subr.bf16.mxu0 %v796_v6  ;;  %771 = vmatprep.subr.bf16.mxu1 %v796_v6 }
  0x1b   : > { %729 = vmatpush3.bf16.msra.mxu0 %v796_v6  ;;  %779 = vmatpush3.bf16.msra.mxu1 %v796_v6 }
  0x1c   : > { %730 = vmatprep.subr.bf16.mxu0 %v797_v8  ;;  %772 = vmatprep.subr.bf16.mxu1 %v797_v8 }
  0x1f   : > { %731 = vmatpush3.bf16.msra.mxu0 %v797_v8  ;;  %780 = vmatpush3.bf16.msra.mxu1 %v797_v8 }
  0x20   : > { %732 = vmatprep.subr.bf16.mxu0 %v798_v9  ;;  %773 = vmatprep.subr.bf16.mxu1 %v798_v9 }
  0x23   : > { %733 = vmatpush3.bf16.msra.mxu0 %v798_v9  ;;  %781 = vmatpush3.bf16.msra.mxu1 %v798_v9 }
  0x26   : > { %735 = vmatmul.mubr.bf16.vlgmr.msra.gmra.mrb[0].mxu0 %v800_v10  ;;  %751 = vmatmul.mubr.bf16.vlgmr.msra.gmra.mrb[0].mxu1 %v808_v11 }
  0x27   : > { %738 = vmatprep.mubr.bf16.mxu0 %v801_v12  ;;  %754 = vmatprep.mubr.bf16.mxu1 %v809_v13 }
  0x2e   : > { %739 = vmatmul.mubr.bf16.gmra.mrb[4].mxu0 %v802_v14  ;;  %755 = vmatmul.mubr.bf16.gmra.mrb[4].mxu1 %v810_v15 }
  0x2f   : > { %742 = vmatprep.mubr.bf16.mxu0 %v803_v16  ;;  %758 = vmatprep.mubr.bf16.mxu1 %v811_v17 }
  0x36   : > { %743 = vmatmul.mubr.bf16.gmra.mrb[8].mxu0 %v804_v18  ;;  %759 = vmatmul.mubr.bf16.gmra.mrb[8].mxu1 %v812_v19 }
  0x37   : > { %746 = vmatprep.mubr.bf16.mxu0 %v805_v20  ;;  %762 = vmatprep.mubr.bf16.mxu1 %v813_v21 }
  0x3e   : > { %747 = vmatmul.mubr.bf16.gmra.mrb[12].mxu0 %v806_v22  ;;  %763 = vmatmul.mubr.bf16.gmra.mrb[12].mxu1 %v814_v23 }
  0xf9   : > { %v736_v25 = vpop.f32.mrb[0].mxu0  ;;  %v903_v26 = vpop.f32.mrb[0].mxu1 }
  0xfa   : > { %v371_v27 = vpop.f32.mrb[1].mxu0  ;;  %v905_v28 = vpop.f32.mrb[1].mxu1  ;;  %v539_v36 = vmul.f32 %v736_v25, %v736_v25 }
  0xfb   : > { %v737_v29 = vpop.f32.mrb[2].mxu0  ;;  %v907_v30 = vpop.f32.mrb[2].mxu1  ;;  %v537_v33 = vmul.f32 %v371_v27, %v371_v27 }
  0xfc   : > { %v374_v31 = vpop.f32.mrb[3].mxu0  ;;  %v909_v32 = vpop.f32.mrb[3].mxu1  ;;  %v540_v39 = vmul.f32 %v737_v29, %v737_v29 }
  0xfd   : > { %v499_v34 = vadd.f32 %v374_v31, %v371_v27  ;;  %v538_v35 = vmul.f32 %v374_v31, %v374_v31 }
  0xff   : > { %v500_v37 = vadd.f32 %v736_v25, %v499_v34  ;;  %v569_v38 = vadd.f32 %v538_v35, %v537_v33 }
 0x101   : > { %v570_v40 = vadd.f32 %v569_v38, %v539_v36  ;;  %v740_v41 = vpop.f32.mrb[4].mxu0  ;;  %v501_v42 = vadd.f32 %v737_v29, %v500_v37  ;;  %v911_v43 = vpop.f32.mrb[4].mxu1 }
 0x102   : > { %v387_v44 = vpop.f32.mrb[5].mxu0  ;;  %v913_v45 = vpop.f32.mrb[5].mxu1  ;;  %v543_v56 = vmul.f32 %v740_v41, %v740_v41 }
 0x103   : > { %v502_v46 = vadd.f32 %v501_v42, %v387_v44  ;;  %v541_v47 = vmul.f32 %v387_v44, %v387_v44  ;;  %v571_v48 = vadd.f32 %v570_v40, %v540_v39  ;;  %v741_v49 = vpop.f32.mrb[6].mxu0  ;;  %v915_v50 = vpop.f32.mrb[6].mxu1  ;;  %v553_v42 = vmul.f32 %v905_v28, %v905_v28 }
 0x104   : > { %v390_v51 = vpop.f32.mrb[7].mxu0  ;;  %v917_v52 = vpop.f32.mrb[7].mxu1  ;;  %v544_v59 = vmul.f32 %v741_v49, %v741_v49 }
 0x105   : > { %v572_v53 = vadd.f32 %v571_v48, %v541_v47  ;;  %v503_v54 = vadd.f32 %v502_v46, %v390_v51  ;;  %v542_v55 = vmul.f32 %v390_v51, %v390_v51  ;;  %v555_v51 = vmul.f32 %v903_v26, %v903_v26 }
 0x107   : > { %v504_v57 = vadd.f32 %v740_v41, %v503_v54  ;;  %v573_v58 = vadd.f32 %v572_v53, %v542_v55  ;;  %v556_v55 = vmul.f32 %v907_v30, %v907_v30 }
 0x109   : > { %v574_v60 = vadd.f32 %v573_v58, %v543_v56  ;;  %v744_v61 = vpop.f32.mrb[8].mxu0  ;;  %v505_v62 = vadd.f32 %v741_v49, %v504_v57  ;;  %v919_v63 = vpop.f32.mrb[8].mxu1  ;;  %v554_v49 = vmul.f32 %v909_v32, %v909_v32 }
 0x10a   : > { %v403_v0 = vpop.f32.mrb[9].mxu0  ;;  %v467_v1 = vpop.f32.mrb[9].mxu1  ;;  %v547_v12 = vmul.f32 %v744_v61, %v744_v61 }
 0x10b   : > { %v506_v2 = vadd.f32 %v505_v62, %v403_v0  ;;  %v545_v3 = vmul.f32 %v403_v0, %v403_v0  ;;  %v575_v4 = vadd.f32 %v574_v60, %v544_v59  ;;  %v745_v5 = vpop.f32.mrb[10].mxu0  ;;  %v921_v6 = vpop.f32.mrb[10].mxu1 }
 0x10c   : > { %v406_v7 = vpop.f32.mrb[11].mxu0  ;;  %v470_v8 = vpop.f32.mrb[11].mxu1  ;;  %v548_v15 = vmul.f32 %v745_v5, %v745_v5 }
 0x10d   : > { %v576_v9 = vadd.f32 %v575_v4, %v545_v3  ;;  %v507_v10 = vadd.f32 %v506_v2, %v406_v7  ;;  %v546_v11 = vmul.f32 %v406_v7, %v406_v7 }
 0x10f   : > { %v508_v13 = vadd.f32 %v744_v61, %v507_v10  ;;  %v577_v14 = vadd.f32 %v576_v9, %v546_v11  ;;  %v558_v61 = vmul.f32 %v917_v52, %v917_v52  ;;  %v562_v10 = vmul.f32 %v470_v8, %v470_v8 }
 0x111   : > { %v578_v16 = vadd.f32 %v577_v14, %v547_v12  ;;  %v748_v17 = vpop.f32.mrb[12].mxu0  ;;  %v509_v18 = vadd.f32 %v745_v5, %v508_v13  ;;  %v764_v19 = vpop.f32.mrb[12].mxu1 }
 0x112   : > { %v419_v20 = vpop.f32.mrb[13].mxu0  ;;  %v483_v21 = vpop.f32.mrb[13].mxu1  ;;  %v551_v36 = vmul.f32 %v748_v17, %v748_v17 }
 0x113   : > { %v510_v22 = vadd.f32 %v509_v18, %v419_v20  ;;  %v549_v23 = vmul.f32 %v419_v20, %v419_v20  ;;  %v579_v24 = vadd.f32 %v578_v16, %v548_v15  ;;  %v749_v25 = vpop.f32.mrb[14].mxu0  ;;  %v765_v27 = vpop.f32.mrb[14].mxu1  ;;  %v565_v15 = vmul.f32 %v483_v21, %v483_v21 }
 0x114   : > { %v422_v29 = vpop.f32.mrb[15].mxu0  ;;  %v486_v31 = vpop.f32.mrb[15].mxu1  ;;  %v552_v39 = vmul.f32 %v749_v25, %v749_v25  ;;  %v567_v20 = vmul.f32 %v764_v19, %v764_v19 }
 0x115   : > { %v580_v33 = vadd.f32 %v579_v24, %v549_v23  ;;  %v511_v34 = vadd.f32 %v510_v22, %v422_v29  ;;  %v550_v35 = vmul.f32 %v422_v29, %v422_v29  ;;  %v566_v18 = vmul.f32 %v486_v31, %v486_v31 }
 0x116   : > { %v568_v23 = vmul.f32 %v765_v27, %v765_v27 }
 0x117   : > { %v512_v37 = vadd.f32 %v748_v17, %v511_v34  ;;  %v581_v38 = vadd.f32 %v580_v33, %v550_v35 }
 0x119   : > { %v582_v40 = vadd.f32 %v581_v38, %v551_v36  ;;  %v513_v41 = vadd.f32 %v749_v25, %v512_v37 }
 0x11b   : > { %v514_v44 = vadd.f32 %v513_v41, %v905_v28  ;;  %v583_v46 = vadd.f32 %v582_v40, %v552_v39  ;;  %v557_v28 = vmul.f32 %v913_v45, %v913_v45 }
 0x11d   : > { %v584_v47 = vadd.f32 %v583_v46, %v553_v42  ;;  %v515_v48 = vadd.f32 %v514_v44, %v909_v32 }
 0x11f   : > { %v516_v53 = vadd.f32 %v903_v26, %v515_v48  ;;  %v585_v54 = vadd.f32 %v584_v47, %v554_v49  ;;  %v559_v26 = vmul.f32 %v911_v43, %v911_v43 }
 0x121   : > { %v586_v56 = vadd.f32 %v585_v54, %v555_v51  ;;  %v517_v57 = vadd.f32 %v907_v30, %v516_v53  ;;  %v560_v30 = vmul.f32 %v915_v50, %v915_v50 }
 0x123   : > { %v518_v58 = vadd.f32 %v517_v57, %v913_v45  ;;  %v587_v59 = vadd.f32 %v586_v56, %v556_v55  ;;  %v561_v45 = vmul.f32 %v467_v1, %v467_v1 }
 0x125   : > { %v588_v60 = vadd.f32 %v587_v59, %v557_v28  ;;  %v519_v32 = vadd.f32 %v518_v58, %v917_v52  ;;  %v563_v52 = vmul.f32 %v919_v63, %v919_v63 }
 0x127   : > { %v520_v62 = vadd.f32 %v911_v43, %v519_v32  ;;  %v589_v0 = vadd.f32 %v588_v60, %v558_v61  ;;  %v564_v43 = vmul.f32 %v921_v6, %v921_v6 }
 0x129   : > { %v590_v2 = vadd.f32 %v589_v0, %v559_v26  ;;  %v521_v3 = vadd.f32 %v915_v50, %v520_v62 }
 0x12b   : > { %v522_v4 = vadd.f32 %v521_v3, %v467_v1  ;;  %v591_v5 = vadd.f32 %v590_v2, %v560_v30 }
 0x12d   : > { %v592_v7 = vadd.f32 %v591_v5, %v561_v45  ;;  %v523_v9 = vadd.f32 %v522_v4, %v470_v8 }
 0x12f   : > { %v524_v11 = vadd.f32 %v919_v63, %v523_v9  ;;  %v593_v12 = vadd.f32 %v592_v7, %v562_v10 }
 0x131   : > { %v594_v13 = vadd.f32 %v593_v12, %v563_v52  ;;  %v525_v14 = vadd.f32 %v921_v6, %v524_v11 }
 0x133   : > { %v526_v50 = vadd.f32 %v525_v14, %v483_v21  ;;  %v595_v16 = vadd.f32 %v594_v13, %v564_v43 }
 0x135   : > { %v596_v1 = vadd.f32 %v595_v16, %v565_v15  ;;  %v527_v17 = vadd.f32 %v526_v50, %v486_v31 }
 0x137   : > { %v528_v8 = vadd.f32 %v764_v19, %v527_v17  ;;  %v597_v22 = vadd.f32 %v596_v1, %v566_v18 }
 0x139   : > { %v529_v24 = vadd.f32 %v765_v27, %v528_v8  ;;  %v598_v63 = vadd.f32 %v597_v22, %v567_v20 }
 0x13b   : > { %v530_v25 = vrot.slane %v529_v24, 4  ;;  %v599_v29 = vadd.f32 %v598_v63, %v568_v23 }
 0x13d   : > { %v531_v33 = vadd.f32 %v530_v25, %v529_v24  ;;  %v600_v34 = vrot.slane %v599_v29, 4 }
 0x13f   : > { %v532_v35 = vrot.slane %v531_v33, 2  ;;  %v601_v6 = vadd.f32 %v600_v34, %v599_v29 }
 0x141   : > { %v533_v36 = vadd.f32 %v532_v35, %v531_v33  ;;  %v602_v21 = vrot.slane %v601_v6, 2 }
 0x143   : > { %v534_v37 = vrot.slane %v533_v36, 1  ;;  %v603_v38 = vadd.f32 %v602_v21, %v601_v6 }
 0x145   : > { %v535_v39 = vadd.f32 %v534_v37, %v533_v36  ;;  %v604_v31 = vrot.slane %v603_v38, 1 }
 0x147   : > { %536 = vst [vmem:[%s900_s7] sm:$0x1] %v535_v39  ;;  %v605_v19 = vadd.f32 %v604_v31, %v603_v38 }
 0x149   : > { %606 = vst [vmem:[%s900_s7 + $0x1] sm:$0x1] %v605_v19 }
 0x14a PF: > { %s12_s9 = sadd.s32 1, %s821_s9  }
 0x14b   : > { %p9_p5 = scmp.ge.s32.totalorder %s12_s9, 4  }
 0x14d   :  { %11 = sbr.rel (!%p9_p5) target bundleno = 1 (0x1), region = 58 }

// kernel: _residual_block_impl.5
= control target key start
LH: loop header
LB: loop body
LE: loop exit
PB: predicated region body
PF: predicated region fallthrough
CT: control target
= control target key end

     0   :  { %s6219_s18 = smov 0   ;;  %s8146_s0 = inlined_call_operand.vmem [shape: f32[2,362,128], index: 0, kind: input, shape index: {}]   ;;  %s8147_s1 = inlined_call_operand.vmem [shape: bf16[1152,128], index: 1, kind: input, shape index: {}]   ;;  %s8148_s2 = inlined_call_operand.vmem [shape: f32[362,128], index: 2, kind: input, shape index: {}]   ;;  %s8149_s3 = inlined_call_operand.vmem [shape: f32[8,128], index: 3, kind: input, shape index: {}]   ;;  %s8150_s4 = inlined_call_operand.vmem [shape: f32[2,324,128], index: 4, kind: output, shape index: {0}]   ;;  %s8151_s5 = inlined_call_operand.vmem [shape: f32[16,128], index: 5, kind: output, shape index: {1}]  }
   0x1 LB: > { %s4197_s19 = sadd.s32 4294967295, %s6185_s18   ;;  %p4201_p0 = scmp.ge.s32.totalorder %s6185_s18, 1  ;;  %s6185_s18 = sphi %s6219_s18, %s16_s18  }
   0x2   : > { %p190_p1 = scmp.lt.s32.totalorder %s6185_s18, 3 }
   0x4   : > { %p191_p2 = pnand %p4201_p0, %p190_p1 }
   0x6   : > { %194 = sbr.rel (%p191_p2) target bundleno = 1047 (0x417), region = 36 }
   0xd   : > { %v6097_v0 = vld [vmem:[%s8147_s1 + $0x100] sm:$0xff]   ;;  %v8170_v1 = vmov 0.0   ;;  %v6099_v3 = vld [vmem:[%s8147_s1 + $0x108] sm:$0xff]   ;;  %vm6188_vm0 = vmmov 0   ;;  %v6101_v5 = vld [vmem:[%s8147_s1 + $0x110] sm:$0xff]   ;;  %p222_p3 = scmp.lt.s32.totalorder %s4197_s19, 1  ;;  %v296_v23 = vlaneseq }
   0xe   : > { %4940 = vmatprep.subr.bf16.mxu0 %v8170_v1  ;;  %4540 = vmatprep.subr.bf16.mxu1 %v8170_v1  ;;  %v6098_v2 = vld [vmem:[%s8147_s1 + $0x40] sm:$0xff]   ;;  %v6100_v4 = vld [vmem:[%s8147_s1 + $0x48] sm:$0xff]   ;;  %v6102_v6 = vld [vmem:[%s8147_s1 + $0x50] sm:$0xff]   ;;  %vm589_vm1 = vsmask.f32 7424  ;;  %vm2404_vm3 = vcmask 1045504  }
   0xf   : > { %4941 = vmatpush3.bf16.msra.mxu0 %v6097_v0  ;;  %4556 = vmatprep.mubr.msk.bf16.mxu1 %vm6188_vm0, %v8170_v1  ;;  %v6103_v7 = vld [vmem:[%s8147_s1 + $0x118] sm:$0xff]   ;;  %v6105_v9 = vld [vmem:[%s8147_s1 + $0x120] sm:$0xff]   ;;  %v6107_v15 = vld [vmem:[%s8147_s1 + $0x128] sm:$0xff]   ;;  %s8253_s19 = smov (!%p222_p3, %s4197_s19), 1  ;;  %v297_v25 = vshrl.u32 %v296_v23, 7  ;;  %vm1311_vm4 = vcmask 1046528  }
  0x10   : > { %4541 = vmatpush3.bf16.msra.mxu1 %v6098_v2  ;;  %4942 = vmatprep.subr.bf16.mxu0 %v8170_v1  ;;  %v6104_v8 = vld [vmem:[%s8147_s1 + $0x58] sm:$0xff]   ;;  %v6106_v10 = vld [vmem:[%s8147_s1 + $0x60] sm:$0xff]   ;;  %v6108_v16 = vld [vmem:[%s8147_s1 + $0x68] sm:$0xff]   ;;  %s6085_s8 = smul.u32 368, %s8253_s19  ;;  %vm1989_vm2 = vsmask.f32 6400 }
  0x11   : > { %4542 = vmatprep.subr.bf16.mxu1 %v8170_v1  ;;  %4956 = vmatprep.mubr.msk.bf16.mxu0 %vm6188_vm0, %v8170_v1  ;;  %v237_v11 = vld [vmem:[%s8149_s3] sm:$0x1]  ;;  %v239_v12 = vld [vmem:[%s8149_s3 + $0x1] sm:$0x1]  ;;  %v6109_v19 = vld [vmem:[%s8147_s1 + $0x130] sm:$0xff]   ;;  %v298_v27 = vsub.s32 0, %v297_v25 }
  0x12   : > { %v238_v13 = vmul.f32 0.001953125, %v237_v11  ;;  %v240_v14 = vmul.f32 0.001953125, %v239_v12  ;;  %v6110_v20 = vld [vmem:[%s8147_s1 + $0x70] sm:$0xff]   ;;  %v6111_v22 = vld [vmem:[%s8147_s1 + $0x138] sm:$0xff]   ;;  %s6312_s11 = scalar_lea.vmem %s8146_s0, %s6085_s8  ;;  %v243_v26 = vld [vmem:[%s8149_s3 + $0x2] sm:$0x1] }
  0x13   : > { %4943 = vmatpush3.bf16.msra.mxu0 %v6099_v3  ;;  %v6112_v24 = vld [vmem:[%s8147_s1 + $0x78] sm:$0xff]   ;;  %v247_v29 = vld [vmem:[%s8149_s3 + $0x3] sm:$0x1]  ;;  %v251_v31 = vld [vmem:[%s6312_s11 + $0x8] sm:$0xff]  ;;  %vm3082_vm5 = vsmask.f32 5376 }
  0x14   : > { %4543 = vmatpush3.bf16.msra.mxu1 %v6100_v4  ;;  %4944 = vmatprep.subr.bf16.mxu0 %v8170_v1  ;;  %v241_v17 = vmul.f32 %v238_v13, %v238_v13  ;;  %v250_v30 = vld [vmem:[%s6312_s11] sm:$0xff]  ;;  %v252_v33 = vld [vmem:[%s6312_s11 + $0x10] sm:$0xff]  ;;  %v253_v34 = vld [vmem:[%s6312_s11 + $0x18] sm:$0xff]  ;;  %vm3497_vm6 = vcmask 1044480   ;;  %s6086_s14 = smul.u32 328, %s8253_s19  ;;  %s4204_s13 = sshll.u32 %s8253_s19, 3 }
  0x15   : > { %4544 = vmatprep.subr.bf16.mxu1 %v8170_v1  ;;  %v254_v37 = vld [vmem:[%s6312_s11 + $0x20] sm:$0xff]  ;;  %v255_v38 = vld [vmem:[%s6312_s11 + $0x28] sm:$0xff]  ;;  %v256_v39 = vld [vmem:[%s6312_s11 + $0x30] sm:$0xff]  ;;  %s7998_s20 = scalar_lea.vmem %s8151_s5, %s4204_s13  ;;  %vm4012_vm7 = vcmask 1043456  }
  0x16   : > { %v242_v18 = vsub.f32 %v240_v14, %v241_v17  ;;  %v257_v40 = vld [vmem:[%s6312_s11 + $0x38] sm:$0xff]  ;;  %v258_v45 = vld [vmem:[%s6312_s11 + $0x40] sm:$0xff]  ;;  %v259_v46 = vld [vmem:[%s6312_s11 + $0x48] sm:$0xff]  ;;  %s7949_s21 = scalar_lea.vmem %s8150_s4, %s6086_s14 }
  0x17   : > { %4945 = vmatpush3.bf16.msra.mxu0 %v6101_v5  ;;  %v442_v53 = vld [vmem:[%s8148_s2] sm:$0xff]  ;;  %v443_v54 = vld [vmem:[%s8148_s2 + $0x8] sm:$0xff]  ;;  %v444_v55 = vld [vmem:[%s8148_s2 + $0x10] sm:$0xff] }
  0x18   : > { %4545 = vmatpush3.bf16.msra.mxu1 %v6102_v6  ;;  %4946 = vmatprep.subr.bf16.mxu0 %v8170_v1  ;;  %v244_v21 = vadd.f32 1e-05, %v242_v18  ;;  %v445_v56 = vld [vmem:[%s8148_s2 + $0x18] sm:$0xff]  ;;  %v446_v63 = vld [vmem:[%s8148_s2 + $0x20] sm:$0xff]  ;;  %v447_v3 = vld [vmem:[%s8148_s2 + $0x28] sm:$0xff] }
  0x19   : > { %4546 = vmatprep.subr.bf16.mxu1 %v8170_v1  ;;  %v448_v6 = vld [vmem:[%s8148_s2 + $0x30] sm:$0xff] }
  0x1a   : > { %6169 = vrsqrt.f32 %v244_v21  ;;  %v260_v12 = vld [vmem:[%s6312_s11 + $0x50] sm:$0xff] }
  0x1b   : > { %4947 = vmatpush3.bf16.msra.mxu0 %v6103_v7  ;;  %v449_v7 = vld [vmem:[%s8148_s2 + $0x38] sm:$0xff] }
  0x1c   : > { %4547 = vmatpush3.bf16.msra.mxu1 %v6104_v8  ;;  %4948 = vmatprep.subr.bf16.mxu0 %v8170_v1 }
  0x1d   : > { %4548 = vmatprep.subr.bf16.mxu1 %v8170_v1 }
  0x1f   : > { %4949 = vmatpush3.bf16.msra.mxu0 %v6105_v9 }
  0x20   : > { %4549 = vmatpush3.bf16.msra.mxu1 %v6106_v10  ;;  %4950 = vmatprep.subr.bf16.mxu0 %v8170_v1 }
  0x21   : > { %4550 = vmatprep.subr.bf16.mxu1 %v8170_v1 }
  0x23   : > { %4951 = vmatpush3.bf16.msra.mxu0 %v6107_v15 }
  0x24   : > { %4551 = vmatpush3.bf16.msra.mxu1 %v6108_v16  ;;  %4952 = vmatprep.subr.bf16.mxu0 %v8170_v1  ;;  %v6170_v28 = vpop.eup %6169 }
  0x25   : > { %4552 = vmatprep.subr.bf16.mxu1 %v8170_v1  ;;  %v246_v32 = vmul.f32 %v6170_v28, %v243_v26 }
  0x27   : > { %4953 = vmatpush3.bf16.msra.mxu0 %v6109_v19  ;;  %v248_v35 = vmul.f32 %v246_v32, %v238_v13  ;;  %v6325_v36 = vrot.slane %v246_v32, %v298_v27  ;;  %v261_v13 = vld [vmem:[%s6312_s11 + $0x58] sm:$0xff] }
  0x28   : > { %4553 = vmatpush3.bf16.msra.mxu1 %v6110_v20  ;;  %4954 = vmatprep.subr.bf16.mxu0 %v8170_v1 }
  0x29   : > { %4554 = vmatprep.subr.bf16.mxu1 %v8170_v1  ;;  %v249_v41 = vsub.f32 %v247_v29, %v248_v35  ;;  %v300_v42 = vmul.f32 %v6325_v36, %v250_v30  ;;  %v301_v43 = vmul.f32 %v6325_v36, %v251_v31  ;;  %v302_v44 = vmul.f32 %v6325_v36, %v252_v33 }
  0x2a   : > { %v303_v47 = vmul.f32 %v6325_v36, %v253_v34  ;;  %v304_v48 = vmul.f32 %v6325_v36, %v254_v37  ;;  %v305_v49 = vmul.f32 %v6325_v36, %v255_v38  ;;  %v306_v50 = vmul.f32 %v6325_v36, %v256_v39  ;;  %v262_v39 = vld [vmem:[%s6312_s11 + $0x60] sm:$0xff] }
  0x2b   : > { %4955 = vmatpush3.bf16.msra.mxu0 %v6111_v22  ;;  %v6340_v51 = vrot.slane %v249_v41, %v298_v27  ;;  %v307_v52 = vmul.f32 %v6325_v36, %v257_v40  ;;  %v308_v57 = vmul.f32 %v6325_v36, %v258_v45  ;;  %v309_v58 = vmul.f32 %v6325_v36, %v259_v46  ;;  %v263_v40 = vld [vmem:[%s6312_s11 + $0x68] sm:$0xff] }
  0x2c   : > { %4555 = vmatpush3.bf16.msra.mxu1 %v6112_v24  ;;  %5040 = vmatprep.subr.bf16.mxu0 %v8170_v1  ;;  %v310_v28 = vmul.f32 %v6325_v36, %v260_v12  ;;  %v311_v29 = vmul.f32 %v6325_v36, %v261_v13 }
  0x2d   : > { %4640 = vmatprep.subr.bf16.mxu1 %v8170_v1  ;;  %v350_v59 = vadd.f32 %v6340_v51, %v300_v42  ;;  %v351_v60 = vadd.f32 %v6340_v51, %v301_v43  ;;  %v352_v61 = vadd.f32 %v6340_v51, %v302_v44  ;;  %v353_v62 = vadd.f32 %v6340_v51, %v303_v47 }
  0x2e   : > { %v354_v0 = vadd.f32 %v6340_v51, %v304_v48  ;;  %v355_v2 = vadd.f32 %v6340_v51, %v305_v49  ;;  %v356_v4 = vadd.f32 %v6340_v51, %v306_v50  ;;  %v357_v5 = vadd.f32 %v6340_v51, %v307_v52 }
  0x2f   : > { %v396_v8 = vmax.f32 %v350_v59, 0.0  ;;  %v397_v9 = vmax.f32 %v351_v60, 0.0  ;;  %v398_v10 = vmax.f32 %v352_v61, 0.0  ;;  %v399_v11 = vmax.f32 %v353_v62, 0.0  ;;  %v6113_v60 = vld [vmem:[%s8147_s1 + $0x140] sm:$0xff]   ;;  %v451_v62 = vld [vmem:[%s8148_s2 + $0x48] sm:$0xff] }
  0x30   : > { %v400_v14 = vmax.f32 %v354_v0, 0.0  ;;  %v401_v15 = vmax.f32 %v355_v2, 0.0  ;;  %v402_v16 = vmax.f32 %v356_v4, 0.0  ;;  %v403_v17 = vmax.f32 %v357_v5, 0.0  ;;  %v264_v5 = vld [vmem:[%s6312_s11 + $0x70] sm:$0xff] }
  0x31   : > { %v488_v18 = vmul.f32 %v442_v53, %v396_v8  ;;  %v489_v19 = vmul.f32 %v443_v54, %v397_v9  ;;  %v490_v20 = vmul.f32 %v444_v55, %v398_v10  ;;  %v491_v21 = vmul.f32 %v445_v56, %v399_v11  ;;  %v452_v10 = vld [vmem:[%s8148_s2 + $0x50] sm:$0xff]  ;;  %v453_v11 = vld [vmem:[%s8148_s2 + $0x58] sm:$0xff] }
  0x32   : > { %v492_v22 = vmul.f32 %v446_v63, %v400_v14  ;;  %v493_v23 = vmul.f32 %v447_v3, %v401_v15  ;;  %v494_v24 = vmul.f32 %v448_v6, %v402_v16  ;;  %v495_v25 = vmul.f32 %v449_v7, %v403_v17  ;;  %v6114_v3 = vld [vmem:[%s8147_s1] sm:$0xff]   ;;  %v265_v16 = vld [vmem:[%s6312_s11 + $0x78] sm:$0xff]  ;;  %v6115_v17 = vld [vmem:[%s8147_s1 + $0x148] sm:$0xff]  }
  0x33   : > { %v6379_v26 = vpack.c.bf16 %v489_v19, %v488_v18  ;;  %v6381_v27 = vpack.c.bf16 %v491_v21, %v490_v20  ;;  %v358_v32 = vadd.f32 %v6340_v51, %v308_v57  ;;  %v359_v33 = vadd.f32 %v6340_v51, %v309_v58  ;;  %v450_v58 = vld [vmem:[%s8148_s2 + $0x40] sm:$0xff] }
  0x34   : > { %v6385_v30 = vpack.c.bf16 %v493_v23, %v492_v22  ;;  %v6387_v31 = vpack.c.bf16 %v495_v25, %v494_v24  ;;  %v360_v52 = vadd.f32 %v6340_v51, %v310_v28  ;;  %v361_v53 = vadd.f32 %v6340_v51, %v311_v29  ;;  %v6117_v24 = vld [vmem:[%s8147_s1 + $0x8] sm:$0xff]   ;;  %v454_v29 = vld [vmem:[%s8148_s2 + $0x60] sm:$0xff] }
  0x35   : > { %v591_v34 = vshrl.u32 %v6379_v26, 16  ;;  %v593_v35 = vshll.u32 %v6379_v26, 16  ;;  %v598_v37 = vshll.u32 %v6381_v27, 16  ;;  %v602_v38 = vshrl.u32 %v6381_v27, 16 }
  0x36   : > { %v6398_v41 = vshll.u32 %v6385_v30, 16  ;;  %v6401_v42 = vshrl.u32 %v6385_v30, 16  ;;  %v6404_v43 = vshll.u32 %v6387_v31, 16  ;;  %v6407_v44 = vshrl.u32 %v6387_v31, 16 }
  0x37   : > { %v595_v45 = vrot.slane %v593_v35, 1  ;;  %v600_v46 = vrot.slane %v598_v37, 1  ;;  %v1990_v47 = vrot.slane %v602_v38, 1  ;;  %v1991_v48 = vrot.slane %v598_v37, 2 }
  0x38   : > { %v1993_v49 = vrot.slane %v6401_v42, 1  ;;  %v1994_v50 = vrot.slane %v6398_v41, 2  ;;  %v1997_v56 = vrot.slane %v6407_v44, 1  ;;  %v1998_v57 = vrot.slane %v6404_v43, 2 }
  0x39   : > { %v596_v54 = vor.u32 %v595_v45, %v591_v34  ;;  %v1992_v55 = vor.u32 %v1991_v48, %v1990_v47  ;;  %v404_v61 = vmax.f32 %v358_v32, 0.0  ;;  %v312_v63 = vmul.f32 %v6325_v36, %v262_v39  ;;  %v455_v32 = vld [vmem:[%s8148_s2 + $0x68] sm:$0xff]  ;;  %v266_v39 = vld [vmem:[%s6312_s11 + $0x80] sm:$0xff]  ;;  %v6116_v45 = vld [vmem:[%s8147_s1 + $0x150] sm:$0xff]  }
  0x3a   : > { %v1995_v59 = vor.u32 %v1994_v50, %v1993_v49  ;;  %v313_v0 = vmul.f32 %v6325_v36, %v263_v40  ;;  %v405_v4 = vmax.f32 %v359_v33, 0.0  ;;  %v604_v7 = vor.u32 %v602_v38, %v600_v46 }
  0x3b   : > { %v601_v2 = vsel %vm589_vm1, %v596_v54, %v600_v46  ;;  %v608_v8 = vrot.slane %v6398_v41, 1  ;;  %v496_v9 = vmul.f32 %v450_v58, %v404_v61  ;;  %v6441_v12 = vor.u32 %v1998_v57, %v1997_v56  ;;  %v6118_v58 = vld [vmem:[%s8147_s1 + $0x158] sm:$0xff]  }
  0x3c   : > { %4557 = vmatmul.mubr.bf16.vlgmr.msra.gmra.mrb[0].mxu1 %v601_v2  ;;  %v1996_v6 = vsel %vm1989_vm2, %v1992_v55, %v1995_v59  ;;  %v497_v13 = vmul.f32 %v451_v62, %v405_v4  ;;  %v406_v14 = vmax.f32 %v360_v52, 0.0  ;;  %v407_v15 = vmax.f32 %v361_v53, 0.0  ;;  %v267_v53 = vld [vmem:[%s6312_s11 + $0x88] sm:$0xff]  ;;  %v6120_v55 = vld [vmem:[%s8147_s1 + $0x10] sm:$0xff]   ;;  %v457_v2 = vld [vmem:[%s8148_s2 + $0x78] sm:$0xff] }
  0x3d   : > { %4957 = vmatmul.mubr.bf16.vlgmr.msra.gmra.mrb[0].mxu0 %v1996_v6  ;;  %4560 = vmatprep.mubr.msk.bf16.mxu1 %vm6188_vm0, %v8170_v1  ;;  %v362_v18 = vadd.f32 %v6340_v51, %v312_v63  ;;  %v363_v19 = vadd.f32 %v6340_v51, %v313_v0  ;;  %v314_v20 = vmul.f32 %v6325_v36, %v264_v5  ;;  %v616_v57 = vrot.slane %v6404_v43, 1 }
  0x3e   : > { %5041 = vmatpush3.bf16.msra.mxu0 %v6113_v60  ;;  %4960 = vmatprep.mubr.msk.bf16.mxu0 %vm6188_vm0, %v8170_v1  ;;  %v6453_v21 = vpack.c.bf16 %v497_v13, %v496_v9  ;;  %v498_v22 = vmul.f32 %v452_v10, %v406_v14  ;;  %v499_v23 = vmul.f32 %v453_v11, %v407_v15  ;;  %v456_v60 = vld [vmem:[%s8148_s2 + $0x70] sm:$0xff] }
  0x3f   : > { %4641 = vmatpush3.bf16.msra.mxu1 %v6114_v3  ;;  %5042 = vmatprep.subr.bf16.mxu0 %v8170_v1  ;;  %v408_v25 = vmax.f32 %v362_v18, 0.0  ;;  %v409_v28 = vmax.f32 %v363_v19, 0.0  ;;  %v315_v33 = vmul.f32 %v6325_v36, %v265_v16  ;;  %v609_v34 = vsel %vm589_vm1, %v604_v7, %v608_v8  ;;  %v458_v16 = vld [vmem:[%s8148_s2 + $0x80] sm:$0xff] }
  0x40   : > { %4642 = vmatprep.subr.bf16.mxu1 %v8170_v1  ;;  %v6468_v35 = vshll.u32 %v6453_v21, 16  ;;  %v6471_v37 = vshrl.u32 %v6453_v21, 16  ;;  %v364_v38 = vadd.f32 %v6340_v51, %v314_v20  ;;  %v2000_v40 = vsel %vm1989_vm2, %v1995_v59, %v6441_v12 }
  0x41   : > { %v6480_v46 = vpack.c.bf16 %v499_v23, %v498_v22  ;;  %v365_v47 = vadd.f32 %v6340_v51, %v315_v33  ;;  %v500_v50 = vmul.f32 %v454_v29, %v408_v25  ;;  %v501_v52 = vmul.f32 %v455_v32, %v409_v28  ;;  %v268_v23 = vld [vmem:[%s6312_s11 + $0x90] sm:$0xff]  ;;  %v6121_v32 = vld [vmem:[%s8147_s1 + $0x168] sm:$0xff]  }
  0x42   : > { %5043 = vmatpush3.bf16.msra.mxu0 %v6115_v17  ;;  %v2001_v48 = vrot.slane %v6471_v37, 1  ;;  %v2002_v49 = vrot.slane %v6468_v35, 2  ;;  %v316_v54 = vmul.f32 %v6325_v36, %v266_v39  ;;  %v612_v56 = vor.u32 %v6401_v42, %v608_v8  ;;  %v6119_v8 = vld [vmem:[%s8147_s1 + $0x160] sm:$0xff]   ;;  %v6123_v17 = vld [vmem:[%s8147_s1 + $0x18] sm:$0xff]  }
  0x43   : > { %5044 = vmatprep.subr.bf16.mxu0 %v8170_v1  ;;  %4643 = vmatpush3.bf16.msra.mxu1 %v6117_v24  ;;  %v410_v59 = vmax.f32 %v364_v38, 0.0  ;;  %v6505_v62 = vshll.u32 %v6480_v46, 16  ;;  %v6508_v63 = vshrl.u32 %v6480_v46, 16  ;;  %v411_v0 = vmax.f32 %v365_v47, 0.0  ;;  %v269_v24 = vld [vmem:[%s6312_s11 + $0x98] sm:$0xff]  ;;  %v6122_v47 = vld [vmem:[%s8147_s1 + $0x170] sm:$0xff]  }
  0x44   : > { %4561 = vmatmul.mubr.bf16.gmra.mrb[4].mxu1 %v609_v34  ;;  %4644 = vmatprep.subr.bf16.mxu1 %v8170_v1  ;;  %v2003_v61 = vor.u32 %v2002_v49, %v2001_v48  ;;  %v6513_v3 = vpack.c.bf16 %v501_v52, %v500_v50  ;;  %v317_v4 = vmul.f32 %v6325_v36, %v267_v53  ;;  %v624_v22 = vrot.slane %v6468_v35, 1  ;;  %v6126_v34 = vld [vmem:[%s8147_s1 + $0x20] sm:$0xff]  }
  0x45   : > { %4961 = vmatmul.mubr.bf16.gmra.mrb[4].mxu0 %v2000_v40  ;;  %4564 = vmatprep.mubr.msk.bf16.mxu1 %vm6188_vm0, %v8170_v1  ;;  %v366_v5 = vadd.f32 %v6340_v51, %v316_v54  ;;  %v617_v6 = vsel %vm589_vm1, %v612_v56, %v616_v57  ;;  %v502_v7 = vmul.f32 %v456_v60, %v410_v59  ;;  %v2005_v11 = vrot.slane %v6508_v63, 1  ;;  %v270_v53 = vld [vmem:[%s6312_s11 + $0xa0] sm:$0xff] }
  0x46   : > { %4964 = vmatprep.mubr.msk.bf16.mxu0 %vm6188_vm0, %v8170_v1  ;;  %5045 = vmatpush3.bf16.msra.mxu0 %v6116_v45  ;;  %v367_v9 = vadd.f32 %v6340_v51, %v317_v4  ;;  %v2004_v10 = vsel %vm1989_vm2, %v6441_v12, %v2003_v61  ;;  %v2006_v13 = vrot.slane %v6505_v62, 2  ;;  %v503_v14 = vmul.f32 %v457_v2, %v411_v0  ;;  %v459_v12 = vld [vmem:[%s8148_s2 + $0x88] sm:$0xff] }
  0x47   : > { %5046 = vmatprep.subr.bf16.mxu0 %v8170_v1  ;;  %4645 = vmatpush3.bf16.msra.mxu1 %v6120_v55  ;;  %v6529_v15 = vshrl.u32 %v6513_v3, 16  ;;  %v412_v18 = vmax.f32 %v366_v5, 0.0  ;;  %v620_v20 = vor.u32 %v6407_v44, %v616_v57  ;;  %v6550_v28 = vshll.u32 %v6513_v3, 16  ;;  %v6124_v5 = vld [vmem:[%s8147_s1 + $0x178] sm:$0xff]  }
  0x48   : > { %4646 = vmatprep.subr.bf16.mxu1 %v8170_v1  ;;  %v413_v19 = vmax.f32 %v367_v9, 0.0  ;;  %v2007_v25 = vor.u32 %v2006_v13, %v2005_v11  ;;  %v6552_v29 = vpack.c.bf16 %v503_v14, %v502_v7  ;;  %v318_v40 = vmul.f32 %v6325_v36, %v268_v23  ;;  %v461_v11 = vld [vmem:[%s8148_s2 + $0x98] sm:$0xff]  ;;  %v6130_v13 = vld [vmem:[%s8147_s1 + $0x30] sm:$0xff]  }
  0x49   : > { %v2009_v33 = vrot.slane %v6529_v15, 1  ;;  %v504_v38 = vmul.f32 %v458_v16, %v412_v18  ;;  %v319_v45 = vmul.f32 %v6325_v36, %v269_v24  ;;  %v625_v48 = vsel %vm589_vm1, %v620_v20, %v624_v22  ;;  %v272_v24 = vld [vmem:[%s6312_s11 + $0xb0] sm:$0xff] }
  0x4a   : > { %5047 = vmatpush3.bf16.msra.mxu0 %v6118_v58  ;;  %v505_v39 = vmul.f32 %v459_v12, %v413_v19  ;;  %v2008_v49 = vsel %vm1989_vm2, %v2003_v61, %v2007_v25  ;;  %v2010_v50 = vrot.slane %v6550_v28, 2  ;;  %v6572_v52 = vshrl.u32 %v6552_v29, 16  ;;  %v6128_v58 = vld [vmem:[%s8147_s1 + $0x28] sm:$0xff]  }
  0x4b   : > { %5048 = vmatprep.subr.bf16.mxu0 %v8170_v1  ;;  %4647 = vmatpush3.bf16.msra.mxu1 %v6123_v17  ;;  %v6577_v54 = vshll.u32 %v6552_v29, 16  ;;  %v368_v56 = vadd.f32 %v6340_v51, %v318_v40  ;;  %v369_v57 = vadd.f32 %v6340_v51, %v319_v45  ;;  %v628_v59 = vor.u32 %v6471_v37, %v624_v22  ;;  %v271_v61 = vld [vmem:[%s6312_s11 + $0xa8] sm:$0xff] }
  0x4c   : > { %4565 = vmatmul.mubr.bf16.gmra.mrb[8].mxu1 %v617_v6  ;;  %4648 = vmatprep.subr.bf16.mxu1 %v8170_v1  ;;  %v6579_v55 = vpack.c.bf16 %v505_v39, %v504_v38  ;;  %v632_v60 = vrot.slane %v6505_v62, 1  ;;  %v2011_v0 = vor.u32 %v2010_v50, %v2009_v33  ;;  %v2013_v2 = vrot.slane %v6572_v52, 1  ;;  %v6132_v39 = vld [vmem:[%s8147_s1 + $0x38] sm:$0xff]  }
  0x4d   : > { %4965 = vmatmul.mubr.bf16.gmra.mrb[8].mxu0 %v2004_v10  ;;  %4568 = vmatprep.mubr.msk.bf16.mxu1 %vm6188_vm0, %v8170_v1  ;;  %v320_v4 = vmul.f32 %v6325_v36, %v270_v53  ;;  %v2014_v6 = vrot.slane %v6577_v54, 2  ;;  %v415_v9 = vmax.f32 %v369_v57, 0.0  ;;  %v460_v10 = vld [vmem:[%s8148_s2 + $0x90] sm:$0xff]  ;;  %v321_v12 = vmul.f32 %v6325_v36, %v271_v61  ;;  %v463_v57 = vld [vmem:[%s8148_s2 + $0xa8] sm:$0xff] }
  0x4e   : > { %4968 = vmatprep.mubr.msk.bf16.mxu0 %vm6188_vm0, %v8170_v1  ;;  %5049 = vmatpush3.bf16.msra.mxu0 %v6119_v8  ;;  %v6602_v7 = vshrl.u32 %v6579_v55, 16  ;;  %v414_v8 = vmax.f32 %v368_v56, 0.0  ;;  %v633_v14 = vsel %vm589_vm1, %v628_v59, %v632_v60  ;;  %v2012_v16 = vsel %vm1989_vm2, %v2007_v25, %v2011_v0  ;;  %v273_v25 = vld [vmem:[%s6312_s11 + $0xb8] sm:$0xff] }
  0x4f   : > { %5050 = vmatprep.subr.bf16.mxu0 %v8170_v1  ;;  %4649 = vmatpush3.bf16.msra.mxu1 %v6126_v34  ;;  %v370_v17 = vadd.f32 %v6340_v51, %v320_v4  ;;  %v636_v18 = vor.u32 %v6508_v63, %v632_v60  ;;  %v640_v19 = vrot.slane %v6550_v28, 1  ;;  %v2015_v20 = vor.u32 %v2014_v6, %v2013_v2 }
  0x50   : > { %4650 = vmatprep.subr.bf16.mxu1 %v8170_v1  ;;  %8197 = vst [vmem:[#allocation2_spill] sm:$0xff] %v6602_v7  ;;  %v506_v22 = vmul.f32 %v460_v10, %v414_v8  ;;  %v507_v23 = vmul.f32 %v461_v11, %v415_v9  ;;  %v2017_v33 = vrot.slane %v6602_v7, 1  ;;  %v371_v34 = vadd.f32 %v6340_v51, %v321_v12  ;;  %v274_v8 = vld [vmem:[%s6312_s11 + $0xc0] sm:$0xff]  ;;  %v275_v9 = vld [vmem:[%s6312_s11 + $0xc8] sm:$0xff] }
  0x51   : > { %v416_v38 = vmax.f32 %v370_v17, 0.0  ;;  %v641_v40 = vsel %vm589_vm1, %v636_v18, %v640_v19  ;;  %v2016_v50 = vsel %vm1989_vm2, %v2011_v0, %v2015_v20  ;;  %v648_v59 = vrot.slane %v6577_v54, 1  ;;  %v464_v18 = vld [vmem:[%s8148_s2 + $0xb0] sm:$0xff] }
  0x52   : > { %5051 = vmatpush3.bf16.msra.mxu0 %v6121_v32  ;;  %v6628_v32 = vshll.u32 %v6579_v55, 16  ;;  %v6637_v45 = vpack.c.bf16 %v507_v23, %v506_v22  ;;  %v417_v56 = vmax.f32 %v371_v34, 0.0  ;;  %v324_v22 = vmul.f32 %v6325_v36, %v274_v8 }
  0x53   : > { %5052 = vmatprep.subr.bf16.mxu0 %v8170_v1  ;;  %4651 = vmatpush3.bf16.msra.mxu1 %v6128_v58  ;;  %v644_v58 = vor.u32 %v6529_v15, %v640_v19  ;;  %v465_v19 = vld [vmem:[%s8148_s2 + $0xb8] sm:$0xff]  ;;  %v325_v23 = vmul.f32 %v6325_v36, %v275_v9 }
  0x54   : > { %4569 = vmatmul.mubr.bf16.gmra.mrb[12].mxu1 %v625_v48  ;;  %4652 = vmatprep.subr.bf16.mxu1 %v8170_v1  ;;  %8198 = vst [vmem:[#allocation3_spill] sm:$0xff] %v6628_v32  ;;  %v322_v48 = vmul.f32 %v6325_v36, %v272_v24  ;;  %v2018_v53 = vrot.slane %v6628_v32, 2  ;;  %v6655_v60 = vshll.u32 %v6637_v45, 16  ;;  %v6658_v61 = vshrl.u32 %v6637_v45, 16 }
  0x55   : > { %4969 = vmatmul.mubr.bf16.gmra.mrb[12].mxu0 %v2008_v49  ;;  %4572 = vmatprep.mubr.msk.bf16.mxu1 %vm6188_vm0, %v8170_v1  ;;  %v323_v49 = vmul.f32 %v6325_v36, %v273_v25  ;;  %v509_v6 = vmul.f32 %v463_v57, %v417_v56  ;;  %v649_v10 = vsel %vm589_vm1, %v644_v58, %v648_v59 }
  0x56   : > { %4972 = vmatprep.mubr.msk.bf16.mxu0 %vm6188_vm0, %v8170_v1  ;;  %5053 = vmatpush3.bf16.msra.mxu0 %v6122_v47  ;;  %v462_v47 = vld [vmem:[%s8148_s2 + $0xa0] sm:$0xff]  ;;  %8199 = vst [vmem:[#allocation4_spill] sm:$0xff] %v6655_v60  ;;  %8200 = vst [vmem:[#allocation5_spill] sm:$0xff] %v6658_v61  ;;  %v372_v0 = vadd.f32 %v6340_v51, %v322_v48  ;;  %v2019_v4 = vor.u32 %v2018_v53, %v2017_v33  ;;  %v2021_v11 = vrot.slane %v6658_v61, 1 }
  0x57   : > { %5054 = vmatprep.subr.bf16.mxu0 %v8170_v1  ;;  %4653 = vmatpush3.bf16.msra.mxu1 %v6130_v13  ;;  %v373_v2 = vadd.f32 %v6340_v51, %v323_v49  ;;  %v2022_v13 = vrot.slane %v6655_v60, 2  ;;  %v652_v24 = vor.u32 %v6572_v52, %v648_v59  ;;  %v466_v59 = vld [vmem:[%s8148_s2 + $0xc0] sm:$0xff] }
  0x58   : > { %4654 = vmatprep.subr.bf16.mxu1 %v8170_v1  ;;  %v2020_v12 = vsel %vm1989_vm2, %v2015_v20, %v2019_v4  ;;  %v656_v20 = vrot.slane %v6628_v32, 1  ;;  %v485_v32 = vld [vmem:[%s8148_s2 + $0x158] sm:$0xff] }
  0x59   : > { %v2023_v25 = vor.u32 %v2022_v13, %v2021_v11 }
  0x5a   : > { %5055 = vmatpush3.bf16.msra.mxu0 %v6124_v5  ;;  %v508_v5 = vmul.f32 %v462_v47, %v416_v38  ;;  %v375_v47 = vadd.f32 %v6340_v51, %v325_v23  ;;  %v657_v48 = vsel %vm589_vm1, %v652_v24, %v656_v20 }
  0x5b   : > { %5140 = vmatprep.subr.bf16.mxu0 %v8170_v1  ;;  %4655 = vmatpush3.bf16.msra.mxu1 %v6132_v39  ;;  %v2024_v49 = vsel %vm1989_vm2, %v2019_v4, %v2023_v25  ;;  %v664_v4 = vrot.slane %v6655_v60, 1 }
  0x5c   : > { %4573 = vmatmul.mubr.bf16.gmra.mrb[16].mxu1 %v633_v14  ;;  %4740 = vmatprep.subr.bf16.mxu1 %v8170_v1  ;;  %v418_v14 = vmax.f32 %v372_v0, 0.0  ;;  %v6670_v17 = vpack.c.bf16 %v509_v6, %v508_v5  ;;  %v421_v58 = vmax.f32 %v375_v47, 0.0  ;;  %v467_v0 = vld [vmem:[%s8148_s2 + $0xc8] sm:$0xff] }
  0x5d   : > { %4973 = vmatmul.mubr.bf16.gmra.mrb[16].mxu0 %v2012_v16  ;;  %4576 = vmatprep.mubr.msk.bf16.mxu1 %vm6188_vm0, %v8170_v1  ;;  %v419_v16 = vmax.f32 %v373_v2, 0.0  ;;  %v660_v2 = vor.u32 %v6602_v7, %v656_v20 }
  0x5e   : > { %4976 = vmatprep.mubr.msk.bf16.mxu0 %vm6188_vm0, %v8170_v1  ;;  %v510_v33 = vmul.f32 %v464_v18, %v418_v14  ;;  %v6687_v38 = vshll.u32 %v6670_v17, 16  ;;  %v6690_v39 = vshrl.u32 %v6670_v17, 16  ;;  %v276_v18 = vld [vmem:[%s6312_s11 + $0xd0] sm:$0xff] }
  0x5f   : > { %v511_v34 = vmul.f32 %v465_v19, %v419_v16  ;;  %v665_v11 = vsel %vm589_vm1, %v660_v2, %v664_v4  ;;  %v277_v19 = vld [vmem:[%s6312_s11 + $0xd8] sm:$0xff]  ;;  %v326_v24 = vmul.f32 %v6325_v36, %v276_v18 }
  0x60   : > { %8201 = vst [vmem:[#allocation6_spill] sm:$0xff] %v6687_v38  ;;  %8202 = vst [vmem:[#allocation7_spill] sm:$0xff] %v6690_v39  ;;  %v2025_v53 = vrot.slane %v6690_v39, 1  ;;  %v2026_v56 = vrot.slane %v6687_v38, 2  ;;  %v672_v23 = vrot.slane %v6687_v38, 1  ;;  %v327_v20 = vmul.f32 %v6325_v36, %v277_v19 }
  0x61   : > { %v376_v47 = vadd.f32 %v6340_v51, %v326_v24 }
  0x62   : > { %v2027_v6 = vor.u32 %v2026_v56, %v2025_v53 }
  0x63   : > { %v422_v2 = vmax.f32 %v376_v47, 0.0 }
  0x64   : > { %4577 = vmatmul.mubr.bf16.gmra.mrb[20].mxu1 %v641_v40  ;;  %v374_v40 = vadd.f32 %v6340_v51, %v324_v22  ;;  %v2028_v13 = vsel %vm1989_vm2, %v2023_v25, %v2027_v6  ;;  %v668_v22 = vor.u32 %v6658_v61, %v664_v4  ;;  %v484_v61 = vld [vmem:[%s8148_s2 + $0x150] sm:$0xff] }
  0x65   : > { %4977 = vmatmul.mubr.bf16.gmra.mrb[20].mxu0 %v2016_v50  ;;  %4580 = vmatprep.mubr.msk.bf16.mxu1 %vm6188_vm0, %v8170_v1  ;;  %v6696_v50 = vpack.c.bf16 %v511_v34, %v510_v33 }
  0x66   : > { %4980 = vmatprep.mubr.msk.bf16.mxu0 %vm6188_vm0, %v8170_v1  ;;  %v420_v57 = vmax.f32 %v374_v40, 0.0  ;;  %v673_v40 = vsel %vm589_vm1, %v668_v22, %v672_v23 }
  0x67   : > { %v6711_v5 = vshll.u32 %v6696_v50, 16  ;;  %v6716_v8 = vshrl.u32 %v6696_v50, 16 }
  0x68   : > { %v512_v9 = vmul.f32 %v466_v59, %v420_v57  ;;  %v278_v57 = vld [vmem:[%s6312_s11 + $0xe0] sm:$0xff]  ;;  %v676_v59 = vor.u32 %v6690_v39, %v672_v23  ;;  %v280_v23 = vld [vmem:[%s6312_s11 + $0xf0] sm:$0xff] }
  0x69   : > { %8203 = vst [vmem:[#allocation8_spill] sm:$0xff] %v6711_v5  ;;  %8204 = vst [vmem:[#allocation9_spill] sm:$0xff] %v6716_v8  ;;  %v2029_v14 = vrot.slane %v6716_v8, 1  ;;  %v2030_v16 = vrot.slane %v6711_v5, 2 }
  0x6b   : > { %v2031_v25 = vor.u32 %v2030_v16, %v2029_v14 }
  0x6c   : > { %4581 = vmatmul.mubr.bf16.gmra.mrb[24].mxu1 %v649_v10  ;;  %v513_v10 = vmul.f32 %v467_v0, %v421_v58  ;;  %v279_v58 = vld [vmem:[%s6312_s11 + $0xe8] sm:$0xff]  ;;  %v680_v0 = vrot.slane %v6711_v5, 1 }
  0x6d   : > { %4981 = vmatmul.mubr.bf16.gmra.mrb[24].mxu0 %v2020_v12  ;;  %4584 = vmatprep.mubr.msk.bf16.mxu1 %vm6188_vm0, %v8170_v1 }
  0x6e   : > { %4984 = vmatprep.mubr.msk.bf16.mxu0 %vm6188_vm0, %v8170_v1  ;;  %v6722_v12 = vpack.c.bf16 %v513_v10, %v512_v9  ;;  %v329_v9 = vmul.f32 %v6325_v36, %v279_v58  ;;  %v681_v14 = vsel %vm589_vm1, %v676_v59, %v680_v0  ;;  %v2406_v58 = vrot.slane %v6385_v30, 2  ;;  %v470_v59 = vld [vmem:[%s8148_s2 + $0xe0] sm:$0xff] }
  0x70   : > { %v6735_v33 = vshll.u32 %v6722_v12, 16  ;;  %v6738_v34 = vshrl.u32 %v6722_v12, 16  ;;  %v379_v22 = vadd.f32 %v6340_v51, %v329_v9 }
  0x72   : > { %8205 = vst [vmem:[#allocation10_spill] sm:$0xff] %v6735_v33  ;;  %8206 = vst [vmem:[#allocation11_spill] sm:$0xff] %v6738_v34  ;;  %v2033_v53 = vrot.slane %v6738_v34, 1  ;;  %v2034_v56 = vrot.slane %v6735_v33, 2  ;;  %v688_v47 = vrot.slane %v6735_v33, 1  ;;  %v289_v33 = vld [vmem:[%s6312_s11 + $0x138] sm:$0xff] }
  0x74   : > { %4585 = vmatmul.mubr.bf16.gmra.mrb[28].mxu1 %v657_v48  ;;  %v377_v48 = vadd.f32 %v6340_v51, %v327_v20  ;;  %v6756_v10 = vor.u32 %v2034_v56, %v2033_v53  ;;  %v281_v20 = vld [vmem:[%s6312_s11 + $0xf8] sm:$0xff]  ;;  %v425_v56 = vmax.f32 %v379_v22, 0.0  ;;  %v692_v22 = vor.u32 %v6738_v34, %v688_v47  ;;  %v291_v34 = vld [vmem:[%s6312_s11 + $0x148] sm:$0xff] }
  0x75   : > { %4985 = vmatmul.mubr.bf16.gmra.mrb[28].mxu0 %v2024_v49  ;;  %4588 = vmatprep.mubr.msk.bf16.mxu1 %vm6188_vm0, %v8170_v1  ;;  %v2032_v49 = vsel %vm1989_vm2, %v2027_v6, %v2031_v25  ;;  %v328_v6 = vmul.f32 %v6325_v36, %v278_v57  ;;  %v331_v57 = vmul.f32 %v6325_v36, %v281_v20 }
  0x76   : > { %4988 = vmatprep.mubr.msk.bf16.mxu0 %vm6188_vm0, %v8170_v1  ;;  %v423_v4 = vmax.f32 %v377_v48, 0.0  ;;  %8207 = vst [vmem:[#allocation12_spill] sm:$0xff] %v6756_v10  ;;  %v2036_v24 = vsel %vm1989_vm2, %v2031_v25, %v6756_v10  ;;  %v330_v48 = vmul.f32 %v6325_v36, %v280_v23  ;;  %v2405_v25 = vrot.slane %v6381_v27, 2  ;;  %v286_v10 = vld [vmem:[%s6312_s11 + $0x120] sm:$0xff] }
  0x77   : > { %v378_v19 = vadd.f32 %v6340_v51, %v328_v6 }
  0x79   : > { %v424_v53 = vmax.f32 %v378_v19, 0.0  ;;  %v283_v19 = vld [vmem:[%s6312_s11 + $0x108] sm:$0xff] }
  0x7b   : > { %v516_v9 = vmul.f32 %v470_v59, %v424_v53  ;;  %v472_v53 = vld [vmem:[%s8148_s2 + $0xf0] sm:$0xff] }
  0x7c   : > { %4589 = vmatmul.mubr.bf16.gmra.mrb[32].mxu1 %v665_v11  ;;  %v468_v11 = vld [vmem:[%s8148_s2 + $0xd0] sm:$0xff] }
  0x7d   : > { %4989 = vmatmul.mubr.bf16.gmra.mrb[32].mxu0 %v2028_v13  ;;  %4592 = vmatprep.mubr.msk.bf16.mxu1 %vm6188_vm0, %v8170_v1  ;;  %v469_v13 = vld [vmem:[%s8148_s2 + $0xd8] sm:$0xff]  ;;  %v514_v16 = vmul.f32 %v468_v11, %v422_v2 }
  0x7e   : > { %4992 = vmatprep.mubr.msk.bf16.mxu0 %vm6188_vm0, %v8170_v1  ;;  %v515_v18 = vmul.f32 %v469_v13, %v423_v4  ;;  %v380_v4 = vadd.f32 %v6340_v51, %v330_v48  ;;  %v381_v13 = vadd.f32 %v6340_v51, %v331_v57  ;;  %v6127_v57 = vld [vmem:[%s8147_s1 + $0x188] sm:$0xff]  }
  0x80   : > { %v426_v23 = vmax.f32 %v380_v4, 0.0  ;;  %v427_v48 = vmax.f32 %v381_v13, 0.0 }
  0x84   : > { %4593 = vmatmul.mubr.bf16.gmra.mrb[36].mxu1 %v673_v40  ;;  %v684_v40 = vor.u32 %v6716_v8, %v680_v0  ;;  %v471_v0 = vld [vmem:[%s8148_s2 + $0xe8] sm:$0xff] }
  0x85   : > { %4993 = vmatmul.mubr.bf16.gmra.mrb[36].mxu0 %v2032_v49  ;;  %4596 = vmatprep.mubr.msk.bf16.mxu1 %vm6188_vm0, %v8170_v1  ;;  %v6776_v49 = vpack.c.bf16 %v515_v18, %v514_v16  ;;  %v517_v11 = vmul.f32 %v471_v0, %v425_v56  ;;  %v2407_v16 = vsel %vm2404_vm3, %v2405_v25, %v2406_v58  ;;  %v6125_v18 = vld [vmem:[%s8147_s1 + $0x180] sm:$0xff]   ;;  %v473_v25 = vld [vmem:[%s8148_s2 + $0xf8] sm:$0xff] }
  0x86   : > { %4996 = vmatprep.mubr.msk.bf16.mxu0 %vm6188_vm0, %v8170_v1  ;;  %v689_v2 = vsel %vm589_vm1, %v684_v40, %v688_v47  ;;  %v333_v56 = vmul.f32 %v6325_v36, %v283_v19  ;;  %v2408_v47 = vrot.slane %v6387_v31, 2  ;;  %v518_v0 = vmul.f32 %v472_v53, %v426_v23  ;;  %v6129_v19 = vld [vmem:[%s8147_s1 + $0x190] sm:$0xff]  }
  0x87   : > { %v6792_v6 = vshll.u32 %v6776_v49, 16  ;;  %v6806_v40 = vpack.c.bf16 %v517_v11, %v516_v9  ;;  %v6823_v59 = vshrl.u32 %v6776_v49, 16  ;;  %v519_v11 = vmul.f32 %v473_v25, %v427_v48  ;;  %v475_v25 = vld [vmem:[%s8148_s2 + $0x108] sm:$0xff] }
  0x88   : > { %v383_v13 = vadd.f32 %v6340_v51, %v333_v56  ;;  %v474_v56 = vld [vmem:[%s8148_s2 + $0x100] sm:$0xff] }
  0x89   : > { %8208 = vst [vmem:[#allocation13_spill] sm:$0xff] %v6792_v6  ;;  %v696_v20 = vrot.slane %v6792_v6, 1  ;;  %8209 = vst [vmem:[#allocation14_spill] sm:$0xff] %v6823_v59  ;;  %v6828_v9 = vshll.u32 %v6806_v40, 16  ;;  %v6846_v48 = vpack.c.bf16 %v519_v11, %v518_v0  ;;  %v6131_v0 = vld [vmem:[%s8147_s1 + $0x198] sm:$0xff]   ;;  %v287_v6 = vld [vmem:[%s6312_s11 + $0x128] sm:$0xff] }
  0x8a   : > { %v429_v53 = vmax.f32 %v383_v13, 0.0 }
  0x8b   : > { %v697_v4 = vsel %vm589_vm1, %v692_v22, %v696_v20  ;;  %8210 = vst [vmem:[#allocation15_spill] sm:$0xff] %v6828_v9  ;;  %v700_v22 = vor.u32 %v6823_v59, %v696_v20 }
  0x8c   : > { %4597 = vmatmul.mubr.bf16.gmra.mrb[40].mxu1 %v681_v14  ;;  %v282_v14 = vld [vmem:[%s6312_s11 + $0x100] sm:$0xff] }
  0x8d   : > { %4997 = vmatmul.mubr.bf16.gmra.mrb[40].mxu0 %v2036_v24  ;;  %4600 = vmatprep.mubr.msk.bf16.mxu1 %vm6188_vm0, %v8170_v1  ;;  %v332_v24 = vmul.f32 %v6325_v36, %v282_v14  ;;  %v284_v14 = vld [vmem:[%s6312_s11 + $0x110] sm:$0xff] }
  0x8e   : > { %5056 = vmatprep.mubr.msk.bf16.mxu0 %vm6188_vm0, %v8170_v1 }
  0x94   : > { %4601 = vmatmul.mubr.bf16.gmra.mrb[44].mxu1 %v689_v2  ;;  %v382_v2 = vadd.f32 %v6340_v51, %v332_v24  ;;  %v334_v24 = vmul.f32 %v6325_v36, %v284_v14  ;;  %v6868_v14 = vshll.u32 %v6846_v48, 16 }
  0x95   : > { %5057 = vmatmul.mubr.bf16.vlgmr.msra.gmra.mrb[0].mxu0 %v2407_v16  ;;  %4604 = vmatprep.mubr.msk.bf16.mxu1 %vm6188_vm0, %v8170_v1  ;;  %v6833_v16 = vsel %vm2404_vm3, %v2406_v58, %v2408_v47  ;;  %v704_v58 = vrot.slane %v6828_v9, 1 }
  0x96   : > { %5141 = vmatpush3.bf16.msra.mxu0 %v6125_v18  ;;  %5060 = vmatprep.mubr.msk.bf16.mxu0 %vm6188_vm0, %v8170_v1  ;;  %v285_v18 = vld [vmem:[%s6312_s11 + $0x118] sm:$0xff]  ;;  %v428_v23 = vmax.f32 %v382_v2, 0.0  ;;  %v6863_v2 = vshrl.u32 %v6806_v40, 16  ;;  %v384_v11 = vadd.f32 %v6340_v51, %v334_v24  ;;  %8212 = vst [vmem:[#allocation17_spill] sm:$0xff] %v6868_v14 }
  0x97   : > { %5142 = vmatprep.subr.bf16.mxu0 %v8170_v1  ;;  %v335_v20 = vmul.f32 %v6325_v36, %v285_v18  ;;  %v705_v13 = vsel %vm589_vm1, %v700_v22, %v704_v58  ;;  %v521_v18 = vmul.f32 %v475_v25, %v429_v53  ;;  %v336_v53 = vmul.f32 %v6325_v36, %v286_v10  ;;  %v476_v25 = vld [vmem:[%s8148_s2 + $0x110] sm:$0xff] }
  0x98   : > { %8211 = vst [vmem:[#allocation16_spill] sm:$0xff] %v6863_v2  ;;  %v708_v22 = vor.u32 %v6863_v2, %v704_v58  ;;  %v430_v24 = vmax.f32 %v384_v11, 0.0  ;;  %v337_v58 = vmul.f32 %v6325_v36, %v287_v6  ;;  %v2412_v10 = vrot.slane %v6480_v46, 2  ;;  %v288_v2 = vld [vmem:[%s6312_s11 + $0x130] sm:$0xff] }
  0x99   : > { %v6903_v11 = vshrl.u32 %v6846_v48, 16 }
  0x9a   : > { %5143 = vmatpush3.bf16.msra.mxu0 %v6127_v57  ;;  %v2410_v57 = vrot.slane %v6453_v21, 2  ;;  %v522_v6 = vmul.f32 %v476_v25, %v430_v24  ;;  %v6137_v24 = vld [vmem:[%s8147_s1 + $0x1b0] sm:$0xff]  }
  0x9b   : > { %5144 = vmatprep.subr.bf16.mxu0 %v8170_v1  ;;  %8213 = vst [vmem:[#allocation18_spill] sm:$0xff] %v6903_v11 }
  0x9c   : > { %4605 = vmatmul.mubr.bf16.gmra.mrb[48].mxu1 %v697_v4  ;;  %v520_v4 = vmul.f32 %v474_v56, %v428_v23  ;;  %v6873_v9 = vsel %vm2404_vm3, %v2408_v47, %v2410_v57  ;;  %v6133_v23 = vld [vmem:[%s8147_s1 + $0x1a0] sm:$0xff]   ;;  %v712_v47 = vrot.slane %v6868_v14, 1  ;;  %v6913_v59 = vsel %vm2404_vm3, %v2410_v57, %v2412_v10 }
  0x9d   : > { %5061 = vmatmul.mubr.bf16.gmra.mrb[4].mxu0 %v6833_v16  ;;  %4608 = vmatprep.mubr.msk.bf16.mxu1 %vm6188_vm0, %v8170_v1 }
  0x9e   : > { %5064 = vmatprep.mubr.msk.bf16.mxu0 %vm6188_vm0, %v8170_v1  ;;  %5145 = vmatpush3.bf16.msra.mxu0 %v6129_v19  ;;  %v385_v19 = vadd.f32 %v6340_v51, %v335_v20  ;;  %v6886_v56 = vpack.c.bf16 %v521_v18, %v520_v4  ;;  %v6135_v4 = vld [vmem:[%s8147_s1 + $0x1a8] sm:$0xff]   ;;  %v713_v18 = vsel %vm589_vm1, %v708_v22, %v712_v47 }
  0x9f   : > { %5146 = vmatprep.subr.bf16.mxu0 %v8170_v1  ;;  %v716_v22 = vor.u32 %v6903_v11, %v712_v47  ;;  %v339_v47 = vmul.f32 %v6325_v36, %v289_v33  ;;  %v290_v11 = vld [vmem:[%s6312_s11 + $0x140] sm:$0xff] }
  0xa0   : > { %v431_v20 = vmax.f32 %v385_v19, 0.0  ;;  %v6908_v19 = vshll.u32 %v6886_v56, 16 }
  0xa2   : > { %5147 = vmatpush3.bf16.msra.mxu0 %v6131_v0  ;;  %v477_v0 = vld [vmem:[%s8148_s2 + $0x118] sm:$0xff]  ;;  %8214 = vst [vmem:[#allocation19_spill] sm:$0xff] %v6908_v19  ;;  %v720_v57 = vrot.slane %v6908_v19, 1 }
  0xa3   : > { %5148 = vmatprep.subr.bf16.mxu0 %v8170_v1  ;;  %v523_v14 = vmul.f32 %v477_v0, %v431_v20  ;;  %v338_v20 = vmul.f32 %v6325_v36, %v288_v2  ;;  %v478_v0 = vld [vmem:[%s8148_s2 + $0x120] sm:$0xff]  ;;  %v2414_v2 = vrot.slane %v6513_v3, 2 }
  0xa4   : > { %4609 = vmatmul.mubr.bf16.gmra.mrb[52].mxu1 %v705_v13  ;;  %v386_v13 = vadd.f32 %v6340_v51, %v336_v53 }
  0xa5   : > { %5065 = vmatmul.mubr.bf16.gmra.mrb[8].mxu0 %v6873_v9  ;;  %4612 = vmatprep.mubr.msk.bf16.mxu1 %vm6188_vm0, %v8170_v1  ;;  %v6926_v25 = vpack.c.bf16 %v523_v14, %v522_v6  ;;  %v6139_v14 = vld [vmem:[%s8147_s1 + $0x1b8] sm:$0xff]   ;;  %v6943_v6 = vshrl.u32 %v6886_v56, 16  ;;  %v6954_v5 = vsel %vm2404_vm3, %v2412_v10, %v2414_v2 }
  0xa6   : > { %5068 = vmatprep.mubr.msk.bf16.mxu0 %vm6188_vm0, %v8170_v1  ;;  %5149 = vmatpush3.bf16.msra.mxu0 %v6133_v23  ;;  %v387_v23 = vadd.f32 %v6340_v51, %v337_v58  ;;  %v432_v53 = vmax.f32 %v386_v13, 0.0  ;;  %v388_v13 = vadd.f32 %v6340_v51, %v338_v20  ;;  %v340_v20 = vmul.f32 %v6325_v36, %v290_v11  ;;  %v481_v11 = vld [vmem:[%s8148_s2 + $0x138] sm:$0xff] }
  0xa7   : > { %5150 = vmatprep.subr.bf16.mxu0 %v8170_v1  ;;  %8215 = vst [vmem:[#allocation20_spill] sm:$0xff] %v6943_v6 }
  0xa8   : > { %v433_v58 = vmax.f32 %v387_v23, 0.0  ;;  %v524_v33 = vmul.f32 %v478_v0, %v432_v53  ;;  %v6948_v23 = vshll.u32 %v6926_v25, 16  ;;  %v434_v53 = vmax.f32 %v388_v13, 0.0 }
  0xaa   : > { %5151 = vmatpush3.bf16.msra.mxu0 %v6135_v4  ;;  %v479_v4 = vld [vmem:[%s8148_s2 + $0x128] sm:$0xff]  ;;  %8216 = vst [vmem:[#allocation21_spill] sm:$0xff] %v6948_v23  ;;  %v728_v0 = vrot.slane %v6948_v23, 1 }
  0xab   : > { %5152 = vmatprep.subr.bf16.mxu0 %v8170_v1  ;;  %v525_v19 = vmul.f32 %v479_v4, %v433_v58  ;;  %v724_v58 = vor.u32 %v6943_v6, %v720_v57  ;;  %v480_v4 = vld [vmem:[%s8148_s2 + $0x130] sm:$0xff]  ;;  %v8219_v6 = vmov 0.0  }
  0xac   : > { %4613 = vmatmul.mubr.bf16.gmra.mrb[56].mxu1 %v713_v18  ;;  %v721_v18 = vsel %vm589_vm1, %v716_v22, %v720_v57  ;;  %v341_v22 = vmul.f32 %v6325_v36, %v291_v34  ;;  %v2416_v34 = vrot.slane %v6552_v29, 2  ;;  %v6976_v57 = vshrl.u32 %v6926_v25, 16  ;;  %3972 = vst [vmem:[%s7998_s20] sm:$0xff] %v8219_v6 }
  0xad   : > { %5069 = vmatmul.mubr.bf16.gmra.mrb[12].mxu0 %v6913_v59  ;;  %4616 = vmatprep.mubr.msk.bf16.mxu1 %vm6188_vm0, %v8170_v1  ;;  %v6964_v10 = vpack.c.bf16 %v525_v19, %v524_v33  ;;  %v390_v19 = vadd.f32 %v6340_v51, %v340_v20  ;;  %v729_v33 = vsel %vm589_vm1, %v724_v58, %v728_v0 }
  0xae   : > { %5072 = vmatprep.mubr.msk.bf16.mxu0 %vm6188_vm0, %v8170_v1  ;;  %5153 = vmatpush3.bf16.msra.mxu0 %v6137_v24  ;;  %v389_v24 = vadd.f32 %v6340_v51, %v339_v47  ;;  %8217 = vst [vmem:[#allocation22_spill] sm:$0xff] %v6976_v57  ;;  %v732_v23 = vor.u32 %v6976_v57, %v728_v0  ;;  %v483_v0 = vld [vmem:[%s8148_s2 + $0x148] sm:$0xff] }
  0xaf   : > { %5154 = vmatprep.subr.bf16.mxu0 %v8170_v1  ;;  %v6981_v13 = vshll.u32 %v6964_v10, 16  ;;  %v436_v58 = vmax.f32 %v390_v19, 0.0 }
  0xb0   : > { %v435_v47 = vmax.f32 %v389_v24, 0.0  ;;  %v391_v24 = vadd.f32 %v6340_v51, %v341_v22  ;;  %v482_v22 = vld [vmem:[%s8148_s2 + $0x140] sm:$0xff] }
  0xb1   : > { %8218 = vst [vmem:[#allocation23_spill] sm:$0xff] %v6981_v13  ;;  %v528_v19 = vmul.f32 %v482_v22, %v436_v58 }
  0xb2   : > { %5155 = vmatpush3.bf16.msra.mxu0 %v6139_v14  ;;  %v526_v14 = vmul.f32 %v480_v4, %v434_v53  ;;  %v736_v53 = vrot.slane %v6981_v13, 1  ;;  %v437_v4 = vmax.f32 %v391_v24, 0.0 }
  0xb3   : > { %5240 = vmatprep.subr.bf16.mxu0 %v8170_v1 }
  0xb4   : > { %4617 = vmatmul.mubr.bf16.gmra.mrb[60].mxu1 %v721_v18  ;;  %v527_v18 = vmul.f32 %v481_v11, %v435_v47  ;;  %v7004_v47 = vshrl.u32 %v6964_v10, 16  ;;  %v737_v11 = vsel %vm589_vm1, %v732_v23, %v736_v53  ;;  %v2420_v23 = vrot.slane %v6637_v45, 2 }
  0xb5   : > { %5073 = vmatmul.mubr.bf16.gmra.mrb[16].mxu0 %v6954_v5  ;;  %4620 = vmatprep.mubr.msk.bf16.mxu1 %vm6188_vm0, %v8170_v1 }
  0xb6   : > { %5076 = vmatprep.mubr.msk.bf16.mxu0 %vm6188_vm0, %v8170_v1  ;;  %v6985_v1 = vsel %vm2404_vm3, %v2414_v2, %v2416_v34  ;;  %v6992_v20 = vpack.c.bf16 %v527_v18, %v526_v14  ;;  %v2418_v2 = vrot.slane %v6579_v55, 2  ;;  %8220 = vst [vmem:[#allocation24_spill] sm:$0xff] %v7004_v47  ;;  %v740_v24 = vor.u32 %v7004_v47, %v736_v53 }
  0xb8   : > { %v7008_v14 = vshll.u32 %v6992_v20, 16  ;;  %v7011_v18 = vsel %vm2404_vm3, %v2416_v34, %v2418_v2  ;;  %v7025_v58 = vshrl.u32 %v6992_v20, 16  ;;  %v7031_v22 = vsel %vm2404_vm3, %v2418_v2, %v2420_v23 }
  0xb9   : > { %v2440_v38 = vrot.slane %v6992_v20, 2 }
  0xba   : > { %8221 = vst [vmem:[#allocation25_spill] sm:$0xff] %v7008_v14  ;;  %v744_v13 = vrot.slane %v7008_v14, 1  ;;  %8222 = vst [vmem:[#allocation26_spill] sm:$0xff] %v7025_v58 }
  0xbc   : > { %4621 = vmatmul.mubr.bf16.gmra.mrb[64].mxu1 %v729_v33  ;;  %v529_v33 = vmul.f32 %v483_v0, %v437_v4  ;;  %v745_v34 = vsel %vm589_vm1, %v740_v24, %v744_v13  ;;  %v748_v53 = vor.u32 %v7025_v58, %v744_v13  ;;  %v2424_v13 = vrot.slane %v6696_v50, 2  ;;  %v293_v58 = vld [vmem:[%s6312_s11 + $0x158] sm:$0xff] }
  0xbd   : > { %5077 = vmatmul.mubr.bf16.gmra.mrb[20].mxu0 %v6985_v1  ;;  %4624 = vmatprep.mubr.msk.bf16.mxu1 %vm6188_vm0, %v8219_v6  ;;  %v343_v8 = vmul.f32 %v6325_v36, %v293_v58 }
  0xbe   : > { %5080 = vmatprep.mubr.msk.bf16.mxu0 %vm6188_vm0, %v8219_v6  ;;  %v7018_v57 = vpack.c.bf16 %v529_v33, %v528_v19 }
  0xc0   : > { %v7028_v4 = vshll.u32 %v7018_v57, 16  ;;  %v7046_v33 = vshrl.u32 %v7018_v57, 16 }
  0xc2   : > { %8223 = vst [vmem:[#allocation27_spill] sm:$0xff] %v7028_v4  ;;  %v752_v0 = vrot.slane %v7028_v4, 1  ;;  %8224 = vst [vmem:[#allocation28_spill] sm:$0xff] %v7046_v33  ;;  %v6142_v4 = vld [vmem:[%s8147_s1 + $0xa0] sm:$0xff]  }
  0xc4   : > { %4625 = vmatmul.mubr.bf16.gmra.mrb[68].mxu1 %v737_v11  ;;  %v2422_v11 = vrot.slane %v6670_v17, 2  ;;  %v753_v19 = vsel %vm589_vm1, %v748_v53, %v752_v0  ;;  %v756_v24 = vor.u32 %v7046_v33, %v752_v0  ;;  %v6134_v0 = vld [vmem:[%s8147_s1 + $0x80] sm:$0xff]   ;;  %v6146_v33 = vld [vmem:[%s8147_s1 + $0xb0] sm:$0xff]  }
  0xc5   : > { %5081 = vmatmul.mubr.bf16.gmra.mrb[24].mxu0 %v7011_v18  ;;  %4628 = vmatprep.mubr.msk.bf16.mxu1 %vm6188_vm0, %v8219_v6 }
  0xc6   : > { %5084 = vmatprep.mubr.msk.bf16.mxu0 %vm6188_vm0, %v8219_v6  ;;  %v7043_v2 = vsel %vm2404_vm3, %v2420_v23, %v2422_v11  ;;  %v2426_v23 = vrot.slane %v6722_v12, 2 }
  0xc8   : > { %v7065_v53 = vsel %vm2404_vm3, %v2424_v13, %v2426_v23 }
  0xcc   : > { %4629 = vmatmul.mubr.bf16.gmra.mrb[72].mxu1 %v745_v34  ;;  %v7056_v34 = vsel %vm2404_vm3, %v2422_v11, %v2424_v13  ;;  %v2428_v11 = vrot.slane %v6776_v49, 2 }
  0xcd   : > { %5085 = vmatmul.mubr.bf16.gmra.mrb[28].mxu0 %v7031_v22  ;;  %4632 = vmatprep.mubr.msk.bf16.mxu1 %vm6188_vm0, %v8219_v6 }
  0xce   : > { %5088 = vmatprep.mubr.msk.bf16.mxu0 %vm6188_vm0, %v8219_v6  ;;  %v7082_v13 = vsel %vm2404_vm3, %v2426_v23, %v2428_v11  ;;  %v2430_v23 = vrot.slane %v6806_v40, 2 }
  0xd4   : > { %4633 = vmatmul.mubr.bf16.gmra.mrb[76].mxu1 %v753_v19  ;;  %v6136_v19 = vld [vmem:[%s8147_s1 + $0x88] sm:$0xff]  }
  0xd5   : > { %5089 = vmatmul.mubr.bf16.gmra.mrb[32].mxu0 %v7043_v2  ;;  %4636 = vmatprep.mubr.msk.bf16.mxu1 %vm6188_vm0, %v8219_v6 }
  0xd6   : > { %5092 = vmatprep.mubr.msk.bf16.mxu0 %vm6188_vm0, %v8219_v6 }
  0xdc   : > { %4637 = vmatmul.mubr.bf16.gmra.mrb[80].mxu1 %v756_v24  ;;  %v6138_v24 = vld [vmem:[%s8147_s1 + $0x90] sm:$0xff]  }
  0xdd   : > { %5093 = vmatmul.mubr.bf16.gmra.mrb[36].mxu0 %v7056_v34  ;;  %4656 = vmatprep.mubr.msk.bf16.mxu1 %vm6188_vm0, %v8219_v6 }
  0xde   : > { %5096 = vmatprep.mubr.msk.bf16.mxu0 %vm6188_vm0, %v8219_v6 }
  0xe4   : > { %4657 = vmatmul.mubr.bf16.vlgmr.msra.gmra.mrb[0].mxu1 %v6379_v26 }
  0xe5   : > { %5097 = vmatmul.mubr.bf16.gmra.mrb[40].mxu0 %v7065_v53  ;;  %4660 = vmatprep.mubr.msk.bf16.mxu1 %vm6188_vm0, %v8219_v6 }
  0xe6   : > { %5100 = vmatprep.mubr.msk.bf16.mxu0 %vm6188_vm0, %v8219_v6  ;;  %4741 = vmatpush3.bf16.msra.mxu1 %v6134_v0  ;;  %v6140_v0 = vld [vmem:[%s8147_s1 + $0x98] sm:$0xff]  }
  0xe7   : > { %4742 = vmatprep.subr.bf16.mxu1 %v8219_v6 }
  0xea   : > { %4743 = vmatpush3.bf16.msra.mxu1 %v6136_v19  ;;  %v7100_v19 = vsel %vm2404_vm3, %v2428_v11, %v2430_v23  ;;  %v2432_v11 = vrot.slane %v6846_v48, 2 }
  0xeb   : > { %4744 = vmatprep.subr.bf16.mxu1 %v8219_v6 }
  0xec   : > { %4661 = vmatmul.mubr.bf16.gmra.mrb[4].mxu1 %v6381_v27 }
  0xed   : > { %5101 = vmatmul.mubr.bf16.gmra.mrb[44].mxu0 %v7082_v13  ;;  %4664 = vmatprep.mubr.msk.bf16.mxu1 %vm6188_vm0, %v8219_v6 }
  0xee   : > { %5104 = vmatprep.mubr.msk.bf16.mxu0 %vm6188_vm0, %v8219_v6  ;;  %4745 = vmatpush3.bf16.msra.mxu1 %v6138_v24  ;;  %v6144_v24 = vld [vmem:[%s8147_s1 + $0xa8] sm:$0xff]  }
  0xef   : > { %4746 = vmatprep.subr.bf16.mxu1 %v8219_v6 }
  0xf2   : > { %4747 = vmatpush3.bf16.msra.mxu1 %v6140_v0  ;;  %v7118_v0 = vsel %vm2404_vm3, %v2430_v23, %v2432_v11  ;;  %v6148_v23 = vld [vmem:[%s8147_s1 + $0xb8] sm:$0xff]  }
  0xf3   : > { %4748 = vmatprep.subr.bf16.mxu1 %v8219_v6 }
  0xf4   : > { %4665 = vmatmul.mubr.bf16.gmra.mrb[8].mxu1 %v6385_v30 }
  0xf5   : > { %5105 = vmatmul.mubr.bf16.gmra.mrb[48].mxu0 %v7100_v19  ;;  %4668 = vmatprep.mubr.msk.bf16.mxu1 %vm6188_vm0, %v8219_v6 }
  0xf6   : > { %5108 = vmatprep.mubr.msk.bf16.mxu0 %vm6188_vm0, %v8219_v6  ;;  %4749 = vmatpush3.bf16.msra.mxu1 %v6142_v4  ;;  %v2434_v4 = vrot.slane %v6886_v56, 2 }
  0xf7   : > { %4750 = vmatprep.subr.bf16.mxu1 %v8219_v6 }
  0xfa   : > { %4751 = vmatpush3.bf16.msra.mxu1 %v6144_v24  ;;  %v7136_v24 = vsel %vm2404_vm3, %v2432_v11, %v2434_v4  ;;  %v2438_v11 = vrot.slane %v6964_v10, 2 }
  0xfb   : > { %4752 = vmatprep.subr.bf16.mxu1 %v8219_v6 }
  0xfc   : > { %4669 = vmatmul.mubr.bf16.gmra.mrb[12].mxu1 %v6387_v31 }
  0xfd   : > { %5109 = vmatmul.mubr.bf16.gmra.mrb[52].mxu0 %v7118_v0  ;;  %4672 = vmatprep.mubr.msk.bf16.mxu1 %vm6188_vm0, %v8219_v6 }
  0xfe   : > { %5112 = vmatprep.mubr.msk.bf16.mxu0 %vm6188_vm0, %v8219_v6  ;;  %4753 = vmatpush3.bf16.msra.mxu1 %v6146_v33  ;;  %v2436_v33 = vrot.slane %v6926_v25, 2 }
  0xff   : > { %4754 = vmatprep.subr.bf16.mxu1 %v8219_v6 }
 0x100   : > { %v7147_v14 = vsel %vm2404_vm3, %v2434_v4, %v2436_v33  ;;  %v7159_v47 = vsel %vm2404_vm3, %v2436_v33, %v2438_v11  ;;  %v393_v33 = vadd.f32 %v6340_v51, %v343_v8 }
 0x102   : > { %4755 = vmatpush3.bf16.msra.mxu1 %v6148_v23  ;;  %v292_v23 = vld [vmem:[%s6312_s11 + $0x150] sm:$0xff]  ;;  %v439_v60 = vmax.f32 %v393_v33, 0.0 }
 0x103   : > { %4840 = vmatprep.subr.bf16.mxu1 %v8219_v6  ;;  %v342_v4 = vmul.f32 %v6325_v36, %v292_v23  ;;  %v7173_v23 = vsel %vm2404_vm3, %v2438_v11, %v2440_v38 }
 0x104   : > { %4673 = vmatmul.mubr.bf16.gmra.mrb[16].mxu1 %v6453_v21  ;;  %v531_v11 = vmul.f32 %v485_v32, %v439_v60  ;;  %v6141_v60 = vld [vmem:[%s8147_s1 + $0x1c0] sm:$0xff]  }
 0x105   : > { %5113 = vmatmul.mubr.bf16.gmra.mrb[56].mxu0 %v7136_v24  ;;  %4676 = vmatprep.mubr.msk.bf16.mxu1 %vm6188_vm0, %v8219_v6  ;;  %v392_v39 = vadd.f32 %v6340_v51, %v342_v4 }
 0x106   : > { %5116 = vmatprep.mubr.msk.bf16.mxu0 %vm6188_vm0, %v8219_v6 }
 0x107   : > { %v438_v58 = vmax.f32 %v392_v39, 0.0  ;;  %v2442_v39 = vrot.slane %v7018_v57, 2 }
 0x109   : > { %v530_v8 = vmul.f32 %v484_v61, %v438_v58  ;;  %v7189_v4 = vsel %vm2404_vm3, %v2440_v38, %v2442_v39  ;;  %v6143_v61 = vld [vmem:[%s8147_s1 + $0x1c8] sm:$0xff]   ;;  %v6145_v38 = vld [vmem:[%s8147_s1 + $0x1d0] sm:$0xff]   ;;  %v6149_v58 = vld [vmem:[%s8147_s1 + $0x1e0] sm:$0xff]  }
 0x10b   : > { %v7191_v33 = vpack.c.bf16 %v531_v11, %v530_v8  ;;  %v1319_v11 = vrot.slane %v6453_v21, 1 }
 0x10c   : > { %4677 = vmatmul.mubr.bf16.gmra.mrb[20].mxu1 %v6480_v46 }
 0x10d   : > { %5117 = vmatmul.mubr.bf16.gmra.mrb[60].mxu0 %v7147_v14  ;;  %4680 = vmatprep.mubr.msk.bf16.mxu1 %vm6188_vm0, %v8219_v6  ;;  %v7200_v7 = vrot.slane %v7191_v33, 2 }
 0x10e   : > { %5120 = vmatprep.mubr.msk.bf16.mxu0 %vm6188_vm0, %v8219_v6 }
 0x10f   : > { %v7204_v32 = vsel %vm2404_vm3, %v2442_v39, %v7200_v7  ;;  %v6153_v39 = vld [vmem:[%s8147_s1 + $0x1f0] sm:$0xff]  }
 0x114   : > { %4681 = vmatmul.mubr.bf16.gmra.mrb[24].mxu1 %v6513_v3 }
 0x115   : > { %5121 = vmatmul.mubr.bf16.gmra.mrb[64].mxu0 %v7159_v47  ;;  %4684 = vmatprep.mubr.msk.bf16.mxu1 %vm6188_vm0, %v8219_v6 }
 0x116   : > { %5124 = vmatprep.mubr.msk.bf16.mxu0 %vm6188_vm0, %v8219_v6 }
 0x11c   : > { %4685 = vmatmul.mubr.bf16.gmra.mrb[28].mxu1 %v6552_v29 }
 0x11d   : > { %5125 = vmatmul.mubr.bf16.gmra.mrb[68].mxu0 %v7173_v23  ;;  %4688 = vmatprep.mubr.msk.bf16.mxu1 %vm6188_vm0, %v8219_v6 }
 0x11e   : > { %5128 = vmatprep.mubr.msk.bf16.mxu0 %vm6188_vm0, %v8219_v6 }
 0x124   : > { %4689 = vmatmul.mubr.bf16.gmra.mrb[32].mxu1 %v6579_v55 }
 0x125   : > { %5129 = vmatmul.mubr.bf16.gmra.mrb[72].mxu0 %v7189_v4  ;;  %4692 = vmatprep.mubr.msk.bf16.mxu1 %vm6188_vm0, %v8219_v6 }
 0x126   : > { %5132 = vmatprep.mubr.msk.bf16.mxu0 %vm6188_vm0, %v8219_v6 }
 0x12c   : > { %4693 = vmatmul.mubr.bf16.gmra.mrb[36].mxu1 %v6637_v45 }
 0x12d   : > { %5133 = vmatmul.mubr.bf16.gmra.mrb[76].mxu0 %v7204_v32  ;;  %4696 = vmatprep.mubr.msk.bf16.mxu1 %vm6188_vm0, %v8219_v6 }
 0x12e   : > { %5136 = vmatprep.mubr.msk.bf16.mxu0 %vm6188_vm0, %v8219_v6 }
 0x134   : > { %4697 = vmatmul.mubr.bf16.gmra.mrb[40].mxu1 %v6670_v17 }
 0x135   : > { %5137 = vmatmul.mubr.bf16.gmra.mrb[80].mxu0 %v7200_v7  ;;  %4700 = vmatprep.mubr.msk.bf16.mxu1 %vm6188_vm0, %v8219_v6 }
 0x136   : > { %5156 = vmatprep.mubr.msk.bf16.mxu0 %vm6188_vm0, %v8219_v6 }
 0x13c   : > { %4701 = vmatmul.mubr.bf16.gmra.mrb[44].mxu1 %v6696_v50 }
 0x13d   : > { %5157 = vmatmul.mubr.bf16.vlgmr.msra.gmra.mrb[0].mxu0 %v6833_v16  ;;  %4704 = vmatprep.mubr.msk.bf16.mxu1 %vm6188_vm0, %v8219_v6  ;;  %v6147_v16 = vld [vmem:[%s8147_s1 + $0x1d8] sm:$0xff]  }
 0x13e   : > { %5241 = vmatpush3.bf16.msra.mxu0 %v6141_v60  ;;  %5160 = vmatprep.mubr.msk.bf16.mxu0 %vm6188_vm0, %v8219_v6  ;;  %v6160_v60 = vld [vmem:[%s8147_s1 + $0xe8] sm:$0xff]  }
 0x13f   : > { %5242 = vmatprep.subr.bf16.mxu0 %v8219_v6 }
 0x142   : > { %5243 = vmatpush3.bf16.msra.mxu0 %v6143_v61 }
 0x143   : > { %5244 = vmatprep.subr.bf16.mxu0 %v8219_v6 }
 0x144   : > { %4705 = vmatmul.mubr.bf16.gmra.mrb[48].mxu1 %v6722_v12 }
 0x145   : > { %5161 = vmatmul.mubr.bf16.gmra.mrb[4].mxu0 %v6873_v9  ;;  %4708 = vmatprep.mubr.msk.bf16.mxu1 %vm6188_vm0, %v8219_v6  ;;  %v6151_v9 = vld [vmem:[%s8147_s1 + $0x1e8] sm:$0xff]  }
 0x146   : > { %5164 = vmatprep.mubr.msk.bf16.mxu0 %vm6188_vm0, %v8219_v6  ;;  %5245 = vmatpush3.bf16.msra.mxu0 %v6145_v38  ;;  %v1321_v38 = vrot.slane %v6480_v46, 1 }
 0x147   : > { %5246 = vmatprep.subr.bf16.mxu0 %v8219_v6 }
 0x14a   : > { %5247 = vmatpush3.bf16.msra.mxu0 %v6147_v16  ;;  %v6164_v16 = vld [vmem:[%s8147_s1 + $0xf8] sm:$0xff]  }
 0x14b   : > { %5248 = vmatprep.subr.bf16.mxu0 %v8219_v6 }
 0x14c   : > { %4709 = vmatmul.mubr.bf16.gmra.mrb[52].mxu1 %v6776_v49 }
 0x14d   : > { %5165 = vmatmul.mubr.bf16.gmra.mrb[8].mxu0 %v6913_v59  ;;  %4712 = vmatprep.mubr.msk.bf16.mxu1 %vm6188_vm0, %v8219_v6  ;;  %v6155_v59 = vld [vmem:[%s8147_s1 + $0x1f8] sm:$0xff]  }
 0x14e   : > { %5168 = vmatprep.mubr.msk.bf16.mxu0 %vm6188_vm0, %v8219_v6  ;;  %5249 = vmatpush3.bf16.msra.mxu0 %v6149_v58  ;;  %v7381_v58 = vsel %vm1311_vm4, %v1319_v11, %v1321_v38 }
 0x14f   : > { %5250 = vmatprep.subr.bf16.mxu0 %v8219_v6 }
 0x152   : > { %5251 = vmatpush3.bf16.msra.mxu0 %v6151_v9 }
 0x153   : > { %5252 = vmatprep.subr.bf16.mxu0 %v8219_v6 }
 0x154   : > { %4713 = vmatmul.mubr.bf16.gmra.mrb[56].mxu1 %v6806_v40 }
 0x155   : > { %5169 = vmatmul.mubr.bf16.gmra.mrb[12].mxu0 %v6954_v5  ;;  %4716 = vmatprep.mubr.msk.bf16.mxu1 %vm6188_vm0, %v8219_v6  ;;  %v1313_v5 = vrot.slane %v6381_v27, 1  ;;  %v6152_v27 = vld [vmem:[%s8147_s1 + $0xc8] sm:$0xff]  }
 0x156   : > { %5172 = vmatprep.mubr.msk.bf16.mxu0 %vm6188_vm0, %v8219_v6  ;;  %5253 = vmatpush3.bf16.msra.mxu0 %v6153_v39  ;;  %v294_v39 = vld [vmem:[%s6312_s11 + $0x160] sm:$0xff] }
 0x157   : > { %5254 = vmatprep.subr.bf16.mxu0 %v8219_v6 }
 0x15a   : > { %5255 = vmatpush3.bf16.msra.mxu0 %v6155_v59  ;;  %v295_v59 = vld [vmem:[%s6312_s11 + $0x168] sm:$0x3] }
 0x15b   : > { %5340 = vmatprep.subr.bf16.mxu0 %v8219_v6 }
 0x15c   : > { %4717 = vmatmul.mubr.bf16.gmra.mrb[60].mxu1 %v6846_v48 }
 0x15d   : > { %5173 = vmatmul.mubr.bf16.gmra.mrb[16].mxu0 %v6985_v1  ;;  %4720 = vmatprep.mubr.msk.bf16.mxu1 %vm6188_vm0, %v8219_v6  ;;  %v1312_v1 = vrot.slane %v6379_v26, 1  ;;  %v1315_v26 = vrot.slane %v6385_v30, 1 }
 0x15e   : > { %5176 = vmatprep.mubr.msk.bf16.mxu0 %vm6188_vm0, %v8219_v6 }
 0x164   : > { %4721 = vmatmul.mubr.bf16.gmra.mrb[64].mxu1 %v6886_v56 }
 0x165   : > { %5177 = vmatmul.mubr.bf16.gmra.mrb[20].mxu0 %v7011_v18  ;;  %4724 = vmatprep.mubr.msk.bf16.mxu1 %vm6188_vm0, %v8219_v6  ;;  %v1314_v18 = vsel %vm1311_vm4, %v1312_v1, %v1313_v5 }
 0x166   : > { %5180 = vmatprep.mubr.msk.bf16.mxu0 %vm6188_vm0, %v8219_v6 }
 0x16c   : > { %4725 = vmatmul.mubr.bf16.gmra.mrb[68].mxu1 %v6926_v25 }
 0x16d   : > { %5181 = vmatmul.mubr.bf16.gmra.mrb[24].mxu0 %v7031_v22  ;;  %4728 = vmatprep.mubr.msk.bf16.mxu1 %vm6188_vm0, %v8219_v6  ;;  %v6150_v22 = vld [vmem:[%s8147_s1 + $0xc0] sm:$0xff]  }
 0x16e   : > { %5184 = vmatprep.mubr.msk.bf16.mxu0 %vm6188_vm0, %v8219_v6 }
 0x174   : > { %4729 = vmatmul.mubr.bf16.gmra.mrb[72].mxu1 %v6964_v10 }
 0x175   : > { %5185 = vmatmul.mubr.bf16.gmra.mrb[28].mxu0 %v7043_v2  ;;  %4732 = vmatprep.mubr.msk.bf16.mxu1 %vm6188_vm0, %v8219_v6  ;;  %v7327_v2 = vsel %vm1311_vm4, %v1313_v5, %v1315_v26  ;;  %v344_v5 = vmul.f32 %v6325_v36, %v294_v39  ;;  %v3084_v39 = vrot.slane %v6398_v41, 3 }
 0x176   : > { %5188 = vmatprep.mubr.msk.bf16.mxu0 %vm6188_vm0, %v8219_v6 }
 0x17c   : > { %4733 = vmatmul.mubr.bf16.gmra.mrb[76].mxu1 %v6992_v20 }
 0x17d   : > { %5189 = vmatmul.mubr.bf16.gmra.mrb[32].mxu0 %v7056_v34  ;;  %4736 = vmatprep.mubr.msk.bf16.mxu1 %vm6188_vm0, %v8219_v6  ;;  %v6154_v34 = vld [vmem:[%s8147_s1 + $0xd0] sm:$0xff]  }
 0x17e   : > { %5192 = vmatprep.mubr.msk.bf16.mxu0 %vm6188_vm0, %v8219_v6 }
 0x184   : > { %4737 = vmatmul.mubr.bf16.gmra.mrb[80].mxu1 %v7018_v57 }
 0x185   : > { %5193 = vmatmul.mubr.bf16.gmra.mrb[36].mxu0 %v7065_v53  ;;  %4756 = vmatprep.mubr.msk.bf16.mxu1 %vm6188_vm0, %v8219_v6  ;;  %v1317_v53 = vrot.slane %v6387_v31, 1 }
 0x186   : > { %5196 = vmatprep.mubr.msk.bf16.mxu0 %vm6188_vm0, %v8219_v6 }
 0x187   : > { %v7345_v8 = vsel %vm1311_vm4, %v1315_v26, %v1317_v53  ;;  %v7363_v61 = vsel %vm1311_vm4, %v1317_v53, %v1319_v11  ;;  %v487_v53 = vld [vmem:[%s8148_s2 + $0x168] sm:$0x3] }
 0x18c   : > { %4757 = vmatmul.mubr.bf16.vlgmr.msra.gmra.mrb[0].mxu1 %v1314_v18  ;;  %v345_v18 = vmul.f32 %v6325_v36, %v295_v59  ;;  %v3087_v59 = vrot.slane %v6404_v43, 3  ;;  %v6157_v43 = vld [vmem:[%s8147_s1 + $0x200] sm:$0xff]  }
 0x18d   : > { %5197 = vmatmul.mubr.bf16.gmra.mrb[40].mxu0 %v7082_v13  ;;  %4760 = vmatprep.mubr.msk.bf16.mxu1 %vm6188_vm0, %v8219_v6  ;;  %v6156_v13 = vld [vmem:[%s8147_s1 + $0xd8] sm:$0xff]  }
 0x18e   : > { %5200 = vmatprep.mubr.msk.bf16.mxu0 %vm6188_vm0, %v8219_v6  ;;  %4841 = vmatpush3.bf16.msra.mxu1 %v6150_v22  ;;  %v394_v22 = vadd.f32 %v6340_v51, %v344_v5  ;;  %v395_v26 = vadd.f32 %v6340_v51, %v345_v18  ;;  %v1329_v51 = vrot.slane %v6637_v45, 1  ;;  %v1335_v5 = vrot.slane %v6722_v12, 1 }
 0x18f   : > { %4842 = vmatprep.subr.bf16.mxu1 %v8219_v6 }
 0x190   : > { %v440_v36 = vmax.f32 %v394_v22, 0.0  ;;  %v3091_v22 = vrot.slane %v6468_v35, 3 }
 0x192   : > { %4843 = vmatpush3.bf16.msra.mxu1 %v6152_v27 }
 0x193   : > { %4844 = vmatprep.subr.bf16.mxu1 %v8219_v6 }
 0x194   : > { %4761 = vmatmul.mubr.bf16.gmra.mrb[4].mxu1 %v7327_v2 }
 0x195   : > { %5201 = vmatmul.mubr.bf16.gmra.mrb[44].mxu0 %v7100_v19  ;;  %4764 = vmatprep.mubr.msk.bf16.mxu1 %vm6188_vm0, %v8219_v6  ;;  %v6158_v19 = vld [vmem:[%s8147_s1 + $0xe0] sm:$0xff]  }
 0x196   : > { %5204 = vmatprep.mubr.msk.bf16.mxu0 %vm6188_vm0, %v8219_v6  ;;  %4845 = vmatpush3.bf16.msra.mxu1 %v6154_v34  ;;  %v441_v34 = vmax.f32 %v395_v26, 0.0  ;;  %v1337_v26 = vrot.slane %v6776_v49, 1 }
 0x197   : > { %4846 = vmatprep.subr.bf16.mxu1 %v8219_v6 }
 0x198   : > { %v7490_v35 = vsel %vm1311_vm4, %v1335_v5, %v1337_v26 }
 0x19a   : > { %4847 = vmatpush3.bf16.msra.mxu1 %v6156_v13 }
 0x19b   : > { %4848 = vmatprep.subr.bf16.mxu1 %v8219_v6 }
 0x19c   : > { %4765 = vmatmul.mubr.bf16.gmra.mrb[8].mxu1 %v7345_v8 }
 0x19d   : > { %5205 = vmatmul.mubr.bf16.gmra.mrb[48].mxu0 %v7118_v0  ;;  %4768 = vmatprep.mubr.msk.bf16.mxu1 %vm6188_vm0, %v8219_v6  ;;  %v6162_v0 = vld [vmem:[%s8147_s1 + $0xf0] sm:$0xff]  }
 0x19e   : > { %5208 = vmatprep.mubr.msk.bf16.mxu0 %vm6188_vm0, %v8219_v6  ;;  %4849 = vmatpush3.bf16.msra.mxu1 %v6158_v19  ;;  %v533_v19 = vmul.f32 %v487_v53, %v441_v34  ;;  %v6159_v34 = vld [vmem:[%s8147_s1 + $0x208] sm:$0xff]   ;;  %v3095_v53 = vrot.slane %v6505_v62, 3  ;;  %v6163_v62 = vld [vmem:[%s8147_s1 + $0x218] sm:$0xff]  }
 0x19f   : > { %4850 = vmatprep.subr.bf16.mxu1 %v8219_v6 }
 0x1a2   : > { %4851 = vmatpush3.bf16.msra.mxu1 %v6160_v60 }
 0x1a3   : > { %4852 = vmatprep.subr.bf16.mxu1 %v8219_v6 }
 0x1a4   : > { %4769 = vmatmul.mubr.bf16.gmra.mrb[12].mxu1 %v7363_v61 }
 0x1a5   : > { %5209 = vmatmul.mubr.bf16.gmra.mrb[52].mxu0 %v7136_v24  ;;  %4772 = vmatprep.mubr.msk.bf16.mxu1 %vm6188_vm0, %v8219_v6  ;;  %v1323_v24 = vrot.slane %v6513_v3, 1 }
 0x1a6   : > { %5212 = vmatprep.mubr.msk.bf16.mxu0 %vm6188_vm0, %v8219_v6  ;;  %4853 = vmatpush3.bf16.msra.mxu1 %v6162_v0 }
 0x1a7   : > { %4854 = vmatprep.subr.bf16.mxu1 %v8219_v6  ;;  %v7392_v9 = vsel %vm1311_vm4, %v1321_v38, %v1323_v24 }
 0x1aa   : > { %4855 = vmatpush3.bf16.msra.mxu1 %v6164_v16 }
 0x1ab   : > { %5440 = vmatprep.subr.bf16.mxu1 %v8219_v6 }
 0x1ac   : > { %4773 = vmatmul.mubr.bf16.gmra.mrb[16].mxu1 %v7381_v58 }
 0x1ad   : > { %5213 = vmatmul.mubr.bf16.gmra.mrb[56].mxu0 %v7147_v14  ;;  %4776 = vmatprep.mubr.msk.bf16.mxu1 %vm6188_vm0, %v8219_v6  ;;  %v1325_v14 = vrot.slane %v6552_v29, 1 }
 0x1ae   : > { %5216 = vmatprep.mubr.msk.bf16.mxu0 %vm6188_vm0, %v8219_v6 }
 0x1af   : > { %v7404_v1 = vsel %vm1311_vm4, %v1323_v24, %v1325_v14 }
 0x1b4   : > { %4777 = vmatmul.mubr.bf16.gmra.mrb[20].mxu1 %v7392_v9 }
 0x1b5   : > { %5217 = vmatmul.mubr.bf16.gmra.mrb[60].mxu0 %v7159_v47  ;;  %4780 = vmatprep.mubr.msk.bf16.mxu1 %vm6188_vm0, %v8219_v6  ;;  %v1327_v47 = vrot.slane %v6579_v55, 1 }
 0x1b6   : > { %5220 = vmatprep.mubr.msk.bf16.mxu0 %vm6188_vm0, %v8219_v6 }
 0x1b7   : > { %v7418_v27 = vsel %vm1311_vm4, %v1325_v14, %v1327_v47  ;;  %v7434_v11 = vsel %vm1311_vm4, %v1327_v47, %v1329_v51  ;;  %v3083_v14 = vrot.slane %v6401_v42, 2 }
 0x1b9   : > { %v3085_v18 = vor.u32 %v3084_v39, %v3083_v14  ;;  %v1341_v14 = vrot.slane %v6846_v48, 1 }
 0x1bc   : > { %4781 = vmatmul.mubr.bf16.gmra.mrb[24].mxu1 %v7404_v1 }
 0x1bd   : > { %5221 = vmatmul.mubr.bf16.gmra.mrb[64].mxu0 %v7173_v23  ;;  %4784 = vmatprep.mubr.msk.bf16.mxu1 %vm6188_vm0, %v8219_v6  ;;  %v486_v23 = vld [vmem:[%s8148_s2 + $0x160] sm:$0xff] }
 0x1be   : > { %5224 = vmatprep.mubr.msk.bf16.mxu0 %vm6188_vm0, %v8219_v6  ;;  %v532_v13 = vmul.f32 %v486_v23, %v440_v36  ;;  %v3094_v23 = vrot.slane %v6508_v63, 2 }
 0x1c0   : > { %v7436_v60 = vpack.c.bf16 %v533_v19, %v532_v13  ;;  %v1339_v13 = vrot.slane %v6806_v40, 1  ;;  %v3096_v63 = vor.u32 %v3095_v53, %v3094_v23 }
 0x1c2   : > { %v2773_v0 = vrot.slane %v7436_v60, 2  ;;  %v7510_v19 = vsel %vm1311_vm4, %v1337_v26, %v1339_v13  ;;  %v7530_v39 = vsel %vm1311_vm4, %v1339_v13, %v1341_v14  ;;  %v8226_v26 = vld [vmem:[#allocation3_spill] sm:$0xff] }
 0x1c4   : > { %4785 = vmatmul.mubr.bf16.gmra.mrb[28].mxu1 %v7418_v27  ;;  %v2774_v16 = vsel %vm2404_vm3, %v7200_v7, %v2773_v0  ;;  %v3086_v7 = vrot.slane %v6407_v44, 2  ;;  %v3090_v44 = vrot.slane %v6471_v37, 2 }
 0x1c5   : > { %5225 = vmatmul.mubr.bf16.gmra.mrb[68].mxu0 %v7189_v4  ;;  %4788 = vmatprep.mubr.msk.bf16.mxu1 %vm6188_vm0, %v8219_v6  ;;  %v1331_v4 = vrot.slane %v6670_v17, 1 }
 0x1c6   : > { %5228 = vmatprep.mubr.msk.bf16.mxu0 %vm6188_vm0, %v8219_v6  ;;  %v3088_v47 = vor.u32 %v3087_v59, %v3086_v7  ;;  %v3092_v36 = vor.u32 %v3091_v22, %v3090_v44  ;;  %v3102_v59 = vrot.slane %v6572_v52, 2  ;;  %v8225_v44 = vld [vmem:[#allocation2_spill] sm:$0xff] }
 0x1c7   : > { %v7447_v38 = vsel %vm1311_vm4, %v1329_v51, %v1331_v4  ;;  %v6161_v51 = vld [vmem:[%s8147_s1 + $0x210] sm:$0xff]   ;;  %v3106_v22 = vrot.slane %v8225_v44, 2 }
 0x1c8   : > { %v3089_v42 = vsel %vm3082_vm5, %v3085_v18, %v3088_v47  ;;  %v3093_v37 = vsel %vm3082_vm5, %v3088_v47, %v3092_v36  ;;  %v6167_v18 = vld [vmem:[%s8147_s1 + $0x230] sm:$0xff]   ;;  %v1343_v47 = vrot.slane %v6886_v56, 1 }
 0x1cc   : > { %4789 = vmatmul.mubr.bf16.gmra.mrb[32].mxu1 %v7434_v11 }
 0x1cd   : > { %5229 = vmatmul.mubr.bf16.gmra.mrb[72].mxu0 %v7204_v32  ;;  %4792 = vmatprep.mubr.msk.bf16.mxu1 %vm6188_vm0, %v8219_v6  ;;  %v1333_v32 = vrot.slane %v6696_v50, 1 }
 0x1ce   : > { %5232 = vmatprep.mubr.msk.bf16.mxu0 %vm6188_vm0, %v8219_v6 }
 0x1cf   : > { %v7458_v24 = vsel %vm1311_vm4, %v1331_v4, %v1333_v32  ;;  %v7471_v41 = vsel %vm1311_vm4, %v1333_v32, %v1335_v5  ;;  %v3097_v4 = vsel %vm3082_vm5, %v3092_v36, %v3096_v63  ;;  %v6165_v32 = vld [vmem:[%s8147_s1 + $0x220] sm:$0xff]   ;;  %v3103_v5 = vrot.slane %v6577_v54, 3  ;;  %v6168_v54 = vld [vmem:[%s8147_s1 + $0x238] sm:$0xff]  }
 0x1d0   : > { %v3107_v36 = vrot.slane %v8226_v26, 3 }
 0x1d1   : > { %v3104_v52 = vor.u32 %v3103_v5, %v3102_v59  ;;  %v1349_v59 = vrot.slane %v6992_v20, 1 }
 0x1d4   : > { %4793 = vmatmul.mubr.bf16.gmra.mrb[36].mxu1 %v7447_v38 }
 0x1d5   : > { %5233 = vmatmul.mubr.bf16.gmra.mrb[76].mxu0 %v2774_v16  ;;  %4796 = vmatprep.mubr.msk.bf16.mxu1 %vm6188_vm0, %v8219_v6  ;;  %v3099_v16 = vrot.slane %v6550_v28, 3  ;;  %v6166_v28 = vld [vmem:[%s8147_s1 + $0x228] sm:$0xff]  }
 0x1d6   : > { %5236 = vmatprep.mubr.msk.bf16.mxu0 %vm6188_vm0, %v8219_v6 }
 0x1dc   : > { %4797 = vmatmul.mubr.bf16.gmra.mrb[40].mxu1 %v7458_v24 }
 0x1dd   : > { %5237 = vmatmul.mubr.bf16.gmra.mrb[80].mxu0 %v2773_v0  ;;  %4800 = vmatprep.mubr.msk.bf16.mxu1 %vm6188_vm0, %v8219_v6  ;;  %v3098_v0 = vrot.slane %v6529_v15, 2 }
 0x1de   : > { %5256 = vmatprep.mubr.msk.bf16.mxu0 %vm6188_vm0, %v8219_v6 }
 0x1df   : > { %v3100_v15 = vor.u32 %v3099_v16, %v3098_v0 }
 0x1e1   : > { %v3101_v7 = vsel %vm3082_vm5, %v3096_v63, %v3100_v15  ;;  %v8228_v63 = vld [vmem:[#allocation4_spill] sm:$0xff] }
 0x1e4   : > { %4801 = vmatmul.mubr.bf16.gmra.mrb[44].mxu1 %v7471_v41 }
 0x1e5   : > { %5257 = vmatmul.mubr.bf16.vlgmr.msra.gmra.mrb[0].mxu0 %v3089_v42  ;;  %4804 = vmatprep.mubr.msk.bf16.mxu1 %vm6188_vm0, %v8219_v6  ;;  %v7550_v42 = vsel %vm1311_vm4, %v1341_v14, %v1343_v47  ;;  %v8229_v14 = vld [vmem:[#allocation7_spill] sm:$0xff] }
 0x1e6   : > { %5341 = vmatpush3.bf16.msra.mxu0 %v6157_v43  ;;  %5260 = vmatprep.mubr.msk.bf16.mxu0 %vm6188_vm0, %v8219_v6  ;;  %v3105_v43 = vsel %vm3082_vm5, %v3100_v15, %v3104_v52  ;;  %v3114_v15 = vrot.slane %v8229_v14, 2 }
 0x1e7   : > { %5342 = vmatprep.subr.bf16.mxu0 %v8219_v6 }
 0x1ea   : > { %5343 = vmatpush3.bf16.msra.mxu0 %v6159_v34  ;;  %v1345_v34 = vrot.slane %v6926_v25, 1 }
 0x1eb   : > { %5344 = vmatprep.subr.bf16.mxu0 %v8219_v6 }
 0x1ec   : > { %4805 = vmatmul.mubr.bf16.gmra.mrb[48].mxu1 %v7490_v35  ;;  %v7562_v23 = vsel %vm1311_vm4, %v1343_v47, %v1345_v34 }
 0x1ed   : > { %5261 = vmatmul.mubr.bf16.gmra.mrb[4].mxu0 %v3093_v37  ;;  %4808 = vmatprep.mubr.msk.bf16.mxu1 %vm6188_vm0, %v8219_v6  ;;  %v3108_v37 = vor.u32 %v3107_v36, %v3106_v22  ;;  %v7595_v22 = vrot.slane %v7018_v57, 1 }
 0x1ee   : > { %5264 = vmatprep.mubr.msk.bf16.mxu0 %vm6188_vm0, %v8219_v6  ;;  %5345 = vmatpush3.bf16.msra.mxu0 %v6161_v51  ;;  %v8227_v51 = vld [vmem:[#allocation5_spill] sm:$0xff] }
 0x1ef   : > { %5346 = vmatprep.subr.bf16.mxu0 %v8219_v6  ;;  %v3109_v53 = vsel %vm3082_vm5, %v3104_v52, %v3108_v37  ;;  %v3110_v13 = vrot.slane %v8227_v51, 2  ;;  %v8231_v52 = vld [vmem:[#allocation9_spill] sm:$0xff]  ;;  %v7601_v36 = vsel %vm1311_vm4, %v1349_v59, %v7595_v22  ;;  %v8234_v51 = vld [vmem:[#allocation10_spill] sm:$0xff] }
 0x1f2   : > { %5347 = vmatpush3.bf16.msra.mxu0 %v6163_v62  ;;  %v3111_v62 = vrot.slane %v8228_v63, 3 }
 0x1f3   : > { %5348 = vmatprep.subr.bf16.mxu0 %v8219_v6 }
 0x1f4   : > { %4809 = vmatmul.mubr.bf16.gmra.mrb[52].mxu1 %v7510_v19  ;;  %v3112_v0 = vor.u32 %v3111_v62, %v3110_v13  ;;  %v3123_v13 = vrot.slane %v8234_v51, 3  ;;  %v6173_v51 = vld [vmem:[%s8147_s1 + $0x110] sm:$0xff]  }
 0x1f5   : > { %5265 = vmatmul.mubr.bf16.gmra.mrb[8].mxu0 %v3097_v4  ;;  %4812 = vmatprep.mubr.msk.bf16.mxu1 %vm6188_vm0, %v8219_v6  ;;  %v1347_v4 = vrot.slane %v6964_v10, 1 }
 0x1f6   : > { %5268 = vmatprep.mubr.msk.bf16.mxu0 %vm6188_vm0, %v8219_v6  ;;  %5349 = vmatpush3.bf16.msra.mxu0 %v6165_v32  ;;  %v3113_v32 = vsel %vm3082_vm5, %v3108_v37, %v3112_v0  ;;  %v8233_v37 = vld [vmem:[#allocation11_spill] sm:$0xff] }
 0x1f7   : > { %5350 = vmatprep.subr.bf16.mxu0 %v8219_v6  ;;  %v7574_v16 = vsel %vm1311_vm4, %v1345_v34, %v1347_v4 }
 0x1fa   : > { %5351 = vmatpush3.bf16.msra.mxu0 %v6166_v28  ;;  %v8230_v28 = vld [vmem:[#allocation6_spill] sm:$0xff] }
 0x1fb   : > { %5352 = vmatprep.subr.bf16.mxu0 %v8219_v6 }
 0x1fc   : > { %4813 = vmatmul.mubr.bf16.gmra.mrb[56].mxu1 %v7530_v39 }
 0x1fd   : > { %5269 = vmatmul.mubr.bf16.gmra.mrb[12].mxu0 %v3101_v7  ;;  %4816 = vmatprep.mubr.msk.bf16.mxu1 %vm6188_vm0, %v8219_v6  ;;  %v3115_v7 = vrot.slane %v8230_v28, 3 }
 0x1fe   : > { %5272 = vmatprep.mubr.msk.bf16.mxu0 %vm6188_vm0, %v8219_v6  ;;  %5353 = vmatpush3.bf16.msra.mxu0 %v6167_v18  ;;  %v7586_v18 = vsel %vm1311_vm4, %v1347_v4, %v1349_v59  ;;  %v8235_v4 = vld [vmem:[#allocation14_spill] sm:$0xff] }
 0x1ff   : > { %5354 = vmatprep.subr.bf16.mxu0 %v8219_v6  ;;  %v3116_v5 = vor.u32 %v3115_v7, %v3114_v15  ;;  %v8237_v7 = vld [vmem:[#allocation16_spill] sm:$0xff] }
 0x200   : > { %v3130_v59 = vrot.slane %v8237_v7, 2 }
 0x201   : > { %v3117_v47 = vsel %vm3082_vm5, %v3112_v0, %v3116_v5  ;;  %v3126_v0 = vrot.slane %v8235_v4, 2 }
 0x202   : > { %5355 = vmatpush3.bf16.msra.mxu0 %v6168_v54  ;;  %v3118_v54 = vrot.slane %v8231_v52, 2  ;;  %v6171_v52 = vld [vmem:[%s8147_s1 + $0x100] sm:$0xff]  }
 0x204   : > { %4817 = vmatmul.mubr.bf16.gmra.mrb[60].mxu1 %v7550_v42 }
 0x205   : > { %5273 = vmatmul.mubr.bf16.gmra.mrb[16].mxu0 %v3105_v43  ;;  %4820 = vmatprep.mubr.msk.bf16.mxu1 %vm6188_vm0, %v8219_v6  ;;  %v8232_v43 = vld [vmem:[#allocation8_spill] sm:$0xff] }
 0x206   : > { %5276 = vmatprep.mubr.msk.bf16.mxu0 %vm6188_vm0, %v8219_v6  ;;  %v3119_v44 = vrot.slane %v8232_v43, 3 }
 0x208   : > { %v3120_v26 = vor.u32 %v3119_v44, %v3118_v54  ;;  %v8239_v44 = vld [vmem:[#allocation18_spill] sm:$0xff] }
 0x20a   : > { %v3121_v34 = vsel %vm3082_vm5, %v3116_v5, %v3120_v26  ;;  %v8238_v5 = vld [vmem:[#allocation15_spill] sm:$0xff] }
 0x20c   : > { %4821 = vmatmul.mubr.bf16.gmra.mrb[64].mxu1 %v7562_v23 }
 0x20d   : > { %5277 = vmatmul.mubr.bf16.gmra.mrb[20].mxu0 %v3109_v53  ;;  %4824 = vmatprep.mubr.msk.bf16.mxu1 %vm6188_vm0, %v8219_v6  ;;  %v3122_v53 = vrot.slane %v8233_v37, 2  ;;  %v6172_v37 = vld [vmem:[%s8147_s1 + $0x108] sm:$0xff]  }
 0x20e   : > { %5280 = vmatprep.mubr.msk.bf16.mxu0 %vm6188_vm0, %v8219_v6 }
 0x20f   : > { %v3124_v63 = vor.u32 %v3123_v13, %v3122_v53 }
 0x211   : > { %v3125_v62 = vsel %vm3082_vm5, %v3120_v26, %v3124_v63  ;;  %v3134_v26 = vrot.slane %v8239_v44, 2 }
 0x214   : > { %4825 = vmatmul.mubr.bf16.gmra.mrb[68].mxu1 %v7574_v16 }
 0x215   : > { %5281 = vmatmul.mubr.bf16.gmra.mrb[24].mxu0 %v3113_v32  ;;  %4828 = vmatprep.mubr.msk.bf16.mxu1 %vm6188_vm0, %v8219_v6  ;;  %v8236_v32 = vld [vmem:[#allocation13_spill] sm:$0xff] }
 0x216   : > { %5284 = vmatprep.mubr.msk.bf16.mxu0 %vm6188_vm0, %v8219_v6  ;;  %v3127_v14 = vrot.slane %v8236_v32, 3 }
 0x218   : > { %v3128_v15 = vor.u32 %v3127_v14, %v3126_v0  ;;  %v6174_v14 = vld [vmem:[%s8147_s1 + $0x118] sm:$0xff]  }
 0x21a   : > { %v3129_v28 = vsel %vm3082_vm5, %v3124_v63, %v3128_v15  ;;  %v8241_v63 = vld [vmem:[#allocation20_spill] sm:$0xff] }
 0x21c   : > { %4829 = vmatmul.mubr.bf16.gmra.mrb[72].mxu1 %v7586_v18 }
 0x21d   : > { %5285 = vmatmul.mubr.bf16.gmra.mrb[28].mxu0 %v3117_v47  ;;  %4832 = vmatprep.mubr.msk.bf16.mxu1 %vm6188_vm0, %v8219_v6  ;;  %v3131_v47 = vrot.slane %v8238_v5, 3 }
 0x21e   : > { %5288 = vmatprep.mubr.msk.bf16.mxu0 %vm6188_vm0, %v8219_v6 }
 0x21f   : > { %v3132_v54 = vor.u32 %v3131_v47, %v3130_v59  ;;  %v8243_v47 = vld [vmem:[#allocation22_spill] sm:$0xff] }
 0x221   : > { %v3133_v43 = vsel %vm3082_vm5, %v3128_v15, %v3132_v54 }
 0x224   : > { %4833 = vmatmul.mubr.bf16.gmra.mrb[76].mxu1 %v7601_v36 }
 0x225   : > { %5289 = vmatmul.mubr.bf16.gmra.mrb[32].mxu0 %v3121_v34  ;;  %4836 = vmatprep.mubr.msk.bf16.mxu1 %vm6188_vm0, %v8219_v6 }
 0x226   : > { %5292 = vmatprep.mubr.msk.bf16.mxu0 %vm6188_vm0, %v8219_v6 }
 0x22c   : > { %4837 = vmatmul.mubr.bf16.gmra.mrb[80].mxu1 %v7595_v22 }
 0x22d   : > { %5293 = vmatmul.mubr.bf16.gmra.mrb[36].mxu0 %v3125_v62  ;;  %4856 = vmatprep.mubr.msk.bf16.mxu1 %vm6188_vm0, %v8219_v6  ;;  %v3138_v62 = vrot.slane %v8241_v63, 2 }
 0x22e   : > { %5296 = vmatprep.mubr.msk.bf16.mxu0 %vm6188_vm0, %v8219_v6 }
 0x234   : > { %4857 = vmatmul.mubr.bf16.vlgmr.msra.gmra.mrb[0].mxu1 %v7327_v2  ;;  %v8240_v2 = vld [vmem:[#allocation17_spill] sm:$0xff] }
 0x235   : > { %5297 = vmatmul.mubr.bf16.gmra.mrb[40].mxu0 %v3129_v28  ;;  %4860 = vmatprep.mubr.msk.bf16.mxu1 %vm6188_vm0, %v8219_v6  ;;  %v3135_v34 = vrot.slane %v8240_v2, 3  ;;  %v6175_v28 = vld [vmem:[%s8147_s1 + $0x120] sm:$0xff]  }
 0x236   : > { %5300 = vmatprep.mubr.msk.bf16.mxu0 %vm6188_vm0, %v8219_v6  ;;  %5448 = vmatpush3.bf16.msra.mxu1 %v6171_v52  ;;  %v3142_v52 = vrot.slane %v8243_v47, 2 }
 0x237   : > { %5441 = vmatprep.subr.bf16.mxu1 %v8219_v6  ;;  %v3136_v53 = vor.u32 %v3135_v34, %v3134_v26  ;;  %v6177_v34 = vld [vmem:[%s8147_s1 + $0x130] sm:$0xff]  }
 0x239   : > { %v3137_v13 = vsel %vm3082_vm5, %v3132_v54, %v3136_v53 }
 0x23a   : > { %5449 = vmatpush3.bf16.msra.mxu1 %v6172_v37 }
 0x23b   : > { %5442 = vmatprep.subr.bf16.mxu1 %v8219_v6 }
 0x23c   : > { %4861 = vmatmul.mubr.bf16.gmra.mrb[4].mxu1 %v7345_v8  ;;  %v8242_v8 = vld [vmem:[#allocation19_spill] sm:$0xff] }
 0x23d   : > { %5301 = vmatmul.mubr.bf16.gmra.mrb[44].mxu0 %v3133_v43  ;;  %4864 = vmatprep.mubr.msk.bf16.mxu1 %vm6188_vm0, %v8219_v6  ;;  %v3139_v0 = vrot.slane %v8242_v8, 3  ;;  %v6176_v43 = vld [vmem:[%s8147_s1 + $0x128] sm:$0xff]  }
 0x23e   : > { %5304 = vmatprep.mubr.msk.bf16.mxu0 %vm6188_vm0, %v8219_v6  ;;  %5450 = vmatpush3.bf16.msra.mxu1 %v6173_v51 }
 0x23f   : > { %5443 = vmatprep.subr.bf16.mxu1 %v8219_v6  ;;  %v3140_v15 = vor.u32 %v3139_v0, %v3138_v62  ;;  %v6178_v62 = vld [vmem:[%s8147_s1 + $0x138] sm:$0xff]  }
 0x241   : > { %v3141_v59 = vsel %vm3082_vm5, %v3136_v53, %v3140_v15  ;;  %v8245_v53 = vld [vmem:[#allocation24_spill] sm:$0xff] }
 0x242   : > { %5451 = vmatpush3.bf16.msra.mxu1 %v6174_v14  ;;  %v3146_v51 = vrot.slane %v8245_v53, 2 }
 0x243   : > { %5444 = vmatprep.subr.bf16.mxu1 %v8219_v6 }
 0x244   : > { %4865 = vmatmul.mubr.bf16.gmra.mrb[8].mxu1 %v7363_v61  ;;  %v8244_v61 = vld [vmem:[#allocation21_spill] sm:$0xff] }
 0x245   : > { %5305 = vmatmul.mubr.bf16.gmra.mrb[48].mxu0 %v3137_v13  ;;  %4868 = vmatprep.mubr.msk.bf16.mxu1 %vm6188_vm0, %v8219_v6  ;;  %v3143_v54 = vrot.slane %v8244_v61, 3 }
 0x246   : > { %5308 = vmatprep.mubr.msk.bf16.mxu0 %vm6188_vm0, %v8219_v6  ;;  %5452 = vmatpush3.bf16.msra.mxu1 %v6175_v28 }
 0x247   : > { %5445 = vmatprep.subr.bf16.mxu1 %v8219_v6  ;;  %v3144_v26 = vor.u32 %v3143_v54, %v3142_v52 }
 0x249   : > { %v3145_v37 = vsel %vm3082_vm5, %v3140_v15, %v3144_v26  ;;  %v8247_v15 = vld [vmem:[#allocation26_spill] sm:$0xff] }
 0x24a   : > { %5453 = vmatpush3.bf16.msra.mxu1 %v6176_v43  ;;  %v3150_v28 = vrot.slane %v8247_v15, 2  ;;  %v8249_v43 = vld [vmem:[#allocation28_spill] sm:$0xff] }
 0x24b   : > { %5446 = vmatprep.subr.bf16.mxu1 %v8219_v6 }
 0x24c   : > { %4869 = vmatmul.mubr.bf16.gmra.mrb[12].mxu1 %v7381_v58  ;;  %v8246_v58 = vld [vmem:[#allocation23_spill] sm:$0xff] }
 0x24d   : > { %5309 = vmatmul.mubr.bf16.gmra.mrb[52].mxu0 %v3141_v59  ;;  %4872 = vmatprep.mubr.msk.bf16.mxu1 %vm6188_vm0, %v8219_v6  ;;  %v3147_v13 = vrot.slane %v8246_v58, 3  ;;  %v8248_v59 = vld [vmem:[#allocation25_spill] sm:$0xff] }
 0x24e   : > { %5312 = vmatprep.mubr.msk.bf16.mxu0 %vm6188_vm0, %v8219_v6  ;;  %5454 = vmatpush3.bf16.msra.mxu1 %v6177_v34  ;;  %v3151_v52 = vrot.slane %v8248_v59, 3  ;;  %v3154_v34 = vrot.slane %v8249_v43, 2 }
 0x24f   : > { %5447 = vmatprep.subr.bf16.mxu1 %v8219_v6  ;;  %v3148_v0 = vor.u32 %v3147_v13, %v3146_v51  ;;  %v2070_v51 = vshrl.u32 %v7191_v33, 16  ;;  %v2073_v13 = vshll.u32 %v7191_v33, 16 }
 0x251   : > { %v3149_v14 = vsel %vm3082_vm5, %v3144_v26, %v3148_v0 }
 0x252   : > { %5455 = vmatpush3.bf16.msra.mxu1 %v6178_v62 }
 0x254   : > { %4873 = vmatmul.mubr.bf16.gmra.mrb[16].mxu1 %v7392_v9  ;;  %v3152_v9 = vor.u32 %v3151_v52, %v3150_v28  ;;  %v3163_v28 = vshrl.u32 %v7436_v60, 16  ;;  %v3166_v52 = vshll.u32 %v7436_v60, 16 }
 0x255   : > { %5313 = vmatmul.mubr.bf16.gmra.mrb[56].mxu0 %v3145_v37  ;;  %4876 = vmatprep.mubr.msk.bf16.mxu1 %vm6188_vm0, %v8219_v6  ;;  %v8250_v37 = vld [vmem:[#allocation27_spill] sm:$0xff] }
 0x256   : > { %5316 = vmatprep.mubr.msk.bf16.mxu0 %vm6188_vm0, %v8219_v6  ;;  %v3153_v54 = vsel %vm3082_vm5, %v3148_v0, %v3152_v9  ;;  %v3155_v26 = vrot.slane %v8250_v37, 3  ;;  %v3158_v0 = vrot.slane %v2070_v51, 2 }
 0x25c   : > { %4877 = vmatmul.mubr.bf16.gmra.mrb[20].mxu1 %v7404_v1  ;;  %v3156_v1 = vor.u32 %v3155_v26, %v3154_v34  ;;  %v3168_v34 = vrot.slane %v3166_v52, 3 }
 0x25d   : > { %5317 = vmatmul.mubr.bf16.gmra.mrb[60].mxu0 %v3149_v14  ;;  %4880 = vmatprep.mubr.msk.bf16.mxu1 %vm6188_vm0, %v8219_v6 }
 0x25e   : > { %5320 = vmatprep.mubr.msk.bf16.mxu0 %vm6188_vm0, %v8219_v6  ;;  %v3157_v62 = vsel %vm3082_vm5, %v3152_v9, %v3156_v1 }
 0x264   : > { %4881 = vmatmul.mubr.bf16.gmra.mrb[24].mxu1 %v7418_v27  ;;  %v3159_v27 = vrot.slane %v2073_v13, 3 }
 0x265   : > { %5321 = vmatmul.mubr.bf16.gmra.mrb[64].mxu0 %v3153_v54  ;;  %4884 = vmatprep.mubr.msk.bf16.mxu1 %vm6188_vm0, %v8219_v6  ;;  %v3165_v54 = vrot.slane %v3163_v28, 2  ;;  %v8251_v28 = vld [vmem:[#allocation12_spill] sm:$0xff] }
 0x266   : > { %5324 = vmatprep.mubr.msk.bf16.mxu0 %vm6188_vm0, %v8219_v6  ;;  %v3160_v14 = vor.u32 %v3159_v27, %v3158_v0  ;;  %v2037_v0 = vrot.slane %v8235_v4, 1  ;;  %v2038_v27 = vrot.slane %v8236_v32, 2  ;;  %v2041_v4 = vrot.slane %v8237_v7, 1 }
 0x267   : > { %v2042_v32 = vrot.slane %v8238_v5, 2  ;;  %v2046_v7 = vrot.slane %v8240_v2, 2 }
 0x268   : > { %v3161_v9 = vsel %vm3082_vm5, %v3156_v1, %v3160_v14 }
 0x26c   : > { %4885 = vmatmul.mubr.bf16.gmra.mrb[28].mxu1 %v7434_v11  ;;  %v3169_v11 = vor.u32 %v3168_v34, %v3165_v54  ;;  %v2045_v34 = vrot.slane %v8239_v44, 1  ;;  %v2050_v44 = vrot.slane %v8242_v8, 2 }
 0x26d   : > { %5325 = vmatmul.mubr.bf16.gmra.mrb[68].mxu0 %v3157_v62  ;;  %4888 = vmatprep.mubr.msk.bf16.mxu1 %vm6188_vm0, %v8219_v6 }
 0x26e   : > { %5328 = vmatprep.mubr.msk.bf16.mxu0 %vm6188_vm0, %v8219_v6  ;;  %v3170_v26 = vsel %vm3082_vm5, %v3160_v14, %v3169_v11  ;;  %v3519_v14 = vrot.slane %v6776_v49, 3  ;;  %v3521_v49 = vrot.slane %v6806_v40, 3 }
 0x270   : > { %v3522_v5 = vsel %vm3497_vm6, %v3519_v14, %v3521_v49 }
 0x274   : > { %4889 = vmatmul.mubr.bf16.gmra.mrb[32].mxu1 %v7447_v38  ;;  %v3498_v38 = vrot.slane %v6385_v30, 3  ;;  %v3503_v30 = vrot.slane %v6480_v46, 3  ;;  %v3507_v46 = vrot.slane %v6552_v29, 3  ;;  %v3511_v29 = vrot.slane %v6637_v45, 3 }
 0x275   : > { %5329 = vmatmul.mubr.bf16.gmra.mrb[72].mxu0 %v3161_v9  ;;  %4892 = vmatprep.mubr.msk.bf16.mxu1 %vm6188_vm0, %v8219_v6  ;;  %v1680_v45 = vrot.slane %v7191_v33, 1  ;;  %v2043_v9 = vor.u32 %v2042_v32, %v2041_v4 }
 0x276   : > { %5332 = vmatprep.mubr.msk.bf16.mxu0 %vm6188_vm0, %v8219_v6 }
 0x27c   : > { %4893 = vmatmul.mubr.bf16.gmra.mrb[36].mxu1 %v7458_v24  ;;  %v3499_v24 = vrot.slane %v6387_v31, 3 }
 0x27d   : > { %5333 = vmatmul.mubr.bf16.gmra.mrb[76].mxu0 %v3170_v26  ;;  %4896 = vmatprep.mubr.msk.bf16.mxu1 %vm6188_vm0, %v8219_v6  ;;  %v3523_v26 = vrot.slane %v6846_v48, 3 }
 0x27e   : > { %5336 = vmatprep.mubr.msk.bf16.mxu0 %vm6188_vm0, %v8219_v6  ;;  %v3500_v1 = vsel %vm3497_vm6, %v3498_v38, %v3499_v24  ;;  %v2049_v38 = vrot.slane %v8241_v63, 1  ;;  %v2054_v63 = vrot.slane %v8244_v61, 2 }
 0x27f   : > { %v3524_v2 = vsel %vm3497_vm6, %v3521_v49, %v3523_v26 }
 0x284   : > { %4897 = vmatmul.mubr.bf16.gmra.mrb[40].mxu1 %v7471_v41  ;;  %v3501_v41 = vrot.slane %v6453_v21, 3  ;;  %v3505_v21 = vrot.slane %v6513_v3, 3  ;;  %v3509_v3 = vrot.slane %v6579_v55, 3  ;;  %v3513_v55 = vrot.slane %v6670_v17, 3 }
 0x285   : > { %5337 = vmatmul.mubr.bf16.gmra.mrb[80].mxu0 %v3169_v11  ;;  %4900 = vmatprep.mubr.msk.bf16.mxu1 %vm6188_vm0, %v8219_v6  ;;  %v2047_v11 = vor.u32 %v2046_v7, %v2045_v34 }
 0x286   : > { %5356 = vmatprep.mubr.msk.bf16.mxu0 %vm6188_vm0, %v8219_v6  ;;  %v3502_v62 = vsel %vm3497_vm6, %v3499_v24, %v3501_v41  ;;  %v3504_v31 = vsel %vm3497_vm6, %v3501_v41, %v3503_v30  ;;  %v2051_v24 = vor.u32 %v2050_v44, %v2049_v38  ;;  %v2053_v41 = vrot.slane %v8243_v47, 1 }
 0x287   : > { %v2048_v40 = vsel %vm1989_vm2, %v2043_v9, %v2047_v11  ;;  %v2058_v47 = vrot.slane %v8246_v58, 2 }
 0x288   : > { %v2052_v48 = vsel %vm1989_vm2, %v2047_v11, %v2051_v24 }
 0x28c   : > { %4901 = vmatmul.mubr.bf16.gmra.mrb[44].mxu1 %v7490_v35  ;;  %v3506_v35 = vsel %vm3497_vm6, %v3503_v30, %v3505_v21  ;;  %v3527_v30 = vrot.slane %v6926_v25, 3 }
 0x28d   : > { %5357 = vmatmul.mubr.bf16.vlgmr.msra.gmra.mrb[0].mxu0 %v3500_v1  ;;  %4904 = vmatprep.mubr.msk.bf16.mxu1 %vm6188_vm0, %v8219_v6  ;;  %v3525_v1 = vrot.slane %v6886_v56, 3 }
 0x28e   : > { %5360 = vmatprep.mubr.msk.bf16.mxu0 %vm6188_vm0, %v8219_v6 }
 0x28f   : > { %v3526_v8 = vsel %vm3497_vm6, %v3523_v26, %v3525_v1  ;;  %v3528_v61 = vsel %vm3497_vm6, %v3525_v1, %v3527_v30 }
 0x294   : > { %4905 = vmatmul.mubr.bf16.gmra.mrb[48].mxu1 %v7510_v19  ;;  %v3508_v19 = vsel %vm3497_vm6, %v3505_v21, %v3507_v46 }
 0x295   : > { %5361 = vmatmul.mubr.bf16.gmra.mrb[4].mxu0 %v3502_v62  ;;  %4908 = vmatprep.mubr.msk.bf16.mxu1 %vm6188_vm0, %v8219_v6  ;;  %v2055_v62 = vor.u32 %v2054_v63, %v2053_v41 }
 0x296   : > { %5364 = vmatprep.mubr.msk.bf16.mxu0 %vm6188_vm0, %v8219_v6 }
 0x297   : > { %v2056_v56 = vsel %vm1989_vm2, %v2051_v24, %v2055_v62 }
 0x29c   : > { %4909 = vmatmul.mubr.bf16.gmra.mrb[52].mxu1 %v7530_v39  ;;  %v3510_v39 = vsel %vm3497_vm6, %v3507_v46, %v3509_v3  ;;  %v2061_v46 = vrot.slane %v8247_v15, 1 }
 0x29d   : > { %5365 = vmatmul.mubr.bf16.gmra.mrb[8].mxu0 %v3504_v31  ;;  %4912 = vmatprep.mubr.msk.bf16.mxu1 %vm6188_vm0, %v8219_v6  ;;  %v2057_v31 = vrot.slane %v8245_v53, 1  ;;  %v2062_v53 = vrot.slane %v8248_v59, 2  ;;  %v2065_v59 = vrot.slane %v8249_v43, 1 }
 0x29e   : > { %5368 = vmatprep.mubr.msk.bf16.mxu0 %vm6188_vm0, %v8219_v6 }
 0x29f   : > { %v2059_v21 = vor.u32 %v2058_v47, %v2057_v31 }
 0x2a1   : > { %v2060_v25 = vsel %vm1989_vm2, %v2055_v62, %v2059_v21 }
 0x2a4   : > { %4913 = vmatmul.mubr.bf16.gmra.mrb[56].mxu1 %v7550_v42  ;;  %v3512_v42 = vsel %vm3497_vm6, %v3509_v3, %v3511_v29  ;;  %v3531_v3 = vrot.slane %v6992_v20, 3 }
 0x2a5   : > { %5369 = vmatmul.mubr.bf16.gmra.mrb[12].mxu0 %v3506_v35  ;;  %4916 = vmatprep.mubr.msk.bf16.mxu1 %vm6188_vm0, %v8219_v6  ;;  %v3529_v35 = vrot.slane %v6964_v10, 3 }
 0x2a6   : > { %5372 = vmatprep.mubr.msk.bf16.mxu0 %vm6188_vm0, %v8219_v6 }
 0x2a7   : > { %v3530_v58 = vsel %vm3497_vm6, %v3527_v30, %v3529_v35 }
 0x2ac   : > { %4917 = vmatmul.mubr.bf16.gmra.mrb[60].mxu1 %v7562_v23  ;;  %v3514_v23 = vsel %vm3497_vm6, %v3511_v29, %v3513_v55 }
 0x2ad   : > { %5373 = vmatmul.mubr.bf16.gmra.mrb[16].mxu0 %v3508_v19  ;;  %4920 = vmatprep.mubr.msk.bf16.mxu1 %vm6188_vm0, %v8219_v6  ;;  %v2063_v19 = vor.u32 %v2062_v53, %v2061_v46 }
 0x2ae   : > { %5376 = vmatprep.mubr.msk.bf16.mxu0 %vm6188_vm0, %v8219_v6 }
 0x2af   : > { %v2064_v15 = vsel %vm1989_vm2, %v2059_v21, %v2063_v19 }
 0x2b4   : > { %4921 = vmatmul.mubr.bf16.gmra.mrb[64].mxu1 %v7574_v16  ;;  %v3515_v16 = vrot.slane %v6696_v50, 3 }
 0x2b5   : > { %5377 = vmatmul.mubr.bf16.gmra.mrb[20].mxu0 %v3510_v39  ;;  %4924 = vmatprep.mubr.msk.bf16.mxu1 %vm6188_vm0, %v8219_v6 }
 0x2b6   : > { %5380 = vmatprep.mubr.msk.bf16.mxu0 %vm6188_vm0, %v8219_v6  ;;  %v3516_v17 = vsel %vm3497_vm6, %v3513_v55, %v3515_v16 }
 0x2bc   : > { %4925 = vmatmul.mubr.bf16.gmra.mrb[68].mxu1 %v7586_v18  ;;  %v1681_v18 = vsel %vm1311_vm4, %v7595_v22, %v1680_v45  ;;  %v2039_v22 = vor.u32 %v2038_v27, %v2037_v0 }
 0x2bd   : > { %5381 = vmatmul.mubr.bf16.gmra.mrb[24].mxu0 %v3512_v42  ;;  %4928 = vmatprep.mubr.msk.bf16.mxu1 %vm6188_vm0, %v8219_v6  ;;  %v2066_v42 = vrot.slane %v8250_v37, 2 }
 0x2be   : > { %5384 = vmatprep.mubr.msk.bf16.mxu0 %vm6188_vm0, %v8219_v6  ;;  %v2044_v54 = vsel %vm1989_vm2, %v2039_v22, %v2043_v9 }
 0x2bf   : > { %v2067_v20 = vor.u32 %v2066_v42, %v2065_v59  ;;  %v3850_v59 = vld [vmem:[%s8148_s2 + $0x1b] sm:$0xff] }
 0x2c1   : > { %v2068_v37 = vsel %vm1989_vm2, %v2063_v19, %v2067_v20  ;;  %v3849_v19 = vld [vmem:[%s8148_s2 + $0x13] sm:$0xff] }
 0x2c4   : > { %4929 = vmatmul.mubr.bf16.gmra.mrb[72].mxu1 %v7601_v36  ;;  %v3517_v36 = vrot.slane %v6722_v12, 3  ;;  %v2040_v12 = vsel %vm1989_vm2, %v8251_v28, %v2039_v22 }
 0x2c5   : > { %5385 = vmatmul.mubr.bf16.gmra.mrb[28].mxu0 %v3514_v23  ;;  %4932 = vmatprep.mubr.msk.bf16.mxu1 %vm6188_vm0, %v8219_v6  ;;  %v3532_v23 = vsel %vm3497_vm6, %v3529_v35, %v3531_v3 }
 0x2c6   : > { %5388 = vmatprep.mubr.msk.bf16.mxu0 %vm6188_vm0, %v8219_v6  ;;  %v3518_v50 = vsel %vm3497_vm6, %v3515_v16, %v3517_v36  ;;  %v3520_v52 = vsel %vm3497_vm6, %v3517_v36, %v3519_v14  ;;  %v2075_v36 = vrot.slane %v2073_v13, 2 }
 0x2cc   : > { %4933 = vmatmul.mubr.bf16.gmra.mrb[76].mxu1 %v1681_v18 }
 0x2cd   : > { %5389 = vmatmul.mubr.bf16.gmra.mrb[32].mxu0 %v3516_v17  ;;  %4936 = vmatprep.mubr.msk.bf16.mxu1 %vm6188_vm0, %v8219_v6  ;;  %v2072_v17 = vrot.slane %v2070_v51, 1 }
 0x2ce   : > { %5392 = vmatprep.mubr.msk.bf16.mxu0 %vm6188_vm0, %v8219_v6 }
 0x2d4   : > { %4937 = vmatmul.mubr.bf16.gmra.mrb[80].mxu1 %v1680_v45  ;;  %v3533_v45 = vrot.slane %v7018_v57, 3  ;;  %v2076_v57 = vor.u32 %v2075_v36, %v2072_v17  ;;  %v3851_v17 = vld [vmem:[%s8148_s2 + $0x23] sm:$0xff] }
 0x2d5   : > { %5393 = vmatmul.mubr.bf16.gmra.mrb[36].mxu0 %v3518_v50  ;;  %5000 = vmatprep.mubr.msk.bf16.mxu1 %vm6188_vm0, %v8219_v6  ;;  %v3535_v50 = vrot.slane %v7191_v33, 3  ;;  %v3537_v33 = vrot.slane %v7436_v60, 3 }
 0x2d6   : > { %5396 = vmatprep.mubr.msk.bf16.mxu0 %vm6188_vm0, %v8219_v6  ;;  %v3534_v27 = vsel %vm3497_vm6, %v3531_v3, %v3533_v45  ;;  %v2077_v13 = vsel %vm1989_vm2, %v2067_v20, %v2076_v57 }
 0x2d7   : > { %v3538_v49 = vsel %vm3497_vm6, %v3535_v50, %v3537_v33 }
 0x2dc   : > { %5001 = vmatmul.mubr.bf16.vlgmr.msra.gmra.mrb[44].mxu1 %v2040_v12  ;;  %v3536_v12 = vsel %vm3497_vm6, %v3533_v45, %v3535_v50 }
 0x2dd   : > { %5397 = vmatmul.mubr.bf16.gmra.mrb[40].mxu0 %v3520_v52  ;;  %5004 = vmatprep.mubr.msk.bf16.mxu1 %vm6188_vm0, %v8219_v6 }
 0x2de   : > { %5400 = vmatprep.mubr.msk.bf16.mxu0 %vm6188_vm0, %v8219_v6 }
 0x2e4   : > { %5005 = vmatmul.mubr.bf16.gmra.mrb[48].mxu1 %v2044_v54 }
 0x2e5   : > { %5401 = vmatmul.mubr.bf16.gmra.mrb[44].mxu0 %v3522_v5  ;;  %5008 = vmatprep.mubr.msk.bf16.mxu1 %vm6188_vm0, %v8219_v6 }
 0x2e6   : > { %5404 = vmatprep.mubr.msk.bf16.mxu0 %vm6188_vm0, %v8219_v6 }
 0x2ec   : > { %5009 = vmatmul.mubr.bf16.gmra.mrb[52].mxu1 %v2048_v40 }
 0x2ed   : > { %5405 = vmatmul.mubr.bf16.gmra.mrb[48].mxu0 %v3524_v2  ;;  %5012 = vmatprep.mubr.msk.bf16.mxu1 %vm6188_vm0, %v8219_v6 }
 0x2ee   : > { %5408 = vmatprep.mubr.msk.bf16.mxu0 %vm6188_vm0, %v8219_v6 }
 0x2f4   : > { %5013 = vmatmul.mubr.bf16.gmra.mrb[56].mxu1 %v2052_v48 }
 0x2f5   : > { %5409 = vmatmul.mubr.bf16.gmra.mrb[52].mxu0 %v3526_v8  ;;  %5016 = vmatprep.mubr.msk.bf16.mxu1 %vm6188_vm0, %v8219_v6 }
 0x2f6   : > { %5412 = vmatprep.mubr.msk.bf16.mxu0 %vm6188_vm0, %v8219_v6 }
 0x2fc   : > { %5017 = vmatmul.mubr.bf16.gmra.mrb[60].mxu1 %v2056_v56 }
 0x2fd   : > { %5413 = vmatmul.mubr.bf16.gmra.mrb[56].mxu0 %v3528_v61  ;;  %5020 = vmatprep.mubr.msk.bf16.mxu1 %vm6188_vm0, %v8219_v6 }
 0x2fe   : > { %5416 = vmatprep.mubr.msk.bf16.mxu0 %vm6188_vm0, %v8219_v6 }
 0x304   : > { %5021 = vmatmul.mubr.bf16.gmra.mrb[64].mxu1 %v2060_v25 }
 0x305   : > { %5417 = vmatmul.mubr.bf16.gmra.mrb[60].mxu0 %v3530_v58  ;;  %5024 = vmatprep.mubr.msk.bf16.mxu1 %vm6188_vm0, %v8219_v6 }
 0x306   : > { %5420 = vmatprep.mubr.msk.bf16.mxu0 %vm6188_vm0, %v8219_v6 }
 0x307   : > { %v7867_v10 = vpop.f32.mrb[0].mxu1 }
 0x308   : > { %v4858_v39 = vpop.f32.mrb[1].mxu1 }
 0x309   : > { %v7869_v29 = vpop.f32.mrb[2].mxu1 }
 0x30a   : > { %v4859_v55 = vpop.f32.mrb[3].mxu1 }
 0x30c   : > { %5025 = vmatmul.mubr.bf16.gmra.mrb[68].mxu1 %v2064_v15 }
 0x30d   : > { %5421 = vmatmul.mubr.bf16.gmra.mrb[64].mxu0 %v3532_v23  ;;  %5028 = vmatprep.mubr.msk.bf16.mxu1 %vm6188_vm0, %v8219_v6 }
 0x30e   : > { %5424 = vmatprep.mubr.msk.bf16.mxu0 %vm6188_vm0, %v8219_v6 }
 0x30f   : > { %v7880_v16 = vpop.f32.mrb[4].mxu1 }
 0x310   : > { %v4862_v18 = vpop.f32.mrb[5].mxu1 }
 0x311   : > { %v7882_v43 = vpop.f32.mrb[6].mxu1 }
 0x312   : > { %v4863_v0 = vpop.f32.mrb[7].mxu1 }
 0x314   : > { %5029 = vmatmul.mubr.bf16.gmra.mrb[72].mxu1 %v2068_v37 }
 0x315   : > { %5425 = vmatmul.mubr.bf16.gmra.mrb[68].mxu0 %v3534_v27  ;;  %5032 = vmatprep.mubr.msk.bf16.mxu1 %vm6188_vm0, %v8219_v6 }
 0x316   : > { %5428 = vmatprep.mubr.msk.bf16.mxu0 %vm6188_vm0, %v8219_v6 }
 0x317   : > { %v7895_v22 = vpop.f32.mrb[8].mxu1 }
 0x318   : > { %v4866_v51 = vpop.f32.mrb[9].mxu1 }
 0x319   : > { %v7897_v14 = vpop.f32.mrb[10].mxu1 }
 0x31a   : > { %v4867_v28 = vpop.f32.mrb[11].mxu1 }
 0x31c   : > { %5033 = vmatmul.mubr.bf16.gmra.mrb[76].mxu1 %v2077_v13 }
 0x31d   : > { %5429 = vmatmul.mubr.bf16.gmra.mrb[72].mxu0 %v3536_v12  ;;  %5036 = vmatprep.mubr.msk.bf16.mxu1 %vm6188_vm0, %v8219_v6 }
 0x31e   : > { %5432 = vmatprep.mubr.msk.bf16.mxu0 %vm6188_vm0, %v8219_v6 }
 0x31f   : > { %v7906_v4 = vpop.f32.mrb[12].mxu1 }
 0x320   : > { %v4870_v32 = vpop.f32.mrb[13].mxu1 }
 0x321   : > { %v7908_v52 = vpop.f32.mrb[14].mxu1 }
 0x322   : > { %v4871_v9 = vpop.f32.mrb[15].mxu1 }
 0x324   : > { %5037 = vmatmul.mubr.bf16.gmra.mrb[80].mxu1 %v2076_v57 }
 0x325   : > { %5433 = vmatmul.mubr.bf16.gmra.mrb[76].mxu0 %v3538_v49 }
 0x326   : > { %5436 = vmatprep.mubr.msk.bf16.mxu0 %vm6188_vm0, %v8219_v6 }
 0x327   : > { %v7913_v54 = vpop.f32.mrb[16].mxu1 }
 0x328   : > { %v4874_v34 = vpop.f32.mrb[17].mxu1 }
 0x329   : > { %v7915_v7 = vpop.f32.mrb[18].mxu1  ;;  %v3853_v34 = vld [vmem:[%s8148_s2 + $0x33] sm:$0xff] }
 0x32a   : > { %v4875_v5 = vpop.f32.mrb[19].mxu1 }
 0x32d   : > { %5437 = vmatmul.mubr.bf16.gmra.mrb[80].mxu0 %v3537_v33 }
 0x32f   : > { %v7917_v60 = vpop.f32.mrb[20].mxu1 }
 0x330   : > { %v4878_v11 = vpop.f32.mrb[21].mxu1 }
 0x331   : > { %v7919_v26 = vpop.f32.mrb[22].mxu1 }
 0x332   : > { %v4879_v40 = vpop.f32.mrb[23].mxu1 }
 0x337   : > { %v7921_v38 = vpop.f32.mrb[24].mxu1 }
 0x338   : > { %v4882_v44 = vpop.f32.mrb[25].mxu1 }
 0x339   : > { %v7923_v2 = vpop.f32.mrb[26].mxu1  ;;  %v3854_v44 = vld [vmem:[%s8148_s2 + $0x3b] sm:$0xff] }
 0x33a   : > { %v4883_v24 = vpop.f32.mrb[27].mxu1 }
 0x33f   : > { %v7925_v1 = vpop.f32.mrb[28].mxu1 }
 0x340   : > { %v4886_v48 = vpop.f32.mrb[29].mxu1 }
 0x341   : > { %v7927_v41 = vpop.f32.mrb[30].mxu1 }
 0x342   : > { %v4887_v63 = vpop.f32.mrb[31].mxu1 }
 0x347   : > { %v7929_v8 = vpop.f32.mrb[32].mxu1 }
 0x348   : > { %v4890_v62 = vpop.f32.mrb[33].mxu1 }
 0x349   : > { %v7931_v30 = vpop.f32.mrb[34].mxu1 }
 0x34a   : > { %v4891_v56 = vpop.f32.mrb[35].mxu1 }
 0x34f   : > { %v7933_v31 = vpop.f32.mrb[36].mxu1 }
 0x350   : > { %v4894_v47 = vpop.f32.mrb[37].mxu1 }
 0x351   : > { %v7935_v61 = vpop.f32.mrb[38].mxu1 }
 0x352   : > { %v4895_v21 = vpop.f32.mrb[39].mxu1 }
 0x357   : > { %v7937_v35 = vpop.f32.mrb[40].mxu1 }
 0x358   : > { %v4898_v25 = vpop.f32.mrb[41].mxu1 }
 0x359   : > { %v7939_v46 = vpop.f32.mrb[42].mxu1 }
 0x35a   : > { %v4899_v53 = vpop.f32.mrb[43].mxu1 }
 0x360   : > { %v3642_v58 = vpop.f32.mrb[0].mxu0 }
 0x361   : > { %v5456_v3 = vadd.f32 %v3642_v58, %v7867_v10  ;;  %v5358_v39 = vpop.f32.mrb[1].mxu0  ;;  %v3855_v58 = vld [vmem:[%s8148_s2 + $0x43] sm:$0xff] }
 0x362   : > { %v3645_v15 = vpop.f32.mrb[2].mxu0 }
 0x363   : > { %v3890_v42 = vmul.f32 %v5456_v3, %v3849_v19  ;;  %v5457_v55 = vadd.f32 %v3645_v15, %v7869_v29  ;;  %v5359_v23 = vpop.f32.mrb[3].mxu0  ;;  %v3852_v29 = vld [vmem:[%s8148_s2 + $0x2b] sm:$0xff] }
 0x364   : > { %v3856_v15 = vld [vmem:[%s8148_s2 + $0x4b] sm:$0xff] }
 0x365   : > { %3931 = vst [vmem:[%s7949_s21] sm:$0xff] %v3890_v42  ;;  %v3891_v10 = vmul.f32 %v5457_v55, %v3850_v59  ;;  %v4022_v20 = vmul.f32 %v3890_v42, %v3890_v42 }
 0x367   : > { %3932 = vst [vmem:[%s7949_s21 + $0x8] sm:$0xff] %v3891_v10  ;;  %v3973_v45 = vadd.f32 %v3891_v10, %v3890_v42  ;;  %v4023_v18 = vmul.f32 %v3891_v10, %v3891_v10 }
 0x368   : > { %v3650_v37 = vpop.f32.mrb[4].mxu0 }
 0x369   : > { %v4063_v36 = vadd.f32 %v4023_v18, %v4022_v20  ;;  %v5458_v0 = vadd.f32 %v3650_v37, %v7880_v16  ;;  %v5362_v27 = vpop.f32.mrb[5].mxu0 }
 0x36a   : > { %v3653_v57 = vpop.f32.mrb[6].mxu0 }
 0x36b   : > { %v3892_v50 = vmul.f32 %v5458_v0, %v3851_v17  ;;  %v5459_v51 = vadd.f32 %v3653_v57, %v7882_v43  ;;  %v5363_v13 = vpop.f32.mrb[7].mxu0  ;;  %v3857_v17 = vld [vmem:[%s8148_s2 + $0x53] sm:$0xff]  ;;  %v3858_v57 = vld [vmem:[%s8148_s2 + $0x5b] sm:$0xff] }
 0x36d   : > { %3933 = vst [vmem:[%s7949_s21 + $0x10] sm:$0xff] %v3892_v50  ;;  %v3974_v28 = vadd.f32 %v3973_v45, %v3892_v50  ;;  %v4024_v12 = vmul.f32 %v3892_v50, %v3892_v50  ;;  %v3893_v33 = vmul.f32 %v5459_v51, %v3852_v29 }
 0x36f   : > { %v4064_v32 = vadd.f32 %v4063_v36, %v4024_v12  ;;  %3934 = vst [vmem:[%s7949_s21 + $0x18] sm:$0xff] %v3893_v33  ;;  %v3975_v9 = vadd.f32 %v3974_v28, %v3893_v33  ;;  %v4025_v49 = vmul.f32 %v3893_v33, %v3893_v33 }
 0x370   : > { %v3658_v16 = vpop.f32.mrb[8].mxu0 }
 0x371   : > { %v4065_v5 = vadd.f32 %v4064_v32, %v4025_v49  ;;  %v5460_v11 = vadd.f32 %v3658_v16, %v7895_v22  ;;  %v5366_v43 = vpop.f32.mrb[9].mxu0  ;;  %v3859_v49 = vld [vmem:[%s8148_s2 + $0x63] sm:$0xff] }
 0x372   : > { %v3661_v40 = vpop.f32.mrb[10].mxu0 }
 0x373   : > { %v3894_v24 = vmul.f32 %v5460_v11, %v3853_v34  ;;  %v5461_v48 = vadd.f32 %v3661_v40, %v7897_v14  ;;  %v5367_v63 = vpop.f32.mrb[11].mxu0 }
 0x375   : > { %3935 = vst [vmem:[%s7949_s21 + $0x20] sm:$0xff] %v3894_v24  ;;  %v3976_v62 = vadd.f32 %v3975_v9, %v3894_v24  ;;  %v4026_v56 = vmul.f32 %v3894_v24, %v3894_v24  ;;  %v3895_v47 = vmul.f32 %v5461_v48, %v3854_v44 }
 0x377   : > { %v4066_v21 = vadd.f32 %v4065_v5, %v4026_v56  ;;  %3936 = vst [vmem:[%s7949_s21 + $0x28] sm:$0xff] %v3895_v47  ;;  %v3977_v25 = vadd.f32 %v3976_v62, %v3895_v47  ;;  %v4027_v53 = vmul.f32 %v3895_v47, %v3895_v47  ;;  %v3860_v5 = vld [vmem:[%s8148_s2 + $0x6b] sm:$0xff]  ;;  %v3861_v47 = vld [vmem:[%s8148_s2 + $0x73] sm:$0xff] }
 0x378   : > { %v3666_v22 = vpop.f32.mrb[12].mxu0 }
 0x379   : > { %v4067_v19 = vadd.f32 %v4066_v21, %v4027_v53  ;;  %v5462_v3 = vadd.f32 %v3666_v22, %v7906_v4  ;;  %v5370_v14 = vpop.f32.mrb[13].mxu0  ;;  %v3862_v22 = vld [vmem:[%s8148_s2 + $0x7b] sm:$0xff] }
 0x37a   : > { %v3669_v39 = vpop.f32.mrb[14].mxu0 }
 0x37b   : > { %v3896_v59 = vmul.f32 %v5462_v3, %v3855_v58  ;;  %v5463_v42 = vadd.f32 %v3669_v39, %v7908_v52  ;;  %v5371_v55 = vpop.f32.mrb[15].mxu0 }
 0x37d   : > { %3937 = vst [vmem:[%s7949_s21 + $0x30] sm:$0xff] %v3896_v59  ;;  %v3978_v23 = vadd.f32 %v3977_v25, %v3896_v59  ;;  %v4028_v10 = vmul.f32 %v3896_v59, %v3896_v59  ;;  %v3897_v20 = vmul.f32 %v5463_v42, %v3856_v15 }
 0x37f   : > { %v4068_v45 = vadd.f32 %v4067_v19, %v4028_v10  ;;  %3938 = vst [vmem:[%s7949_s21 + $0x38] sm:$0xff] %v3897_v20  ;;  %v3979_v18 = vadd.f32 %v3978_v23, %v3897_v20  ;;  %v4029_v4 = vmul.f32 %v3897_v20, %v3897_v20  ;;  %v3863_v23 = vld [vmem:[%s8148_s2 + $0x83] sm:$0xff] }
 0x380   : > { %v3674_v37 = vpop.f32.mrb[16].mxu0 }
 0x381   : > { %v4069_v36 = vadd.f32 %v4068_v45, %v4029_v4  ;;  %v5464_v0 = vadd.f32 %v3674_v37, %v7913_v54  ;;  %v5374_v52 = vpop.f32.mrb[17].mxu0 }
 0x382   : > { %v3677_v27 = vpop.f32.mrb[18].mxu0 }
 0x383   : > { %v3898_v29 = vmul.f32 %v5464_v0, %v3857_v17  ;;  %v5465_v50 = vadd.f32 %v3677_v27, %v7915_v7  ;;  %v5375_v51 = vpop.f32.mrb[19].mxu0 }
 0x385   : > { %3939 = vst [vmem:[%s7949_s21 + $0x40] sm:$0xff] %v3898_v29  ;;  %v3980_v54 = vadd.f32 %v3979_v18, %v3898_v29  ;;  %v4030_v13 = vmul.f32 %v3898_v29, %v3898_v29  ;;  %v3899_v28 = vmul.f32 %v5465_v50, %v3858_v57  ;;  %v3864_v18 = vld [vmem:[%s8148_s2 + $0x8b] sm:$0xff]  ;;  %v3865_v50 = vld [vmem:[%s8148_s2 + $0x93] sm:$0xff] }
 0x387   : > { %v4070_v12 = vadd.f32 %v4069_v36, %v4030_v13  ;;  %3940 = vst [vmem:[%s7949_s21 + $0x48] sm:$0xff] %v3899_v28  ;;  %v3981_v33 = vadd.f32 %v3980_v54, %v3899_v28  ;;  %v4031_v32 = vmul.f32 %v3899_v28, %v3899_v28  ;;  %v3866_v28 = vld [vmem:[%s8148_s2 + $0x9b] sm:$0xff] }
 0x388   : > { %v3682_v9 = vpop.f32.mrb[20].mxu0 }
 0x389   : > { %v4071_v16 = vadd.f32 %v4070_v12, %v4031_v32  ;;  %v5466_v7 = vadd.f32 %v3682_v9, %v7917_v60  ;;  %v5378_v34 = vpop.f32.mrb[21].mxu0 }
 0x38a   : > { %v3685_v6 = vpop.f32.mrb[22].mxu0 }
 0x38b   : > { %v3900_v11 = vmul.f32 %v5466_v7, %v3859_v49  ;;  %v5467_v43 = vadd.f32 %v3685_v6, %v7919_v26  ;;  %v5379_v40 = vpop.f32.mrb[23].mxu0 }
 0x38d   : > { %3941 = vst [vmem:[%s7949_s21 + $0x50] sm:$0xff] %v3900_v11  ;;  %v3982_v44 = vadd.f32 %v3981_v33, %v3900_v11  ;;  %v4032_v24 = vmul.f32 %v3900_v11, %v3900_v11  ;;  %v3901_v48 = vmul.f32 %v5467_v43, %v3860_v5  ;;  %v3867_v5 = vld [vmem:[%s8148_s2 + $0xa3] sm:$0xff] }
 0x38f   : > { %v4072_v63 = vadd.f32 %v4071_v16, %v4032_v24  ;;  %3942 = vst [vmem:[%s7949_s21 + $0x58] sm:$0xff] %v3901_v48  ;;  %v3983_v62 = vadd.f32 %v3982_v44, %v3901_v48  ;;  %v4033_v56 = vmul.f32 %v3901_v48, %v3901_v48  ;;  %v3868_v44 = vld [vmem:[%s8148_s2 + $0xab] sm:$0xff] }
 0x390   : > { %v3690_v60 = vpop.f32.mrb[24].mxu0 }
 0x391   : > { %v4073_v21 = vadd.f32 %v4072_v63, %v4033_v56  ;;  %v5468_v25 = vadd.f32 %v3690_v60, %v7921_v38  ;;  %v5382_v26 = vpop.f32.mrb[25].mxu0 }
 0x392   : > { %v3693_v53 = vpop.f32.mrb[26].mxu0 }
 0x393   : > { %v3902_v58 = vmul.f32 %v5468_v25, %v3861_v47  ;;  %v5469_v19 = vadd.f32 %v3693_v53, %v7923_v2  ;;  %v5383_v3 = vpop.f32.mrb[27].mxu0  ;;  %v3869_v53 = vld [vmem:[%s8148_s2 + $0xb3] sm:$0xff] }
 0x395   : > { %3943 = vst [vmem:[%s7949_s21 + $0x60] sm:$0xff] %v3902_v58  ;;  %v3984_v14 = vadd.f32 %v3983_v62, %v3902_v58  ;;  %v4034_v39 = vmul.f32 %v3902_v58, %v3902_v58  ;;  %v3903_v15 = vmul.f32 %v5469_v19, %v3862_v22 }
 0x397   : > { %v4074_v59 = vadd.f32 %v4073_v21, %v4034_v39  ;;  %3944 = vst [vmem:[%s7949_s21 + $0x68] sm:$0xff] %v3903_v15  ;;  %v3985_v42 = vadd.f32 %v3984_v14, %v3903_v15  ;;  %v4035_v55 = vmul.f32 %v3903_v15, %v3903_v15  ;;  %v3870_v39 = vld [vmem:[%s8148_s2 + $0xbb] sm:$0xff] }
 0x398   : > { %v3698_v38 = vpop.f32.mrb[28].mxu0 }
 0x399   : > { %v4075_v10 = vadd.f32 %v4074_v59, %v4035_v55  ;;  %v5470_v20 = vadd.f32 %v3698_v38, %v7925_v1  ;;  %v5386_v2 = vpop.f32.mrb[29].mxu0 }
 0x39a   : > { %v3701_v45 = vpop.f32.mrb[30].mxu0 }
 0x39b   : > { %v3904_v4 = vmul.f32 %v5470_v20, %v3863_v23  ;;  %v5471_v37 = vadd.f32 %v3701_v45, %v7927_v41  ;;  %v5387_v17 = vpop.f32.mrb[31].mxu0 }
 0x39d   : > { %3945 = vst [vmem:[%s7949_s21 + $0x70] sm:$0xff] %v3904_v4  ;;  %v3986_v36 = vadd.f32 %v3985_v42, %v3904_v4  ;;  %v4036_v0 = vmul.f32 %v3904_v4, %v3904_v4  ;;  %v3905_v52 = vmul.f32 %v5471_v37, %v3864_v18  ;;  %v3871_v4 = vld [vmem:[%s8148_s2 + $0xc3] sm:$0xff] }
 0x39f   : > { %v4076_v27 = vadd.f32 %v4075_v10, %v4036_v0  ;;  %3946 = vst [vmem:[%s7949_s21 + $0x78] sm:$0xff] %v3905_v52  ;;  %v3987_v57 = vadd.f32 %v3986_v36, %v3905_v52  ;;  %v4037_v29 = vmul.f32 %v3905_v52, %v3905_v52 }
 0x3a0   : > { %v3706_v1 = vpop.f32.mrb[32].mxu0 }
 0x3a1   : > { %v4077_v51 = vadd.f32 %v4076_v27, %v4037_v29  ;;  %v5472_v54 = vadd.f32 %v3706_v1, %v7929_v8  ;;  %v5390_v41 = vpop.f32.mrb[33].mxu0  ;;  %v3872_v27 = vld [vmem:[%s8148_s2 + $0xcb] sm:$0xff] }
 0x3a2   : > { %v3709_v13 = vpop.f32.mrb[34].mxu0 }
 0x3a3   : > { %v3906_v12 = vmul.f32 %v5472_v54, %v3865_v50  ;;  %v5473_v33 = vadd.f32 %v3709_v13, %v7931_v30  ;;  %v5391_v32 = vpop.f32.mrb[35].mxu0 }
 0x3a5   : > { %3947 = vst [vmem:[%s7949_s21 + $0x80] sm:$0xff] %v3906_v12  ;;  %v3988_v9 = vadd.f32 %v3987_v57, %v3906_v12  ;;  %v4038_v49 = vmul.f32 %v3906_v12, %v3906_v12  ;;  %v3907_v16 = vmul.f32 %v5473_v33, %v3866_v28 }
 0x3a7   : > { %v4078_v7 = vadd.f32 %v4077_v51, %v4038_v49  ;;  %3948 = vst [vmem:[%s7949_s21 + $0x88] sm:$0xff] %v3907_v16  ;;  %v3989_v34 = vadd.f32 %v3988_v9, %v3907_v16  ;;  %v4039_v6 = vmul.f32 %v3907_v16, %v3907_v16  ;;  %v3873_v9 = vld [vmem:[%s8148_s2 + $0xd3] sm:$0xff] }
 0x3a8   : > { %v3714_v8 = vpop.f32.mrb[36].mxu0 }
 0x3a9   : > { %v4079_v11 = vadd.f32 %v4078_v7, %v4039_v6  ;;  %v5474_v43 = vadd.f32 %v3714_v8, %v7933_v31  ;;  %v5394_v30 = vpop.f32.mrb[37].mxu0 }
 0x3aa   : > { %v3717_v40 = vpop.f32.mrb[38].mxu0 }
 0x3ab   : > { %v3908_v24 = vmul.f32 %v5474_v43, %v3867_v5  ;;  %v5475_v48 = vadd.f32 %v3717_v40, %v7935_v61  ;;  %v5395_v63 = vpop.f32.mrb[39].mxu0  ;;  %v3874_v5 = vld [vmem:[%s8148_s2 + $0xdb] sm:$0xff] }
 0x3ad   : > { %3949 = vst [vmem:[%s7949_s21 + $0x90] sm:$0xff] %v3908_v24  ;;  %v3990_v62 = vadd.f32 %v3989_v34, %v3908_v24  ;;  %v4040_v56 = vmul.f32 %v3908_v24, %v3908_v24  ;;  %v3909_v60 = vmul.f32 %v5475_v48, %v3868_v44 }
 0x3af   : > { %v4080_v47 = vadd.f32 %v4079_v11, %v4040_v56  ;;  %3950 = vst [vmem:[%s7949_s21 + $0x98] sm:$0xff] %v3909_v60  ;;  %v3991_v21 = vadd.f32 %v3990_v62, %v3909_v60  ;;  %v4041_v25 = vmul.f32 %v3909_v60, %v3909_v60  ;;  %v2269_v31 = vpop.f32.mrb[44].mxu1 }
 0x3b0   : > { %v3722_v26 = vpop.f32.mrb[40].mxu0  ;;  %v5002_v22 = vpop.f32.mrb[45].mxu1 }
 0x3b1   : > { %v4081_v58 = vadd.f32 %v4080_v47, %v4041_v25  ;;  %v5476_v61 = vadd.f32 %v3722_v26, %v7937_v35  ;;  %v5398_v19 = vpop.f32.mrb[41].mxu0  ;;  %v2272_v3 = vpop.f32.mrb[46].mxu1 }
 0x3b2   : > { %v3725_v14 = vpop.f32.mrb[42].mxu0  ;;  %v5003_v15 = vpop.f32.mrb[47].mxu1 }
 0x3b3   : > { %v3910_v59 = vmul.f32 %v5476_v61, %v3869_v53  ;;  %v5477_v42 = vadd.f32 %v3725_v14, %v7939_v46  ;;  %v5399_v55 = vpop.f32.mrb[43].mxu0  ;;  %v3876_v61 = vld [vmem:[%s8148_s2 + $0xeb] sm:$0xff] }
 0x3b5   : > { %3951 = vst [vmem:[%s7949_s21 + $0xa0] sm:$0xff] %v3910_v59  ;;  %v3992_v38 = vadd.f32 %v3991_v21, %v3910_v59  ;;  %v4042_v23 = vmul.f32 %v3910_v59, %v3910_v59  ;;  %v3911_v10 = vmul.f32 %v5477_v42, %v3870_v39  ;;  %v3875_v21 = vld [vmem:[%s8148_s2 + $0xe3] sm:$0xff] }
 0x3b7   : > { %v4082_v20 = vadd.f32 %v4081_v58, %v4042_v23  ;;  %3952 = vst [vmem:[%s7949_s21 + $0xa8] sm:$0xff] %v3911_v10  ;;  %v3993_v2 = vadd.f32 %v3992_v38, %v3911_v10  ;;  %v4043_v35 = vmul.f32 %v3911_v10, %v3911_v10  ;;  %v2277_v45 = vpop.f32.mrb[48].mxu1 }
 0x3b8   : > { %v3730_v18 = vpop.f32.mrb[44].mxu0  ;;  %v5006_v37 = vpop.f32.mrb[49].mxu1 }
 0x3b9   : > { %v4083_v17 = vadd.f32 %v4082_v20, %v4043_v35  ;;  %v5478_v46 = vadd.f32 %v3730_v18, %v2269_v31  ;;  %v5402_v36 = vpop.f32.mrb[45].mxu0  ;;  %v2280_v0 = vpop.f32.mrb[50].mxu1 }
 0x3ba   : > { %v3733_v52 = vpop.f32.mrb[46].mxu0  ;;  %v5007_v57 = vpop.f32.mrb[51].mxu1 }
 0x3bb   : > { %v3912_v29 = vmul.f32 %v5478_v46, %v3871_v4  ;;  %v5479_v1 = vadd.f32 %v3733_v52, %v2272_v3  ;;  %v5403_v50 = vpop.f32.mrb[47].mxu0  ;;  %v3878_v46 = vld [vmem:[%s8148_s2 + $0xfb] sm:$0xff] }
 0x3bd   : > { %3953 = vst [vmem:[%s7949_s21 + $0xb0] sm:$0xff] %v3912_v29  ;;  %v3994_v51 = vadd.f32 %v3993_v2, %v3912_v29  ;;  %v4044_v54 = vmul.f32 %v3912_v29, %v3912_v29  ;;  %v3913_v41 = vmul.f32 %v5479_v1, %v3872_v27  ;;  %v3877_v2 = vld [vmem:[%s8148_s2 + $0xf3] sm:$0xff] }
 0x3bf   : > { %v4084_v13 = vadd.f32 %v4083_v17, %v4044_v54  ;;  %3954 = vst [vmem:[%s7949_s21 + $0xb8] sm:$0xff] %v3913_v41  ;;  %v3995_v28 = vadd.f32 %v3994_v51, %v3913_v41  ;;  %v4045_v12 = vmul.f32 %v3913_v41, %v3913_v41  ;;  %v2285_v33 = vpop.f32.mrb[52].mxu1 }
 0x3c0   : > { %v3738_v32 = vpop.f32.mrb[48].mxu0  ;;  %v5010_v49 = vpop.f32.mrb[53].mxu1 }
 0x3c1   : > { %v4085_v16 = vadd.f32 %v4084_v13, %v4045_v12  ;;  %v5480_v7 = vadd.f32 %v3738_v32, %v2277_v45  ;;  %v5406_v34 = vpop.f32.mrb[49].mxu0  ;;  %v2288_v6 = vpop.f32.mrb[54].mxu1 }
 0x3c2   : > { %v3741_v8 = vpop.f32.mrb[50].mxu0  ;;  %v5011_v11 = vpop.f32.mrb[55].mxu1 }
 0x3c3   : > { %v3914_v43 = vmul.f32 %v5480_v7, %v3873_v9  ;;  %v5481_v30 = vadd.f32 %v3741_v8, %v2280_v0  ;;  %v5407_v40 = vpop.f32.mrb[51].mxu0  ;;  %v3880_v7 = vld [vmem:[%s8148_s2 + $0x10b] sm:$0xff] }
 0x3c5   : > { %3955 = vst [vmem:[%s7949_s21 + $0xc0] sm:$0xff] %v3914_v43  ;;  %v3996_v44 = vadd.f32 %v3995_v28, %v3914_v43  ;;  %v4046_v24 = vmul.f32 %v3914_v43, %v3914_v43  ;;  %v3915_v48 = vmul.f32 %v5481_v30, %v3874_v5  ;;  %v3879_v28 = vld [vmem:[%s8148_s2 + $0x103] sm:$0xff] }
 0x3c7   : > { %v4086_v63 = vadd.f32 %v4085_v16, %v4046_v24  ;;  %3956 = vst [vmem:[%s7949_s21 + $0xc8] sm:$0xff] %v3915_v48  ;;  %v3997_v62 = vadd.f32 %v3996_v44, %v3915_v48  ;;  %v4047_v56 = vmul.f32 %v3915_v48, %v3915_v48  ;;  %v2293_v60 = vpop.f32.mrb[56].mxu1 }
 0x3c8   : > { %v3746_v47 = vpop.f32.mrb[52].mxu0  ;;  %v5014_v25 = vpop.f32.mrb[57].mxu1 }
 0x3c9   : > { %v4087_v31 = vadd.f32 %v4086_v63, %v4047_v56  ;;  %v5482_v26 = vadd.f32 %v3746_v47, %v2285_v33  ;;  %v5410_v53 = vpop.f32.mrb[53].mxu0  ;;  %v2296_v22 = vpop.f32.mrb[58].mxu1 }
 0x3ca   : > { %v3749_v58 = vpop.f32.mrb[54].mxu0  ;;  %v5015_v19 = vpop.f32.mrb[59].mxu1 }
 0x3cb   : > { %v3916_v3 = vmul.f32 %v5482_v26, %v3875_v21  ;;  %v5483_v14 = vadd.f32 %v3749_v58, %v2288_v6  ;;  %v5411_v39 = vpop.f32.mrb[55].mxu0  ;;  %v3882_v26 = vld [vmem:[%s8148_s2 + $0x11b] sm:$0xff] }
 0x3cd   : > { %3957 = vst [vmem:[%s7949_s21 + $0xd0] sm:$0xff] %v3916_v3  ;;  %v3998_v15 = vadd.f32 %v3997_v62, %v3916_v3  ;;  %v4048_v59 = vmul.f32 %v3916_v3, %v3916_v3  ;;  %v3917_v42 = vmul.f32 %v5483_v14, %v3876_v61  ;;  %v3881_v62 = vld [vmem:[%s8148_s2 + $0x113] sm:$0xff] }
 0x3cf   : > { %v4088_v55 = vadd.f32 %v4087_v31, %v4048_v59  ;;  %3958 = vst [vmem:[%s7949_s21 + $0xd8] sm:$0xff] %v3917_v42  ;;  %v3999_v38 = vadd.f32 %v3998_v15, %v3917_v42  ;;  %v4049_v23 = vmul.f32 %v3917_v42, %v3917_v42  ;;  %v2301_v10 = vpop.f32.mrb[60].mxu1 }
 0x3d0   : > { %v3754_v20 = vpop.f32.mrb[56].mxu0  ;;  %v5018_v35 = vpop.f32.mrb[61].mxu1 }
 0x3d1   : > { %v4089_v45 = vadd.f32 %v4088_v55, %v4049_v23  ;;  %v5484_v18 = vadd.f32 %v3754_v20, %v2293_v60  ;;  %v5414_v4 = vpop.f32.mrb[57].mxu0  ;;  %v2304_v37 = vpop.f32.mrb[62].mxu1 }
 0x3d2   : > { %v3757_v17 = vpop.f32.mrb[58].mxu0  ;;  %v5019_v36 = vpop.f32.mrb[63].mxu1 }
 0x3d3   : > { %v3918_v0 = vmul.f32 %v5484_v18, %v3877_v2  ;;  %v5485_v52 = vadd.f32 %v3757_v17, %v2296_v22  ;;  %v5415_v27 = vpop.f32.mrb[59].mxu0  ;;  %v3884_v18 = vld [vmem:[%s8148_s2 + $0x12b] sm:$0xff] }
 0x3d5   : > { %3959 = vst [vmem:[%s7949_s21 + $0xe0] sm:$0xff] %v3918_v0  ;;  %v4000_v57 = vadd.f32 %v3999_v38, %v3918_v0  ;;  %v4050_v29 = vmul.f32 %v3918_v0, %v3918_v0  ;;  %v3919_v1 = vmul.f32 %v5485_v52, %v3878_v46  ;;  %v3883_v38 = vld [vmem:[%s8148_s2 + $0x123] sm:$0xff] }
 0x3d7   : > { %v4090_v50 = vadd.f32 %v4089_v45, %v4050_v29  ;;  %3960 = vst [vmem:[%s7949_s21 + $0xe8] sm:$0xff] %v3919_v1  ;;  %v4001_v51 = vadd.f32 %v4000_v57, %v3919_v1  ;;  %v4051_v54 = vmul.f32 %v3919_v1, %v3919_v1  ;;  %v2309_v41 = vpop.f32.mrb[64].mxu1 }
 0x3d8   : > { %v3762_v13 = vpop.f32.mrb[60].mxu0  ;;  %v5022_v12 = vpop.f32.mrb[65].mxu1 }
 0x3d9   : > { %v4091_v33 = vadd.f32 %v4090_v50, %v4051_v54  ;;  %v5486_v32 = vadd.f32 %v3762_v13, %v2301_v10  ;;  %v5418_v9 = vpop.f32.mrb[61].mxu0  ;;  %v2312_v49 = vpop.f32.mrb[66].mxu1 }
 0x3da   : > { %v3765_v16 = vpop.f32.mrb[62].mxu0  ;;  %v5023_v34 = vpop.f32.mrb[67].mxu1 }
 0x3db   : > { %v3920_v6 = vmul.f32 %v5486_v32, %v3879_v28  ;;  %v5487_v8 = vadd.f32 %v3765_v16, %v2304_v37  ;;  %v5419_v5 = vpop.f32.mrb[63].mxu0  ;;  %v3886_v32 = vld [vmem:[%s8148_s2 + $0x13b] sm:$0xff] }
 0x3dd   : > { %3961 = vst [vmem:[%s7949_s21 + $0xf0] sm:$0xff] %v3920_v6  ;;  %v4002_v11 = vadd.f32 %v4001_v51, %v3920_v6  ;;  %v4052_v43 = vmul.f32 %v3920_v6, %v3920_v6  ;;  %v3921_v30 = vmul.f32 %v5487_v8, %v3880_v7  ;;  %v3885_v51 = vld [vmem:[%s8148_s2 + $0x133] sm:$0xff] }
 0x3df   : > { %v4092_v40 = vadd.f32 %v4091_v33, %v4052_v43  ;;  %3962 = vst [vmem:[%s7949_s21 + $0xf8] sm:$0xff] %v3921_v30  ;;  %v4003_v44 = vadd.f32 %v4002_v11, %v3921_v30  ;;  %v4053_v24 = vmul.f32 %v3921_v30, %v3921_v30  ;;  %v2317_v48 = vpop.f32.mrb[68].mxu1 }
 0x3e0   : > { %v3770_v63 = vpop.f32.mrb[64].mxu0  ;;  %v5026_v56 = vpop.f32.mrb[69].mxu1 }
 0x3e1   : > { %v4093_v60 = vadd.f32 %v4092_v40, %v4053_v24  ;;  %v5488_v47 = vadd.f32 %v3770_v63, %v2309_v41  ;;  %v5422_v21 = vpop.f32.mrb[65].mxu0  ;;  %v2320_v25 = vpop.f32.mrb[70].mxu1 }
 0x3e2   : > { %v3773_v31 = vpop.f32.mrb[66].mxu0  ;;  %v5027_v53 = vpop.f32.mrb[71].mxu1 }
 0x3e3   : > { %v3922_v22 = vmul.f32 %v5488_v47, %v3881_v62  ;;  %v5489_v58 = vadd.f32 %v3773_v31, %v2312_v49  ;;  %v5423_v61 = vpop.f32.mrb[67].mxu0  ;;  %v3888_v47 = vld [vmem:[%s8148_s2 + $0x14b] sm:$0xff] }
 0x3e5   : > { %3963 = vst [vmem:[%s7949_s21 + $0x100] sm:$0xff] %v3922_v22  ;;  %v4004_v19 = vadd.f32 %v4003_v44, %v3922_v22  ;;  %v4054_v3 = vmul.f32 %v3922_v22, %v3922_v22  ;;  %v3923_v14 = vmul.f32 %v5489_v58, %v3882_v26  ;;  %v3887_v44 = vld [vmem:[%s8148_s2 + $0x143] sm:$0xff] }
 0x3e7   : > { %v4094_v39 = vadd.f32 %v4093_v60, %v4054_v3  ;;  %3964 = vst [vmem:[%s7949_s21 + $0x108] sm:$0xff] %v3923_v14  ;;  %v4005_v15 = vadd.f32 %v4004_v19, %v3923_v14  ;;  %v4055_v59 = vmul.f32 %v3923_v14, %v3923_v14  ;;  %v2325_v42 = vpop.f32.mrb[72].mxu1 }
 0x3e8   : > { %v3778_v55 = vpop.f32.mrb[68].mxu0  ;;  %v5030_v23 = vpop.f32.mrb[73].mxu1 }
 0x3e9   : > { %v4095_v10 = vadd.f32 %v4094_v39, %v4055_v59  ;;  %v5490_v20 = vadd.f32 %v3778_v55, %v2317_v48  ;;  %v5426_v2 = vpop.f32.mrb[69].mxu0  ;;  %v2328_v35 = vpop.f32.mrb[74].mxu1  ;;  %v3889_v39 = vld [vmem:[%s8148_s2 + $0x153] sm:$0xf] }
 0x3ea   : > { %v3781_v45 = vpop.f32.mrb[70].mxu0  ;;  %v5031_v4 = vpop.f32.mrb[75].mxu1 }
 0x3eb   : > { %v3924_v37 = vmul.f32 %v5490_v20, %v3883_v38  ;;  %v5491_v17 = vadd.f32 %v3781_v45, %v2320_v25  ;;  %v5427_v46 = vpop.f32.mrb[71].mxu0 }
 0x3ed   : > { %3965 = vst [vmem:[%s7949_s21 + $0x110] sm:$0xff] %v3924_v37  ;;  %v4006_v36 = vadd.f32 %v4005_v15, %v3924_v37  ;;  %v4056_v0 = vmul.f32 %v3924_v37, %v3924_v37  ;;  %v3925_v52 = vmul.f32 %v5491_v17, %v3884_v18 }
 0x3ef   : > { %v4096_v27 = vadd.f32 %v4095_v10, %v4056_v0  ;;  %3966 = vst [vmem:[%s7949_s21 + $0x118] sm:$0xff] %v3925_v52  ;;  %v4007_v57 = vadd.f32 %v4006_v36, %v3925_v52  ;;  %v4057_v29 = vmul.f32 %v3925_v52, %v3925_v52  ;;  %v2333_v1 = vpop.f32.mrb[76].mxu1 }
 0x3f0   : > { %v3786_v50 = vpop.f32.mrb[72].mxu0  ;;  %v5034_v54 = vpop.f32.mrb[77].mxu1 }
 0x3f1   : > { %v4097_v41 = vadd.f32 %v4096_v27, %v4057_v29  ;;  %v5492_v13 = vadd.f32 %v3786_v50, %v2325_v42  ;;  %v5430_v28 = vpop.f32.mrb[73].mxu0  ;;  %v2336_v12 = vpop.f32.mrb[78].mxu1 }
 0x3f2   : > { %v3789_v33 = vpop.f32.mrb[74].mxu0  ;;  %v5035_v9 = vpop.f32.mrb[79].mxu1 }
 0x3f3   : > { %v3926_v49 = vmul.f32 %v5492_v13, %v3885_v51  ;;  %v5493_v16 = vadd.f32 %v3789_v33, %v2328_v35  ;;  %v5431_v7 = vpop.f32.mrb[75].mxu0 }
 0x3f5   : > { %3967 = vst [vmem:[%s7949_s21 + $0x120] sm:$0xff] %v3926_v49  ;;  %v4008_v34 = vadd.f32 %v4007_v57, %v3926_v49  ;;  %v4058_v6 = vmul.f32 %v3926_v49, %v3926_v49  ;;  %v3927_v8 = vmul.f32 %v5493_v16, %v3886_v32 }
 0x3f7   : > { %v4098_v5 = vadd.f32 %v4097_v41, %v4058_v6  ;;  %3968 = vst [vmem:[%s7949_s21 + $0x128] sm:$0xff] %v3927_v8  ;;  %v4009_v11 = vadd.f32 %v4008_v34, %v3927_v8  ;;  %v4059_v43 = vmul.f32 %v3927_v8, %v3927_v8  ;;  %v2341_v30 = vpop.f32.mrb[80].mxu1 }
 0x3f8   : > { %v3794_v40 = vpop.f32.mrb[76].mxu0  ;;  %v5038_v24 = vpop.f32.mrb[81].mxu1 }
 0x3f9   : > { %v4099_v48 = vadd.f32 %v4098_v5, %v4059_v43  ;;  %v5494_v63 = vadd.f32 %v3794_v40, %v2333_v1  ;;  %v5434_v62 = vpop.f32.mrb[77].mxu0  ;;  %v2344_v56 = vpop.f32.mrb[82].mxu1 }
 0x3fa   : > { %v3797_v60 = vpop.f32.mrb[78].mxu0  ;;  %v5039_v21 = vpop.f32.mrb[83].mxu1 }
 0x3fb   : > { %v3928_v25 = vmul.f32 %v5494_v63, %v3887_v44  ;;  %v5495_v31 = vadd.f32 %v3797_v60, %v2336_v12  ;;  %v5435_v26 = vpop.f32.mrb[79].mxu0 }
 0x3fd   : > { %3969 = vst [vmem:[%s7949_s21 + $0x130] sm:$0xff] %v3928_v25  ;;  %v4010_v53 = vadd.f32 %v4009_v11, %v3928_v25  ;;  %v4060_v22 = vmul.f32 %v3928_v25, %v3928_v25  ;;  %v3929_v58 = vmul.f32 %v5495_v31, %v3888_v47 }
 0x3ff   : > { %v4100_v61 = vadd.f32 %v4099_v48, %v4060_v22  ;;  %3970 = vst [vmem:[%s7949_s21 + $0x138] sm:$0xff] %v3929_v58  ;;  %v4011_v19 = vadd.f32 %v4010_v53, %v3929_v58  ;;  %v4061_v3 = vmul.f32 %v3929_v58, %v3929_v58 }
 0x400   : > { %v3802_v14 = vpop.f32.mrb[80].mxu0 }
 0x401   : > { %v4101_v15 = vadd.f32 %v4100_v61, %v4061_v3  ;;  %v5496_v59 = vadd.f32 %v3802_v14, %v2341_v30  ;;  %v5438_v42 = vpop.f32.mrb[81].mxu0 }
 0x402   : > { %v3805_v55 = vpop.f32.mrb[82].mxu0 }
 0x403   : > { %v3930_v38 = vmul.f32 %v5496_v59, %v3889_v39  ;;  %v5439_v23 = vpop.f32.mrb[83].mxu0 }
 0x405   : > { %3971 = vst [vmem:[%s7949_s21 + $0x140] sm:$0xf] %v3930_v38  ;;  %v4013_v10 = vsel %vm4012_vm7, %v3930_v38, 0.0  ;;  %v4062_v20 = vmul.f32 %v3930_v38, %v3930_v38 }
 0x406   : > { %v4014_v2 = vadd.f32 %v4013_v10, %v4011_v19 }
 0x407   : > { %v4102_v35 = vsel %vm4012_vm7, %v4062_v20, 0.0 }
 0x408   : > { %v4015_v45 = vrot.slane %v4014_v2, 4  ;;  %v4103_v18 = vadd.f32 %v4102_v35, %v4101_v15 }
 0x40a   : > { %v4016_v4 = vadd.f32 %v4015_v45, %v4014_v2  ;;  %v4104_v37 = vrot.slane %v4103_v18, 4 }
 0x40c   : > { %v4017_v17 = vrot.slane %v4016_v4, 2  ;;  %v4105_v46 = vadd.f32 %v4104_v37, %v4103_v18 }
 0x40e   : > { %v4018_v36 = vadd.f32 %v4017_v17, %v4016_v4  ;;  %v4106_v0 = vrot.slane %v4105_v46, 2 }
 0x410   : > { %v4019_v52 = vrot.slane %v4018_v36, 1  ;;  %v4107_v27 = vadd.f32 %v4106_v0, %v4105_v46 }
 0x412   : > { %v4020_v57 = vadd.f32 %v4019_v52, %v4018_v36  ;;  %v4108_v29 = vrot.slane %v4107_v27, 1 }
 0x414   : > { %4021 = vst [vmem:[%s7998_s20] sm:$0x1] %v4020_v57  ;;  %v4109_v1 = vadd.f32 %v4108_v29, %v4107_v27 }
 0x416   : > { %4110 = vst [vmem:[%s7998_s20 + $0x1] sm:$0x1] %v4109_v1 }
 0x417 PF: > { %s16_s18 = sadd.s32 1, %s6185_s18  }
 0x418   : > { %p13_p4 = scmp.ge.s32.totalorder %s16_s18, 4  }
 0x41a   :  { %15 = sbr.rel (!%p13_p4) target bundleno = 1 (0x1), region = 78 }

// kernel: _residual_block_impl.4
= control target key start
LH: loop header
LB: loop body
LE: loop exit
PB: predicated region body
PF: predicated region fallthrough
CT: control target
= control target key end

     0   :  { %s6115_s15 = smov 0   ;;  %s7805_s0 = inlined_call_operand.vmem [shape: bf16[2,362,128], index: 0, kind: input, shape index: {}]   ;;  %s7806_s1 = inlined_call_operand.vmem [shape: bf16[1152,128], index: 1, kind: input, shape index: {}]   ;;  %s7807_s2 = inlined_call_operand.vmem [shape: f32[362,128], index: 2, kind: input, shape index: {}]   ;;  %s7808_s3 = inlined_call_operand.vmem [shape: f32[2,324,128], index: 3, kind: output, shape index: {0}]   ;;  %s7809_s4 = inlined_call_operand.vmem [shape: f32[16,128], index: 4, kind: output, shape index: {1}]  }
   0x1 LB: > { %s4028_s16 = sadd.s32 4294967295, %s6086_s15   ;;  %p4032_p0 = scmp.ge.s32.totalorder %s6086_s15, 1  ;;  %s6086_s15 = sphi %s6115_s15, %s15_s15  }
   0x2   : > { %p165_p1 = scmp.lt.s32.totalorder %s6086_s15, 3 }
   0x4   : > { %p166_p2 = pnand %p4032_p0, %p165_p1 }
   0x6   : > { %169 = sbr.rel (%p166_p2) target bundleno = 1033 (0x409), region = 32 }
   0xd   : > { %v5954_v0 = vld [vmem:[%s7806_s1 + $0x40] sm:$0xff]   ;;  %v6088_v1 = vmov 0.0   ;;  %v5956_v3 = vld [vmem:[%s7806_s1 + $0x48] sm:$0xff]   ;;  %vm6089_vm0 = vmmov 0   ;;  %p195_p3 = scmp.lt.s32.totalorder %s4028_s16, 1  ;;  %v5958_v5 = vld [vmem:[%s7806_s1 + $0x50] sm:$0xff]  }
   0xe   : > { %4397 = vmatprep.subr.bf16.mxu1 %v6088_v1  ;;  %4797 = vmatprep.subr.bf16.mxu0 %v6088_v1  ;;  %v5955_v2 = vld [vmem:[%s7806_s1 + $0x100] sm:$0xff]   ;;  %v5957_v4 = vld [vmem:[%s7806_s1 + $0x108] sm:$0xff]   ;;  %v5959_v6 = vld [vmem:[%s7806_s1 + $0x110] sm:$0xff]   ;;  %vm391_vm1 = vsmask.f32 7424  ;;  %vm2219_vm3 = vcmask 1045504  }
   0xf   : > { %4398 = vmatpush3.bf16.msra.mxu1 %v5954_v0  ;;  %4413 = vmatprep.mubr.msk.bf16.mxu1 %vm6089_vm0, %v6088_v1  ;;  %s7873_s16 = smov (!%p195_p3, %s4028_s16), 1  ;;  %v5960_v7 = vld [vmem:[%s7806_s1 + $0x58] sm:$0xff]   ;;  %v5962_v9 = vld [vmem:[%s7806_s1 + $0x60] sm:$0xff]   ;;  %v5964_v11 = vld [vmem:[%s7806_s1 + $0x68] sm:$0xff]   ;;  %vm1799_vm2 = vsmask.f32 6400 }
  0x10   : > { %4798 = vmatpush3.bf16.msra.mxu0 %v5955_v2  ;;  %4399 = vmatprep.subr.bf16.mxu1 %v6088_v1  ;;  %s5942_s5 = smul.u32 184, %s7873_s16  ;;  %v5961_v8 = vld [vmem:[%s7806_s1 + $0x118] sm:$0xff]   ;;  %v5963_v10 = vld [vmem:[%s7806_s1 + $0x120] sm:$0xff]   ;;  %v5965_v15 = vld [vmem:[%s7806_s1 + $0x128] sm:$0xff]   ;;  %vm1113_vm4 = vcmask 1046528   ;;  %vm3328_vm6 = vcmask 1044480  }
  0x11   : > { %4799 = vmatprep.subr.bf16.mxu0 %v6088_v1  ;;  %4813 = vmatprep.mubr.msk.bf16.mxu0 %vm6089_vm0, %v6088_v1  ;;  %v5966_v21 = vld [vmem:[%s7806_s1 + $0x70] sm:$0xff]   ;;  %v5968_v30 = vld [vmem:[%s7806_s1 + $0x78] sm:$0xff]   ;;  %v5973_v38 = vld [vmem:[%s7806_s1 + $0x140] sm:$0xff]   ;;  %vm2908_vm5 = vsmask.f32 5376  ;;  %s4035_s17 = sshll.u32 %s7873_s16, 3 }
  0x12   : > { %s6168_s12 = scalar_lea.vmem %s7805_s0, %s5942_s5  ;;  %v5967_v22 = vld [vmem:[%s7806_s1 + $0x130] sm:$0xff]   ;;  %v5969_v31 = vld [vmem:[%s7806_s1 + $0x138] sm:$0xff]   ;;  %v5975_v44 = vld [vmem:[%s7806_s1] sm:$0xff]   ;;  %s7657_s21 = scalar_lea.vmem %s7809_s4, %s4035_s17  ;;  %vm3843_vm7 = vcmask 1043456  }
  0x13   : > { %4400 = vmatpush3.bf16.msra.mxu1 %v5956_v3  ;;  %v5970_v12 = vld [vmem:[%s6168_s12] sm:$0xff]   ;;  %v6180_v13 = vld [vmem:[%s6168_s12 + $0x8] sm:$0xff]   ;;  %v6183_v14 = vld [vmem:[%s6168_s12 + $0x10] sm:$0xff]   ;;  %3803 = vst [vmem:[%s7657_s21] sm:$0xff] %v6088_v1 }
  0x14   : > { %4800 = vmatpush3.bf16.msra.mxu0 %v5957_v4  ;;  %4401 = vmatprep.subr.bf16.mxu1 %v6088_v1  ;;  %v395_v16 = vshll.u32 %v5970_v12, 16  ;;  %v400_v17 = vshll.u32 %v6180_v13, 16  ;;  %v404_v18 = vshrl.u32 %v6180_v13, 16  ;;  %v6193_v19 = vshll.u32 %v6183_v14, 16  ;;  %v6205_v27 = vld [vmem:[%s6168_s12 + $0x18] sm:$0xff]   ;;  %v6230_v40 = vld [vmem:[%s6168_s12 + $0x20] sm:$0xff]  }
  0x15   : > { %4801 = vmatprep.subr.bf16.mxu0 %v6088_v1  ;;  %v6196_v20 = vshrl.u32 %v6183_v14, 16  ;;  %v393_v23 = vshrl.u32 %v5970_v12, 16  ;;  %v6218_v34 = vshll.u32 %v6205_v27, 16  ;;  %v6221_v35 = vshrl.u32 %v6205_v27, 16  ;;  %v5976_v48 = vld [vmem:[%s7806_s1 + $0x148] sm:$0xff]   ;;  %v5978_v54 = vld [vmem:[%s7806_s1 + $0x150] sm:$0xff]  }
  0x16   : > { %v397_v24 = vrot.slane %v395_v16, 1  ;;  %v1800_v25 = vrot.slane %v404_v18, 1  ;;  %v1801_v26 = vrot.slane %v400_v17, 2  ;;  %v1804_v29 = vrot.slane %v6193_v19, 2  ;;  %v5980_v51 = vld [vmem:[%s7806_s1 + $0x8] sm:$0xff]   ;;  %v5986_v58 = vld [vmem:[%s7806_s1 + $0x10] sm:$0xff]  }
  0x17   : > { %4402 = vmatpush3.bf16.msra.mxu1 %v5958_v5  ;;  %v1803_v28 = vrot.slane %v6196_v20, 1  ;;  %v402_v33 = vrot.slane %v400_v17, 1  ;;  %v1807_v42 = vrot.slane %v6221_v35, 1  ;;  %v1808_v43 = vrot.slane %v6218_v34, 2  ;;  %v6259_v52 = vld [vmem:[%s6168_s12 + $0x28] sm:$0xff]   ;;  %v5982_v0 = vld [vmem:[%s7806_s1 + $0x158] sm:$0xff]  }
  0x18   : > { %4802 = vmatpush3.bf16.msra.mxu0 %v5959_v6  ;;  %4403 = vmatprep.subr.bf16.mxu1 %v6088_v1  ;;  %v398_v32 = vor.u32 %v397_v24, %v393_v23  ;;  %v1802_v36 = vor.u32 %v1801_v26, %v1800_v25  ;;  %v410_v46 = vrot.slane %v6193_v19, 1  ;;  %v6249_v49 = vshll.u32 %v6230_v40, 16  ;;  %v5991_v2 = vld [vmem:[%s7806_s1 + $0x18] sm:$0xff]   ;;  %v6297_v5 = vld [vmem:[%s6168_s12 + $0x30] sm:$0xff]   ;;  %v5988_v17 = vld [vmem:[%s7806_s1 + $0x168] sm:$0xff]  }
  0x19   : > { %4803 = vmatprep.subr.bf16.mxu0 %v6088_v1  ;;  %v1805_v37 = vor.u32 %v1804_v29, %v1803_v28  ;;  %v406_v45 = vor.u32 %v404_v18, %v402_v33  ;;  %v1809_v47 = vor.u32 %v1808_v43, %v1807_v42  ;;  %v6252_v50 = vshrl.u32 %v6230_v40, 16  ;;  %v5990_v25 = vld [vmem:[%s7806_s1 + $0x170] sm:$0xff]   ;;  %v6001_v26 = vld [vmem:[%s7806_s1 + $0x28] sm:$0xff]   ;;  %v6341_v28 = vld [vmem:[%s6168_s12 + $0x40] sm:$0xff]  }
  0x1a   : > { %v403_v39 = vsel %vm391_vm1, %v398_v32, %v402_v33  ;;  %v1812_v57 = vrot.slane %v6249_v49, 2  ;;  %v418_v59 = vrot.slane %v6218_v34, 1  ;;  %v6275_v60 = vshll.u32 %v6259_v52, 16  ;;  %v6371_v42 = vld [vmem:[%s6168_s12 + $0x48] sm:$0xff]  }
  0x1b   : > { %4404 = vmatpush3.bf16.msra.mxu1 %v5960_v7  ;;  %v1806_v41 = vsel %vm1799_vm2, %v1802_v36, %v1805_v37  ;;  %v411_v53 = vsel %vm391_vm1, %v406_v45, %v410_v46  ;;  %v1810_v55 = vsel %vm1799_vm2, %v1805_v37, %v1809_v47  ;;  %v1811_v56 = vrot.slane %v6252_v50, 1  ;;  %v5993_v36 = vld [vmem:[%s7806_s1 + $0x178] sm:$0xff]   ;;  %v6005_v37 = vld [vmem:[%s7806_s1 + $0x30] sm:$0xff]  }
  0x1c   : > { %4804 = vmatpush3.bf16.msra.mxu0 %v5961_v8  ;;  %4405 = vmatprep.subr.bf16.mxu1 %v6088_v1  ;;  %v414_v61 = vor.u32 %v6196_v20, %v410_v46  ;;  %v6284_v63 = vshrl.u32 %v6259_v52, 16  ;;  %v1816_v4 = vrot.slane %v6275_v60, 2  ;;  %v5984_v8 = vld [vmem:[%s7806_s1 + $0x160] sm:$0xff]   ;;  %v6314_v12 = vshll.u32 %v6297_v5, 16 }
  0x1d   : > { %4805 = vmatprep.subr.bf16.mxu0 %v6088_v1  ;;  %v1813_v62 = vor.u32 %v1812_v57, %v1811_v56  ;;  %v6319_v16 = vshrl.u32 %v6297_v5, 16 }
  0x1e   : > { %v419_v3 = vsel %vm391_vm1, %v414_v61, %v418_v59  ;;  %v1815_v7 = vrot.slane %v6284_v63, 1 }
  0x1f   : > { %4406 = vmatpush3.bf16.msra.mxu1 %v5962_v9  ;;  %v1814_v6 = vsel %vm1799_vm2, %v1809_v47, %v1813_v62  ;;  %v5996_v9 = vld [vmem:[%s7806_s1 + $0x20] sm:$0xff]   ;;  %v1819_v24 = vrot.slane %v6319_v16, 1  ;;  %v442_v47 = vrot.slane %v6314_v12, 1 }
  0x20   : > { %4806 = vmatpush3.bf16.msra.mxu0 %v5963_v10  ;;  %4407 = vmatprep.subr.bf16.mxu1 %v6088_v1  ;;  %v422_v10 = vor.u32 %v6221_v35, %v418_v59 }
  0x21   : > { %4807 = vmatprep.subr.bf16.mxu0 %v6088_v1 }
  0x23   : > { %4408 = vmatpush3.bf16.msra.mxu1 %v5964_v11  ;;  %v426_v11 = vrot.slane %v6249_v49, 1 }
  0x24   : > { %4808 = vmatpush3.bf16.msra.mxu0 %v5965_v15  ;;  %4409 = vmatprep.subr.bf16.mxu1 %v6088_v1  ;;  %v1817_v15 = vor.u32 %v1816_v4, %v1815_v7 }
  0x25   : > { %4809 = vmatprep.subr.bf16.mxu0 %v6088_v1  ;;  %v427_v18 = vsel %vm391_vm1, %v422_v10, %v426_v11  ;;  %v430_v29 = vor.u32 %v6252_v50, %v426_v11  ;;  %v6420_v11 = vld [vmem:[%s6168_s12 + $0x58] sm:$0xff]  }
  0x26   : > { %v1818_v23 = vsel %vm1799_vm2, %v1813_v62, %v1817_v15  ;;  %v6401_v62 = vshll.u32 %v6371_v42, 16 }
  0x27   : > { %4410 = vmatpush3.bf16.msra.mxu1 %v5966_v21  ;;  %v1820_v21 = vrot.slane %v6314_v12, 2 }
  0x28   : > { %4810 = vmatpush3.bf16.msra.mxu0 %v5967_v22  ;;  %4411 = vmatprep.subr.bf16.mxu1 %v6088_v1  ;;  %v6329_v22 = vld [vmem:[%s6168_s12 + $0x38] sm:$0xff]   ;;  %v466_v10 = vrot.slane %v6401_v62, 1 }
  0x29   : > { %4811 = vmatprep.subr.bf16.mxu0 %v6088_v1  ;;  %v1821_v32 = vor.u32 %v1820_v21, %v1819_v24  ;;  %v6353_v33 = vshrl.u32 %v6329_v22, 16 }
  0x2b   : > { %4412 = vmatpush3.bf16.msra.mxu1 %v5968_v30  ;;  %v434_v30 = vrot.slane %v6275_v60, 1  ;;  %v1822_v43 = vsel %vm1799_vm2, %v1817_v15, %v1821_v32 }
  0x2c   : > { %4812 = vmatpush3.bf16.msra.mxu0 %v5969_v31  ;;  %4497 = vmatprep.subr.bf16.mxu1 %v6088_v1  ;;  %v6348_v31 = vshll.u32 %v6329_v22, 16 }
  0x2d   : > { %4897 = vmatprep.subr.bf16.mxu0 %v6088_v1  ;;  %v438_v46 = vor.u32 %v6284_v63, %v434_v30 }
  0x2e   : > { %4414 = vmatmul.mubr.bf16.vlgmr.msra.gmra.mrb[0].mxu1 %v403_v39  ;;  %v435_v39 = vsel %vm391_vm1, %v430_v29, %v434_v30  ;;  %v1824_v45 = vrot.slane %v6348_v31, 2 }
  0x2f   : > { %4814 = vmatmul.mubr.bf16.vlgmr.msra.gmra.mrb[0].mxu0 %v1806_v41  ;;  %4417 = vmatprep.mubr.msk.bf16.mxu1 %vm6089_vm0, %v6088_v1  ;;  %v6368_v41 = vshrl.u32 %v6341_v28, 16  ;;  %v443_v59 = vsel %vm391_vm1, %v438_v46, %v442_v47 }
  0x30   : > { %4898 = vmatpush3.bf16.msra.mxu0 %v5973_v38  ;;  %4817 = vmatprep.mubr.msk.bf16.mxu0 %vm6089_vm0, %v6088_v1  ;;  %v6363_v38 = vshll.u32 %v6341_v28, 16 }
  0x31   : > { %4498 = vmatpush3.bf16.msra.mxu1 %v5975_v44  ;;  %4899 = vmatprep.subr.bf16.mxu0 %v6088_v1  ;;  %v1823_v44 = vrot.slane %v6353_v33, 1 }
  0x32   : > { %4499 = vmatprep.subr.bf16.mxu1 %v6088_v1  ;;  %v458_v57 = vrot.slane %v6363_v38, 1 }
  0x33   : > { %v1825_v56 = vor.u32 %v1824_v45, %v1823_v44 }
  0x34   : > { %4900 = vmatpush3.bf16.msra.mxu0 %v5976_v48  ;;  %v6011_v48 = vld [vmem:[%s7806_s1 + $0x38] sm:$0xff]   ;;  %v462_v29 = vor.u32 %v6368_v41, %v458_v57 }
  0x35   : > { %4901 = vmatprep.subr.bf16.mxu0 %v6088_v1  ;;  %4500 = vmatpush3.bf16.msra.mxu1 %v5980_v51  ;;  %v450_v51 = vrot.slane %v6348_v31, 1  ;;  %v1826_v61 = vsel %vm1799_vm2, %v1821_v32, %v1825_v56 }
  0x36   : > { %4418 = vmatmul.mubr.bf16.gmra.mrb[4].mxu1 %v411_v53  ;;  %4501 = vmatprep.subr.bf16.mxu1 %v6088_v1  ;;  %v1827_v53 = vrot.slane %v6368_v41, 1  ;;  %v467_v32 = vsel %vm391_vm1, %v462_v29, %v466_v10  ;;  %v5999_v29 = vld [vmem:[%s7806_s1 + $0x188] sm:$0xff]  }
  0x37   : > { %4818 = vmatmul.mubr.bf16.gmra.mrb[4].mxu0 %v1810_v55  ;;  %4421 = vmatprep.mubr.msk.bf16.mxu1 %vm6089_vm0, %v6088_v1  ;;  %v6389_v55 = vshrl.u32 %v6371_v42, 16  ;;  %v454_v15 = vor.u32 %v6353_v33, %v450_v51 }
  0x38   : > { %4821 = vmatprep.mubr.msk.bf16.mxu0 %vm6089_vm0, %v6088_v1  ;;  %4902 = vmatpush3.bf16.msra.mxu0 %v5978_v54  ;;  %v1828_v54 = vrot.slane %v6363_v38, 2 }
  0x39   : > { %4903 = vmatprep.subr.bf16.mxu0 %v6088_v1  ;;  %4502 = vmatpush3.bf16.msra.mxu1 %v5986_v58  ;;  %v6395_v58 = vld [vmem:[%s6168_s12 + $0x50] sm:$0xff]   ;;  %v470_v44 = vor.u32 %v6389_v55, %v466_v10  ;;  %v2221_v10 = vrot.slane %v6183_v14, 2 }
  0x3a   : > { %4503 = vmatprep.subr.bf16.mxu1 %v6088_v1  ;;  %v6411_v4 = vshrl.u32 %v6395_v58, 16 }
  0x3c   : > { %4904 = vmatpush3.bf16.msra.mxu0 %v5982_v0  ;;  %v1831_v0 = vrot.slane %v6389_v55, 1 }
  0x3d   : > { %4905 = vmatprep.subr.bf16.mxu0 %v6088_v1  ;;  %4504 = vmatpush3.bf16.msra.mxu1 %v5991_v2  ;;  %v446_v2 = vor.u32 %v6319_v16, %v442_v47 }
  0x3e   : > { %4422 = vmatmul.mubr.bf16.gmra.mrb[8].mxu1 %v419_v3  ;;  %4505 = vmatprep.subr.bf16.mxu1 %v6088_v1  ;;  %v6408_v3 = vshll.u32 %v6395_v58, 16 }
  0x3f   : > { %4822 = vmatmul.mubr.bf16.gmra.mrb[8].mxu0 %v1814_v6  ;;  %4425 = vmatprep.mubr.msk.bf16.mxu1 %vm6089_vm0, %v6088_v1  ;;  %v1829_v6 = vor.u32 %v1828_v54, %v1827_v53  ;;  %v451_v7 = vsel %vm391_vm1, %v446_v2, %v450_v51 }
  0x40   : > { %4825 = vmatprep.mubr.msk.bf16.mxu0 %vm6089_vm0, %v6088_v1  ;;  %4906 = vmatpush3.bf16.msra.mxu0 %v5984_v8  ;;  %v474_v45 = vrot.slane %v6408_v3, 1 }
  0x41   : > { %4907 = vmatprep.subr.bf16.mxu0 %v6088_v1  ;;  %4506 = vmatpush3.bf16.msra.mxu1 %v5996_v9  ;;  %v1830_v8 = vsel %vm1799_vm2, %v1825_v56, %v1829_v6  ;;  %v1832_v9 = vrot.slane %v6401_v62, 2 }
  0x42   : > { %4507 = vmatprep.subr.bf16.mxu1 %v6088_v1  ;;  %v475_v51 = vsel %vm391_vm1, %v470_v44, %v474_v45 }
  0x43   : > { %v1833_v21 = vor.u32 %v1832_v9, %v1831_v0  ;;  %v2220_v9 = vrot.slane %v6180_v13, 2 }
  0x44   : > { %4908 = vmatpush3.bf16.msra.mxu0 %v5988_v17  ;;  %v1835_v17 = vrot.slane %v6411_v4, 1 }
  0x45   : > { %4909 = vmatprep.subr.bf16.mxu0 %v6088_v1  ;;  %4508 = vmatpush3.bf16.msra.mxu1 %v6001_v26  ;;  %v1834_v24 = vsel %vm1799_vm2, %v1829_v6, %v1833_v21  ;;  %v6435_v26 = vshrl.u32 %v6420_v11, 16 }
  0x46   : > { %4426 = vmatmul.mubr.bf16.gmra.mrb[12].mxu1 %v427_v18  ;;  %4509 = vmatprep.subr.bf16.mxu1 %v6088_v1  ;;  %v1836_v18 = vrot.slane %v6408_v3, 2 }
  0x47   : > { %4826 = vmatmul.mubr.bf16.gmra.mrb[12].mxu0 %v1818_v23  ;;  %4429 = vmatprep.mubr.msk.bf16.mxu1 %vm6089_vm0, %v6088_v1  ;;  %v459_v23 = vsel %vm391_vm1, %v454_v15, %v458_v57  ;;  %v478_v57 = vor.u32 %v6411_v4, %v474_v45  ;;  %v6529_v45 = vld [vmem:[%s6168_s12 + $0x78] sm:$0xff]  }
  0x48   : > { %4829 = vmatprep.mubr.msk.bf16.mxu0 %vm6089_vm0, %v6088_v1  ;;  %4910 = vmatpush3.bf16.msra.mxu0 %v5990_v25  ;;  %v6432_v25 = vshll.u32 %v6420_v11, 16  ;;  %v1837_v30 = vor.u32 %v1836_v18, %v1835_v17  ;;  %v2222_v18 = vsel %vm2219_vm3, %v2220_v9, %v2221_v10  ;;  %v6014_v9 = vld [vmem:[%s7806_s1 + $0x1a8] sm:$0xff]  }
  0x49   : > { %4911 = vmatprep.subr.bf16.mxu0 %v6088_v1  ;;  %4510 = vmatpush3.bf16.msra.mxu1 %v6005_v37  ;;  %v1839_v37 = vrot.slane %v6435_v26, 1 }
  0x4a   : > { %4511 = vmatprep.subr.bf16.mxu1 %v6088_v1 }
  0x4c   : > { %4912 = vmatpush3.bf16.msra.mxu0 %v5993_v36  ;;  %v1838_v36 = vsel %vm1799_vm2, %v1833_v21, %v1837_v30  ;;  %v5995_v21 = vld [vmem:[%s7806_s1 + $0x180] sm:$0xff]  }
  0x4d   : > { %4997 = vmatprep.subr.bf16.mxu0 %v6088_v1  ;;  %4512 = vmatpush3.bf16.msra.mxu1 %v6011_v48 }
  0x4e   : > { %4430 = vmatmul.mubr.bf16.gmra.mrb[16].mxu1 %v435_v39  ;;  %4597 = vmatprep.subr.bf16.mxu1 %v6088_v1  ;;  %v1840_v39 = vrot.slane %v6432_v25, 2 }
  0x4f   : > { %4830 = vmatmul.mubr.bf16.gmra.mrb[16].mxu0 %v1822_v43  ;;  %4433 = vmatprep.mubr.msk.bf16.mxu1 %vm6089_vm0, %v6088_v1  ;;  %v6447_v43 = vld [vmem:[%s6168_s12 + $0x60] sm:$0xff]  }
  0x50   : > { %4833 = vmatprep.mubr.msk.bf16.mxu0 %vm6089_vm0, %v6088_v1  ;;  %v1841_v46 = vor.u32 %v1840_v39, %v1839_v37  ;;  %v6456_v47 = vshll.u32 %v6447_v43, 16  ;;  %v6459_v48 = vshrl.u32 %v6447_v43, 16 }
  0x52   : > { %7840 = vst [vmem:[#allocation2_spill] sm:$0xff] %v6456_v47  ;;  %v1842_v53 = vsel %vm1799_vm2, %v1837_v30, %v1841_v46  ;;  %v1843_v54 = vrot.slane %v6459_v48, 1  ;;  %v1844_v56 = vrot.slane %v6456_v47, 2 }
  0x56   : > { %4434 = vmatmul.mubr.bf16.gmra.mrb[20].mxu1 %v443_v59  ;;  %v482_v59 = vrot.slane %v6432_v25, 1 }
  0x57   : > { %4834 = vmatmul.mubr.bf16.gmra.mrb[20].mxu0 %v1826_v61  ;;  %4437 = vmatprep.mubr.msk.bf16.mxu1 %vm6089_vm0, %v6088_v1  ;;  %v6471_v61 = vor.u32 %v1844_v56, %v1843_v54  ;;  %v6543_v56 = vshll.u32 %v6529_v45, 16 }
  0x58   : > { %4837 = vmatprep.mubr.msk.bf16.mxu0 %vm6089_vm0, %v6088_v1  ;;  %v483_v0 = vsel %vm391_vm1, %v478_v57, %v482_v59  ;;  %v486_v6 = vor.u32 %v6435_v26, %v482_v59  ;;  %v6012_v59 = vld [vmem:[%s7806_s1 + $0x1a0] sm:$0xff]  }
  0x59   : > { %7841 = vst [vmem:[#allocation3_spill] sm:$0xff] %v6471_v61  ;;  %v1846_v2 = vsel %vm1799_vm2, %v1841_v46, %v6471_v61  ;;  %v2225_v46 = vrot.slane %v6230_v40, 2  ;;  %7846 = vst [vmem:[#allocation8_spill] sm:$0xff] %v6543_v56 }
  0x5e   : > { %4438 = vmatmul.mubr.bf16.gmra.mrb[24].mxu1 %v451_v7  ;;  %v490_v7 = vrot.slane %v6456_v47, 1 }
  0x5f   : > { %4838 = vmatmul.mubr.bf16.gmra.mrb[24].mxu0 %v1830_v8  ;;  %4441 = vmatprep.mubr.msk.bf16.mxu1 %vm6089_vm0, %v6088_v1  ;;  %v6481_v8 = vld [vmem:[%s6168_s12 + $0x68] sm:$0xff]  }
  0x60   : > { %4841 = vmatprep.mubr.msk.bf16.mxu0 %vm6089_vm0, %v6088_v1  ;;  %v491_v15 = vsel %vm391_vm1, %v486_v6, %v490_v7  ;;  %v6489_v17 = vshll.u32 %v6481_v8, 16  ;;  %v494_v13 = vor.u32 %v6459_v48, %v490_v7  ;;  %v6558_v6 = vld [vmem:[%s6168_s12 + $0x80] sm:$0xff]   ;;  %v2227_v7 = vrot.slane %v6259_v52, 2 }
  0x62   : > { %7842 = vst [vmem:[#allocation4_spill] sm:$0xff] %v6489_v17  ;;  %v498_v14 = vrot.slane %v6489_v17, 1  ;;  %v6769_v17 = vld [vmem:[%s6168_s12 + $0x18] sm:$0xff]  }
  0x64   : > { %v499_v30 = vsel %vm391_vm1, %v494_v13, %v498_v14  ;;  %v6016_v13 = vld [vmem:[%s7806_s1 + $0x1b0] sm:$0xff]  }
  0x66   : > { %4442 = vmatmul.mubr.bf16.gmra.mrb[28].mxu1 %v459_v23  ;;  %v6500_v23 = vld [vmem:[%s6168_s12 + $0x70] sm:$0xff]  }
  0x67   : > { %4842 = vmatmul.mubr.bf16.gmra.mrb[28].mxu0 %v1834_v24  ;;  %4445 = vmatprep.mubr.msk.bf16.mxu1 %vm6089_vm0, %v6088_v1  ;;  %v2223_v24 = vrot.slane %v6205_v27, 2  ;;  %v6004_v27 = vld [vmem:[%s7806_s1 + $0x190] sm:$0xff]   ;;  %v6540_v54 = vshrl.u32 %v6500_v23, 16 }
  0x68   : > { %4845 = vmatprep.mubr.msk.bf16.mxu0 %vm6089_vm0, %v6088_v1 }
  0x69   : > { %v6517_v37 = vsel %vm2219_vm3, %v2221_v10, %v2223_v24  ;;  %7845 = vst [vmem:[#allocation7_spill] sm:$0xff] %v6540_v54  ;;  %v6546_v57 = vsel %vm2219_vm3, %v2223_v24, %v2225_v46 }
  0x6e   : > { %4446 = vmatmul.mubr.bf16.gmra.mrb[32].mxu1 %v467_v32  ;;  %v6511_v32 = vshrl.u32 %v6481_v8, 16 }
  0x6f   : > { %4846 = vmatmul.mubr.bf16.gmra.mrb[32].mxu0 %v1838_v36  ;;  %4449 = vmatprep.mubr.msk.bf16.mxu1 %vm6089_vm0, %v6088_v1  ;;  %v6514_v36 = vshll.u32 %v6500_v23, 16 }
  0x70   : > { %4849 = vmatprep.mubr.msk.bf16.mxu0 %vm6089_vm0, %v6088_v1  ;;  %7843 = vst [vmem:[#allocation5_spill] sm:$0xff] %v6511_v32  ;;  %v502_v39 = vor.u32 %v6511_v32, %v498_v14 }
  0x71   : > { %7844 = vst [vmem:[#allocation6_spill] sm:$0xff] %v6514_v36  ;;  %v506_v44 = vrot.slane %v6514_v36, 1  ;;  %v6748_v36 = vld [vmem:[%s6168_s12 + $0x10] sm:$0xff]  }
  0x76   : > { %4450 = vmatmul.mubr.bf16.gmra.mrb[36].mxu1 %v475_v51  ;;  %v6010_v51 = vld [vmem:[%s7806_s1 + $0x198] sm:$0xff]  }
  0x77   : > { %4850 = vmatmul.mubr.bf16.gmra.mrb[36].mxu0 %v1842_v53  ;;  %4453 = vmatprep.mubr.msk.bf16.mxu1 %vm6089_vm0, %v6088_v1  ;;  %v507_v53 = vsel %vm391_vm1, %v502_v39, %v506_v44 }
  0x78   : > { %4853 = vmatprep.mubr.msk.bf16.mxu0 %vm6089_vm0, %v6088_v1 }
  0x7e   : > { %4454 = vmatmul.mubr.bf16.gmra.mrb[40].mxu1 %v483_v0  ;;  %v510_v0 = vor.u32 %v6540_v54, %v506_v44  ;;  %v6598_v44 = vshrl.u32 %v6558_v6, 16  ;;  %v6026_v54 = vld [vmem:[%s7806_s1 + $0xb0] sm:$0xff]  }
  0x7f   : > { %4854 = vmatmul.mubr.bf16.gmra.mrb[40].mxu0 %v1846_v2  ;;  %4457 = vmatprep.mubr.msk.bf16.mxu1 %vm6089_vm0, %v6088_v1  ;;  %v514_v2 = vrot.slane %v6543_v56, 1 }
  0x80   : > { %4913 = vmatprep.mubr.msk.bf16.mxu0 %vm6089_vm0, %v6088_v1  ;;  %7849 = vst [vmem:[#allocation11_spill] sm:$0xff] %v6598_v44 }
  0x81   : > { %v515_v10 = vsel %vm391_vm1, %v510_v0, %v514_v2  ;;  %v6613_v0 = vld [vmem:[%s6168_s12 + $0x90] sm:$0xff]  }
  0x86   : > { %4458 = vmatmul.mubr.bf16.gmra.mrb[44].mxu1 %v491_v15  ;;  %v6569_v15 = vshrl.u32 %v6529_v45, 16 }
  0x87   : > { %4914 = vmatmul.mubr.bf16.vlgmr.msra.gmra.mrb[0].mxu0 %v2222_v18  ;;  %4461 = vmatprep.mubr.msk.bf16.mxu1 %vm6089_vm0, %v6088_v1  ;;  %v6572_v18 = vshll.u32 %v6558_v6, 16 }
  0x88   : > { %4998 = vmatpush3.bf16.msra.mxu0 %v5995_v21  ;;  %4917 = vmatprep.mubr.msk.bf16.mxu0 %vm6089_vm0, %v6088_v1  ;;  %7847 = vst [vmem:[#allocation9_spill] sm:$0xff] %v6569_v15  ;;  %v6575_v21 = vsel %vm2219_vm3, %v2225_v46, %v2227_v7  ;;  %v518_v14 = vor.u32 %v6569_v15, %v514_v2  ;;  %v2231_v2 = vrot.slane %v6329_v22, 2  ;;  %v6022_v15 = vld [vmem:[%s7806_s1 + $0xa0] sm:$0xff]  }
  0x89   : > { %4999 = vmatprep.subr.bf16.mxu0 %v6088_v1  ;;  %7848 = vst [vmem:[#allocation10_spill] sm:$0xff] %v6572_v18  ;;  %v522_v24 = vrot.slane %v6572_v18, 1 }
  0x8b   : > { %v523_v39 = vsel %vm391_vm1, %v518_v14, %v522_v24 }
  0x8c   : > { %5000 = vmatpush3.bf16.msra.mxu0 %v5999_v29  ;;  %v6587_v29 = vld [vmem:[%s6168_s12 + $0x88] sm:$0xff]  }
  0x8d   : > { %5001 = vmatprep.subr.bf16.mxu0 %v6088_v1  ;;  %v6601_v46 = vshll.u32 %v6587_v29, 16 }
  0x8e   : > { %4462 = vmatmul.mubr.bf16.gmra.mrb[48].mxu1 %v499_v30  ;;  %v2229_v30 = vrot.slane %v6297_v5, 2 }
  0x8f   : > { %4918 = vmatmul.mubr.bf16.gmra.mrb[4].mxu0 %v6517_v37  ;;  %4465 = vmatprep.mubr.msk.bf16.mxu1 %vm6089_vm0, %v6088_v1  ;;  %7850 = vst [vmem:[#allocation12_spill] sm:$0xff] %v6601_v46 }
  0x90   : > { %4921 = vmatprep.mubr.msk.bf16.mxu0 %vm6089_vm0, %v6088_v1  ;;  %5002 = vmatpush3.bf16.msra.mxu0 %v6004_v27  ;;  %v6018_v27 = vld [vmem:[%s7806_s1 + $0x1b8] sm:$0xff]  }
  0x91   : > { %5003 = vmatprep.subr.bf16.mxu0 %v6088_v1 }
  0x94   : > { %5004 = vmatpush3.bf16.msra.mxu0 %v6010_v51  ;;  %v6604_v51 = vsel %vm2219_vm3, %v2227_v7, %v2229_v30 }
  0x95   : > { %5005 = vmatprep.subr.bf16.mxu0 %v6088_v1 }
  0x96   : > { %4466 = vmatmul.mubr.bf16.gmra.mrb[52].mxu1 %v507_v53  ;;  %v526_v53 = vor.u32 %v6598_v44, %v522_v24 }
  0x97   : > { %4922 = vmatmul.mubr.bf16.gmra.mrb[8].mxu0 %v6546_v57  ;;  %4469 = vmatprep.mubr.msk.bf16.mxu1 %vm6089_vm0, %v6088_v1 }
  0x98   : > { %4925 = vmatprep.mubr.msk.bf16.mxu0 %vm6089_vm0, %v6088_v1  ;;  %5006 = vmatpush3.bf16.msra.mxu0 %v6012_v59  ;;  %v530_v59 = vrot.slane %v6601_v46, 1 }
  0x99   : > { %5007 = vmatprep.subr.bf16.mxu0 %v6088_v1 }
  0x9a   : > { %v531_v7 = vsel %vm391_vm1, %v526_v53, %v530_v59  ;;  %v6641_v53 = vshrl.u32 %v6613_v0, 16 }
  0x9c   : > { %5008 = vmatpush3.bf16.msra.mxu0 %v6014_v9  ;;  %v6620_v9 = vshrl.u32 %v6587_v29, 16  ;;  %7853 = vst [vmem:[#allocation15_spill] sm:$0xff] %v6641_v53 }
  0x9d   : > { %5009 = vmatprep.subr.bf16.mxu0 %v6088_v1 }
  0x9e   : > { %4470 = vmatmul.mubr.bf16.gmra.mrb[56].mxu1 %v515_v10  ;;  %7851 = vst [vmem:[#allocation13_spill] sm:$0xff] %v6620_v9  ;;  %v6623_v10 = vshll.u32 %v6613_v0, 16  ;;  %v534_v14 = vor.u32 %v6620_v9, %v530_v59  ;;  %v6650_v59 = vld [vmem:[%s6168_s12 + $0xa0] sm:$0xf] }
  0x9f   : > { %4926 = vmatmul.mubr.bf16.gmra.mrb[12].mxu0 %v6575_v21  ;;  %4473 = vmatprep.mubr.msk.bf16.mxu1 %vm6089_vm0, %v6088_v1  ;;  %v6659_v46 = vcombine.low %v6650_v59, %v6650_v59 }
  0xa0   : > { %4929 = vmatprep.mubr.msk.bf16.mxu0 %vm6089_vm0, %v6088_v1  ;;  %5010 = vmatpush3.bf16.msra.mxu0 %v6016_v13  ;;  %7852 = vst [vmem:[#allocation14_spill] sm:$0xff] %v6623_v10  ;;  %v6626_v13 = vsel %vm2219_vm3, %v2229_v30, %v2231_v2  ;;  %v538_v24 = vrot.slane %v6623_v10, 1 }
  0xa1   : > { %5011 = vmatprep.subr.bf16.mxu0 %v6088_v1  ;;  %v552_v18 = vshll.u32 %v6659_v46, 16 }
  0xa2   : > { %v539_v30 = vsel %vm391_vm1, %v534_v14, %v538_v24  ;;  %v542_v10 = vor.u32 %v6641_v53, %v538_v24 }
  0xa3   : > { %v554_v53 = vrot.slane %v552_v18, 1  ;;  %v2239_v18 = vrot.slane %v6420_v11, 2 }
  0xa4   : > { %5012 = vmatpush3.bf16.msra.mxu0 %v6018_v27  ;;  %v6634_v27 = vld [vmem:[%s6168_s12 + $0x98] sm:$0xff]  }
  0xa5   : > { %5097 = vmatprep.subr.bf16.mxu0 %v6088_v1  ;;  %v6666_v9 = vshrl.u32 %v6634_v27, 16 }
  0xa6   : > { %4474 = vmatmul.mubr.bf16.gmra.mrb[60].mxu1 %v523_v39  ;;  %v2233_v39 = vrot.slane %v6341_v28, 2 }
  0xa7   : > { %4930 = vmatmul.mubr.bf16.gmra.mrb[16].mxu0 %v6604_v51  ;;  %4477 = vmatprep.mubr.msk.bf16.mxu1 %vm6089_vm0, %v6088_v1  ;;  %7855 = vst [vmem:[#allocation17_spill] sm:$0xff] %v6666_v9 }
  0xa8   : > { %4933 = vmatprep.mubr.msk.bf16.mxu0 %vm6089_vm0, %v6088_v1  ;;  %v6647_v61 = vsel %vm2219_vm3, %v2231_v2, %v2233_v39  ;;  %v2235_v2 = vrot.slane %v6371_v42, 2 }
  0xaa   : > { %v6670_v24 = vsel %vm2219_vm3, %v2233_v39, %v2235_v2  ;;  %v556_v39 = vshrl.u32 %v6659_v46, 16 }
  0xae   : > { %4478 = vmatmul.mubr.bf16.gmra.mrb[64].mxu1 %v531_v7  ;;  %v6644_v7 = vshll.u32 %v6634_v27, 16 }
  0xaf   : > { %4934 = vmatmul.mubr.bf16.gmra.mrb[20].mxu0 %v6626_v13  ;;  %4481 = vmatprep.mubr.msk.bf16.mxu1 %vm6089_vm0, %v6088_v1 }
  0xb0   : > { %4937 = vmatprep.mubr.msk.bf16.mxu0 %vm6089_vm0, %v6088_v1  ;;  %7854 = vst [vmem:[#allocation16_spill] sm:$0xff] %v6644_v7  ;;  %v546_v14 = vrot.slane %v6644_v7, 1 }
  0xb2   : > { %v550_v7 = vor.u32 %v6666_v9, %v546_v14  ;;  %v6727_v9 = vld [vmem:[%s6168_s12 + $0x8] sm:$0xff]  }
  0xb4   : > { %v555_v44 = vsel %vm391_vm1, %v550_v7, %v554_v53 }
  0xb6   : > { %4482 = vmatmul.mubr.bf16.gmra.mrb[68].mxu1 %v539_v30  ;;  %v547_v30 = vsel %vm391_vm1, %v542_v10, %v546_v14  ;;  %v2237_v10 = vrot.slane %v6395_v58, 2  ;;  %v558_v14 = vor.u32 %v556_v39, %v554_v53  ;;  %v6013_v53 = vld [vmem:[%s7806_s1 + $0x80] sm:$0xff]   ;;  %v6015_v39 = vld [vmem:[%s7806_s1 + $0x88] sm:$0xff]  }
  0xb7   : > { %4938 = vmatmul.mubr.bf16.gmra.mrb[24].mxu0 %v6647_v61  ;;  %4485 = vmatprep.mubr.msk.bf16.mxu1 %vm6089_vm0, %v6088_v1 }
  0xb8   : > { %4941 = vmatprep.mubr.msk.bf16.mxu0 %vm6089_vm0, %v6088_v1  ;;  %v6681_v56 = vsel %vm2219_vm3, %v2235_v2, %v2237_v10  ;;  %v6691_v7 = vsel %vm2219_vm3, %v2237_v10, %v2239_v18  ;;  %v2243_v10 = vrot.slane %v6481_v8, 2 }
  0xbe   : > { %4486 = vmatmul.mubr.bf16.gmra.mrb[72].mxu1 %v547_v30  ;;  %v6706_v30 = vld [vmem:[%s6168_s12] sm:$0xff]  }
  0xbf   : > { %4942 = vmatmul.mubr.bf16.gmra.mrb[28].mxu0 %v6670_v24  ;;  %4489 = vmatprep.mubr.msk.bf16.mxu1 %vm6089_vm0, %v6088_v1 }
  0xc0   : > { %4945 = vmatprep.mubr.msk.bf16.mxu0 %vm6089_vm0, %v6088_v1 }
  0xc6   : > { %4490 = vmatmul.mubr.bf16.gmra.mrb[76].mxu1 %v555_v44  ;;  %v2241_v44 = vrot.slane %v6447_v43, 2 }
  0xc7   : > { %4946 = vmatmul.mubr.bf16.gmra.mrb[32].mxu0 %v6681_v56  ;;  %4493 = vmatprep.mubr.msk.bf16.mxu1 %vm6089_vm0, %v6088_v1 }
  0xc8   : > { %4949 = vmatprep.mubr.msk.bf16.mxu0 %vm6089_vm0, %v6088_v1  ;;  %v6700_v2 = vsel %vm2219_vm3, %v2239_v18, %v2241_v44  ;;  %v6720_v18 = vsel %vm2219_vm3, %v2241_v44, %v2243_v10  ;;  %v2245_v44 = vrot.slane %v6500_v23, 2 }
  0xce   : > { %4494 = vmatmul.mubr.bf16.gmra.mrb[80].mxu1 %v558_v14  ;;  %v6017_v14 = vld [vmem:[%s7806_s1 + $0x90] sm:$0xff]  }
  0xcf   : > { %4950 = vmatmul.mubr.bf16.gmra.mrb[36].mxu0 %v6691_v7  ;;  %4513 = vmatprep.mubr.msk.bf16.mxu1 %vm6089_vm0, %v6088_v1 }
  0xd0   : > { %4953 = vmatprep.mubr.msk.bf16.mxu0 %vm6089_vm0, %v6088_v1 }
  0xd6   : > { %4514 = vmatmul.mubr.bf16.vlgmr.msra.gmra.mrb[0].mxu1 %v6706_v30 }
  0xd7   : > { %4954 = vmatmul.mubr.bf16.gmra.mrb[40].mxu0 %v6700_v2  ;;  %4517 = vmatprep.mubr.msk.bf16.mxu1 %vm6089_vm0, %v6088_v1 }
  0xd8   : > { %4957 = vmatprep.mubr.msk.bf16.mxu0 %vm6089_vm0, %v6088_v1  ;;  %4598 = vmatpush3.bf16.msra.mxu1 %v6013_v53  ;;  %v6019_v53 = vld [vmem:[%s7806_s1 + $0x98] sm:$0xff]  }
  0xd9   : > { %4599 = vmatprep.subr.bf16.mxu1 %v6088_v1 }
  0xdc   : > { %4600 = vmatpush3.bf16.msra.mxu1 %v6015_v39  ;;  %v6741_v39 = vsel %vm2219_vm3, %v2243_v10, %v2245_v44  ;;  %v2247_v10 = vrot.slane %v6529_v45, 2 }
  0xdd   : > { %4601 = vmatprep.subr.bf16.mxu1 %v6088_v1 }
  0xde   : > { %4518 = vmatmul.mubr.bf16.gmra.mrb[4].mxu1 %v6727_v9 }
  0xdf   : > { %4958 = vmatmul.mubr.bf16.gmra.mrb[44].mxu0 %v6720_v18  ;;  %4521 = vmatprep.mubr.msk.bf16.mxu1 %vm6089_vm0, %v6088_v1 }
  0xe0   : > { %4961 = vmatprep.mubr.msk.bf16.mxu0 %vm6089_vm0, %v6088_v1  ;;  %4602 = vmatpush3.bf16.msra.mxu1 %v6017_v14  ;;  %v6024_v14 = vld [vmem:[%s7806_s1 + $0xa8] sm:$0xff]  }
  0xe1   : > { %4603 = vmatprep.subr.bf16.mxu1 %v6088_v1 }
  0xe4   : > { %4604 = vmatpush3.bf16.msra.mxu1 %v6019_v53  ;;  %v6762_v53 = vsel %vm2219_vm3, %v2245_v44, %v2247_v10  ;;  %v6028_v44 = vld [vmem:[%s7806_s1 + $0xb8] sm:$0xff]  }
  0xe5   : > { %4605 = vmatprep.subr.bf16.mxu1 %v6088_v1 }
  0xe6   : > { %4522 = vmatmul.mubr.bf16.gmra.mrb[8].mxu1 %v6748_v36 }
  0xe7   : > { %4962 = vmatmul.mubr.bf16.gmra.mrb[48].mxu0 %v6741_v39  ;;  %4525 = vmatprep.mubr.msk.bf16.mxu1 %vm6089_vm0, %v6088_v1 }
  0xe8   : > { %4965 = vmatprep.mubr.msk.bf16.mxu0 %vm6089_vm0, %v6088_v1  ;;  %4606 = vmatpush3.bf16.msra.mxu1 %v6022_v15  ;;  %v2249_v15 = vrot.slane %v6558_v6, 2 }
  0xe9   : > { %4607 = vmatprep.subr.bf16.mxu1 %v6088_v1 }
  0xec   : > { %4608 = vmatpush3.bf16.msra.mxu1 %v6024_v14  ;;  %v6783_v14 = vsel %vm2219_vm3, %v2247_v10, %v2249_v15 }
  0xed   : > { %4609 = vmatprep.subr.bf16.mxu1 %v6088_v1 }
  0xee   : > { %4526 = vmatmul.mubr.bf16.gmra.mrb[12].mxu1 %v6769_v17 }
  0xef   : > { %4966 = vmatmul.mubr.bf16.gmra.mrb[52].mxu0 %v6762_v53  ;;  %4529 = vmatprep.mubr.msk.bf16.mxu1 %vm6089_vm0, %v6088_v1 }
  0xf0   : > { %4969 = vmatprep.mubr.msk.bf16.mxu0 %vm6089_vm0, %v6088_v1  ;;  %4610 = vmatpush3.bf16.msra.mxu1 %v6026_v54  ;;  %v2251_v54 = vrot.slane %v6587_v29, 2 }
  0xf1   : > { %4611 = vmatprep.subr.bf16.mxu1 %v6088_v1 }
  0xf2   : > { %v6794_v32 = vsel %vm2219_vm3, %v2249_v15, %v2251_v54  ;;  %v251_v15 = vld [vmem:[%s6168_s12 + $0xa4] sm:$0xf] }
  0xf4   : > { %4612 = vmatpush3.bf16.msra.mxu1 %v6028_v44  ;;  %v6815_v44 = vcombine.low %v6650_v59, %v251_v15  ;;  %v6029_v15 = vld [vmem:[%s7806_s1 + $0x1e0] sm:$0xff]  }
  0xf5   : > { %4697 = vmatprep.subr.bf16.mxu1 %v6088_v1 }
  0xf6   : > { %4530 = vmatmul.mubr.bf16.gmra.mrb[16].mxu1 %v6230_v40  ;;  %v2253_v40 = vrot.slane %v6613_v0, 2 }
  0xf7   : > { %4970 = vmatmul.mubr.bf16.gmra.mrb[56].mxu0 %v6783_v14  ;;  %4533 = vmatprep.mubr.msk.bf16.mxu1 %vm6089_vm0, %v6088_v1 }
  0xf8   : > { %4973 = vmatprep.mubr.msk.bf16.mxu0 %vm6089_vm0, %v6088_v1  ;;  %v6804_v10 = vsel %vm2219_vm3, %v2251_v54, %v2253_v40  ;;  %v6830_v54 = vld [vmem:[%s6168_s12 + $0xa8] sm:$0xf] }
  0xfe   : > { %4534 = vmatmul.mubr.bf16.gmra.mrb[20].mxu1 %v6259_v52  ;;  %v2255_v52 = vrot.slane %v6634_v27, 2 }
  0xff   : > { %4974 = vmatmul.mubr.bf16.gmra.mrb[60].mxu0 %v6794_v32  ;;  %4537 = vmatprep.mubr.msk.bf16.mxu1 %vm6089_vm0, %v6088_v1 }
 0x100   : > { %4977 = vmatprep.mubr.msk.bf16.mxu0 %vm6089_vm0, %v6088_v1  ;;  %v6818_v47 = vsel %vm2219_vm3, %v2253_v40, %v2255_v52 }
 0x106   : > { %4538 = vmatmul.mubr.bf16.gmra.mrb[24].mxu1 %v6297_v5  ;;  %v6827_v5 = vrot.slane %v6815_v44, 2 }
 0x107   : > { %4978 = vmatmul.mubr.bf16.gmra.mrb[64].mxu0 %v6804_v10  ;;  %4541 = vmatprep.mubr.msk.bf16.mxu1 %vm6089_vm0, %v6088_v1 }
 0x108   : > { %4981 = vmatprep.mubr.msk.bf16.mxu0 %vm6089_vm0, %v6088_v1  ;;  %v6834_v59 = vsel %vm2219_vm3, %v2255_v52, %v6827_v5 }
 0x10e   : > { %4542 = vmatmul.mubr.bf16.gmra.mrb[28].mxu1 %v6329_v22  ;;  %v6838_v22 = vcombine.low %v6830_v54, %v6830_v54 }
 0x10f   : > { %4982 = vmatmul.mubr.bf16.gmra.mrb[68].mxu0 %v6818_v47  ;;  %4545 = vmatprep.mubr.msk.bf16.mxu1 %vm6089_vm0, %v6088_v1 }
 0x110   : > { %4985 = vmatprep.mubr.msk.bf16.mxu0 %vm6089_vm0, %v6088_v1  ;;  %v2259_v40 = vrot.slane %v6838_v22, 2 }
 0x112   : > { %v2260_v52 = vsel %vm2219_vm3, %v6827_v5, %v2259_v40 }
 0x116   : > { %4546 = vmatmul.mubr.bf16.gmra.mrb[32].mxu1 %v6341_v28  ;;  %v6021_v28 = vld [vmem:[%s7806_s1 + $0x1c0] sm:$0xff]  }
 0x117   : > { %4986 = vmatmul.mubr.bf16.gmra.mrb[72].mxu0 %v6834_v59  ;;  %4549 = vmatprep.mubr.msk.bf16.mxu1 %vm6089_vm0, %v6088_v1 }
 0x118   : > { %4989 = vmatprep.mubr.msk.bf16.mxu0 %vm6089_vm0, %v6088_v1 }
 0x11e   : > { %4550 = vmatmul.mubr.bf16.gmra.mrb[36].mxu1 %v6371_v42  ;;  %v6023_v42 = vld [vmem:[%s7806_s1 + $0x1c8] sm:$0xff]  }
 0x11f   : > { %4990 = vmatmul.mubr.bf16.gmra.mrb[76].mxu0 %v2260_v52  ;;  %4553 = vmatprep.mubr.msk.bf16.mxu1 %vm6089_vm0, %v6088_v1 }
 0x120   : > { %4993 = vmatprep.mubr.msk.bf16.mxu0 %vm6089_vm0, %v6088_v1 }
 0x126   : > { %4554 = vmatmul.mubr.bf16.gmra.mrb[40].mxu1 %v6395_v58  ;;  %v6025_v58 = vld [vmem:[%s7806_s1 + $0x1d0] sm:$0xff]  }
 0x127   : > { %4994 = vmatmul.mubr.bf16.gmra.mrb[80].mxu0 %v2259_v40  ;;  %4557 = vmatprep.mubr.msk.bf16.mxu1 %vm6089_vm0, %v6088_v1  ;;  %v6033_v40 = vld [vmem:[%s7806_s1 + $0x1f0] sm:$0xff]  }
 0x128   : > { %5013 = vmatprep.mubr.msk.bf16.mxu0 %vm6089_vm0, %v6088_v1 }
 0x12e   : > { %4558 = vmatmul.mubr.bf16.gmra.mrb[44].mxu1 %v6420_v11 }
 0x12f   : > { %5014 = vmatmul.mubr.bf16.vlgmr.msra.gmra.mrb[0].mxu0 %v6517_v37  ;;  %4561 = vmatprep.mubr.msk.bf16.mxu1 %vm6089_vm0, %v6088_v1  ;;  %v6027_v37 = vld [vmem:[%s7806_s1 + $0x1d8] sm:$0xff]  }
 0x130   : > { %5098 = vmatpush3.bf16.msra.mxu0 %v6021_v28  ;;  %5017 = vmatprep.mubr.msk.bf16.mxu0 %vm6089_vm0, %v6088_v1  ;;  %v6997_v28 = vld [vmem:[%s6168_s12 + $0x20] sm:$0xff]  }
 0x131   : > { %5099 = vmatprep.subr.bf16.mxu0 %v6088_v1 }
 0x134   : > { %5100 = vmatpush3.bf16.msra.mxu0 %v6023_v42  ;;  %v1121_v42 = vrot.slane %v6997_v28, 1 }
 0x135   : > { %5101 = vmatprep.subr.bf16.mxu0 %v6088_v1 }
 0x136   : > { %4562 = vmatmul.mubr.bf16.gmra.mrb[48].mxu1 %v6447_v43 }
 0x137   : > { %5018 = vmatmul.mubr.bf16.gmra.mrb[4].mxu0 %v6546_v57  ;;  %4565 = vmatprep.mubr.msk.bf16.mxu1 %vm6089_vm0, %v6088_v1  ;;  %v6031_v57 = vld [vmem:[%s7806_s1 + $0x1e8] sm:$0xff]  }
 0x138   : > { %5021 = vmatprep.mubr.msk.bf16.mxu0 %vm6089_vm0, %v6088_v1  ;;  %5102 = vmatpush3.bf16.msra.mxu0 %v6025_v58  ;;  %v6043_v58 = vld [vmem:[%s7806_s1 + $0xe8] sm:$0xff]  }
 0x139   : > { %5103 = vmatprep.subr.bf16.mxu0 %v6088_v1 }
 0x13c   : > { %5104 = vmatpush3.bf16.msra.mxu0 %v6027_v37 }
 0x13d   : > { %5105 = vmatprep.subr.bf16.mxu0 %v6088_v1 }
 0x13e   : > { %4566 = vmatmul.mubr.bf16.gmra.mrb[52].mxu1 %v6481_v8 }
 0x13f   : > { %5022 = vmatmul.mubr.bf16.gmra.mrb[8].mxu0 %v6575_v21  ;;  %4569 = vmatprep.mubr.msk.bf16.mxu1 %vm6089_vm0, %v6088_v1  ;;  %v6036_v21 = vld [vmem:[%s7806_s1 + $0x1f8] sm:$0xff]  }
 0x140   : > { %5025 = vmatprep.mubr.msk.bf16.mxu0 %vm6089_vm0, %v6088_v1  ;;  %5106 = vmatpush3.bf16.msra.mxu0 %v6029_v15  ;;  %v7018_v15 = vld [vmem:[%s6168_s12 + $0x28] sm:$0xff]  }
 0x141   : > { %5107 = vmatprep.subr.bf16.mxu0 %v6088_v1 }
 0x144   : > { %5108 = vmatpush3.bf16.msra.mxu0 %v6031_v57  ;;  %v1123_v57 = vrot.slane %v7018_v15, 1 }
 0x145   : > { %5109 = vmatprep.subr.bf16.mxu0 %v6088_v1 }
 0x146   : > { %4570 = vmatmul.mubr.bf16.gmra.mrb[56].mxu1 %v6500_v23 }
 0x147   : > { %5026 = vmatmul.mubr.bf16.gmra.mrb[12].mxu0 %v6604_v51  ;;  %4573 = vmatprep.mubr.msk.bf16.mxu1 %vm6089_vm0, %v6088_v1 }
 0x148   : > { %5029 = vmatprep.mubr.msk.bf16.mxu0 %vm6089_vm0, %v6088_v1  ;;  %5110 = vmatpush3.bf16.msra.mxu0 %v6033_v40  ;;  %v6047_v40 = vld [vmem:[%s7806_s1 + $0xf8] sm:$0xff]  }
 0x149   : > { %5111 = vmatprep.subr.bf16.mxu0 %v6088_v1 }
 0x14c   : > { %5112 = vmatpush3.bf16.msra.mxu0 %v6036_v21  ;;  %v7036_v21 = vld [vmem:[%s6168_s12 + $0x30] sm:$0xff]  }
 0x14d   : > { %5197 = vmatprep.subr.bf16.mxu0 %v6088_v1 }
 0x14e   : > { %4574 = vmatmul.mubr.bf16.gmra.mrb[60].mxu1 %v6529_v45 }
 0x14f   : > { %5030 = vmatmul.mubr.bf16.gmra.mrb[16].mxu0 %v6626_v13  ;;  %4577 = vmatprep.mubr.msk.bf16.mxu1 %vm6089_vm0, %v6088_v1  ;;  %v6030_v13 = vld [vmem:[%s7806_s1 + $0xc0] sm:$0xff]  }
 0x150   : > { %5033 = vmatprep.mubr.msk.bf16.mxu0 %vm6089_vm0, %v6088_v1 }
 0x156   : > { %4578 = vmatmul.mubr.bf16.gmra.mrb[64].mxu1 %v6558_v6 }
 0x157   : > { %5034 = vmatmul.mubr.bf16.gmra.mrb[20].mxu0 %v6647_v61  ;;  %4581 = vmatprep.mubr.msk.bf16.mxu1 %vm6089_vm0, %v6088_v1  ;;  %v1114_v61 = vrot.slane %v6706_v30, 1  ;;  %v1119_v30 = vrot.slane %v6769_v17, 1 }
 0x158   : > { %5037 = vmatprep.mubr.msk.bf16.mxu0 %vm6089_vm0, %v6088_v1 }
 0x159   : > { %v7007_v37 = vsel %vm1113_vm4, %v1119_v30, %v1121_v42 }
 0x15e   : > { %4582 = vmatmul.mubr.bf16.gmra.mrb[68].mxu1 %v6587_v29 }
 0x15f   : > { %5038 = vmatmul.mubr.bf16.gmra.mrb[24].mxu0 %v6670_v24  ;;  %4585 = vmatprep.mubr.msk.bf16.mxu1 %vm6089_vm0, %v6088_v1  ;;  %v1117_v24 = vrot.slane %v6748_v36, 1 }
 0x160   : > { %5041 = vmatprep.mubr.msk.bf16.mxu0 %vm6089_vm0, %v6088_v1 }
 0x161   : > { %v6986_v52 = vsel %vm1113_vm4, %v1117_v24, %v1119_v30 }
 0x166   : > { %4586 = vmatmul.mubr.bf16.gmra.mrb[72].mxu1 %v6613_v0 }
 0x167   : > { %5042 = vmatmul.mubr.bf16.gmra.mrb[28].mxu0 %v6681_v56  ;;  %4589 = vmatprep.mubr.msk.bf16.mxu1 %vm6089_vm0, %v6088_v1  ;;  %v1115_v56 = vrot.slane %v6727_v9, 1  ;;  %v6032_v9 = vld [vmem:[%s7806_s1 + $0xc8] sm:$0xff]  }
 0x168   : > { %5045 = vmatprep.mubr.msk.bf16.mxu0 %vm6089_vm0, %v6088_v1 }
 0x169   : > { %v1116_v51 = vsel %vm1113_vm4, %v1114_v61, %v1115_v56  ;;  %v1125_v61 = vrot.slane %v7036_v21, 1 }
 0x16e   : > { %4590 = vmatmul.mubr.bf16.gmra.mrb[76].mxu1 %v6634_v27 }
 0x16f   : > { %5046 = vmatmul.mubr.bf16.gmra.mrb[32].mxu0 %v6691_v7  ;;  %4593 = vmatprep.mubr.msk.bf16.mxu1 %vm6089_vm0, %v6088_v1  ;;  %v6968_v7 = vsel %vm1113_vm4, %v1115_v56, %v1117_v24  ;;  %v7042_v56 = vsel %vm1113_vm4, %v1123_v57, %v1125_v61 }
 0x170   : > { %5049 = vmatprep.mubr.msk.bf16.mxu0 %vm6089_vm0, %v6088_v1 }
 0x176   : > { %4594 = vmatmul.mubr.bf16.gmra.mrb[80].mxu1 %v6659_v46 }
 0x177   : > { %5050 = vmatmul.mubr.bf16.gmra.mrb[36].mxu0 %v6700_v2  ;;  %4613 = vmatprep.mubr.msk.bf16.mxu1 %vm6089_vm0, %v6088_v1  ;;  %v6034_v2 = vld [vmem:[%s7806_s1 + $0xd0] sm:$0xff]  }
 0x178   : > { %5053 = vmatprep.mubr.msk.bf16.mxu0 %vm6089_vm0, %v6088_v1 }
 0x17e   : > { %4614 = vmatmul.mubr.bf16.vlgmr.msra.gmra.mrb[0].mxu1 %v1116_v51 }
 0x17f   : > { %5054 = vmatmul.mubr.bf16.gmra.mrb[40].mxu0 %v6720_v18  ;;  %4617 = vmatprep.mubr.msk.bf16.mxu1 %vm6089_vm0, %v6088_v1  ;;  %v6037_v18 = vld [vmem:[%s7806_s1 + $0xd8] sm:$0xff]  }
 0x180   : > { %5057 = vmatprep.mubr.msk.bf16.mxu0 %vm6089_vm0, %v6088_v1  ;;  %4698 = vmatpush3.bf16.msra.mxu1 %v6030_v13 }
 0x181   : > { %4699 = vmatprep.subr.bf16.mxu1 %v6088_v1 }
 0x184   : > { %4700 = vmatpush3.bf16.msra.mxu1 %v6032_v9  ;;  %v253_v9 = vld [vmem:[%s6168_s12 + $0xac] sm:$0xf] }
 0x185   : > { %4701 = vmatprep.subr.bf16.mxu1 %v6088_v1  ;;  %v7072_v30 = vcombine.low %v6830_v54, %v253_v9  ;;  %v2909_v9 = vrot.slane %v6196_v20, 2 }
 0x186   : > { %4618 = vmatmul.mubr.bf16.gmra.mrb[4].mxu1 %v6968_v7 }
 0x187   : > { %5058 = vmatmul.mubr.bf16.gmra.mrb[44].mxu0 %v6741_v39  ;;  %4621 = vmatprep.mubr.msk.bf16.mxu1 %vm6089_vm0, %v6088_v1  ;;  %v6041_v39 = vld [vmem:[%s7806_s1 + $0xe0] sm:$0xff]  }
 0x188   : > { %5061 = vmatprep.mubr.msk.bf16.mxu0 %vm6089_vm0, %v6088_v1  ;;  %4702 = vmatpush3.bf16.msra.mxu1 %v6034_v2 }
 0x189   : > { %4703 = vmatprep.subr.bf16.mxu1 %v6088_v1 }
 0x18c   : > { %4704 = vmatpush3.bf16.msra.mxu1 %v6037_v18 }
 0x18d   : > { %4705 = vmatprep.subr.bf16.mxu1 %v6088_v1 }
 0x18e   : > { %4622 = vmatmul.mubr.bf16.gmra.mrb[8].mxu1 %v6986_v52 }
 0x18f   : > { %5062 = vmatmul.mubr.bf16.gmra.mrb[48].mxu0 %v6762_v53  ;;  %4625 = vmatprep.mubr.msk.bf16.mxu1 %vm6089_vm0, %v6088_v1  ;;  %v6045_v53 = vld [vmem:[%s7806_s1 + $0xf0] sm:$0xff]  }
 0x190   : > { %5065 = vmatprep.mubr.msk.bf16.mxu0 %vm6089_vm0, %v6088_v1  ;;  %4706 = vmatpush3.bf16.msra.mxu1 %v6041_v39  ;;  %v2593_v39 = vrot.slane %v7072_v30, 2 }
 0x191   : > { %4707 = vmatprep.subr.bf16.mxu1 %v6088_v1 }
 0x194   : > { %4708 = vmatpush3.bf16.msra.mxu1 %v6043_v58 }
 0x195   : > { %4709 = vmatprep.subr.bf16.mxu1 %v6088_v1 }
 0x196   : > { %4626 = vmatmul.mubr.bf16.gmra.mrb[12].mxu1 %v7007_v37 }
 0x197   : > { %5066 = vmatmul.mubr.bf16.gmra.mrb[52].mxu0 %v6783_v14  ;;  %4629 = vmatprep.mubr.msk.bf16.mxu1 %vm6089_vm0, %v6088_v1  ;;  %v7028_v14 = vsel %vm1113_vm4, %v1121_v42, %v1123_v57  ;;  %v7086_v42 = vld [vmem:[%s6168_s12 + $0xb0] sm:$0xf] }
 0x198   : > { %5069 = vmatprep.mubr.msk.bf16.mxu0 %vm6089_vm0, %v6088_v1  ;;  %4710 = vmatpush3.bf16.msra.mxu1 %v6045_v53  ;;  %v4108_v58 = vcombine.low %v7086_v42, %v7086_v42  ;;  %v7099_v53 = vld [vmem:[%s6168_s12 + $0x50] sm:$0xff]  }
 0x199   : > { %4711 = vmatprep.subr.bf16.mxu1 %v6088_v1  ;;  %v1133_v57 = vrot.slane %v7099_v53, 1 }
 0x19c   : > { %4712 = vmatpush3.bf16.msra.mxu1 %v6047_v40  ;;  %v2595_v40 = vrot.slane %v4108_v58, 2 }
 0x19d   : > { %5297 = vmatprep.subr.bf16.mxu1 %v6088_v1 }
 0x19e   : > { %4630 = vmatmul.mubr.bf16.gmra.mrb[16].mxu1 %v7028_v14 }
 0x19f   : > { %5070 = vmatmul.mubr.bf16.gmra.mrb[56].mxu0 %v6794_v32  ;;  %4633 = vmatprep.mubr.msk.bf16.mxu1 %vm6089_vm0, %v6088_v1  ;;  %v7049_v32 = vld [vmem:[%s6168_s12 + $0x38] sm:$0xff]  }
 0x1a0   : > { %5073 = vmatprep.mubr.msk.bf16.mxu0 %vm6089_vm0, %v6088_v1  ;;  %v1127_v51 = vrot.slane %v7049_v32, 1 }
 0x1a2   : > { %v7055_v13 = vsel %vm1113_vm4, %v1125_v61, %v1127_v51 }
 0x1a6   : > { %4634 = vmatmul.mubr.bf16.gmra.mrb[20].mxu1 %v7042_v56 }
 0x1a7   : > { %5074 = vmatmul.mubr.bf16.gmra.mrb[60].mxu0 %v6804_v10  ;;  %4637 = vmatprep.mubr.msk.bf16.mxu1 %vm6089_vm0, %v6088_v1  ;;  %v7062_v10 = vld [vmem:[%s6168_s12 + $0x40] sm:$0xff]  }
 0x1a8   : > { %5077 = vmatprep.mubr.msk.bf16.mxu0 %vm6089_vm0, %v6088_v1  ;;  %v1129_v24 = vrot.slane %v7062_v10, 1 }
 0x1aa   : > { %v7069_v2 = vsel %vm1113_vm4, %v1127_v51, %v1129_v24  ;;  %v1135_v51 = vrot.slane %v6420_v11, 1  ;;  %v1137_v11 = vrot.slane %v6447_v43, 1  ;;  %v1139_v43 = vrot.slane %v6481_v8, 1 }
 0x1ab   : > { %v2921_v8 = vrot.slane %v6275_v60, 3  ;;  %v6046_v60 = vld [vmem:[%s7806_s1 + $0x218] sm:$0xff]  }
 0x1ae   : > { %4638 = vmatmul.mubr.bf16.gmra.mrb[24].mxu1 %v7055_v13 }
 0x1af   : > { %5078 = vmatmul.mubr.bf16.gmra.mrb[64].mxu0 %v6818_v47  ;;  %4641 = vmatprep.mubr.msk.bf16.mxu1 %vm6089_vm0, %v6088_v1  ;;  %v7079_v47 = vld [vmem:[%s6168_s12 + $0x48] sm:$0xff]  }
 0x1b0   : > { %5081 = vmatprep.mubr.msk.bf16.mxu0 %vm6089_vm0, %v6088_v1  ;;  %v1131_v18 = vrot.slane %v7079_v47, 1 }
 0x1b2   : > { %v7089_v54 = vsel %vm1113_vm4, %v1129_v24, %v1131_v18  ;;  %v7105_v61 = vsel %vm1113_vm4, %v1131_v18, %v1133_v57  ;;  %v7115_v24 = vsel %vm1113_vm4, %v1133_v57, %v1135_v51  ;;  %v2910_v18 = vrot.slane %v6193_v19, 3 }
 0x1b3   : > { %v7128_v19 = vsel %vm1113_vm4, %v1135_v51, %v1137_v11  ;;  %v6042_v51 = vld [vmem:[%s7806_s1 + $0x208] sm:$0xff]  }
 0x1b4   : > { %v2911_v58 = vor.u32 %v2910_v18, %v2909_v9  ;;  %v2920_v9 = vrot.slane %v6284_v63, 2  ;;  %v6044_v18 = vld [vmem:[%s7806_s1 + $0x210] sm:$0xff]  }
 0x1b6   : > { %4642 = vmatmul.mubr.bf16.gmra.mrb[28].mxu1 %v7069_v2  ;;  %v2922_v63 = vor.u32 %v2921_v8, %v2920_v9  ;;  %v2932_v9 = vrot.slane %v6368_v41, 2  ;;  %v1147_v8 = vrot.slane %v6587_v29, 1  ;;  %v1149_v29 = vrot.slane %v6613_v0, 1 }
 0x1b7   : > { %5082 = vmatmul.mubr.bf16.gmra.mrb[68].mxu0 %v6834_v59  ;;  %4645 = vmatprep.mubr.msk.bf16.mxu1 %vm6089_vm0, %v6088_v1  ;;  %v2594_v59 = vsel %vm2219_vm3, %v6827_v5, %v2593_v39  ;;  %v2596_v5 = vsel %vm2219_vm3, %v2593_v39, %v2595_v40  ;;  %v2912_v39 = vrot.slane %v6221_v35, 2  ;;  %v2916_v35 = vrot.slane %v6252_v50, 2 }
 0x1b8   : > { %5085 = vmatprep.mubr.msk.bf16.mxu0 %vm6089_vm0, %v6088_v1  ;;  %v7240_v0 = vrot.slane %v6634_v27, 1  ;;  %v1153_v27 = vrot.slane %v6659_v46, 1 }
 0x1be   : > { %4646 = vmatmul.mubr.bf16.gmra.mrb[32].mxu1 %v7089_v54 }
 0x1bf   : > { %5086 = vmatmul.mubr.bf16.gmra.mrb[72].mxu0 %v2594_v59  ;;  %4649 = vmatprep.mubr.msk.bf16.mxu1 %vm6089_vm0, %v6088_v1  ;;  %v2913_v59 = vrot.slane %v6218_v34, 3  ;;  %v6040_v34 = vld [vmem:[%s7806_s1 + $0x200] sm:$0xff]  }
 0x1c0   : > { %5089 = vmatprep.mubr.msk.bf16.mxu0 %vm6089_vm0, %v6088_v1 }
 0x1c1   : > { %v2914_v57 = vor.u32 %v2913_v59, %v2912_v39  ;;  %v1141_v39 = vrot.slane %v6500_v23, 1  ;;  %v2925_v23 = vrot.slane %v6314_v12, 3  ;;  %v6049_v12 = vld [vmem:[%s7806_s1 + $0x228] sm:$0xff]  }
 0x1c3   : > { %v2915_v20 = vsel %vm2908_vm5, %v2911_v58, %v2914_v57  ;;  %v7167_v59 = vsel %vm1113_vm4, %v1139_v43, %v1141_v39  ;;  %v2924_v58 = vrot.slane %v6319_v16, 2 }
 0x1c5   : > { %v2926_v16 = vor.u32 %v2925_v23, %v2924_v58 }
 0x1c6   : > { %4650 = vmatmul.mubr.bf16.gmra.mrb[36].mxu1 %v7105_v61 }
 0x1c7   : > { %5090 = vmatmul.mubr.bf16.gmra.mrb[76].mxu0 %v2596_v5  ;;  %4653 = vmatprep.mubr.msk.bf16.mxu1 %vm6089_vm0, %v6088_v1 }
 0x1c8   : > { %5093 = vmatprep.mubr.msk.bf16.mxu0 %vm6089_vm0, %v6088_v1 }
 0x1ce   : > { %4654 = vmatmul.mubr.bf16.gmra.mrb[40].mxu1 %v7115_v24 }
 0x1cf   : > { %5094 = vmatmul.mubr.bf16.gmra.mrb[80].mxu0 %v2595_v40  ;;  %4657 = vmatprep.mubr.msk.bf16.mxu1 %vm6089_vm0, %v6088_v1  ;;  %v2917_v40 = vrot.slane %v6249_v49, 3  ;;  %v7147_v49 = vsel %vm1113_vm4, %v1137_v11, %v1139_v43  ;;  %v6050_v43 = vld [vmem:[%s7806_s1 + $0x230] sm:$0xff]  }
 0x1d0   : > { %5113 = vmatprep.mubr.msk.bf16.mxu0 %vm6089_vm0, %v6088_v1 }
 0x1d1   : > { %v2918_v5 = vor.u32 %v2917_v40, %v2916_v35  ;;  %v2927_v35 = vsel %vm2908_vm5, %v2922_v63, %v2926_v16  ;;  %v2928_v40 = vrot.slane %v6353_v33, 2 }
 0x1d3   : > { %v2919_v50 = vsel %vm2908_vm5, %v2914_v57, %v2918_v5  ;;  %v2923_v11 = vsel %vm2908_vm5, %v2918_v5, %v2922_v63  ;;  %v6048_v57 = vld [vmem:[%s7806_s1 + $0x220] sm:$0xff]   ;;  %v1145_v5 = vrot.slane %v6558_v6, 1  ;;  %v2933_v6 = vrot.slane %v6363_v38, 3 }
 0x1d4   : > { %v2936_v38 = vrot.slane %v6389_v55, 2  ;;  %v2937_v63 = vrot.slane %v6401_v62, 3  ;;  %v2940_v55 = vrot.slane %v6411_v4, 2  ;;  %v2941_v62 = vrot.slane %v6408_v3, 3 }
 0x1d5   : > { %v2944_v3 = vrot.slane %v6435_v26, 2  ;;  %v2948_v26 = vrot.slane %v6459_v48, 2 }
 0x1d6   : > { %4658 = vmatmul.mubr.bf16.gmra.mrb[44].mxu1 %v7128_v19  ;;  %v2942_v23 = vor.u32 %v2941_v62, %v2940_v55  ;;  %v6064_v55 = vld [vmem:[%s7806_s1 + $0x108] sm:$0xff]  }
 0x1d7   : > { %5114 = vmatmul.mubr.bf16.vlgmr.msra.gmra.mrb[0].mxu0 %v2915_v20  ;;  %4661 = vmatprep.mubr.msk.bf16.mxu1 %vm6089_vm0, %v6088_v1  ;;  %v1143_v20 = vrot.slane %v6529_v45, 1  ;;  %v2929_v45 = vrot.slane %v6348_v31, 3  ;;  %v6051_v31 = vld [vmem:[%s7806_s1 + $0x238] sm:$0xff]  }
 0x1d8   : > { %5198 = vmatpush3.bf16.msra.mxu0 %v6040_v34  ;;  %5117 = vmatprep.mubr.msk.bf16.mxu0 %vm6089_vm0, %v6088_v1 }
 0x1d9   : > { %5199 = vmatprep.subr.bf16.mxu0 %v6088_v1  ;;  %v7187_v34 = vsel %vm1113_vm4, %v1141_v39, %v1143_v20  ;;  %v2930_v33 = vor.u32 %v2929_v45, %v2928_v40  ;;  %v7219_v39 = vsel %vm1113_vm4, %v1145_v5, %v1147_v8 }
 0x1dc   : > { %5200 = vmatpush3.bf16.msra.mxu0 %v6042_v51  ;;  %v7207_v51 = vsel %vm1113_vm4, %v1143_v20, %v1145_v5  ;;  %v2945_v20 = vrot.slane %v6432_v25, 3  ;;  %v7856_v25 = vld [vmem:[#allocation2_spill] sm:$0xff] }
 0x1dd   : > { %5201 = vmatprep.subr.bf16.mxu0 %v6088_v1  ;;  %v2949_v40 = vrot.slane %v7856_v25, 3  ;;  %v7865_v25 = vld [vmem:[#allocation13_spill] sm:$0xff] }
 0x1de   : > { %4662 = vmatmul.mubr.bf16.gmra.mrb[48].mxu1 %v7147_v49 }
 0x1df   : > { %5118 = vmatmul.mubr.bf16.gmra.mrb[4].mxu0 %v2919_v50  ;;  %4665 = vmatprep.mubr.msk.bf16.mxu1 %vm6089_vm0, %v6088_v1  ;;  %v2931_v50 = vsel %vm2908_vm5, %v2926_v16, %v2930_v33  ;;  %v2946_v16 = vor.u32 %v2945_v20, %v2944_v3  ;;  %v2950_v46 = vor.u32 %v2949_v40, %v2948_v26  ;;  %v7863_v3 = vld [vmem:[#allocation11_spill] sm:$0xff]  ;;  %v2968_v40 = vrot.slane %v7865_v25, 2 }
 0x1e0   : > { %5121 = vmatprep.mubr.msk.bf16.mxu0 %vm6089_vm0, %v6088_v1  ;;  %5202 = vmatpush3.bf16.msra.mxu0 %v6044_v18  ;;  %v2934_v18 = vor.u32 %v2933_v6, %v2932_v9  ;;  %v7859_v9 = vld [vmem:[#allocation7_spill] sm:$0xff]  ;;  %v2964_v20 = vrot.slane %v7863_v3, 2 }
 0x1e1   : > { %5203 = vmatprep.subr.bf16.mxu0 %v6088_v1  ;;  %v2951_v45 = vsel %vm2908_vm5, %v2946_v16, %v2950_v46  ;;  %v2956_v6 = vrot.slane %v7859_v9, 2 }
 0x1e2   : > { %v2935_v41 = vsel %vm2908_vm5, %v2930_v33, %v2934_v18  ;;  %v7858_v33 = vld [vmem:[#allocation4_spill] sm:$0xff] }
 0x1e4   : > { %5204 = vmatpush3.bf16.msra.mxu0 %v6046_v60  ;;  %v2938_v60 = vor.u32 %v2937_v63, %v2936_v38  ;;  %v6063_v38 = vld [vmem:[%s7806_s1 + $0x100] sm:$0xff]  }
 0x1e5   : > { %5205 = vmatprep.subr.bf16.mxu0 %v6088_v1 }
 0x1e6   : > { %4666 = vmatmul.mubr.bf16.gmra.mrb[52].mxu1 %v7167_v59  ;;  %v2939_v58 = vsel %vm2908_vm5, %v2934_v18, %v2938_v60  ;;  %v2943_v4 = vsel %vm2908_vm5, %v2938_v60, %v2942_v23 }
 0x1e7   : > { %5122 = vmatmul.mubr.bf16.gmra.mrb[8].mxu0 %v2923_v11  ;;  %4669 = vmatprep.mubr.msk.bf16.mxu1 %vm6089_vm0, %v6088_v1  ;;  %v7231_v11 = vsel %vm1113_vm4, %v1147_v8, %v1149_v29  ;;  %v7860_v8 = vld [vmem:[#allocation6_spill] sm:$0xff] }
 0x1e8   : > { %5125 = vmatprep.mubr.msk.bf16.mxu0 %vm6089_vm0, %v6088_v1  ;;  %5206 = vmatpush3.bf16.msra.mxu0 %v6048_v57  ;;  %v7246_v57 = vsel %vm1113_vm4, %v1149_v29, %v7240_v0  ;;  %v2957_v18 = vrot.slane %v7860_v8, 3  ;;  %v7861_v29 = vld [vmem:[#allocation9_spill] sm:$0xff] }
 0x1e9   : > { %5207 = vmatprep.subr.bf16.mxu0 %v6088_v1  ;;  %v2960_v60 = vrot.slane %v7861_v29, 2 }
 0x1ec   : > { %5208 = vmatpush3.bf16.msra.mxu0 %v6049_v12  ;;  %v1154_v12 = vsel %vm1113_vm4, %v7240_v0, %v1153_v27 }
 0x1ed   : > { %5209 = vmatprep.subr.bf16.mxu0 %v6088_v1 }
 0x1ee   : > { %4670 = vmatmul.mubr.bf16.gmra.mrb[56].mxu1 %v7187_v34 }
 0x1ef   : > { %5126 = vmatmul.mubr.bf16.gmra.mrb[12].mxu0 %v2927_v35  ;;  %4673 = vmatprep.mubr.msk.bf16.mxu1 %vm6089_vm0, %v6088_v1  ;;  %v2947_v35 = vsel %vm2908_vm5, %v2942_v23, %v2946_v16  ;;  %v6065_v23 = vld [vmem:[%s7806_s1 + $0x110] sm:$0xff]   ;;  %v6066_v16 = vld [vmem:[%s7806_s1 + $0x118] sm:$0xff]  }
 0x1f0   : > { %5129 = vmatprep.mubr.msk.bf16.mxu0 %vm6089_vm0, %v6088_v1  ;;  %5210 = vmatpush3.bf16.msra.mxu0 %v6050_v43  ;;  %v7857_v43 = vld [vmem:[#allocation5_spill] sm:$0xff] }
 0x1f1   : > { %5211 = vmatprep.subr.bf16.mxu0 %v6088_v1  ;;  %v2952_v5 = vrot.slane %v7857_v43, 2 }
 0x1f4   : > { %5212 = vmatpush3.bf16.msra.mxu0 %v6051_v31  ;;  %v2953_v31 = vrot.slane %v7858_v33, 3 }
 0x1f6   : > { %4674 = vmatmul.mubr.bf16.gmra.mrb[60].mxu1 %v7207_v51  ;;  %v2954_v48 = vor.u32 %v2953_v31, %v2952_v5  ;;  %v6069_v31 = vld [vmem:[%s7806_s1 + $0x130] sm:$0xff]  }
 0x1f7   : > { %5130 = vmatmul.mubr.bf16.gmra.mrb[16].mxu0 %v2931_v50  ;;  %4677 = vmatprep.mubr.msk.bf16.mxu1 %vm6089_vm0, %v6088_v1 }
 0x1f8   : > { %5133 = vmatprep.mubr.msk.bf16.mxu0 %vm6089_vm0, %v6088_v1  ;;  %v2955_v50 = vsel %vm2908_vm5, %v2950_v46, %v2954_v48 }
 0x1fe   : > { %4678 = vmatmul.mubr.bf16.gmra.mrb[64].mxu1 %v7219_v39 }
 0x1ff   : > { %5134 = vmatmul.mubr.bf16.gmra.mrb[20].mxu0 %v2935_v41  ;;  %4681 = vmatprep.mubr.msk.bf16.mxu1 %vm6089_vm0, %v6088_v1  ;;  %v2958_v41 = vor.u32 %v2957_v18, %v2956_v6 }
 0x200   : > { %5137 = vmatprep.mubr.msk.bf16.mxu0 %vm6089_vm0, %v6088_v1 }
 0x201   : > { %v2959_v63 = vsel %vm2908_vm5, %v2954_v48, %v2958_v41 }
 0x206   : > { %4682 = vmatmul.mubr.bf16.gmra.mrb[68].mxu1 %v7231_v11 }
 0x207   : > { %5138 = vmatmul.mubr.bf16.gmra.mrb[24].mxu0 %v2939_v58  ;;  %4685 = vmatprep.mubr.msk.bf16.mxu1 %vm6089_vm0, %v6088_v1 }
 0x208   : > { %5141 = vmatprep.mubr.msk.bf16.mxu0 %vm6089_vm0, %v6088_v1 }
 0x20e   : > { %4686 = vmatmul.mubr.bf16.gmra.mrb[72].mxu1 %v7246_v57 }
 0x20f   : > { %5142 = vmatmul.mubr.bf16.gmra.mrb[28].mxu0 %v2943_v4  ;;  %4689 = vmatprep.mubr.msk.bf16.mxu1 %vm6089_vm0, %v6088_v1 }
 0x210   : > { %5145 = vmatprep.mubr.msk.bf16.mxu0 %vm6089_vm0, %v6088_v1 }
 0x216   : > { %4690 = vmatmul.mubr.bf16.gmra.mrb[76].mxu1 %v1154_v12 }
 0x217   : > { %5146 = vmatmul.mubr.bf16.gmra.mrb[32].mxu0 %v2947_v35  ;;  %4693 = vmatprep.mubr.msk.bf16.mxu1 %vm6089_vm0, %v6088_v1  ;;  %v6067_v35 = vld [vmem:[%s7806_s1 + $0x120] sm:$0xff]  }
 0x218   : > { %5149 = vmatprep.mubr.msk.bf16.mxu0 %vm6089_vm0, %v6088_v1 }
 0x21e   : > { %4694 = vmatmul.mubr.bf16.gmra.mrb[80].mxu1 %v1153_v27 }
 0x21f   : > { %5150 = vmatmul.mubr.bf16.gmra.mrb[36].mxu0 %v2951_v45  ;;  %4713 = vmatprep.mubr.msk.bf16.mxu1 %vm6089_vm0, %v6088_v1  ;;  %v6068_v45 = vld [vmem:[%s7806_s1 + $0x128] sm:$0xff]  }
 0x220   : > { %5153 = vmatprep.mubr.msk.bf16.mxu0 %vm6089_vm0, %v6088_v1 }
 0x226   : > { %4714 = vmatmul.mubr.bf16.vlgmr.msra.gmra.mrb[0].mxu1 %v6968_v7  ;;  %v7862_v7 = vld [vmem:[#allocation8_spill] sm:$0xff] }
 0x227   : > { %5154 = vmatmul.mubr.bf16.gmra.mrb[40].mxu0 %v2955_v50  ;;  %4717 = vmatprep.mubr.msk.bf16.mxu1 %vm6089_vm0, %v6088_v1  ;;  %v2961_v58 = vrot.slane %v7862_v7, 3  ;;  %v7867_v50 = vld [vmem:[#allocation15_spill] sm:$0xff] }
 0x228   : > { %5157 = vmatprep.mubr.msk.bf16.mxu0 %vm6089_vm0, %v6088_v1  ;;  %5305 = vmatpush3.bf16.msra.mxu1 %v6063_v38  ;;  %v2972_v6 = vrot.slane %v7867_v50, 2 }
 0x229   : > { %5298 = vmatprep.subr.bf16.mxu1 %v6088_v1  ;;  %v2962_v62 = vor.u32 %v2961_v58, %v2960_v60  ;;  %v7869_v60 = vld [vmem:[#allocation17_spill] sm:$0xff] }
 0x22a   : > { %v2976_v58 = vrot.slane %v7869_v60, 2 }
 0x22b   : > { %v2963_v4 = vsel %vm2908_vm5, %v2958_v41, %v2962_v62  ;;  %v6070_v41 = vld [vmem:[%s7806_s1 + $0x138] sm:$0xff]  }
 0x22c   : > { %5306 = vmatpush3.bf16.msra.mxu1 %v6064_v55  ;;  %v7870_v55 = vld [vmem:[#allocation16_spill] sm:$0xff] }
 0x22d   : > { %5299 = vmatprep.subr.bf16.mxu1 %v6088_v1 }
 0x22e   : > { %4718 = vmatmul.mubr.bf16.gmra.mrb[4].mxu1 %v6986_v52  ;;  %v7864_v52 = vld [vmem:[#allocation10_spill] sm:$0xff] }
 0x22f   : > { %5158 = vmatmul.mubr.bf16.gmra.mrb[44].mxu0 %v2959_v63  ;;  %4721 = vmatprep.mubr.msk.bf16.mxu1 %vm6089_vm0, %v6088_v1  ;;  %v2965_v27 = vrot.slane %v7864_v52, 3 }
 0x230   : > { %5161 = vmatprep.mubr.msk.bf16.mxu0 %vm6089_vm0, %v6088_v1  ;;  %5307 = vmatpush3.bf16.msra.mxu1 %v6065_v23  ;;  %v1876_v23 = vshrl.u32 %v6815_v44, 16 }
 0x231   : > { %5300 = vmatprep.subr.bf16.mxu1 %v6088_v1  ;;  %v2966_v12 = vor.u32 %v2965_v27, %v2964_v20 }
 0x232   : > { %v2980_v27 = vrot.slane %v1876_v23, 2 }
 0x233   : > { %v2967_v26 = vsel %vm2908_vm5, %v2962_v62, %v2966_v12  ;;  %v2977_v62 = vrot.slane %v7870_v55, 3 }
 0x234   : > { %5308 = vmatpush3.bf16.msra.mxu1 %v6066_v16 }
 0x235   : > { %5301 = vmatprep.subr.bf16.mxu1 %v6088_v1 }
 0x236   : > { %4722 = vmatmul.mubr.bf16.gmra.mrb[8].mxu1 %v7007_v37  ;;  %v7866_v37 = vld [vmem:[#allocation12_spill] sm:$0xff] }
 0x237   : > { %5162 = vmatmul.mubr.bf16.gmra.mrb[48].mxu0 %v2963_v4  ;;  %4725 = vmatprep.mubr.msk.bf16.mxu1 %vm6089_vm0, %v6088_v1  ;;  %v2969_v46 = vrot.slane %v7866_v37, 3  ;;  %v1879_v4 = vshll.u32 %v6815_v44, 16 }
 0x238   : > { %5165 = vmatprep.mubr.msk.bf16.mxu0 %vm6089_vm0, %v6088_v1  ;;  %5309 = vmatpush3.bf16.msra.mxu1 %v6067_v35  ;;  %v2988_v35 = vshll.u32 %v7072_v30, 16 }
 0x239   : > { %5302 = vmatprep.subr.bf16.mxu1 %v6088_v1  ;;  %v2970_v5 = vor.u32 %v2969_v46, %v2968_v40 }
 0x23b   : > { %v2971_v48 = vsel %vm2908_vm5, %v2966_v12, %v2970_v5  ;;  %v2985_v12 = vshrl.u32 %v7072_v30, 16 }
 0x23c   : > { %5310 = vmatpush3.bf16.msra.mxu1 %v6068_v45 }
 0x23d   : > { %5303 = vmatprep.subr.bf16.mxu1 %v6088_v1  ;;  %v2987_v45 = vrot.slane %v2985_v12, 2 }
 0x23e   : > { %4726 = vmatmul.mubr.bf16.gmra.mrb[12].mxu1 %v7028_v14  ;;  %v7868_v14 = vld [vmem:[#allocation14_spill] sm:$0xff] }
 0x23f   : > { %5166 = vmatmul.mubr.bf16.gmra.mrb[52].mxu0 %v2967_v26  ;;  %4729 = vmatprep.mubr.msk.bf16.mxu1 %vm6089_vm0, %v6088_v1  ;;  %v2973_v18 = vrot.slane %v7868_v14, 3  ;;  %v255_v26 = vld [vmem:[%s6168_s12 + $0xb4] sm:$0x1] }
 0x240   : > { %5169 = vmatprep.mubr.msk.bf16.mxu0 %vm6089_vm0, %v6088_v1  ;;  %5311 = vmatpush3.bf16.msra.mxu1 %v6069_v31  ;;  %v7368_v40 = vcombine.low %v7086_v42, %v255_v26 }
 0x241   : > { %5304 = vmatprep.subr.bf16.mxu1 %v6088_v1  ;;  %v2974_v38 = vor.u32 %v2973_v18, %v2972_v6 }
 0x242   : > { %v2994_v31 = vshrl.u32 %v7368_v40, 16 }
 0x243   : > { %v2975_v63 = vsel %vm2908_vm5, %v2970_v5, %v2974_v38 }
 0x244   : > { %5312 = vmatpush3.bf16.msra.mxu1 %v6070_v41  ;;  %v2996_v6 = vrot.slane %v2994_v31, 2  ;;  %v6074_v31 = vld [vmem:[%s6168_s12 + $0x70] sm:$0xff]  }
 0x246   : > { %4730 = vmatmul.mubr.bf16.gmra.mrb[16].mxu1 %v7042_v56  ;;  %v2978_v56 = vor.u32 %v2977_v62, %v2976_v58  ;;  %v6071_v58 = vld [vmem:[%s6168_s12 + $0x58] sm:$0xff]  }
 0x247   : > { %5170 = vmatmul.mubr.bf16.gmra.mrb[56].mxu0 %v2971_v48  ;;  %4733 = vmatprep.mubr.msk.bf16.mxu1 %vm6089_vm0, %v6088_v1  ;;  %v2997_v48 = vshll.u32 %v7368_v40, 16  ;;  %v3346_v62 = vrot.slane %v6071_v58, 3 }
 0x248   : > { %5173 = vmatprep.mubr.msk.bf16.mxu0 %vm6089_vm0, %v6088_v1  ;;  %v2979_v20 = vsel %vm2908_vm5, %v2974_v38, %v2978_v56 }
 0x249   : > { %v2999_v18 = vrot.slane %v2997_v48, 3  ;;  %v3352_v48 = vrot.slane %v6074_v31, 3 }
 0x24e   : > { %4734 = vmatmul.mubr.bf16.gmra.mrb[20].mxu1 %v7055_v13  ;;  %v2981_v13 = vrot.slane %v1879_v4, 3 }
 0x24f   : > { %5174 = vmatmul.mubr.bf16.gmra.mrb[60].mxu0 %v2975_v63  ;;  %4737 = vmatprep.mubr.msk.bf16.mxu1 %vm6089_vm0, %v6088_v1 }
 0x250   : > { %5177 = vmatprep.mubr.msk.bf16.mxu0 %vm6089_vm0, %v6088_v1  ;;  %v2982_v16 = vor.u32 %v2981_v13, %v2980_v27  ;;  %v1847_v27 = vrot.slane %v7857_v43, 1  ;;  %v1848_v13 = vrot.slane %v7858_v33, 2  ;;  %v1851_v43 = vrot.slane %v7859_v9, 1 }
 0x251   : > { %v1852_v33 = vrot.slane %v7860_v8, 2  ;;  %v1855_v9 = vrot.slane %v7861_v29, 1  ;;  %v1856_v8 = vrot.slane %v7862_v7, 2  ;;  %v1859_v29 = vrot.slane %v7863_v3, 1 }
 0x252   : > { %v2983_v46 = vsel %vm2908_vm5, %v2978_v56, %v2982_v16  ;;  %v1849_v12 = vor.u32 %v1848_v13, %v1847_v27  ;;  %v1860_v7 = vrot.slane %v7864_v52, 2  ;;  %v1863_v3 = vrot.slane %v7865_v25, 1 }
 0x253   : > { %v1864_v52 = vrot.slane %v7866_v37, 2  ;;  %v1867_v25 = vrot.slane %v7867_v50, 1  ;;  %v1868_v37 = vrot.slane %v7868_v14, 2  ;;  %v1871_v50 = vrot.slane %v7869_v60, 1 }
 0x254   : > { %v1872_v14 = vrot.slane %v7870_v55, 2  ;;  %v1878_v55 = vrot.slane %v1876_v23, 1  ;;  %v1885_v13 = vshrl.u32 %v6838_v22, 16  ;;  %v3364_v23 = vrot.slane %v6815_v44, 3 }
 0x256   : > { %4738 = vmatmul.mubr.bf16.gmra.mrb[24].mxu1 %v7069_v2  ;;  %v2990_v2 = vrot.slane %v2988_v35, 3  ;;  %v6073_v35 = vld [vmem:[%s6168_s12 + $0x68] sm:$0xff]  }
 0x257   : > { %5178 = vmatmul.mubr.bf16.gmra.mrb[64].mxu0 %v2979_v20  ;;  %4741 = vmatprep.mubr.msk.bf16.mxu1 %vm6089_vm0, %v6088_v1  ;;  %v3350_v26 = vrot.slane %v6073_v35, 3 }
 0x258   : > { %5181 = vmatprep.mubr.msk.bf16.mxu0 %vm6089_vm0, %v6088_v1  ;;  %v2991_v5 = vor.u32 %v2990_v2, %v2987_v45 }
 0x25a   : > { %v2992_v42 = vsel %vm2908_vm5, %v2982_v16, %v2991_v5 }
 0x25e   : > { %4742 = vmatmul.mubr.bf16.gmra.mrb[28].mxu1 %v7089_v54  ;;  %v3000_v54 = vor.u32 %v2999_v18, %v2996_v6  ;;  %v3353_v6 = vsel %vm3328_vm6, %v3350_v26, %v3352_v48  ;;  %v1857_v18 = vor.u32 %v1856_v8, %v1855_v9 }
 0x25f   : > { %5182 = vmatmul.mubr.bf16.gmra.mrb[68].mxu0 %v2983_v46  ;;  %4745 = vmatprep.mubr.msk.bf16.mxu1 %vm6089_vm0, %v6088_v1  ;;  %v7871_v46 = vld [vmem:[#allocation3_spill] sm:$0xff] }
 0x260   : > { %5185 = vmatprep.mubr.msk.bf16.mxu0 %vm6089_vm0, %v6088_v1  ;;  %v3001_v41 = vsel %vm2908_vm5, %v2991_v5, %v3000_v54  ;;  %v1850_v45 = vsel %vm1799_vm2, %v7871_v46, %v1849_v12  ;;  %v1853_v5 = vor.u32 %v1852_v33, %v1851_v43  ;;  %v1887_v46 = vrot.slane %v1885_v13, 1 }
 0x266   : > { %4746 = vmatmul.mubr.bf16.gmra.mrb[32].mxu1 %v7105_v61  ;;  %v3329_v61 = vrot.slane %v6748_v36, 3 }
 0x267   : > { %5186 = vmatmul.mubr.bf16.gmra.mrb[72].mxu0 %v2992_v42  ;;  %4749 = vmatprep.mubr.msk.bf16.mxu1 %vm6089_vm0, %v6088_v1  ;;  %v1854_v42 = vsel %vm1799_vm2, %v1849_v12, %v1853_v5 }
 0x268   : > { %5189 = vmatprep.mubr.msk.bf16.mxu0 %vm6089_vm0, %v6088_v1 }
 0x26e   : > { %4750 = vmatmul.mubr.bf16.gmra.mrb[36].mxu1 %v7115_v24  ;;  %v3330_v24 = vrot.slane %v6769_v17, 3  ;;  %v3334_v17 = vrot.slane %v7018_v15, 3  ;;  %v3338_v15 = vrot.slane %v7049_v32, 3  ;;  %v3342_v32 = vrot.slane %v7079_v47, 3 }
 0x26f   : > { %5190 = vmatmul.mubr.bf16.gmra.mrb[76].mxu0 %v3001_v41  ;;  %4753 = vmatprep.mubr.msk.bf16.mxu1 %vm6089_vm0, %v6088_v1 }
 0x270   : > { %5193 = vmatprep.mubr.msk.bf16.mxu0 %vm6089_vm0, %v6088_v1  ;;  %v3331_v38 = vsel %vm3328_vm6, %v3329_v61, %v3330_v24  ;;  %v1858_v61 = vsel %vm1799_vm2, %v1853_v5, %v1857_v18 }
 0x276   : > { %4754 = vmatmul.mubr.bf16.gmra.mrb[40].mxu1 %v7128_v19  ;;  %v3332_v19 = vrot.slane %v6997_v28, 3  ;;  %v3336_v28 = vrot.slane %v7036_v21, 3  ;;  %v3340_v21 = vrot.slane %v7062_v10, 3  ;;  %v1487_v10 = vrot.slane %v6815_v44, 1 }
 0x277   : > { %5194 = vmatmul.mubr.bf16.gmra.mrb[80].mxu0 %v3000_v54  ;;  %4757 = vmatprep.mubr.msk.bf16.mxu1 %vm6089_vm0, %v6088_v1  ;;  %v6075_v54 = vld [vmem:[%s6168_s12 + $0x78] sm:$0xff]   ;;  %v3366_v44 = vrot.slane %v7072_v30, 3  ;;  %v3368_v30 = vrot.slane %v7368_v40, 3 }
 0x278   : > { %5213 = vmatprep.mubr.msk.bf16.mxu0 %vm6089_vm0, %v6088_v1  ;;  %v3333_v63 = vsel %vm3328_vm6, %v3330_v24, %v3332_v19  ;;  %v3335_v36 = vsel %vm3328_vm6, %v3332_v19, %v3334_v17  ;;  %v3354_v41 = vrot.slane %v6075_v54, 3  ;;  %v6076_v19 = vld [vmem:[%s6168_s12 + $0x80] sm:$0xff]  }
 0x279   : > { %v3367_v9 = vsel %vm3328_vm6, %v3364_v23, %v3366_v44 }
 0x27a   : > { %v3355_v24 = vsel %vm3328_vm6, %v3352_v48, %v3354_v41 }
 0x27e   : > { %4758 = vmatmul.mubr.bf16.gmra.mrb[44].mxu1 %v7147_v49  ;;  %v3337_v49 = vsel %vm3328_vm6, %v3334_v17, %v3336_v28 }
 0x27f   : > { %5214 = vmatmul.mubr.bf16.vlgmr.msra.gmra.mrb[0].mxu0 %v3331_v38  ;;  %4761 = vmatprep.mubr.msk.bf16.mxu1 %vm6089_vm0, %v6088_v1  ;;  %v1861_v38 = vor.u32 %v1860_v7, %v1859_v29 }
 0x280   : > { %5217 = vmatprep.mubr.msk.bf16.mxu0 %vm6089_vm0, %v6088_v1 }
 0x281   : > { %v1862_v17 = vsel %vm1799_vm2, %v1857_v18, %v1861_v38 }
 0x286   : > { %4762 = vmatmul.mubr.bf16.gmra.mrb[48].mxu1 %v7167_v59  ;;  %v3339_v59 = vsel %vm3328_vm6, %v3336_v28, %v3338_v15  ;;  %v1865_v28 = vor.u32 %v1864_v52, %v1863_v3 }
 0x287   : > { %5218 = vmatmul.mubr.bf16.gmra.mrb[4].mxu0 %v3333_v63  ;;  %4765 = vmatprep.mubr.msk.bf16.mxu1 %vm6089_vm0, %v6088_v1  ;;  %v3356_v63 = vrot.slane %v6076_v19, 3 }
 0x288   : > { %5221 = vmatprep.mubr.msk.bf16.mxu0 %vm6089_vm0, %v6088_v1 }
 0x28e   : > { %4766 = vmatmul.mubr.bf16.gmra.mrb[52].mxu1 %v7187_v34  ;;  %v3341_v34 = vsel %vm3328_vm6, %v3338_v15, %v3340_v21 }
 0x28f   : > { %5222 = vmatmul.mubr.bf16.gmra.mrb[8].mxu0 %v3335_v36  ;;  %4769 = vmatprep.mubr.msk.bf16.mxu1 %vm6089_vm0, %v6088_v1  ;;  %v3357_v36 = vsel %vm3328_vm6, %v3354_v41, %v3356_v63  ;;  %v3369_v41 = vsel %vm3328_vm6, %v3366_v44, %v3368_v30 }
 0x290   : > { %5225 = vmatprep.mubr.msk.bf16.mxu0 %vm6089_vm0, %v6088_v1 }
 0x296   : > { %4770 = vmatmul.mubr.bf16.gmra.mrb[56].mxu1 %v7207_v51  ;;  %v3343_v51 = vsel %vm3328_vm6, %v3340_v21, %v3342_v32 }
 0x297   : > { %5226 = vmatmul.mubr.bf16.gmra.mrb[12].mxu0 %v3337_v49  ;;  %4773 = vmatprep.mubr.msk.bf16.mxu1 %vm6089_vm0, %v6088_v1  ;;  %v6077_v49 = vld [vmem:[%s6168_s12 + $0x88] sm:$0xff]  }
 0x298   : > { %5229 = vmatprep.mubr.msk.bf16.mxu0 %vm6089_vm0, %v6088_v1  ;;  %v3358_v15 = vrot.slane %v6077_v49, 3 }
 0x29a   : > { %v3359_v21 = vsel %vm3328_vm6, %v3356_v63, %v3358_v15 }
 0x29e   : > { %4774 = vmatmul.mubr.bf16.gmra.mrb[60].mxu1 %v7219_v39  ;;  %v3344_v39 = vrot.slane %v7099_v53, 3 }
 0x29f   : > { %5230 = vmatmul.mubr.bf16.gmra.mrb[16].mxu0 %v3339_v59  ;;  %4777 = vmatprep.mubr.msk.bf16.mxu1 %vm6089_vm0, %v6088_v1  ;;  %v1866_v59 = vsel %vm1799_vm2, %v1861_v38, %v1865_v28 }
 0x2a0   : > { %5233 = vmatprep.mubr.msk.bf16.mxu0 %vm6089_vm0, %v6088_v1  ;;  %v3345_v47 = vsel %vm3328_vm6, %v3342_v32, %v3344_v39  ;;  %v3347_v56 = vsel %vm3328_vm6, %v3344_v39, %v3346_v62  ;;  %v6078_v32 = vld [vmem:[%s6168_s12 + $0x90] sm:$0xff]  }
 0x2a6   : > { %4778 = vmatmul.mubr.bf16.gmra.mrb[64].mxu1 %v7231_v11  ;;  %v1488_v11 = vsel %vm1113_vm4, %v7240_v0, %v1487_v10  ;;  %v6072_v0 = vld [vmem:[%s6168_s12 + $0x60] sm:$0xff]  }
 0x2a7   : > { %5234 = vmatmul.mubr.bf16.gmra.mrb[20].mxu0 %v3341_v34  ;;  %4781 = vmatprep.mubr.msk.bf16.mxu1 %vm6089_vm0, %v6088_v1  ;;  %v3348_v20 = vrot.slane %v6072_v0, 3  ;;  %v1869_v34 = vor.u32 %v1868_v37, %v1867_v25 }
 0x2a8   : > { %5237 = vmatprep.mubr.msk.bf16.mxu0 %vm6089_vm0, %v6088_v1 }
 0x2a9   : > { %v3349_v16 = vsel %vm3328_vm6, %v3346_v62, %v3348_v20  ;;  %v3351_v2 = vsel %vm3328_vm6, %v3348_v20, %v3350_v26 }
 0x2ae   : > { %4782 = vmatmul.mubr.bf16.gmra.mrb[68].mxu1 %v7246_v57  ;;  %v1489_v57 = vrot.slane %v6838_v22, 1 }
 0x2af   : > { %5238 = vmatmul.mubr.bf16.gmra.mrb[24].mxu0 %v3343_v51  ;;  %4785 = vmatprep.mubr.msk.bf16.mxu1 %vm6089_vm0, %v6088_v1  ;;  %v3360_v51 = vrot.slane %v6078_v32, 3 }
 0x2b0   : > { %5241 = vmatprep.mubr.msk.bf16.mxu0 %vm6089_vm0, %v6088_v1  ;;  %v1490_v53 = vsel %vm1113_vm4, %v1487_v10, %v1489_v57  ;;  %v1870_v10 = vsel %vm1799_vm2, %v1865_v28, %v1869_v34 }
 0x2b1   : > { %v3361_v39 = vsel %vm3328_vm6, %v3358_v15, %v3360_v51 }
 0x2b6   : > { %4786 = vmatmul.mubr.bf16.gmra.mrb[72].mxu1 %v1488_v11  ;;  %v1873_v11 = vor.u32 %v1872_v14, %v1871_v50 }
 0x2b7   : > { %5242 = vmatmul.mubr.bf16.gmra.mrb[28].mxu0 %v3345_v47  ;;  %4789 = vmatprep.mubr.msk.bf16.mxu1 %vm6089_vm0, %v6088_v1  ;;  %v6079_v47 = vld [vmem:[%s6168_s12 + $0x98] sm:$0xff]   ;;  %s5943_s12 = smul.u32 328, %s7873_s16 }
 0x2b8   : > { %5245 = vmatprep.mubr.msk.bf16.mxu0 %vm6089_vm0, %v6088_v1  ;;  %v1874_v60 = vsel %vm1799_vm2, %v1869_v34, %v1873_v11 }
 0x2b9   : > { %s7608_s23 = scalar_lea.vmem %s7808_s3, %s5943_s12 }
 0x2be   : > { %4790 = vmatmul.mubr.bf16.gmra.mrb[76].mxu1 %v1490_v53 }
 0x2bf   : > { %5246 = vmatmul.mubr.bf16.gmra.mrb[32].mxu0 %v3347_v56  ;;  %4793 = vmatprep.mubr.msk.bf16.mxu1 %vm6089_vm0, %v6088_v1  ;;  %v1881_v56 = vrot.slane %v1879_v4, 2 }
 0x2c0   : > { %5249 = vmatprep.mubr.msk.bf16.mxu0 %vm6089_vm0, %v6088_v1 }
 0x2c1   : > { %v1882_v27 = vor.u32 %v1881_v56, %v1878_v55 }
 0x2c3   : > { %v1883_v26 = vsel %vm1799_vm2, %v1873_v11, %v1882_v27 }
 0x2c6   : > { %4794 = vmatmul.mubr.bf16.gmra.mrb[80].mxu1 %v1489_v57  ;;  %v3362_v57 = vrot.slane %v6079_v47, 3 }
 0x2c7   : > { %5250 = vmatmul.mubr.bf16.gmra.mrb[36].mxu0 %v3349_v16  ;;  %4857 = vmatprep.mubr.msk.bf16.mxu1 %vm6089_vm0, %v6088_v1  ;;  %v1888_v16 = vshll.u32 %v6838_v22, 16 }
 0x2c8   : > { %5253 = vmatprep.mubr.msk.bf16.mxu0 %vm6089_vm0, %v6088_v1  ;;  %v3363_v20 = vsel %vm3328_vm6, %v3360_v51, %v3362_v57  ;;  %v3365_v33 = vsel %vm3328_vm6, %v3362_v57, %v3364_v23 }
 0x2ce   : > { %4858 = vmatmul.mubr.bf16.vlgmr.msra.gmra.mrb[44].mxu1 %v1850_v45  ;;  %v1890_v45 = vrot.slane %v1888_v16, 2 }
 0x2cf   : > { %5254 = vmatmul.mubr.bf16.gmra.mrb[40].mxu0 %v3351_v2  ;;  %4861 = vmatprep.mubr.msk.bf16.mxu1 %vm6089_vm0, %v6088_v1 }
 0x2d0   : > { %5257 = vmatprep.mubr.msk.bf16.mxu0 %vm6089_vm0, %v6088_v1  ;;  %v1891_v22 = vor.u32 %v1890_v45, %v1887_v46  ;;  %v3682_v46 = vld [vmem:[%s7807_s2 + $0x23] sm:$0xff] }
 0x2d2   : > { %v1892_v48 = vsel %vm1799_vm2, %v1882_v27, %v1891_v22 }
 0x2d6   : > { %4862 = vmatmul.mubr.bf16.gmra.mrb[48].mxu1 %v1854_v42 }
 0x2d7   : > { %5258 = vmatmul.mubr.bf16.gmra.mrb[44].mxu0 %v3353_v6  ;;  %4865 = vmatprep.mubr.msk.bf16.mxu1 %vm6089_vm0, %v6088_v1 }
 0x2d8   : > { %5261 = vmatprep.mubr.msk.bf16.mxu0 %vm6089_vm0, %v6088_v1 }
 0x2de   : > { %4866 = vmatmul.mubr.bf16.gmra.mrb[52].mxu1 %v1858_v61 }
 0x2df   : > { %5262 = vmatmul.mubr.bf16.gmra.mrb[48].mxu0 %v3355_v24  ;;  %4869 = vmatprep.mubr.msk.bf16.mxu1 %vm6089_vm0, %v6088_v1 }
 0x2e0   : > { %5265 = vmatprep.mubr.msk.bf16.mxu0 %vm6089_vm0, %v6088_v1 }
 0x2e6   : > { %4870 = vmatmul.mubr.bf16.gmra.mrb[56].mxu1 %v1862_v17 }
 0x2e7   : > { %5266 = vmatmul.mubr.bf16.gmra.mrb[52].mxu0 %v3357_v36  ;;  %4873 = vmatprep.mubr.msk.bf16.mxu1 %vm6089_vm0, %v6088_v1 }
 0x2e8   : > { %5269 = vmatprep.mubr.msk.bf16.mxu0 %vm6089_vm0, %v6088_v1 }
 0x2ee   : > { %4874 = vmatmul.mubr.bf16.gmra.mrb[60].mxu1 %v1866_v59 }
 0x2ef   : > { %5270 = vmatmul.mubr.bf16.gmra.mrb[56].mxu0 %v3359_v21  ;;  %4877 = vmatprep.mubr.msk.bf16.mxu1 %vm6089_vm0, %v6088_v1 }
 0x2f0   : > { %5273 = vmatprep.mubr.msk.bf16.mxu0 %vm6089_vm0, %v6088_v1 }
 0x2f6   : > { %4878 = vmatmul.mubr.bf16.gmra.mrb[64].mxu1 %v1870_v10 }
 0x2f7   : > { %5274 = vmatmul.mubr.bf16.gmra.mrb[60].mxu0 %v3361_v39  ;;  %4881 = vmatprep.mubr.msk.bf16.mxu1 %vm6089_vm0, %v6088_v1 }
 0x2f8   : > { %5277 = vmatprep.mubr.msk.bf16.mxu0 %vm6089_vm0, %v6088_v1 }
 0x2f9   : > { %v7526_v58 = vpop.f32.mrb[0].mxu1 }
 0x2fa   : > { %v4715_v62 = vpop.f32.mrb[1].mxu1 }
 0x2fb   : > { %v7528_v53 = vpop.f32.mrb[2].mxu1  ;;  %v3680_v62 = vld [vmem:[%s7807_s2 + $0x13] sm:$0xff] }
 0x2fc   : > { %v4716_v0 = vpop.f32.mrb[3].mxu1 }
 0x2fd   : > { %v3681_v0 = vld [vmem:[%s7807_s2 + $0x1b] sm:$0xff] }
 0x2fe   : > { %4882 = vmatmul.mubr.bf16.gmra.mrb[68].mxu1 %v1874_v60 }
 0x2ff   : > { %5278 = vmatmul.mubr.bf16.gmra.mrb[64].mxu0 %v3363_v20  ;;  %4885 = vmatprep.mubr.msk.bf16.mxu1 %vm6089_vm0, %v6088_v1 }
 0x300   : > { %5281 = vmatprep.mubr.msk.bf16.mxu0 %vm6089_vm0, %v6088_v1 }
 0x301   : > { %v7543_v12 = vpop.f32.mrb[4].mxu1 }
 0x302   : > { %v4719_v4 = vpop.f32.mrb[5].mxu1 }
 0x303   : > { %v7545_v35 = vpop.f32.mrb[6].mxu1 }
 0x304   : > { %v4720_v43 = vpop.f32.mrb[7].mxu1 }
 0x306   : > { %4886 = vmatmul.mubr.bf16.gmra.mrb[72].mxu1 %v1883_v26 }
 0x307   : > { %5282 = vmatmul.mubr.bf16.gmra.mrb[68].mxu0 %v3365_v33  ;;  %4889 = vmatprep.mubr.msk.bf16.mxu1 %vm6089_vm0, %v6088_v1 }
 0x308   : > { %5285 = vmatprep.mubr.msk.bf16.mxu0 %vm6089_vm0, %v6088_v1 }
 0x309   : > { %v7554_v2 = vpop.f32.mrb[8].mxu1 }
 0x30a   : > { %v4723_v5 = vpop.f32.mrb[9].mxu1 }
 0x30b   : > { %v7556_v31 = vpop.f32.mrb[10].mxu1 }
 0x30c   : > { %v4724_v42 = vpop.f32.mrb[11].mxu1 }
 0x30e   : > { %4890 = vmatmul.mubr.bf16.gmra.mrb[76].mxu1 %v1892_v48 }
 0x30f   : > { %5286 = vmatmul.mubr.bf16.gmra.mrb[72].mxu0 %v3367_v9  ;;  %4893 = vmatprep.mubr.msk.bf16.mxu1 %vm6089_vm0, %v6088_v1 }
 0x310   : > { %5289 = vmatprep.mubr.msk.bf16.mxu0 %vm6089_vm0, %v6088_v1 }
 0x311   : > { %v7565_v8 = vpop.f32.mrb[12].mxu1 }
 0x312   : > { %v4727_v6 = vpop.f32.mrb[13].mxu1 }
 0x313   : > { %v7567_v18 = vpop.f32.mrb[14].mxu1 }
 0x314   : > { %v4728_v54 = vpop.f32.mrb[15].mxu1 }
 0x316   : > { %4894 = vmatmul.mubr.bf16.gmra.mrb[80].mxu1 %v1891_v22 }
 0x317   : > { %5290 = vmatmul.mubr.bf16.gmra.mrb[76].mxu0 %v3369_v41 }
 0x318   : > { %5293 = vmatprep.mubr.msk.bf16.mxu0 %vm6089_vm0, %v6088_v1 }
 0x319   : > { %v7572_v61 = vpop.f32.mrb[16].mxu1 }
 0x31a   : > { %v4731_v29 = vpop.f32.mrb[17].mxu1 }
 0x31b   : > { %v7574_v7 = vpop.f32.mrb[18].mxu1  ;;  %v3684_v29 = vld [vmem:[%s7807_s2 + $0x33] sm:$0xff] }
 0x31c   : > { %v4732_v24 = vpop.f32.mrb[19].mxu1 }
 0x31f   : > { %5294 = vmatmul.mubr.bf16.gmra.mrb[80].mxu0 %v3368_v30 }
 0x321   : > { %v7576_v40 = vpop.f32.mrb[20].mxu1 }
 0x322   : > { %v4735_v38 = vpop.f32.mrb[21].mxu1 }
 0x323   : > { %v7578_v19 = vpop.f32.mrb[22].mxu1 }
 0x324   : > { %v4736_v63 = vpop.f32.mrb[23].mxu1 }
 0x329   : > { %v7580_v17 = vpop.f32.mrb[24].mxu1 }
 0x32a   : > { %v4739_v3 = vpop.f32.mrb[25].mxu1 }
 0x32b   : > { %v7582_v52 = vpop.f32.mrb[26].mxu1  ;;  %v3685_v3 = vld [vmem:[%s7807_s2 + $0x3b] sm:$0xff] }
 0x32c   : > { %v4740_v36 = vpop.f32.mrb[27].mxu1 }
 0x331   : > { %v7584_v28 = vpop.f32.mrb[28].mxu1 }
 0x332   : > { %v4743_v49 = vpop.f32.mrb[29].mxu1 }
 0x333   : > { %v7586_v15 = vpop.f32.mrb[30].mxu1 }
 0x334   : > { %v4744_v59 = vpop.f32.mrb[31].mxu1 }
 0x339   : > { %v7588_v25 = vpop.f32.mrb[32].mxu1 }
 0x33a   : > { %v4747_v37 = vpop.f32.mrb[33].mxu1 }
 0x33b   : > { %v7590_v21 = vpop.f32.mrb[34].mxu1 }
 0x33c   : > { %v4748_v34 = vpop.f32.mrb[35].mxu1 }
 0x341   : > { %v7592_v32 = vpop.f32.mrb[36].mxu1 }
 0x342   : > { %v4751_v51 = vpop.f32.mrb[37].mxu1 }
 0x343   : > { %v7594_v10 = vpop.f32.mrb[38].mxu1 }
 0x344   : > { %v4752_v50 = vpop.f32.mrb[39].mxu1 }
 0x349   : > { %v7596_v14 = vpop.f32.mrb[40].mxu1 }
 0x34a   : > { %v4755_v39 = vpop.f32.mrb[41].mxu1 }
 0x34b   : > { %v7598_v11 = vpop.f32.mrb[42].mxu1 }
 0x34c   : > { %v4756_v47 = vpop.f32.mrb[43].mxu1 }
 0x352   : > { %v3473_v57 = vpop.f32.mrb[0].mxu0 }
 0x353   : > { %v5313_v60 = vadd.f32 %v3473_v57, %v7526_v58  ;;  %v5215_v55 = vpop.f32.mrb[1].mxu0  ;;  %v3686_v57 = vld [vmem:[%s7807_s2 + $0x43] sm:$0xff] }
 0x354   : > { %v3476_v56 = vpop.f32.mrb[2].mxu0 }
 0x355   : > { %v3721_v20 = vmul.f32 %v5313_v60, %v3680_v62  ;;  %v5314_v27 = vadd.f32 %v3476_v56, %v7528_v53  ;;  %v5216_v13 = vpop.f32.mrb[3].mxu0  ;;  %v3683_v53 = vld [vmem:[%s7807_s2 + $0x2b] sm:$0xff] }
 0x356   : > { %v3687_v56 = vld [vmem:[%s7807_s2 + $0x4b] sm:$0xff] }
 0x357   : > { %3762 = vst [vmem:[%s7608_s23] sm:$0xff] %v3721_v20  ;;  %v3722_v58 = vmul.f32 %v5314_v27, %v3681_v0  ;;  %v3853_v16 = vmul.f32 %v3721_v20, %v3721_v20 }
 0x359   : > { %3763 = vst [vmem:[%s7608_s23 + $0x8] sm:$0xff] %v3722_v58  ;;  %v3804_v23 = vadd.f32 %v3722_v58, %v3721_v20  ;;  %v3854_v4 = vmul.f32 %v3722_v58, %v3722_v58 }
 0x35a   : > { %v3481_v26 = vpop.f32.mrb[4].mxu0 }
 0x35b   : > { %v3894_v45 = vadd.f32 %v3854_v4, %v3853_v16  ;;  %v5315_v43 = vadd.f32 %v3481_v26, %v7543_v12  ;;  %v5219_v33 = vpop.f32.mrb[5].mxu0 }
 0x35c   : > { %v3484_v22 = vpop.f32.mrb[6].mxu0 }
 0x35d   : > { %v3723_v44 = vmul.f32 %v5315_v43, %v3682_v46  ;;  %v5316_v5 = vadd.f32 %v3484_v22, %v7545_v35  ;;  %v5220_v48 = vpop.f32.mrb[7].mxu0  ;;  %v3688_v46 = vld [vmem:[%s7807_s2 + $0x53] sm:$0xff]  ;;  %v3689_v22 = vld [vmem:[%s7807_s2 + $0x5b] sm:$0xff] }
 0x35f   : > { %3764 = vst [vmem:[%s7608_s23 + $0x10] sm:$0xff] %v3723_v44  ;;  %v3805_v42 = vadd.f32 %v3804_v23, %v3723_v44  ;;  %v3855_v9 = vmul.f32 %v3723_v44, %v3723_v44  ;;  %v3724_v30 = vmul.f32 %v5316_v5, %v3683_v53 }
 0x361   : > { %v3895_v6 = vadd.f32 %v3894_v45, %v3855_v9  ;;  %3765 = vst [vmem:[%s7608_s23 + $0x18] sm:$0xff] %v3724_v30  ;;  %v3806_v54 = vadd.f32 %v3805_v42, %v3724_v30  ;;  %v3856_v41 = vmul.f32 %v3724_v30, %v3724_v30 }
 0x362   : > { %v3489_v12 = vpop.f32.mrb[8].mxu0 }
 0x363   : > { %v3896_v24 = vadd.f32 %v3895_v6, %v3856_v41  ;;  %v5317_v38 = vadd.f32 %v3489_v12, %v7554_v2  ;;  %v5223_v35 = vpop.f32.mrb[9].mxu0  ;;  %v3690_v41 = vld [vmem:[%s7807_s2 + $0x63] sm:$0xff] }
 0x364   : > { %v3492_v63 = vpop.f32.mrb[10].mxu0 }
 0x365   : > { %v3725_v36 = vmul.f32 %v5317_v38, %v3684_v29  ;;  %v5318_v49 = vadd.f32 %v3492_v63, %v7556_v31  ;;  %v5224_v59 = vpop.f32.mrb[11].mxu0 }
 0x367   : > { %3766 = vst [vmem:[%s7608_s23 + $0x20] sm:$0xff] %v3725_v36  ;;  %v3807_v37 = vadd.f32 %v3806_v54, %v3725_v36  ;;  %v3857_v34 = vmul.f32 %v3725_v36, %v3725_v36  ;;  %v3726_v51 = vmul.f32 %v5318_v49, %v3685_v3 }
 0x369   : > { %v3897_v50 = vadd.f32 %v3896_v24, %v3857_v34  ;;  %3767 = vst [vmem:[%s7608_s23 + $0x28] sm:$0xff] %v3726_v51  ;;  %v3808_v39 = vadd.f32 %v3807_v37, %v3726_v51  ;;  %v3858_v47 = vmul.f32 %v3726_v51, %v3726_v51  ;;  %v3691_v24 = vld [vmem:[%s7807_s2 + $0x6b] sm:$0xff]  ;;  %v3692_v51 = vld [vmem:[%s7807_s2 + $0x73] sm:$0xff] }
 0x36a   : > { %v3497_v2 = vpop.f32.mrb[12].mxu0 }
 0x36b   : > { %v3898_v62 = vadd.f32 %v3897_v50, %v3858_v47  ;;  %v5319_v60 = vadd.f32 %v3497_v2, %v7565_v8  ;;  %v5227_v31 = vpop.f32.mrb[13].mxu0  ;;  %v3693_v2 = vld [vmem:[%s7807_s2 + $0x7b] sm:$0xff] }
 0x36c   : > { %v3500_v55 = vpop.f32.mrb[14].mxu0 }
 0x36d   : > { %v3727_v0 = vmul.f32 %v5319_v60, %v3686_v57  ;;  %v5320_v20 = vadd.f32 %v3500_v55, %v7567_v18  ;;  %v5228_v27 = vpop.f32.mrb[15].mxu0 }
 0x36f   : > { %3768 = vst [vmem:[%s7608_s23 + $0x30] sm:$0xff] %v3727_v0  ;;  %v3809_v13 = vadd.f32 %v3808_v39, %v3727_v0  ;;  %v3859_v58 = vmul.f32 %v3727_v0, %v3727_v0  ;;  %v3728_v16 = vmul.f32 %v5320_v20, %v3687_v56 }
 0x371   : > { %v3899_v23 = vadd.f32 %v3898_v62, %v3859_v58  ;;  %3769 = vst [vmem:[%s7608_s23 + $0x38] sm:$0xff] %v3728_v16  ;;  %v3810_v4 = vadd.f32 %v3809_v13, %v3728_v16  ;;  %v3860_v8 = vmul.f32 %v3728_v16, %v3728_v16  ;;  %v3694_v13 = vld [vmem:[%s7807_s2 + $0x83] sm:$0xff] }
 0x372   : > { %v3505_v26 = vpop.f32.mrb[16].mxu0 }
 0x373   : > { %v3900_v45 = vadd.f32 %v3899_v23, %v3860_v8  ;;  %v5321_v43 = vadd.f32 %v3505_v26, %v7572_v61  ;;  %v5231_v18 = vpop.f32.mrb[17].mxu0 }
 0x374   : > { %v3508_v33 = vpop.f32.mrb[18].mxu0 }
 0x375   : > { %v3729_v53 = vmul.f32 %v5321_v43, %v3688_v46  ;;  %v5322_v44 = vadd.f32 %v3508_v33, %v7574_v7  ;;  %v5232_v5 = vpop.f32.mrb[19].mxu0 }
 0x377   : > { %3770 = vst [vmem:[%s7608_s23 + $0x40] sm:$0xff] %v3729_v53  ;;  %v3811_v61 = vadd.f32 %v3810_v4, %v3729_v53  ;;  %v3861_v48 = vmul.f32 %v3729_v53, %v3729_v53  ;;  %v3730_v42 = vmul.f32 %v5322_v44, %v3689_v22  ;;  %v3695_v4 = vld [vmem:[%s7807_s2 + $0x8b] sm:$0xff]  ;;  %v3696_v44 = vld [vmem:[%s7807_s2 + $0x93] sm:$0xff] }
 0x379   : > { %v3901_v9 = vadd.f32 %v3900_v45, %v3861_v48  ;;  %3771 = vst [vmem:[%s7608_s23 + $0x48] sm:$0xff] %v3730_v42  ;;  %v3812_v30 = vadd.f32 %v3811_v61, %v3730_v42  ;;  %v3862_v6 = vmul.f32 %v3730_v42, %v3730_v42  ;;  %v3697_v42 = vld [vmem:[%s7807_s2 + $0x9b] sm:$0xff] }
 0x37a   : > { %v3513_v54 = vpop.f32.mrb[20].mxu0 }
 0x37b   : > { %v3902_v12 = vadd.f32 %v3901_v9, %v3862_v6  ;;  %v5323_v7 = vadd.f32 %v3513_v54, %v7576_v40  ;;  %v5235_v29 = vpop.f32.mrb[21].mxu0 }
 0x37c   : > { %v3516_v1 = vpop.f32.mrb[22].mxu0 }
 0x37d   : > { %v3731_v38 = vmul.f32 %v5323_v7, %v3690_v41  ;;  %v5324_v35 = vadd.f32 %v3516_v1, %v7578_v19  ;;  %v5236_v63 = vpop.f32.mrb[23].mxu0 }
 0x37f   : > { %3772 = vst [vmem:[%s7608_s23 + $0x50] sm:$0xff] %v3731_v38  ;;  %v3813_v3 = vadd.f32 %v3812_v30, %v3731_v38  ;;  %v3863_v36 = vmul.f32 %v3731_v38, %v3731_v38  ;;  %v3732_v49 = vmul.f32 %v5324_v35, %v3691_v24  ;;  %v3698_v24 = vld [vmem:[%s7807_s2 + $0xa3] sm:$0xff] }
 0x381   : > { %v3903_v59 = vadd.f32 %v3902_v12, %v3863_v36  ;;  %3773 = vst [vmem:[%s7608_s23 + $0x58] sm:$0xff] %v3732_v49  ;;  %v3814_v37 = vadd.f32 %v3813_v3, %v3732_v49  ;;  %v3864_v34 = vmul.f32 %v3732_v49, %v3732_v49  ;;  %v3699_v3 = vld [vmem:[%s7807_s2 + $0xab] sm:$0xff] }
 0x382   : > { %v3521_v40 = vpop.f32.mrb[24].mxu0 }
 0x383   : > { %v3904_v50 = vadd.f32 %v3903_v59, %v3864_v34  ;;  %v5325_v39 = vadd.f32 %v3521_v40, %v7580_v17  ;;  %v5239_v19 = vpop.f32.mrb[25].mxu0 }
 0x384   : > { %v3524_v47 = vpop.f32.mrb[26].mxu0 }
 0x385   : > { %v3733_v57 = vmul.f32 %v5325_v39, %v3692_v51  ;;  %v5326_v62 = vadd.f32 %v3524_v47, %v7582_v52  ;;  %v5240_v60 = vpop.f32.mrb[27].mxu0  ;;  %v3700_v47 = vld [vmem:[%s7807_s2 + $0xb3] sm:$0xff] }
 0x387   : > { %3774 = vst [vmem:[%s7608_s23 + $0x60] sm:$0xff] %v3733_v57  ;;  %v3815_v31 = vadd.f32 %v3814_v37, %v3733_v57  ;;  %v3865_v55 = vmul.f32 %v3733_v57, %v3733_v57  ;;  %v3734_v56 = vmul.f32 %v5326_v62, %v3693_v2 }
 0x389   : > { %v3905_v0 = vadd.f32 %v3904_v50, %v3865_v55  ;;  %3775 = vst [vmem:[%s7608_s23 + $0x68] sm:$0xff] %v3734_v56  ;;  %v3816_v20 = vadd.f32 %v3815_v31, %v3734_v56  ;;  %v3866_v27 = vmul.f32 %v3734_v56, %v3734_v56  ;;  %v3701_v55 = vld [vmem:[%s7807_s2 + $0xbb] sm:$0xff] }
 0x38a   : > { %v3529_v17 = vpop.f32.mrb[28].mxu0 }
 0x38b   : > { %v3906_v58 = vadd.f32 %v3905_v0, %v3866_v27  ;;  %v5327_v16 = vadd.f32 %v3529_v17, %v7584_v28  ;;  %v5243_v52 = vpop.f32.mrb[29].mxu0 }
 0x38c   : > { %v3532_v23 = vpop.f32.mrb[30].mxu0 }
 0x38d   : > { %v3735_v8 = vmul.f32 %v5327_v16, %v3694_v13  ;;  %v5328_v26 = vadd.f32 %v3532_v23, %v7586_v15  ;;  %v5244_v46 = vpop.f32.mrb[31].mxu0 }
 0x38f   : > { %3776 = vst [vmem:[%s7608_s23 + $0x70] sm:$0xff] %v3735_v8  ;;  %v3817_v45 = vadd.f32 %v3816_v20, %v3735_v8  ;;  %v3867_v43 = vmul.f32 %v3735_v8, %v3735_v8  ;;  %v3736_v18 = vmul.f32 %v5328_v26, %v3695_v4  ;;  %v3702_v8 = vld [vmem:[%s7807_s2 + $0xc3] sm:$0xff] }
 0x391   : > { %v3907_v33 = vadd.f32 %v3906_v58, %v3867_v43  ;;  %3777 = vst [vmem:[%s7608_s23 + $0x78] sm:$0xff] %v3736_v18  ;;  %v3818_v22 = vadd.f32 %v3817_v45, %v3736_v18  ;;  %v3868_v53 = vmul.f32 %v3736_v18, %v3736_v18 }
 0x392   : > { %v3537_v28 = vpop.f32.mrb[32].mxu0 }
 0x393   : > { %v3908_v5 = vadd.f32 %v3907_v33, %v3868_v53  ;;  %v5329_v61 = vadd.f32 %v3537_v28, %v7588_v25  ;;  %v5247_v15 = vpop.f32.mrb[33].mxu0  ;;  %v3703_v33 = vld [vmem:[%s7807_s2 + $0xcb] sm:$0xff] }
 0x394   : > { %v3540_v48 = vpop.f32.mrb[34].mxu0 }
 0x395   : > { %v3737_v9 = vmul.f32 %v5329_v61, %v3696_v44  ;;  %v5330_v30 = vadd.f32 %v3540_v48, %v7590_v21  ;;  %v5248_v6 = vpop.f32.mrb[35].mxu0 }
 0x397   : > { %3778 = vst [vmem:[%s7608_s23 + $0x80] sm:$0xff] %v3737_v9  ;;  %v3819_v54 = vadd.f32 %v3818_v22, %v3737_v9  ;;  %v3869_v41 = vmul.f32 %v3737_v9, %v3737_v9  ;;  %v3738_v12 = vmul.f32 %v5330_v30, %v3697_v42 }
 0x399   : > { %v3909_v7 = vadd.f32 %v3908_v5, %v3869_v41  ;;  %3779 = vst [vmem:[%s7608_s23 + $0x88] sm:$0xff] %v3738_v12  ;;  %v3820_v29 = vadd.f32 %v3819_v54, %v3738_v12  ;;  %v3870_v1 = vmul.f32 %v3738_v12, %v3738_v12  ;;  %v3704_v54 = vld [vmem:[%s7807_s2 + $0xd3] sm:$0xff] }
 0x39a   : > { %v3545_v25 = vpop.f32.mrb[36].mxu0 }
 0x39b   : > { %v3910_v38 = vadd.f32 %v3909_v7, %v3870_v1  ;;  %v5331_v35 = vadd.f32 %v3545_v25, %v7592_v32  ;;  %v5251_v21 = vpop.f32.mrb[37].mxu0 }
 0x39c   : > { %v3548_v63 = vpop.f32.mrb[38].mxu0 }
 0x39d   : > { %v3739_v36 = vmul.f32 %v5331_v35, %v3698_v24  ;;  %v5332_v49 = vadd.f32 %v3548_v63, %v7594_v10  ;;  %v5252_v59 = vpop.f32.mrb[39].mxu0  ;;  %v3705_v24 = vld [vmem:[%s7807_s2 + $0xdb] sm:$0xff] }
 0x39f   : > { %3780 = vst [vmem:[%s7608_s23 + $0x90] sm:$0xff] %v3739_v36  ;;  %v3821_v37 = vadd.f32 %v3820_v29, %v3739_v36  ;;  %v3871_v34 = vmul.f32 %v3739_v36, %v3739_v36  ;;  %v3740_v40 = vmul.f32 %v5332_v49, %v3699_v3 }
 0x3a1   : > { %v3911_v51 = vadd.f32 %v3910_v38, %v3871_v34  ;;  %3781 = vst [vmem:[%s7608_s23 + $0x98] sm:$0xff] %v3740_v40  ;;  %v3822_v50 = vadd.f32 %v3821_v37, %v3740_v40  ;;  %v3872_v39 = vmul.f32 %v3740_v40, %v3740_v40  ;;  %v2084_v32 = vpop.f32.mrb[44].mxu1 }
 0x3a2   : > { %v3553_v19 = vpop.f32.mrb[40].mxu0  ;;  %v4859_v2 = vpop.f32.mrb[45].mxu1 }
 0x3a3   : > { %v3912_v57 = vadd.f32 %v3911_v51, %v3872_v39  ;;  %v5333_v10 = vadd.f32 %v3553_v19, %v7596_v14  ;;  %v5255_v62 = vpop.f32.mrb[41].mxu0  ;;  %v2087_v60 = vpop.f32.mrb[46].mxu1 }
 0x3a4   : > { %v3556_v31 = vpop.f32.mrb[42].mxu0  ;;  %v4860_v56 = vpop.f32.mrb[47].mxu1 }
 0x3a5   : > { %v3741_v0 = vmul.f32 %v5333_v10, %v3700_v47  ;;  %v5334_v20 = vadd.f32 %v3556_v31, %v7598_v11  ;;  %v5256_v27 = vpop.f32.mrb[43].mxu0  ;;  %v3707_v10 = vld [vmem:[%s7807_s2 + $0xeb] sm:$0xff] }
 0x3a7   : > { %3782 = vst [vmem:[%s7608_s23 + $0xa0] sm:$0xff] %v3741_v0  ;;  %v3823_v17 = vadd.f32 %v3822_v50, %v3741_v0  ;;  %v3873_v13 = vmul.f32 %v3741_v0, %v3741_v0  ;;  %v3742_v58 = vmul.f32 %v5334_v20, %v3701_v55  ;;  %v3706_v50 = vld [vmem:[%s7807_s2 + $0xe3] sm:$0xff] }
 0x3a9   : > { %v3913_v16 = vadd.f32 %v3912_v57, %v3873_v13  ;;  %3783 = vst [vmem:[%s7608_s23 + $0xa8] sm:$0xff] %v3742_v58  ;;  %v3824_v52 = vadd.f32 %v3823_v17, %v3742_v58  ;;  %v3874_v14 = vmul.f32 %v3742_v58, %v3742_v58  ;;  %v2092_v23 = vpop.f32.mrb[48].mxu1 }
 0x3aa   : > { %v3561_v4 = vpop.f32.mrb[44].mxu0  ;;  %v4863_v26 = vpop.f32.mrb[49].mxu1 }
 0x3ab   : > { %v3914_v46 = vadd.f32 %v3913_v16, %v3874_v14  ;;  %v5335_v11 = vadd.f32 %v3561_v4, %v2084_v32  ;;  %v5259_v45 = vpop.f32.mrb[45].mxu0  ;;  %v2095_v43 = vpop.f32.mrb[50].mxu1 }
 0x3ac   : > { %v3564_v18 = vpop.f32.mrb[46].mxu0  ;;  %v4864_v22 = vpop.f32.mrb[51].mxu1 }
 0x3ad   : > { %v3743_v53 = vmul.f32 %v5335_v11, %v3702_v8  ;;  %v5336_v28 = vadd.f32 %v3564_v18, %v2087_v60  ;;  %v5260_v44 = vpop.f32.mrb[47].mxu0  ;;  %v3709_v11 = vld [vmem:[%s7807_s2 + $0xfb] sm:$0xff] }
 0x3af   : > { %3784 = vst [vmem:[%s7608_s23 + $0xb0] sm:$0xff] %v3743_v53  ;;  %v3825_v5 = vadd.f32 %v3824_v52, %v3743_v53  ;;  %v3875_v61 = vmul.f32 %v3743_v53, %v3743_v53  ;;  %v3744_v15 = vmul.f32 %v5336_v28, %v3703_v33  ;;  %v3708_v52 = vld [vmem:[%s7807_s2 + $0xf3] sm:$0xff] }
 0x3b1   : > { %v3915_v48 = vadd.f32 %v3914_v46, %v3875_v61  ;;  %3785 = vst [vmem:[%s7608_s23 + $0xb8] sm:$0xff] %v3744_v15  ;;  %v3826_v42 = vadd.f32 %v3825_v5, %v3744_v15  ;;  %v3876_v9 = vmul.f32 %v3744_v15, %v3744_v15  ;;  %v2100_v30 = vpop.f32.mrb[52].mxu1 }
 0x3b2   : > { %v3569_v6 = vpop.f32.mrb[48].mxu0  ;;  %v4867_v41 = vpop.f32.mrb[53].mxu1 }
 0x3b3   : > { %v3916_v12 = vadd.f32 %v3915_v48, %v3876_v9  ;;  %v5337_v7 = vadd.f32 %v3569_v6, %v2092_v23  ;;  %v5263_v29 = vpop.f32.mrb[49].mxu0  ;;  %v2103_v1 = vpop.f32.mrb[54].mxu1 }
 0x3b4   : > { %v3572_v25 = vpop.f32.mrb[50].mxu0  ;;  %v4868_v38 = vpop.f32.mrb[55].mxu1 }
 0x3b5   : > { %v3745_v35 = vmul.f32 %v5337_v7, %v3704_v54  ;;  %v5338_v21 = vadd.f32 %v3572_v25, %v2095_v43  ;;  %v5264_v63 = vpop.f32.mrb[51].mxu0  ;;  %v3711_v7 = vld [vmem:[%s7807_s2 + $0x10b] sm:$0xff] }
 0x3b7   : > { %3786 = vst [vmem:[%s7608_s23 + $0xc0] sm:$0xff] %v3745_v35  ;;  %v3827_v3 = vadd.f32 %v3826_v42, %v3745_v35  ;;  %v3877_v36 = vmul.f32 %v3745_v35, %v3745_v35  ;;  %v3746_v49 = vmul.f32 %v5338_v21, %v3705_v24  ;;  %v3710_v42 = vld [vmem:[%s7807_s2 + $0x103] sm:$0xff] }
 0x3b9   : > { %v3917_v59 = vadd.f32 %v3916_v12, %v3877_v36  ;;  %3787 = vst [vmem:[%s7608_s23 + $0xc8] sm:$0xff] %v3746_v49  ;;  %v3828_v37 = vadd.f32 %v3827_v3, %v3746_v49  ;;  %v3878_v34 = vmul.f32 %v3746_v49, %v3746_v49  ;;  %v2108_v40 = vpop.f32.mrb[56].mxu1 }
 0x3ba   : > { %v3577_v51 = vpop.f32.mrb[52].mxu0  ;;  %v4871_v39 = vpop.f32.mrb[57].mxu1 }
 0x3bb   : > { %v3918_v32 = vadd.f32 %v3917_v59, %v3878_v34  ;;  %v5339_v19 = vadd.f32 %v3577_v51, %v2100_v30  ;;  %v5267_v47 = vpop.f32.mrb[53].mxu0  ;;  %v2111_v2 = vpop.f32.mrb[58].mxu1 }
 0x3bc   : > { %v3580_v57 = vpop.f32.mrb[54].mxu0  ;;  %v4872_v62 = vpop.f32.mrb[59].mxu1 }
 0x3bd   : > { %v3747_v60 = vmul.f32 %v5339_v19, %v3706_v50  ;;  %v5340_v31 = vadd.f32 %v3580_v57, %v2103_v1  ;;  %v5268_v55 = vpop.f32.mrb[55].mxu0  ;;  %v3713_v19 = vld [vmem:[%s7807_s2 + $0x11b] sm:$0xff] }
 0x3bf   : > { %3788 = vst [vmem:[%s7608_s23 + $0xd0] sm:$0xff] %v3747_v60  ;;  %v3829_v56 = vadd.f32 %v3828_v37, %v3747_v60  ;;  %v3879_v0 = vmul.f32 %v3747_v60, %v3747_v60  ;;  %v3748_v20 = vmul.f32 %v5340_v31, %v3707_v10  ;;  %v3712_v37 = vld [vmem:[%s7807_s2 + $0x113] sm:$0xff] }
 0x3c1   : > { %v3919_v27 = vadd.f32 %v3918_v32, %v3879_v0  ;;  %3789 = vst [vmem:[%s7608_s23 + $0xd8] sm:$0xff] %v3748_v20  ;;  %v3830_v17 = vadd.f32 %v3829_v56, %v3748_v20  ;;  %v3880_v13 = vmul.f32 %v3748_v20, %v3748_v20  ;;  %v2116_v58 = vpop.f32.mrb[60].mxu1 }
 0x3c2   : > { %v3585_v16 = vpop.f32.mrb[56].mxu0  ;;  %v4875_v14 = vpop.f32.mrb[61].mxu1 }
 0x3c3   : > { %v3920_v23 = vadd.f32 %v3919_v27, %v3880_v13  ;;  %v5341_v4 = vadd.f32 %v3585_v16, %v2108_v40  ;;  %v5271_v8 = vpop.f32.mrb[57].mxu0  ;;  %v2119_v26 = vpop.f32.mrb[62].mxu1 }
 0x3c4   : > { %v3588_v46 = vpop.f32.mrb[58].mxu0  ;;  %v4876_v45 = vpop.f32.mrb[63].mxu1 }
 0x3c5   : > { %v3749_v43 = vmul.f32 %v5341_v4, %v3708_v52  ;;  %v5342_v18 = vadd.f32 %v3588_v46, %v2111_v2  ;;  %v5272_v33 = vpop.f32.mrb[59].mxu0  ;;  %v3715_v4 = vld [vmem:[%s7807_s2 + $0x12b] sm:$0xff] }
 0x3c7   : > { %3790 = vst [vmem:[%s7608_s23 + $0xe0] sm:$0xff] %v3749_v43  ;;  %v3831_v22 = vadd.f32 %v3830_v17, %v3749_v43  ;;  %v3881_v53 = vmul.f32 %v3749_v43, %v3749_v43  ;;  %v3750_v28 = vmul.f32 %v5342_v18, %v3709_v11  ;;  %v3714_v17 = vld [vmem:[%s7807_s2 + $0x123] sm:$0xff] }
 0x3c9   : > { %v3921_v44 = vadd.f32 %v3920_v23, %v3881_v53  ;;  %3791 = vst [vmem:[%s7608_s23 + $0xe8] sm:$0xff] %v3750_v28  ;;  %v3832_v5 = vadd.f32 %v3831_v22, %v3750_v28  ;;  %v3882_v61 = vmul.f32 %v3750_v28, %v3750_v28  ;;  %v2124_v15 = vpop.f32.mrb[64].mxu1 }
 0x3ca   : > { %v3593_v48 = vpop.f32.mrb[60].mxu0  ;;  %v4879_v9 = vpop.f32.mrb[65].mxu1 }
 0x3cb   : > { %v3922_v30 = vadd.f32 %v3921_v44, %v3882_v61  ;;  %v5343_v6 = vadd.f32 %v3593_v48, %v2116_v58  ;;  %v5275_v54 = vpop.f32.mrb[61].mxu0  ;;  %v2127_v41 = vpop.f32.mrb[66].mxu1 }
 0x3cc   : > { %v3596_v12 = vpop.f32.mrb[62].mxu0  ;;  %v4880_v29 = vpop.f32.mrb[67].mxu1 }
 0x3cd   : > { %v3751_v1 = vmul.f32 %v5343_v6, %v3710_v42  ;;  %v5344_v25 = vadd.f32 %v3596_v12, %v2119_v26  ;;  %v5276_v24 = vpop.f32.mrb[63].mxu0  ;;  %v3717_v6 = vld [vmem:[%s7807_s2 + $0x13b] sm:$0xff] }
 0x3cf   : > { %3792 = vst [vmem:[%s7608_s23 + $0xf0] sm:$0xff] %v3751_v1  ;;  %v3833_v38 = vadd.f32 %v3832_v5, %v3751_v1  ;;  %v3883_v35 = vmul.f32 %v3751_v1, %v3751_v1  ;;  %v3752_v21 = vmul.f32 %v5344_v25, %v3711_v7  ;;  %v3716_v5 = vld [vmem:[%s7807_s2 + $0x133] sm:$0xff] }
 0x3d1   : > { %v3923_v63 = vadd.f32 %v3922_v30, %v3883_v35  ;;  %3793 = vst [vmem:[%s7608_s23 + $0xf8] sm:$0xff] %v3752_v21  ;;  %v3834_v3 = vadd.f32 %v3833_v38, %v3752_v21  ;;  %v3884_v36 = vmul.f32 %v3752_v21, %v3752_v21  ;;  %v2132_v49 = vpop.f32.mrb[68].mxu1 }
 0x3d2   : > { %v3601_v59 = vpop.f32.mrb[64].mxu0  ;;  %v4883_v34 = vpop.f32.mrb[69].mxu1 }
 0x3d3   : > { %v3924_v40 = vadd.f32 %v3923_v63, %v3884_v36  ;;  %v5345_v51 = vadd.f32 %v3601_v59, %v2124_v15  ;;  %v5279_v50 = vpop.f32.mrb[65].mxu0  ;;  %v2135_v39 = vpop.f32.mrb[70].mxu1 }
 0x3d4   : > { %v3604_v32 = vpop.f32.mrb[66].mxu0  ;;  %v4884_v47 = vpop.f32.mrb[71].mxu1 }
 0x3d5   : > { %v3753_v2 = vmul.f32 %v5345_v51, %v3712_v37  ;;  %v5346_v57 = vadd.f32 %v3604_v32, %v2127_v41  ;;  %v5280_v10 = vpop.f32.mrb[67].mxu0  ;;  %v3719_v51 = vld [vmem:[%s7807_s2 + $0x14b] sm:$0xff] }
 0x3d7   : > { %3794 = vst [vmem:[%s7608_s23 + $0x100] sm:$0xff] %v3753_v2  ;;  %v3835_v62 = vadd.f32 %v3834_v3, %v3753_v2  ;;  %v3885_v60 = vmul.f32 %v3753_v2, %v3753_v2  ;;  %v3754_v31 = vmul.f32 %v5346_v57, %v3713_v19  ;;  %v3718_v3 = vld [vmem:[%s7807_s2 + $0x143] sm:$0xff] }
 0x3d9   : > { %v3925_v55 = vadd.f32 %v3924_v40, %v3885_v60  ;;  %3795 = vst [vmem:[%s7608_s23 + $0x108] sm:$0xff] %v3754_v31  ;;  %v3836_v56 = vadd.f32 %v3835_v62, %v3754_v31  ;;  %v3886_v0 = vmul.f32 %v3754_v31, %v3754_v31  ;;  %v2140_v20 = vpop.f32.mrb[72].mxu1 }
 0x3da   : > { %v3609_v27 = vpop.f32.mrb[68].mxu0  ;;  %v4887_v13 = vpop.f32.mrb[73].mxu1 }
 0x3db   : > { %v3926_v58 = vadd.f32 %v3925_v55, %v3886_v0  ;;  %v5347_v16 = vadd.f32 %v3609_v27, %v2132_v49  ;;  %v5283_v52 = vpop.f32.mrb[69].mxu0  ;;  %v2143_v14 = vpop.f32.mrb[74].mxu1  ;;  %v3720_v55 = vld [vmem:[%s7807_s2 + $0x153] sm:$0xf] }
 0x3dc   : > { %v3612_v23 = vpop.f32.mrb[70].mxu0  ;;  %v4888_v8 = vpop.f32.mrb[75].mxu1 }
 0x3dd   : > { %v3755_v26 = vmul.f32 %v5347_v16, %v3714_v17  ;;  %v5348_v46 = vadd.f32 %v3612_v23, %v2135_v39  ;;  %v5284_v11 = vpop.f32.mrb[71].mxu0 }
 0x3df   : > { %3796 = vst [vmem:[%s7608_s23 + $0x110] sm:$0xff] %v3755_v26  ;;  %v3837_v45 = vadd.f32 %v3836_v56, %v3755_v26  ;;  %v3887_v43 = vmul.f32 %v3755_v26, %v3755_v26  ;;  %v3756_v18 = vmul.f32 %v5348_v46, %v3715_v4 }
 0x3e1   : > { %v3927_v33 = vadd.f32 %v3926_v58, %v3887_v43  ;;  %3797 = vst [vmem:[%s7608_s23 + $0x118] sm:$0xff] %v3756_v18  ;;  %v3838_v22 = vadd.f32 %v3837_v45, %v3756_v18  ;;  %v3888_v53 = vmul.f32 %v3756_v18, %v3756_v18  ;;  %v2148_v28 = vpop.f32.mrb[76].mxu1 }
 0x3e2   : > { %v3617_v44 = vpop.f32.mrb[72].mxu0  ;;  %v4891_v61 = vpop.f32.mrb[77].mxu1 }
 0x3e3   : > { %v3928_v15 = vadd.f32 %v3927_v33, %v3888_v53  ;;  %v5349_v48 = vadd.f32 %v3617_v44, %v2140_v20  ;;  %v5287_v42 = vpop.f32.mrb[73].mxu0  ;;  %v2151_v9 = vpop.f32.mrb[78].mxu1 }
 0x3e4   : > { %v3620_v30 = vpop.f32.mrb[74].mxu0  ;;  %v4892_v54 = vpop.f32.mrb[79].mxu1 }
 0x3e5   : > { %v3757_v41 = vmul.f32 %v5349_v48, %v3716_v5  ;;  %v5350_v12 = vadd.f32 %v3620_v30, %v2143_v14  ;;  %v5288_v7 = vpop.f32.mrb[75].mxu0 }
 0x3e7   : > { %3798 = vst [vmem:[%s7608_s23 + $0x120] sm:$0xff] %v3757_v41  ;;  %v3839_v29 = vadd.f32 %v3838_v22, %v3757_v41  ;;  %v3889_v1 = vmul.f32 %v3757_v41, %v3757_v41  ;;  %v3758_v25 = vmul.f32 %v5350_v12, %v3717_v6 }
 0x3e9   : > { %v3929_v24 = vadd.f32 %v3928_v15, %v3889_v1  ;;  %3799 = vst [vmem:[%s7608_s23 + $0x128] sm:$0xff] %v3758_v25  ;;  %v3840_v38 = vadd.f32 %v3839_v29, %v3758_v25  ;;  %v3890_v35 = vmul.f32 %v3758_v25, %v3758_v25  ;;  %v2156_v21 = vpop.f32.mrb[80].mxu1 }
 0x3ea   : > { %v3625_v63 = vpop.f32.mrb[76].mxu0  ;;  %v4895_v36 = vpop.f32.mrb[81].mxu1 }
 0x3eb   : > { %v3930_v49 = vadd.f32 %v3929_v24, %v3890_v35  ;;  %v5351_v59 = vadd.f32 %v3625_v63, %v2148_v28  ;;  %v5291_v37 = vpop.f32.mrb[77].mxu0  ;;  %v2159_v34 = vpop.f32.mrb[82].mxu1 }
 0x3ec   : > { %v3628_v40 = vpop.f32.mrb[78].mxu0  ;;  %v4896_v50 = vpop.f32.mrb[83].mxu1 }
 0x3ed   : > { %v3759_v39 = vmul.f32 %v5351_v59, %v3718_v3  ;;  %v5352_v32 = vadd.f32 %v3628_v40, %v2151_v9  ;;  %v5292_v19 = vpop.f32.mrb[79].mxu0 }
 0x3ef   : > { %3800 = vst [vmem:[%s7608_s23 + $0x130] sm:$0xff] %v3759_v39  ;;  %v3841_v47 = vadd.f32 %v3840_v38, %v3759_v39  ;;  %v3891_v2 = vmul.f32 %v3759_v39, %v3759_v39  ;;  %v3760_v57 = vmul.f32 %v5352_v32, %v3719_v51 }
 0x3f1   : > { %v3931_v10 = vadd.f32 %v3930_v49, %v3891_v2  ;;  %3801 = vst [vmem:[%s7608_s23 + $0x138] sm:$0xff] %v3760_v57  ;;  %v3842_v62 = vadd.f32 %v3841_v47, %v3760_v57  ;;  %v3892_v60 = vmul.f32 %v3760_v57, %v3760_v57 }
 0x3f2   : > { %v3633_v31 = vpop.f32.mrb[80].mxu0 }
 0x3f3   : > { %v3932_v56 = vadd.f32 %v3931_v10, %v3892_v60  ;;  %v5353_v0 = vadd.f32 %v3633_v31, %v2156_v21  ;;  %v5295_v20 = vpop.f32.mrb[81].mxu0 }
 0x3f4   : > { %v3636_v27 = vpop.f32.mrb[82].mxu0 }
 0x3f5   : > { %v3761_v17 = vmul.f32 %v5353_v0, %v3720_v55  ;;  %v5296_v13 = vpop.f32.mrb[83].mxu0 }
 0x3f7   : > { %3802 = vst [vmem:[%s7608_s23 + $0x140] sm:$0xf] %v3761_v17  ;;  %v3844_v58 = vsel %vm3843_vm7, %v3761_v17, 0.0  ;;  %v3893_v16 = vmul.f32 %v3761_v17, %v3761_v17 }
 0x3f8   : > { %v3845_v52 = vadd.f32 %v3844_v58, %v3842_v62 }
 0x3f9   : > { %v3933_v14 = vsel %vm3843_vm7, %v3893_v16, 0.0 }
 0x3fa   : > { %v3846_v23 = vrot.slane %v3845_v52, 4  ;;  %v3934_v4 = vadd.f32 %v3933_v14, %v3932_v56 }
 0x3fc   : > { %v3847_v8 = vadd.f32 %v3846_v23, %v3845_v52  ;;  %v3935_v26 = vrot.slane %v3934_v4, 4 }
 0x3fe   : > { %v3848_v46 = vrot.slane %v3847_v8, 2  ;;  %v3936_v11 = vadd.f32 %v3935_v26, %v3934_v4 }
 0x400   : > { %v3849_v45 = vadd.f32 %v3848_v46, %v3847_v8  ;;  %v3937_v43 = vrot.slane %v3936_v11, 2 }
 0x402   : > { %v3850_v18 = vrot.slane %v3849_v45, 1  ;;  %v3938_v33 = vadd.f32 %v3937_v43, %v3936_v11 }
 0x404   : > { %v3851_v22 = vadd.f32 %v3850_v18, %v3849_v45  ;;  %v3939_v53 = vrot.slane %v3938_v33, 1 }
 0x406   : > { %3852 = vst [vmem:[%s7657_s21] sm:$0x1] %v3851_v22  ;;  %v3940_v28 = vadd.f32 %v3939_v53, %v3938_v33 }
 0x408   : > { %3941 = vst [vmem:[%s7657_s21 + $0x1] sm:$0x1] %v3940_v28 }
 0x409 PF: > { %s15_s15 = sadd.s32 1, %s6086_s15  }
 0x40a   : > { %p12_p4 = scmp.ge.s32.totalorder %s15_s15, 4  }
 0x40c   :  { %14 = sbr.rel (!%p12_p4) target bundleno = 1 (0x1), region = 74 }

// kernel: _residual_block_impl.7
= control target key start
LH: loop header
LB: loop body
LE: loop exit
PB: predicated region body
PF: predicated region fallthrough
CT: control target
= control target key end

     0   :  { %s1169_s18 = smov 0   ;;  %s1563_s0 = inlined_call_operand.vmem [shape: f32[512,128], index: 0, kind: input, shape index: {}]   ;;  %s1564_s1 = inlined_call_operand.vmem [shape: f32[8,128], index: 1, kind: input, shape index: {}]   ;;  %s1565_s2 = inlined_call_operand.vmem [shape: bf16[512,128], index: 2, kind: input, shape index: {}]   ;;  %s1566_s3 = inlined_call_operand.vmem [shape: bf16[128,128], index: 3, kind: input, shape index: {}]   ;;  %s1567_s4 = inlined_call_operand.vmem [shape: f32[8,128], index: 4, kind: input, shape index: {}]   ;;  %s1568_s5 = inlined_call_operand.vmem [shape: f32[512,128], index: 5, kind: output, shape index: {}]  }
   0x1 LB: > { %s970_s19 = sadd.s32 4294967295, %s1137_s18   ;;  %p974_p0 = scmp.ge.s32.totalorder %s1137_s18, 1  ;;  %s1137_s18 = sphi %s1169_s18, %s15_s18  }
   0x2   : > { %p199_p1 = scmp.lt.s32.totalorder %s1137_s18, 3 }
   0x4   : > { %p200_p2 = pnand %p974_p0, %p199_p1 }
   0x5   : > { %v1103_v0 = vld [vmem:[%s1566_s3] sm:$0xff] (!%p200_p2)   ;;  %s975_s22 = sshll.u32 (!%p200_p2), %s970_s19, 5  ;;  %v1104_v1 = vld [vmem:[%s1566_s3 + $0x8] sm:$0xff] (!%p200_p2)   ;;  %v1105_v2 = vld [vmem:[%s1566_s3 + $0x10] sm:$0xff] (!%p200_p2)   ;;  %v662_v38 = vlaneseq (!%p200_p2) }
   0x6   : > { %203 = sbr.rel (%p200_p2) target bundleno = 288 (0x120), region = 40  ;;  %p233_p3 = scmp.lt.s32.totalorder (!%p200_p2), %s975_s22, 63  ;;  %1031 = vmatprep.subr.bf16.mxu0 (!%p200_p2), %v1103_v0  ;;  %1079 = vmatprep.subr.bf16.mxu1 (!%p200_p2), %v1103_v0  ;;  %v1106_v3 = vld [vmem:[%s1566_s3 + $0x18] sm:$0xff] (!%p200_p2)   ;;  %v1107_v6 = vld [vmem:[%s1566_s3 + $0x20] sm:$0xff] (!%p200_p2)   ;;  %v1108_v7 = vld [vmem:[%s1566_s3 + $0x28] sm:$0xff] (!%p200_p2)  }
   0x7   : > { %1032 = vmatpush3.bf16.msra.mxu0 (!%p200_p2), %v1103_v0  ;;  %1087 = vmatpush3.bf16.msra.mxu1 (!%p200_p2), %v1103_v0  ;;  %v1109_v8 = vld [vmem:[%s1566_s3 + $0x30] sm:$0xff] (!%p200_p2)   ;;  %v1110_v9 = vld [vmem:[%s1566_s3 + $0x38] sm:$0xff] (!%p200_p2)   ;;  %v251_v24 = vld [vmem:[%s1564_s1] sm:$0x1] (!%p200_p2)  ;;  %v663_v44 = vshrl.u32 (!%p200_p2), %v662_v38, 7 }
   0x8   : > { %1033 = vmatprep.subr.bf16.mxu0 (!%p200_p2), %v1104_v1  ;;  %1080 = vmatprep.subr.bf16.mxu1 (!%p200_p2), %v1104_v1  ;;  %v264_v25 = vld [vmem:[%s1567_s4] sm:$0x1] (!%p200_p2)  ;;  %v252_v26 = vmul.f32 (!%p200_p2), 0.001953125, %v251_v24  ;;  %v253_v27 = vld [vmem:[%s1564_s1 + $0x1] sm:$0x1] (!%p200_p2) }
   0x9   : > { %v265_v28 = vmul.f32 (!%p200_p2), 0.001953125, %v264_v25  ;;  %v266_v29 = vld [vmem:[%s1567_s4 + $0x1] sm:$0x1] (!%p200_p2)  ;;  %v254_v30 = vmul.f32 (!%p200_p2), 0.001953125, %v253_v27  ;;  %v257_v40 = vld [vmem:[%s1564_s1 + $0x2] sm:$0x1] (!%p200_p2) }
   0xa   : > { %v255_v31 = vmul.f32 (!%p200_p2), %v252_v26, %v252_v26  ;;  %v267_v32 = vmul.f32 (!%p200_p2), 0.001953125, %v266_v29  ;;  %v270_v42 = vld [vmem:[%s1567_s4 + $0x2] sm:$0x1] (!%p200_p2)  ;;  %v664_v47 = vsub.s32 (!%p200_p2), 0, %v663_v44  ;;  %v261_v48 = vld [vmem:[%s1564_s1 + $0x3] sm:$0x1] (!%p200_p2) }
   0xb   : > { %1034 = vmatpush3.bf16.msra.mxu0 (!%p200_p2), %v1104_v1  ;;  %1088 = vmatpush3.bf16.msra.mxu1 (!%p200_p2), %v1104_v1  ;;  %v268_v33 = vmul.f32 (!%p200_p2), %v265_v28, %v265_v28  ;;  %v274_v50 = vld [vmem:[%s1567_s4 + $0x3] sm:$0x1] (!%p200_p2) }
   0xc   : > { %1035 = vmatprep.subr.bf16.mxu0 (!%p200_p2), %v1105_v2  ;;  %1081 = vmatprep.subr.bf16.mxu1 (!%p200_p2), %v1105_v2  ;;  %v256_v34 = vsub.f32 (!%p200_p2), %v254_v30, %v255_v31 }
   0xd   : > { %s1570_s22 = smov (!%p233_p3, %s975_s22), 63  ;;  %v269_v35 = vsub.f32 %v267_v32, %v268_v33 }
   0xe   : > { %s978_s27 = sshll.u32 %s1570_s22, 2  ;;  %v258_v36 = vadd.f32 1e-05, %v256_v34  ;;  %s976_s30 = sshll.u32 %s1570_s22, 3 }
   0xf   : > { %s1195_s7 = scalar_lea.vmem %s1565_s2, %s978_s27  ;;  %1036 = vmatpush3.bf16.msra.mxu0 %v1105_v2  ;;  %1089 = vmatpush3.bf16.msra.mxu1 %v1105_v2  ;;  %v271_v37 = vadd.f32 1e-05, %v269_v35  ;;  %s1252_s10 = scalar_lea.vmem %s1563_s0, %s976_s30 }
  0x10   : > { %v1111_v4 = vld [vmem:[%s1195_s7] sm:$0xff]   ;;  %1037 = vmatprep.subr.bf16.mxu0 %v1106_v3  ;;  %1082 = vmatprep.subr.bf16.mxu1 %v1106_v3  ;;  %v1113_v10 = vld [vmem:[%s1195_s7 + $0x8] sm:$0xff]   ;;  %v1115_v12 = vld [vmem:[%s1195_s7 + $0x10] sm:$0xff]   ;;  %1127 = vrsqrt.f32 %v258_v36  ;;  %s1446_s15 = scalar_lea.vmem %s1568_s5, %s976_s30 }
  0x11   : > { %v1112_v5 = vld [vmem:[%s1195_s7 + $0x40] sm:$0xff]   ;;  %1047 = vmatprep.mubr.bf16.mxu0 %v1111_v4  ;;  %v1114_v11 = vld [vmem:[%s1195_s7 + $0x48] sm:$0xff]   ;;  %v1116_v13 = vld [vmem:[%s1195_s7 + $0x50] sm:$0xff]   ;;  %1129 = vrsqrt.f32 %v271_v37 }
  0x12   : > { %1063 = vmatprep.mubr.bf16.mxu1 %v1112_v5  ;;  %v1117_v14 = vld [vmem:[%s1195_s7 + $0x18] sm:$0xff]   ;;  %v1119_v16 = vld [vmem:[%s1195_s7 + $0x20] sm:$0xff]   ;;  %v1121_v18 = vld [vmem:[%s1195_s7 + $0x28] sm:$0xff]  }
  0x13   : > { %1038 = vmatpush3.bf16.msra.mxu0 %v1106_v3  ;;  %1090 = vmatpush3.bf16.msra.mxu1 %v1106_v3  ;;  %v1118_v15 = vld [vmem:[%s1195_s7 + $0x58] sm:$0xff]   ;;  %v1120_v17 = vld [vmem:[%s1195_s7 + $0x60] sm:$0xff]   ;;  %v1122_v19 = vld [vmem:[%s1195_s7 + $0x68] sm:$0xff]  }
  0x14   : > { %1039 = vmatprep.subr.bf16.mxu0 %v1107_v6  ;;  %1083 = vmatprep.subr.bf16.mxu1 %v1107_v6  ;;  %v1123_v20 = vld [vmem:[%s1195_s7 + $0x30] sm:$0xff]   ;;  %v1125_v22 = vld [vmem:[%s1195_s7 + $0x38] sm:$0xff]   ;;  %v630_v56 = vld [vmem:[%s1252_s10] sm:$0xff] }
  0x15   : > { %v1124_v21 = vld [vmem:[%s1195_s7 + $0x70] sm:$0xff]   ;;  %v1126_v23 = vld [vmem:[%s1195_s7 + $0x78] sm:$0xff]   ;;  %v646_v57 = vld [vmem:[%s1252_s10 + $0x80] sm:$0xff] }
  0x16   : > { %v632_v54 = vld [vmem:[%s1252_s10 + $0x10] sm:$0xff]  ;;  %v633_v58 = vld [vmem:[%s1252_s10 + $0x18] sm:$0xff]  ;;  %v631_v60 = vld [vmem:[%s1252_s10 + $0x8] sm:$0xff] }
  0x17   : > { %1040 = vmatpush3.bf16.msra.mxu0 %v1107_v6  ;;  %1091 = vmatpush3.bf16.msra.mxu1 %v1107_v6  ;;  %v648_v55 = vld [vmem:[%s1252_s10 + $0x90] sm:$0xff]  ;;  %v649_v59 = vld [vmem:[%s1252_s10 + $0x98] sm:$0xff]  ;;  %v647_v61 = vld [vmem:[%s1252_s10 + $0x88] sm:$0xff] }
  0x18   : > { %1041 = vmatprep.subr.bf16.mxu0 %v1108_v7  ;;  %1084 = vmatprep.subr.bf16.mxu1 %v1108_v7  ;;  %v636_v62 = vld [vmem:[%s1252_s10 + $0x30] sm:$0xff]  ;;  %v634_v3 = vld [vmem:[%s1252_s10 + $0x20] sm:$0xff]  ;;  %v641_v37 = vld [vmem:[%s1252_s10 + $0x58] sm:$0xff] }
  0x19   : > { %v652_v2 = vld [vmem:[%s1252_s10 + $0xb0] sm:$0xff]  ;;  %v650_v4 = vld [vmem:[%s1252_s10 + $0xa0] sm:$0xff]  ;;  %v657_v38 = vld [vmem:[%s1252_s10 + $0xd8] sm:$0xff] }
  0x1a   : > { %v1128_v39 = vpop.eup %1127  ;;  %v640_v29 = vld [vmem:[%s1252_s10 + $0x50] sm:$0xff]  ;;  %v638_v31 = vld [vmem:[%s1252_s10 + $0x40] sm:$0xff]  ;;  %v655_v44 = vld [vmem:[%s1252_s10 + $0xc8] sm:$0xff] }
  0x1b   : > { %1042 = vmatpush3.bf16.msra.mxu0 %v1108_v7  ;;  %1092 = vmatpush3.bf16.msra.mxu1 %v1108_v7  ;;  %v1130_v41 = vpop.eup %1129  ;;  %v260_v43 = vmul.f32 %v1128_v39, %v257_v40  ;;  %v656_v30 = vld [vmem:[%s1252_s10 + $0xd0] sm:$0xff]  ;;  %v654_v36 = vld [vmem:[%s1252_s10 + $0xc0] sm:$0xff] }
  0x1c   : > { %1043 = vmatprep.subr.bf16.mxu0 %v1109_v8  ;;  %1085 = vmatprep.subr.bf16.mxu1 %v1109_v8  ;;  %v273_v45 = vmul.f32 %v1130_v41, %v270_v42 }
  0x1d   : > { %v262_v46 = vmul.f32 %v260_v43, %v252_v26  ;;  %v1257_v52 = vrot.slane %v260_v43, %v664_v47  ;;  %v639_v43 = vld [vmem:[%s1252_s10 + $0x48] sm:$0xff] }
  0x1e   : > { %v275_v49 = vmul.f32 %v273_v45, %v265_v28  ;;  %v1275_v5 = vrot.slane %v273_v45, %v664_v47  ;;  %v644_v45 = vld [vmem:[%s1252_s10 + $0x70] sm:$0xff] }
  0x1f   : > { %1044 = vmatpush3.bf16.msra.mxu0 %v1109_v8  ;;  %1093 = vmatpush3.bf16.msra.mxu1 %v1109_v8  ;;  %v263_v51 = vsub.f32 %v261_v48, %v262_v46  ;;  %v668_v63 = vmul.f32 %v1257_v52, %v632_v54  ;;  %v684_v1 = vmul.f32 %v1257_v52, %v648_v55 }
  0x20   : > { %1045 = vmatprep.subr.bf16.mxu0 %v1110_v9  ;;  %1086 = vmatprep.subr.bf16.mxu1 %v1110_v9  ;;  %v276_v53 = vsub.f32 %v274_v50, %v275_v49  ;;  %v666_v7 = vmul.f32 %v1257_v52, %v630_v56  ;;  %v682_v8 = vmul.f32 %v1257_v52, %v646_v57  ;;  %v660_v50 = vld [vmem:[%s1252_s10 + $0xf0] sm:$0xff] }
  0x21   : > { %v1269_v0 = vrot.slane %v263_v51, %v664_v47  ;;  %v676_v48 = vmul.f32 %v1257_v52, %v640_v29  ;;  %v692_v49 = vmul.f32 %v1257_v52, %v656_v30  ;;  %v642_v51 = vld [vmem:[%s1252_s10 + $0x60] sm:$0xff]  ;;  %v674_v56 = vmul.f32 %v1257_v52, %v638_v31 }
  0x22   : > { %v1277_v6 = vrot.slane %v276_v53, %v664_v47  ;;  %v658_v53 = vld [vmem:[%s1252_s10 + $0xe0] sm:$0xff]  ;;  %v690_v57 = vmul.f32 %v1257_v52, %v654_v36 }
  0x23   : > { %1046 = vmatpush3.bf16.msra.mxu0 %v1110_v9  ;;  %1094 = vmatpush3.bf16.msra.mxu1 %v1110_v9  ;;  %v637_v9 = vld [vmem:[%s1252_s10 + $0x38] sm:$0xff]  ;;  %v1302_v25 = vadd.f32 %v1269_v0, %v666_v7  ;;  %v1305_v26 = vadd.f32 %v1269_v0, %v682_v8  ;;  %v678_v7 = vmul.f32 %v1257_v52, %v642_v51 }
  0x24   : > { %v694_v8 = vmul.f32 %v1257_v52, %v658_v53 }
  0x26   : > { %1048 = vmatmul.mubr.bf16.vlgmr.msra.gmra.mrb[0].mxu0 %v1113_v10  ;;  %1064 = vmatmul.mubr.bf16.vlgmr.msra.gmra.mrb[0].mxu1 %v1114_v11  ;;  %v653_v10 = vld [vmem:[%s1252_s10 + $0xb8] sm:$0xff]  ;;  %v669_v11 = vmul.f32 %v1257_v52, %v633_v58  ;;  %v1411_v29 = vadd.f32 %v1269_v0, %v694_v8 }
  0x27   : > { %1051 = vmatprep.mubr.bf16.mxu0 %v1115_v12  ;;  %1067 = vmatprep.mubr.bf16.mxu1 %v1116_v13  ;;  %v685_v12 = vmul.f32 %v1257_v52, %v649_v59  ;;  %v667_v13 = vmul.f32 %v1257_v52, %v631_v60  ;;  %v689_v24 = vmul.f32 %v1257_v52, %v653_v10  ;;  %v645_v58 = vld [vmem:[%s1252_s10 + $0x78] sm:$0xff] }
  0x28   : > { %v1313_v32 = vadd.f32 %v1269_v0, %v669_v11  ;;  %v661_v59 = vld [vmem:[%s1252_s10 + $0xf8] sm:$0xff]  ;;  %v677_v60 = vmul.f32 %v1257_v52, %v641_v37  ;;  %v1377_v10 = vadd.f32 %v1269_v0, %v692_v49  ;;  %v681_v11 = vmul.f32 %v1257_v52, %v645_v58 }
  0x29   : > { %v1316_v33 = vadd.f32 %v1269_v0, %v685_v12  ;;  %v1319_v34 = vadd.f32 %v1269_v0, %v667_v13  ;;  %v1346_v47 = vadd.f32 %v1269_v0, %v689_v24  ;;  %v697_v12 = vmul.f32 %v1257_v52, %v661_v59 }
  0x2a   : > { %v1382_v13 = vadd.f32 %v1269_v0, %v674_v56 }
  0x2e   : > { %1052 = vmatmul.mubr.bf16.gmra.mrb[4].mxu0 %v1117_v14  ;;  %1068 = vmatmul.mubr.bf16.gmra.mrb[4].mxu1 %v1118_v15  ;;  %v683_v14 = vmul.f32 %v1257_v52, %v647_v61  ;;  %v635_v15 = vld [vmem:[%s1252_s10 + $0x28] sm:$0xff]  ;;  %v693_v61 = vmul.f32 %v1257_v52, %v657_v38  ;;  %v1416_v38 = vadd.f32 %v1269_v0, %v681_v11 }
  0x2f   : > { %1055 = vmatprep.mubr.bf16.mxu0 %v1119_v16  ;;  %1071 = vmatprep.mubr.bf16.mxu1 %v1120_v17  ;;  %v651_v16 = vld [vmem:[%s1252_s10 + $0xa8] sm:$0xff]  ;;  %v672_v17 = vmul.f32 %v1257_v52, %v636_v62  ;;  %v671_v27 = vmul.f32 %v1257_v52, %v635_v15  ;;  %v675_v62 = vmul.f32 %v1257_v52, %v639_v43 }
  0x30   : > { %v687_v28 = vmul.f32 %v1257_v52, %v651_v16  ;;  %v1322_v35 = vadd.f32 %v1269_v0, %v683_v14  ;;  %v1385_v14 = vadd.f32 %v1269_v0, %v690_v57  ;;  %v1419_v43 = vadd.f32 %v1269_v0, %v697_v12 }
  0x31   : > { %v1328_v39 = vadd.f32 %v1269_v0, %v672_v17  ;;  %v1354_v54 = vadd.f32 %v1269_v0, %v671_v27  ;;  %v1390_v17 = vadd.f32 %v1269_v0, %v677_v60 }
  0x32   : > { %v1357_v55 = vadd.f32 %v1269_v0, %v687_v28 }
  0x36   : > { %1056 = vmatmul.mubr.bf16.gmra.mrb[8].mxu0 %v1121_v18  ;;  %1072 = vmatmul.mubr.bf16.gmra.mrb[8].mxu1 %v1122_v19  ;;  %v688_v18 = vmul.f32 %v1257_v52, %v652_v2  ;;  %v670_v19 = vmul.f32 %v1257_v52, %v634_v3  ;;  %v659_v2 = vld [vmem:[%s1252_s10 + $0xe8] sm:$0xff]  ;;  %v680_v3 = vmul.f32 %v1257_v52, %v644_v45 }
  0x37   : > { %1059 = vmatprep.mubr.bf16.mxu0 %v1123_v20  ;;  %1075 = vmatprep.mubr.bf16.mxu1 %v1124_v21  ;;  %v686_v20 = vmul.f32 %v1257_v52, %v650_v4  ;;  %v1294_v21 = vadd.f32 %v1269_v0, %v668_v63  ;;  %v691_v63 = vmul.f32 %v1257_v52, %v655_v44 }
  0x38   : > { %v1331_v40 = vadd.f32 %v1269_v0, %v688_v18  ;;  %v1334_v41 = vadd.f32 %v1269_v0, %v670_v19  ;;  %v696_v4 = vmul.f32 %v1257_v52, %v660_v50  ;;  %v695_v16 = vmul.f32 %v1257_v52, %v659_v2 }
  0x39   : > { %v1337_v42 = vadd.f32 %v1269_v0, %v686_v20  ;;  %v1393_v18 = vadd.f32 %v1269_v0, %v693_v61  ;;  %v1396_v19 = vadd.f32 %v1269_v0, %v675_v62  ;;  %v1399_v20 = vadd.f32 %v1269_v0, %v691_v63 }
  0x3a   : > { %v1402_v27 = vadd.f32 %v1269_v0, %v680_v3  ;;  %v1405_v28 = vadd.f32 %v1269_v0, %v696_v4  ;;  %v1427_v51 = vadd.f32 %v1269_v0, %v695_v16 }
  0x3e   : > { %1060 = vmatmul.mubr.bf16.gmra.mrb[12].mxu0 %v1125_v22  ;;  %1076 = vmatmul.mubr.bf16.gmra.mrb[12].mxu1 %v1126_v23  ;;  %v1297_v22 = vadd.f32 %v1269_v0, %v684_v1  ;;  %v673_v23 = vmul.f32 %v1257_v52, %v637_v9  ;;  %v643_v1 = vld [vmem:[%s1252_s10 + $0x68] sm:$0xff]  ;;  %v1374_v9 = vadd.f32 %v1269_v0, %v676_v48 }
  0x3f   : > { %v679_v15 = vmul.f32 %v1257_v52, %v643_v1  ;;  %v1408_v52 = vadd.f32 %v1269_v0, %v678_v7 }
  0x40   : > { %v1343_v46 = vadd.f32 %v1269_v0, %v673_v23 }
  0x41   : > { %v1424_v50 = vadd.f32 %v1269_v0, %v679_v15 }
  0xf9   : > { %v1049_v23 = vpop.f32.mrb[0].mxu0  ;;  %v1065_v24 = vpop.f32.mrb[0].mxu1 }
  0xfa   : > { %v740_v30 = vmul.f32 %v1049_v23, %v1275_v5  ;;  %v756_v31 = vmul.f32 %v1065_v24, %v1275_v5  ;;  %v503_v36 = vpop.f32.mrb[1].mxu0  ;;  %v567_v37 = vpop.f32.mrb[1].mxu1 }
  0xfb   : > { %v738_v44 = vmul.f32 %v1275_v5, %v503_v36  ;;  %v754_v45 = vmul.f32 %v1275_v5, %v567_v37  ;;  %v1050_v48 = vpop.f32.mrb[2].mxu0  ;;  %v1066_v49 = vpop.f32.mrb[2].mxu1 }
  0xfc   : > { %v776_v53 = vadd.f32 %v1277_v6, %v740_v30  ;;  %v792_v56 = vadd.f32 %v1277_v6, %v756_v31  ;;  %v741_v57 = vmul.f32 %v1050_v48, %v1275_v5  ;;  %v757_v58 = vmul.f32 %v1066_v49, %v1275_v5  ;;  %v506_v59 = vpop.f32.mrb[3].mxu0  ;;  %v570_v60 = vpop.f32.mrb[3].mxu1 }
  0xfd   : > { %v774_v61 = vadd.f32 %v1277_v6, %v738_v44  ;;  %v790_v62 = vadd.f32 %v1277_v6, %v754_v45  ;;  %v739_v63 = vmul.f32 %v1275_v5, %v506_v59  ;;  %v755_v1 = vmul.f32 %v1275_v5, %v570_v60 }
  0xfe   : > { %v808_v0 = vadd.f32 %v776_v53, %v1294_v21  ;;  %v824_v2 = vadd.f32 %v792_v56, %v1297_v22  ;;  %v777_v3 = vadd.f32 %v1277_v6, %v741_v57  ;;  %v793_v4 = vadd.f32 %v1277_v6, %v757_v58 }
  0xff   : > { %v806_v7 = vadd.f32 %v774_v61, %v1302_v25  ;;  %v822_v8 = vadd.f32 %v790_v62, %v1305_v26  ;;  %v775_v21 = vadd.f32 %v1277_v6, %v739_v63  ;;  %v791_v22 = vadd.f32 %v1277_v6, %v755_v1 }
 0x100   : > { %v840_v11 = vmax.f32 %v808_v0, 0.0  ;;  %v856_v12 = vmax.f32 %v824_v2, 0.0  ;;  %v809_v15 = vadd.f32 %v777_v3, %v1313_v32  ;;  %v825_v16 = vadd.f32 %v793_v4, %v1316_v33 }
 0x101   : > { %v838_v23 = vmax.f32 %v806_v7, 0.0  ;;  %v854_v24 = vmax.f32 %v822_v8, 0.0  ;;  %v807_v30 = vadd.f32 %v775_v21, %v1319_v34  ;;  %v823_v25 = vadd.f32 %v791_v22, %v1322_v35  ;;  %v1053_v31 = vpop.f32.mrb[4].mxu0  ;;  %v1069_v26 = vpop.f32.mrb[4].mxu1 }
 0x102   : > { %872 = vst [vmem:[%s1446_s15 + $0x10] sm:$0xff] %v840_v11  ;;  %888 = vst [vmem:[%s1446_s15 + $0x90] sm:$0xff] %v856_v12  ;;  %v841_v36 = vmax.f32 %v809_v15, 0.0  ;;  %v857_v37 = vmax.f32 %v825_v16, 0.0  ;;  %v744_v32 = vmul.f32 %v1053_v31, %v1275_v5  ;;  %v760_v44 = vmul.f32 %v1069_v26, %v1275_v5  ;;  %v519_v33 = vpop.f32.mrb[5].mxu0  ;;  %v583_v45 = vpop.f32.mrb[5].mxu1 }
 0x103   : > { %870 = vst [vmem:[%s1446_s15] sm:$0xff] %v838_v23  ;;  %886 = vst [vmem:[%s1446_s15 + $0x80] sm:$0xff] %v854_v24  ;;  %v839_v34 = vmax.f32 %v807_v30, 0.0  ;;  %v855_v35 = vmax.f32 %v823_v25, 0.0  ;;  %v742_v48 = vmul.f32 %v1275_v5, %v519_v33  ;;  %v758_v49 = vmul.f32 %v1275_v5, %v583_v45  ;;  %v1054_v53 = vpop.f32.mrb[6].mxu0  ;;  %v1070_v56 = vpop.f32.mrb[6].mxu1 }
 0x104   : > { %873 = vst [vmem:[%s1446_s15 + $0x18] sm:$0xff] %v841_v36  ;;  %889 = vst [vmem:[%s1446_s15 + $0x98] sm:$0xff] %v857_v37  ;;  %v780_v57 = vadd.f32 %v1277_v6, %v744_v32  ;;  %v796_v58 = vadd.f32 %v1277_v6, %v760_v44  ;;  %v745_v59 = vmul.f32 %v1054_v53, %v1275_v5  ;;  %v522_v61 = vpop.f32.mrb[7].mxu0  ;;  %v586_v62 = vpop.f32.mrb[7].mxu1 }
 0x105   : > { %v761_v60 = vmul.f32 %v1070_v56, %v1275_v5  ;;  %871 = vst [vmem:[%s1446_s15 + $0x8] sm:$0xff] %v839_v34  ;;  %887 = vst [vmem:[%s1446_s15 + $0x88] sm:$0xff] %v855_v35  ;;  %v778_v63 = vadd.f32 %v1277_v6, %v742_v48  ;;  %v794_v1 = vadd.f32 %v1277_v6, %v758_v49 }
 0x106   : > { %v743_v0 = vmul.f32 %v1275_v5, %v522_v61  ;;  %v759_v2 = vmul.f32 %v1275_v5, %v586_v62  ;;  %v812_v3 = vadd.f32 %v780_v57, %v1328_v39  ;;  %v828_v4 = vadd.f32 %v796_v58, %v1331_v40 }
 0x107   : > { %v781_v7 = vadd.f32 %v1277_v6, %v745_v59  ;;  %v797_v8 = vadd.f32 %v1277_v6, %v761_v60  ;;  %v810_v21 = vadd.f32 %v778_v63, %v1334_v41  ;;  %v826_v22 = vadd.f32 %v794_v1, %v1337_v42 }
 0x108   : > { %v779_v11 = vadd.f32 %v1277_v6, %v743_v0  ;;  %v795_v12 = vadd.f32 %v1277_v6, %v759_v2  ;;  %v844_v15 = vmax.f32 %v812_v3, 0.0  ;;  %v860_v16 = vmax.f32 %v828_v4, 0.0 }
 0x109   : > { %v813_v39 = vadd.f32 %v781_v7, %v1343_v46  ;;  %v829_v40 = vadd.f32 %v797_v8, %v1346_v47  ;;  %v842_v23 = vmax.f32 %v810_v21, 0.0  ;;  %v858_v24 = vmax.f32 %v826_v22, 0.0  ;;  %v1057_v25 = vpop.f32.mrb[8].mxu0  ;;  %v1073_v42 = vpop.f32.mrb[8].mxu1 }
 0x10a   : > { %v811_v30 = vadd.f32 %v779_v11, %v1354_v54  ;;  %v827_v41 = vadd.f32 %v795_v12, %v1357_v55  ;;  %876 = vst [vmem:[%s1446_s15 + $0x30] sm:$0xff] %v844_v15  ;;  %892 = vst [vmem:[%s1446_s15 + $0xb0] sm:$0xff] %v860_v16  ;;  %v748_v46 = vmul.f32 %v1057_v25, %v1275_v5  ;;  %v535_v47 = vpop.f32.mrb[9].mxu0  ;;  %v599_v37 = vpop.f32.mrb[9].mxu1 }
 0x10b   : > { %v845_v31 = vmax.f32 %v813_v39, 0.0  ;;  %v861_v26 = vmax.f32 %v829_v40, 0.0  ;;  %v764_v36 = vmul.f32 %v1073_v42, %v1275_v5  ;;  %874 = vst [vmem:[%s1446_s15 + $0x20] sm:$0xff] %v842_v23  ;;  %890 = vst [vmem:[%s1446_s15 + $0xa0] sm:$0xff] %v858_v24  ;;  %v746_v32 = vmul.f32 %v1275_v5, %v535_v47  ;;  %v1058_v33 = vpop.f32.mrb[10].mxu0  ;;  %v1074_v45 = vpop.f32.mrb[10].mxu1 }
 0x10c   : > { %v843_v54 = vmax.f32 %v811_v30, 0.0  ;;  %v859_v55 = vmax.f32 %v827_v41, 0.0  ;;  %v762_v44 = vmul.f32 %v1275_v5, %v599_v37  ;;  %v784_v34 = vadd.f32 %v1277_v6, %v748_v46  ;;  %v538_v53 = vpop.f32.mrb[11].mxu0  ;;  %v602_v56 = vpop.f32.mrb[11].mxu1 }
 0x10d   : > { %877 = vst [vmem:[%s1446_s15 + $0x38] sm:$0xff] %v845_v31  ;;  %893 = vst [vmem:[%s1446_s15 + $0xb8] sm:$0xff] %v861_v26  ;;  %v800_v35 = vadd.f32 %v1277_v6, %v764_v36  ;;  %v749_v48 = vmul.f32 %v1058_v33, %v1275_v5  ;;  %v765_v49 = vmul.f32 %v1074_v45, %v1275_v5 }
 0x10e   : > { %875 = vst [vmem:[%s1446_s15 + $0x28] sm:$0xff] %v843_v54  ;;  %891 = vst [vmem:[%s1446_s15 + $0xa8] sm:$0xff] %v859_v55  ;;  %v782_v57 = vadd.f32 %v1277_v6, %v746_v32  ;;  %v798_v58 = vadd.f32 %v1277_v6, %v762_v44  ;;  %v747_v59 = vmul.f32 %v1275_v5, %v538_v53 }
 0x10f   : > { %v763_v60 = vmul.f32 %v1275_v5, %v602_v56  ;;  %v816_v61 = vadd.f32 %v784_v34, %v1374_v9  ;;  %v832_v62 = vadd.f32 %v800_v35, %v1377_v10  ;;  %v785_v63 = vadd.f32 %v1277_v6, %v749_v48 }
 0x110   : > { %v801_v1 = vadd.f32 %v1277_v6, %v765_v49  ;;  %v814_v0 = vadd.f32 %v782_v57, %v1382_v13  ;;  %v830_v2 = vadd.f32 %v798_v58, %v1385_v14  ;;  %v783_v3 = vadd.f32 %v1277_v6, %v747_v59 }
 0x111   : > { %v799_v4 = vadd.f32 %v1277_v6, %v763_v60  ;;  %v848_v7 = vmax.f32 %v816_v61, 0.0  ;;  %v864_v8 = vmax.f32 %v832_v62, 0.0  ;;  %v817_v9 = vadd.f32 %v785_v63, %v1390_v17  ;;  %v1061_v12 = vpop.f32.mrb[12].mxu0  ;;  %v1077_v14 = vpop.f32.mrb[12].mxu1 }
 0x112   : > { %v833_v10 = vadd.f32 %v801_v1, %v1393_v18  ;;  %v846_v21 = vmax.f32 %v814_v0, 0.0  ;;  %v862_v22 = vmax.f32 %v830_v2, 0.0  ;;  %v815_v11 = vadd.f32 %v783_v3, %v1396_v19  ;;  %v551_v18 = vpop.f32.mrb[13].mxu0  ;;  %v615_v40 = vpop.f32.mrb[13].mxu1 }
 0x113   : > { %v831_v13 = vadd.f32 %v799_v4, %v1399_v20  ;;  %880 = vst [vmem:[%s1446_s15 + $0x50] sm:$0xff] %v848_v7  ;;  %896 = vst [vmem:[%s1446_s15 + $0xd0] sm:$0xff] %v864_v8  ;;  %v849_v15 = vmax.f32 %v817_v9, 0.0  ;;  %v752_v17 = vmul.f32 %v1061_v12, %v1275_v5  ;;  %v768_v39 = vmul.f32 %v1077_v14, %v1275_v5  ;;  %v1062_v30 = vpop.f32.mrb[14].mxu0  ;;  %v1078_v41 = vpop.f32.mrb[14].mxu1 }
 0x114   : > { %v865_v16 = vmax.f32 %v833_v10, 0.0  ;;  %878 = vst [vmem:[%s1446_s15 + $0x40] sm:$0xff] %v846_v21  ;;  %894 = vst [vmem:[%s1446_s15 + $0xc0] sm:$0xff] %v862_v22  ;;  %v847_v19 = vmax.f32 %v815_v11, 0.0  ;;  %v750_v23 = vmul.f32 %v1275_v5, %v551_v18  ;;  %v766_v24 = vmul.f32 %v1275_v5, %v615_v40  ;;  %v554_v46 = vpop.f32.mrb[15].mxu0  ;;  %v618_v36 = vpop.f32.mrb[15].mxu1 }
 0x115   : > { %v863_v20 = vmax.f32 %v831_v13, 0.0  ;;  %881 = vst [vmem:[%s1446_s15 + $0x58] sm:$0xff] %v849_v15  ;;  %v788_v25 = vadd.f32 %v1277_v6, %v752_v17  ;;  %v804_v42 = vadd.f32 %v1277_v6, %v768_v39  ;;  %v753_v31 = vmul.f32 %v1062_v30, %v1275_v5 }
 0x116   : > { %897 = vst [vmem:[%s1446_s15 + $0xd8] sm:$0xff] %v865_v16  ;;  %v769_v26 = vmul.f32 %v1078_v41, %v1275_v5  ;;  %879 = vst [vmem:[%s1446_s15 + $0x48] sm:$0xff] %v847_v19  ;;  %v786_v47 = vadd.f32 %v1277_v6, %v750_v23  ;;  %v802_v37 = vadd.f32 %v1277_v6, %v766_v24 }
 0x117   : > { %895 = vst [vmem:[%s1446_s15 + $0xc8] sm:$0xff] %v863_v20  ;;  %v751_v54 = vmul.f32 %v1275_v5, %v554_v46  ;;  %v767_v55 = vmul.f32 %v1275_v5, %v618_v36  ;;  %v820_v32 = vadd.f32 %v788_v25, %v1402_v27  ;;  %v836_v44 = vadd.f32 %v804_v42, %v1405_v28 }
 0x118   : > { %v789_v33 = vadd.f32 %v1277_v6, %v753_v31  ;;  %v805_v45 = vadd.f32 %v1277_v6, %v769_v26  ;;  %v818_v34 = vadd.f32 %v786_v47, %v1408_v52  ;;  %v834_v35 = vadd.f32 %v802_v37, %v1411_v29 }
 0x119   : > { %v787_v48 = vadd.f32 %v1277_v6, %v751_v54  ;;  %v803_v5 = vadd.f32 %v1277_v6, %v767_v55  ;;  %v852_v49 = vmax.f32 %v820_v32, 0.0  ;;  %v868_v27 = vmax.f32 %v836_v44, 0.0 }
 0x11a   : > { %v821_v28 = vadd.f32 %v789_v33, %v1416_v38  ;;  %v837_v53 = vadd.f32 %v805_v45, %v1419_v43  ;;  %v850_v56 = vmax.f32 %v818_v34, 0.0  ;;  %v866_v52 = vmax.f32 %v834_v35, 0.0 }
 0x11b   : > { %v819_v57 = vadd.f32 %v787_v48, %v1424_v50  ;;  %v835_v29 = vadd.f32 %v803_v5, %v1427_v51  ;;  %884 = vst [vmem:[%s1446_s15 + $0x70] sm:$0xff] %v852_v49  ;;  %900 = vst [vmem:[%s1446_s15 + $0xf0] sm:$0xff] %v868_v27 }
 0x11c   : > { %v853_v58 = vmax.f32 %v821_v28, 0.0  ;;  %v869_v6 = vmax.f32 %v837_v53, 0.0  ;;  %882 = vst [vmem:[%s1446_s15 + $0x60] sm:$0xff] %v850_v56  ;;  %898 = vst [vmem:[%s1446_s15 + $0xe0] sm:$0xff] %v866_v52 }
 0x11d   : > { %v851_v59 = vmax.f32 %v819_v57, 0.0  ;;  %v867_v60 = vmax.f32 %v835_v29, 0.0 }
 0x11e   : > { %885 = vst [vmem:[%s1446_s15 + $0x78] sm:$0xff] %v853_v58  ;;  %901 = vst [vmem:[%s1446_s15 + $0xf8] sm:$0xff] %v869_v6 }
 0x11f   : > { %883 = vst [vmem:[%s1446_s15 + $0x68] sm:$0xff] %v851_v59  ;;  %899 = vst [vmem:[%s1446_s15 + $0xe8] sm:$0xff] %v867_v60 }
 0x120 PF: > { %s15_s18 = sadd.s32 1, %s1137_s18  }
 0x121   : > { %p12_p4 = scmp.ge.s32.totalorder %s15_s18, 4  }
 0x123   :  { %14 = sbr.rel (!%p12_p4) target bundleno = 1 (0x1), region = 73 }

</bundles_post_ra>
